<compile_context>
chip_gen: v7x
topology: tpu7x:2x2x1
jax: 0.10.0
libtpu: 0.0.40
codegen_flags: <defaults>
</compile_context>

<pallas_src>
import jax
import jax.numpy as jnp
import numpy as np
from jax import lax
from jax.experimental import pallas as pl
from jax.experimental.pallas import tpu as pltpu

EPS = 1e-5

# Static sizes implied by the PyTorch module (fc1 expects 22 * 16 features -> L must be 1453).
L_IN = 1453
C_IN = 20
C1 = 16            # conv1 out channels
C2 = 16            # conv2 out channels
KSZ = 10           # conv kernel size
T1 = 361           # (L_IN - 9) // 4 after conv1 + maxpool(4,4)
T2 = 88            # (T1 - 9) // 4   after conv2 + maxpool(4,4)
T3 = 22            # T2 // 4         after avgpool(4,4)
HID = 34
OUT = 2
U1 = 92            # rows of the 16-phase input decomposition (pad L to 16*92 = 1472)
NM1 = 25           # m = 4*r2 + p + k in [0, 24]   (stage-1 combined phase index)
NM2 = 13           # m = p + k        in [0, 12]   (stage-2 combined phase index)


# ----------------------------- Pallas kernel ------------------------------- #

def _audionet_fused_kernel(xp_ref, w1_ref, b1_ref, w2_ref, b2_ref,
                           wf1_ref, bf1_ref, wf2_ref, bf2_ref, o_ref):
    # xp_ref : (1, 16, 92, 20)  xp[r, u, c] = x[16u + r, c] (time-major input, 16-phase decomposed)
    # w1_ref : (25, 20, 256)    w1[m, ci, 64*r2 + 16*p + co] = conv1_bnfolded[m - 4*r2 - p, ci, co]
    # b1_ref : (1, 16)          BN-folded conv1 bias
    # w2_ref : (13, 16, 64)     w2[m, ci, 16*p + co]        = conv2_bnfolded[m - p, ci, co]
    # b2_ref : (1, 16)          BN-folded conv2 bias
    # wf1_ref: (16, 34, 88)     wf1[c, j, t] = 0.25 * fc1_w[j, c*22 + t//4]  (avgpool+flatten folded)
    # bf1_ref: (34, 1), wf2_ref: (2, 34), bf2_ref: (2, 1)
    # o_ref  : (1, 2, 1)

    # ---- stage 1: conv1 + bn1 + relu + maxpool(4,4), all phases at once ----
    # acc1[u, 64*r2 + 16*p + c] = conv1_bn[4*(4u + r2) + p, c]
    acc1 = None
    for m in range(NM1):                       # m = 4*r2 + p + k
        rr, qq = m % 16, m // 16
        xs = xp_ref[0, rr, qq:qq + 91, :]      # (91, 20) contiguous slice (13 distinct offsets)
        t = jnp.dot(xs, w1_ref[m], preferred_element_type=jnp.float32)      # (91, 256)
        acc1 = t if acc1 is None else acc1 + t

    b1 = b1_ref[...]                           # (1, 16) -- hoisted
    p2 = []                                    # p2[r2][u, c] = pooled1[4u + r2, c]
    for r2 in range(4):
        blk = acc1[:, 64 * r2: 64 * r2 + 16]
        for p in range(1, 4):
            lo = 64 * r2 + 16 * p
            blk = jnp.maximum(blk, acc1[:, lo: lo + 16])
        p2.append(jnp.maximum(blk + b1, 0.0))  # max over phases, then bias + ReLU (exact)

    # ---- stage 2: conv2 + bn2 + relu + maxpool(4,4) ----
    acc2 = None
    for m in range(NM2):                       # m = p + k
        r, q = m % 4, m // 4
        t = jnp.dot(p2[r][q:q + T2, :], w2_ref[m],
                    preferred_element_type=jnp.float32)                      # (88, 64)
        acc2 = t if acc2 is None else acc2 + t

    res = acc2[:, 0:16]
    for p in range(1, 4):
        res = jnp.maximum(res, acc2[:, 16 * p: 16 * p + 16])
    res = jnp.maximum(res + b2_ref[...], 0.0)  # (88, 16) == maxpool2 output

    # ---- avgpool(4,4) + channel-major flatten + fc1 (all folded into wf1); dropout = identity ----
    h = bf1_ref[...]                           # (34, 1)
    for c in range(C2):
        h = h + jnp.dot(wf1_ref[c], res[:, c:c + 1],
                        preferred_element_type=jnp.float32)                  # (34,88)@(88,1)
    h = jnp.maximum(h, 0.0)

    # ---- fc2 ----
    o_ref[0] = jnp.dot(wf2_ref[...], h, preferred_element_type=jnp.float32) + bf2_ref[...]


# ------------------------- host-side parameter prep ------------------------- #

def _fold_bn(conv_w, conv_b, gamma, beta, mean, var):
    scale = gamma / jnp.sqrt(var + EPS)
    w_eff = jnp.transpose(conv_w, (2, 1, 0)) * scale[None, None, :]          # (K, Cin, Cout)
    b_eff = beta + scale * (conv_b - mean)
    return w_eff, b_eff


def _stage1_weights(w1_eff):
    # wbig1[m, ci, 64*r2 + 16*p + co] = w1_eff[m - 4*r2 - p, ci, co] (0 if tap out of range)
    m = np.arange(NM1)[:, None, None]
    r2 = np.arange(4)[None, :, None]
    p = np.arange(4)[None, None, :]
    k = m - 4 * r2 - p                                                       # (25, 4, 4)
    valid = (k >= 0) & (k < KSZ)
    kc = np.clip(k, 0, KSZ - 1)
    w = w1_eff[kc]                                                           # (25, 4, 4, 20, 16)
    w = jnp.where(jnp.asarray(valid)[..., None, None], w, 0.0)
    return jnp.transpose(w, (0, 3, 1, 2, 4)).reshape(NM1, C_IN, 4 * 4 * C1)  # (25, 20, 256)


def _stage2_weights(w2_eff):
    # wcat2[m, ci, 16*p + co] = w2_eff[m - p, ci, co] (0 if tap out of range)
    m = np.arange(NM2)[:, None]
    p = np.arange(4)[None, :]
    k = m - p
    valid = (k >= 0) & (k < KSZ)
    kc = np.clip(k, 0, KSZ - 1)
    w = w2_eff[kc]                                                           # (13, 4, 16, 16)
    w = jnp.where(jnp.asarray(valid)[..., None, None], w, 0.0)
    return jnp.transpose(w, (0, 2, 1, 3)).reshape(NM2, C1, 4 * C2)           # (13, 16, 64)


def _fc1_weights(fc1_w):
    # wf1[c, j, t] = 0.25 * fc1_w[j, c*22 + t//4]  (avgpool + PyTorch channel-major flatten folded)
    w = fc1_w.reshape(HID, C2, T3)                                           # [j, c, u]
    w = 0.25 * jnp.repeat(w, 4, axis=-1)                                     # [j, c, t], u = t // 4
    return jnp.transpose(w, (1, 0, 2))                                       # (16, 34, 88)


@jax.jit
def audionet_forward(x, p):
    """x: (B, 20, 1453) float32 (PyTorch NCL). Inference-mode forward pass."""
    B, cin, L = x.shape
    assert (cin, L) == (C_IN, L_IN)

    w1_eff, b1_eff = _fold_bn(p['conv1_w'], p['conv1_b'], p['bn1_gamma'], p['bn1_beta'],
                              p['bn1_mean'], p['bn1_var'])
    w2_eff, b2_eff = _fold_bn(p['conv2_w'], p['conv2_b'], p['bn2_gamma'], p['bn2_beta'],
                              p['bn2_mean'], p['bn2_var'])
    wbig1 = _stage1_weights(w1_eff)            # (25, 20, 256)
    wcat2 = _stage2_weights(w2_eff)            # (13, 16, 64)
    wf1 = _fc1_weights(p['fc1_w'])             # (16, 34, 88)

    # 16-phase decomposition of the input: xp[b, r, u, ci] = x[b, ci, 16u + r]
    # (zero tail beyond L never reaches a valid output position).
    Lp = 16 * U1                               # 1472
    xp = jnp.pad(x, ((0, 0), (0, 0), (0, Lp - L)))
    xp = xp.reshape(B, C_IN, U1, 16).transpose(0, 3, 2, 1)                   # (B, 16, 92, 20)

    out = pl.pallas_call(
        _audionet_fused_kernel,
        out_shape=jax.ShapeDtypeStruct((B, OUT, 1), jnp.float32),
        grid=(B,),
        in_specs=[
            pl.BlockSpec((1, 16, U1, C_IN), lambda b: (b, 0, 0, 0)),
            pl.BlockSpec((NM1, C_IN, 4 * 4 * C1), lambda b: (0, 0, 0)),
            pl.BlockSpec((1, C1), lambda b: (0, 0)),
            pl.BlockSpec((NM2, C1, 4 * C2), lambda b: (0, 0, 0)),
            pl.BlockSpec((1, C2), lambda b: (0, 0)),
            pl.BlockSpec((C2, HID, T2), lambda b: (0, 0, 0)),
            pl.BlockSpec((HID, 1), lambda b: (0, 0)),
            pl.BlockSpec((OUT, HID), lambda b: (0, 0)),
            pl.BlockSpec((OUT, 1), lambda b: (0, 0)),
        ],
        out_specs=pl.BlockSpec((1, OUT, 1), lambda b: (b, 0, 0)),
        compiler_params=pltpu.CompilerParams(dimension_semantics=("parallel",)),
    )(xp, wbig1, b1_eff.reshape(1, C1), wcat2, b2_eff.reshape(1, C2),
      wf1, p['fc1_b'].reshape(HID, 1), p['fc2_w'], p['fc2_b'].reshape(OUT, 1))
    return out[:, :, 0]


# --------------------------- pure-JAX reference ----------------------------- #

def ref_forward(x, p):
    def bn(y, g, be, m, v):
        return g[None, :, None] * (y - m[None, :, None]) / jnp.sqrt(v[None, :, None] + EPS) \
               + be[None, :, None]

    def conv1d(y, w, b):
        out = lax.conv_general_dilated(y, w, window_strides=(1,), padding='VALID',
                                       dimension_numbers=('NCH', 'OIH', 'NCH'))
        return out + b[None, :, None]

    def pool4(y, red):
        B, C, L = y.shape
        return red(y[:, :, :L // 4 * 4].reshape(B, C, L // 4, 4), axis=-1)

    y = pool4(jnp.maximum(bn(conv1d(x, p['conv1_w'], p['conv1_b']),
                             p['bn1_gamma'], p['bn1_beta'], p['bn1_mean'], p['bn1_var']), 0.0),
              jnp.max)
    y = pool4(jnp.maximum(bn(conv1d(y, p['conv2_w'], p['conv2_b']),
                             p['bn2_gamma'], p['bn2_beta'], p['bn2_mean'], p['bn2_var']), 0.0),
              jnp.max)
    y = pool4(y, jnp.mean)                                  # (B, 16, 22)
    z = y.reshape(y.shape[0], T3 * C2)
    h = jnp.maximum(z @ p['fc1_w'].T + p['fc1_b'], 0.0)
    return h @ p['fc2_w'].T + p['fc2_b']


# ---------------------------------- main ------------------------------------ #

if __name__ == "__main__":
    key = jax.random.PRNGKey(0)
    ks = jax.random.split(key, 17)
    params = dict(
        conv1_w=0.1 * jax.random.normal(ks[0], (16, 20, 10), jnp.float32),
        conv1_b=0.1 * jax.random.normal(ks[1], (16,), jnp.float32),
        bn1_gamma=1.0 + 0.1 * jax.random.normal(ks[2], (16,), jnp.float32),
        bn1_beta=0.1 * jax.random.normal(ks[3], (16,), jnp.float32),
        bn1_mean=0.1 * jax.random.normal(ks[4], (16,), jnp.float32),
        bn1_var=1.0 + 0.5 * jax.random.uniform(ks[5], (16,), jnp.float32),
        conv2_w=0.1 * jax.random.normal(ks[6], (16, 16, 10), jnp.float32),
        conv2_b=0.1 * jax.random.normal(ks[7], (16,), jnp.float32),
        bn2_gamma=1.0 + 0.1 * jax.random.normal(ks[8], (16,), jnp.float32),
        bn2_beta=0.1 * jax.random.normal(ks[9], (16,), jnp.float32),
        bn2_mean=0.1 * jax.random.normal(ks[10], (16,), jnp.float32),
        bn2_var=1.0 + 0.5 * jax.random.uniform(ks[11], (16,), jnp.float32),
        fc1_w=0.1 * jax.random.normal(ks[12], (34, 22 * 16), jnp.float32),
        fc1_b=0.1 * jax.random.normal(ks[13], (34,), jnp.float32),
        fc2_w=0.1 * jax.random.normal(ks[14], (2, 34), jnp.float32),
        fc2_b=0.1 * jax.random.normal(ks[15], (2,), jnp.float32),
    )

    # Smallest input length consistent with x.view(-1, 22*16):
    # L=1453 -> conv1:1444 -> pool:361 -> conv2:352 -> pool:88 -> avgpool:22.
    B, L = 2, L_IN
    x = jax.random.normal(ks[16], (B, 20, L), jnp.float32)

    out = jax.block_until_ready(audionet_forward(x, params))
    assert out.shape == (B, 2)

    ref = ref_forward(x, params)
    np.testing.assert_allclose(np.asarray(out), np.asarray(ref), rtol=2e-3, atol=2e-3)
    print("KERNEL_OK")
</pallas_src>

<mosaic_0001>
module attributes {stable_mosaic.version = 11 : i64} {
  func.func @_audionet_fused_kernel(%arg0: i32, %arg1: memref<1x16x92x20xf32, #tpu.memory_space<vmem>>, %arg2: memref<25x20x256xf32, #tpu.memory_space<vmem>>, %arg3: memref<1x16xf32, #tpu.memory_space<vmem>>, %arg4: memref<13x16x64xf32, #tpu.memory_space<vmem>>, %arg5: memref<1x16xf32, #tpu.memory_space<vmem>>, %arg6: memref<16x34x88xf32, #tpu.memory_space<vmem>>, %arg7: memref<34x1xf32, #tpu.memory_space<vmem>>, %arg8: memref<2x34xf32, #tpu.memory_space<vmem>>, %arg9: memref<2x1xf32, #tpu.memory_space<vmem>>, %arg10: memref<1x2x1xf32, #tpu.memory_space<vmem>>) attributes {dimension_semantics = [#tpu.dimension_semantics<parallel>], iteration_bounds = array<i64: 2>, scalar_prefetch = 0 : i64, scratch_operands = 0 : i64, tpu.core_type = #tpu.core_type<tc>, window_params = [{transform_indices = @transform_0, window_bounds = array<i64: 1, 16, 92, 20>}, {pipeline_mode = #tpu.pipeline_mode<synchronous>, transform_indices = @transform_1, window_bounds = array<i64: 25, 20, 256>}, {pipeline_mode = #tpu.pipeline_mode<synchronous>, transform_indices = @transform_2, window_bounds = array<i64: 1, 16>}, {pipeline_mode = #tpu.pipeline_mode<synchronous>, transform_indices = @transform_3, window_bounds = array<i64: 13, 16, 64>}, {pipeline_mode = #tpu.pipeline_mode<synchronous>, transform_indices = @transform_4, window_bounds = array<i64: 1, 16>}, {pipeline_mode = #tpu.pipeline_mode<synchronous>, transform_indices = @transform_5, window_bounds = array<i64: 16, 34, 88>}, {pipeline_mode = #tpu.pipeline_mode<synchronous>, transform_indices = @transform_6, window_bounds = array<i64: 34, 1>}, {pipeline_mode = #tpu.pipeline_mode<synchronous>, transform_indices = @transform_7, window_bounds = array<i64: 2, 34>}, {pipeline_mode = #tpu.pipeline_mode<synchronous>, transform_indices = @transform_8, window_bounds = array<i64: 2, 1>}, {transform_indices = @transform_9, window_bounds = array<i64: 1, 2, 1>}]} {
    %c0 = arith.constant 0 : index
    %c0_0 = arith.constant 0 : index
    %c0_1 = arith.constant 0 : index
    %c0_2 = arith.constant 0 : index
    %0 = vector.load %arg1[%c0, %c0_0, %c0_1, %c0_2] : memref<1x16x92x20xf32, #tpu.memory_space<vmem>>, vector<1x1x91x20xf32>
    %1 = vector.shape_cast %0 : vector<1x1x91x20xf32> to vector<91x20xf32>
    %c0_3 = arith.constant 0 : index
    %c0_4 = arith.constant 0 : index
    %c0_5 = arith.constant 0 : index
    %2 = vector.load %arg2[%c0_3, %c0_4, %c0_5] : memref<25x20x256xf32, #tpu.memory_space<vmem>>, vector<1x20x256xf32>
    %3 = vector.shape_cast %2 : vector<1x20x256xf32> to vector<20x256xf32>
    %cst = arith.constant dense<0.000000e+00> : vector<91x256xf32>
    %4 = tpu.matmul %1, %3, %cst {dimension_numbers = #tpu.dot_dimension_numbers<[1], [0], [0], [1], [0, 0, 1, 1], [], []>} : vector<91x20xf32>, vector<20x256xf32>, vector<91x256xf32> -> vector<91x256xf32>
    %c0_6 = arith.constant 0 : index
    %c1 = arith.constant 1 : index
    %c0_7 = arith.constant 0 : index
    %c0_8 = arith.constant 0 : index
    %5 = vector.load %arg1[%c0_6, %c1, %c0_7, %c0_8] : memref<1x16x92x20xf32, #tpu.memory_space<vmem>>, vector<1x1x91x20xf32>
    %6 = vector.shape_cast %5 : vector<1x1x91x20xf32> to vector<91x20xf32>
    %c1_9 = arith.constant 1 : index
    %c0_10 = arith.constant 0 : index
    %c0_11 = arith.constant 0 : index
    %7 = vector.load %arg2[%c1_9, %c0_10, %c0_11] : memref<25x20x256xf32, #tpu.memory_space<vmem>>, vector<1x20x256xf32>
    %8 = vector.shape_cast %7 : vector<1x20x256xf32> to vector<20x256xf32>
    %cst_12 = arith.constant dense<0.000000e+00> : vector<91x256xf32>
    %9 = tpu.matmul %6, %8, %cst_12 {dimension_numbers = #tpu.dot_dimension_numbers<[1], [0], [0], [1], [0, 0, 1, 1], [], []>} : vector<91x20xf32>, vector<20x256xf32>, vector<91x256xf32> -> vector<91x256xf32>
    %10 = arith.addf %4, %9 : vector<91x256xf32>
    %c0_13 = arith.constant 0 : index
    %c2 = arith.constant 2 : index
    %c0_14 = arith.constant 0 : index
    %c0_15 = arith.constant 0 : index
    %11 = vector.load %arg1[%c0_13, %c2, %c0_14, %c0_15] : memref<1x16x92x20xf32, #tpu.memory_space<vmem>>, vector<1x1x91x20xf32>
    %12 = vector.shape_cast %11 : vector<1x1x91x20xf32> to vector<91x20xf32>
    %c2_16 = arith.constant 2 : index
    %c0_17 = arith.constant 0 : index
    %c0_18 = arith.constant 0 : index
    %13 = vector.load %arg2[%c2_16, %c0_17, %c0_18] : memref<25x20x256xf32, #tpu.memory_space<vmem>>, vector<1x20x256xf32>
    %14 = vector.shape_cast %13 : vector<1x20x256xf32> to vector<20x256xf32>
    %cst_19 = arith.constant dense<0.000000e+00> : vector<91x256xf32>
    %15 = tpu.matmul %12, %14, %cst_19 {dimension_numbers = #tpu.dot_dimension_numbers<[1], [0], [0], [1], [0, 0, 1, 1], [], []>} : vector<91x20xf32>, vector<20x256xf32>, vector<91x256xf32> -> vector<91x256xf32>
    %16 = arith.addf %10, %15 : vector<91x256xf32>
    %c0_20 = arith.constant 0 : index
    %c3 = arith.constant 3 : index
    %c0_21 = arith.constant 0 : index
    %c0_22 = arith.constant 0 : index
    %17 = vector.load %arg1[%c0_20, %c3, %c0_21, %c0_22] : memref<1x16x92x20xf32, #tpu.memory_space<vmem>>, vector<1x1x91x20xf32>
    %18 = vector.shape_cast %17 : vector<1x1x91x20xf32> to vector<91x20xf32>
    %c3_23 = arith.constant 3 : index
    %c0_24 = arith.constant 0 : index
    %c0_25 = arith.constant 0 : index
    %19 = vector.load %arg2[%c3_23, %c0_24, %c0_25] : memref<25x20x256xf32, #tpu.memory_space<vmem>>, vector<1x20x256xf32>
    %20 = vector.shape_cast %19 : vector<1x20x256xf32> to vector<20x256xf32>
    %cst_26 = arith.constant dense<0.000000e+00> : vector<91x256xf32>
    %21 = tpu.matmul %18, %20, %cst_26 {dimension_numbers = #tpu.dot_dimension_numbers<[1], [0], [0], [1], [0, 0, 1, 1], [], []>} : vector<91x20xf32>, vector<20x256xf32>, vector<91x256xf32> -> vector<91x256xf32>
    %22 = arith.addf %16, %21 : vector<91x256xf32>
    %c0_27 = arith.constant 0 : index
    %c4 = arith.constant 4 : index
    %c0_28 = arith.constant 0 : index
    %c0_29 = arith.constant 0 : index
    %23 = vector.load %arg1[%c0_27, %c4, %c0_28, %c0_29] : memref<1x16x92x20xf32, #tpu.memory_space<vmem>>, vector<1x1x91x20xf32>
    %24 = vector.shape_cast %23 : vector<1x1x91x20xf32> to vector<91x20xf32>
    %c4_30 = arith.constant 4 : index
    %c0_31 = arith.constant 0 : index
    %c0_32 = arith.constant 0 : index
    %25 = vector.load %arg2[%c4_30, %c0_31, %c0_32] : memref<25x20x256xf32, #tpu.memory_space<vmem>>, vector<1x20x256xf32>
    %26 = vector.shape_cast %25 : vector<1x20x256xf32> to vector<20x256xf32>
    %cst_33 = arith.constant dense<0.000000e+00> : vector<91x256xf32>
    %27 = tpu.matmul %24, %26, %cst_33 {dimension_numbers = #tpu.dot_dimension_numbers<[1], [0], [0], [1], [0, 0, 1, 1], [], []>} : vector<91x20xf32>, vector<20x256xf32>, vector<91x256xf32> -> vector<91x256xf32>
    %28 = arith.addf %22, %27 : vector<91x256xf32>
    %c0_34 = arith.constant 0 : index
    %c5 = arith.constant 5 : index
    %c0_35 = arith.constant 0 : index
    %c0_36 = arith.constant 0 : index
    %29 = vector.load %arg1[%c0_34, %c5, %c0_35, %c0_36] : memref<1x16x92x20xf32, #tpu.memory_space<vmem>>, vector<1x1x91x20xf32>
    %30 = vector.shape_cast %29 : vector<1x1x91x20xf32> to vector<91x20xf32>
    %c5_37 = arith.constant 5 : index
    %c0_38 = arith.constant 0 : index
    %c0_39 = arith.constant 0 : index
    %31 = vector.load %arg2[%c5_37, %c0_38, %c0_39] : memref<25x20x256xf32, #tpu.memory_space<vmem>>, vector<1x20x256xf32>
    %32 = vector.shape_cast %31 : vector<1x20x256xf32> to vector<20x256xf32>
    %cst_40 = arith.constant dense<0.000000e+00> : vector<91x256xf32>
    %33 = tpu.matmul %30, %32, %cst_40 {dimension_numbers = #tpu.dot_dimension_numbers<[1], [0], [0], [1], [0, 0, 1, 1], [], []>} : vector<91x20xf32>, vector<20x256xf32>, vector<91x256xf32> -> vector<91x256xf32>
    %34 = arith.addf %28, %33 : vector<91x256xf32>
    %c0_41 = arith.constant 0 : index
    %c6 = arith.constant 6 : index
    %c0_42 = arith.constant 0 : index
    %c0_43 = arith.constant 0 : index
    %35 = vector.load %arg1[%c0_41, %c6, %c0_42, %c0_43] : memref<1x16x92x20xf32, #tpu.memory_space<vmem>>, vector<1x1x91x20xf32>
    %36 = vector.shape_cast %35 : vector<1x1x91x20xf32> to vector<91x20xf32>
    %c6_44 = arith.constant 6 : index
    %c0_45 = arith.constant 0 : index
    %c0_46 = arith.constant 0 : index
    %37 = vector.load %arg2[%c6_44, %c0_45, %c0_46] : memref<25x20x256xf32, #tpu.memory_space<vmem>>, vector<1x20x256xf32>
    %38 = vector.shape_cast %37 : vector<1x20x256xf32> to vector<20x256xf32>
    %cst_47 = arith.constant dense<0.000000e+00> : vector<91x256xf32>
    %39 = tpu.matmul %36, %38, %cst_47 {dimension_numbers = #tpu.dot_dimension_numbers<[1], [0], [0], [1], [0, 0, 1, 1], [], []>} : vector<91x20xf32>, vector<20x256xf32>, vector<91x256xf32> -> vector<91x256xf32>
    %40 = arith.addf %34, %39 : vector<91x256xf32>
    %c0_48 = arith.constant 0 : index
    %c7 = arith.constant 7 : index
    %c0_49 = arith.constant 0 : index
    %c0_50 = arith.constant 0 : index
    %41 = vector.load %arg1[%c0_48, %c7, %c0_49, %c0_50] : memref<1x16x92x20xf32, #tpu.memory_space<vmem>>, vector<1x1x91x20xf32>
    %42 = vector.shape_cast %41 : vector<1x1x91x20xf32> to vector<91x20xf32>
    %c7_51 = arith.constant 7 : index
    %c0_52 = arith.constant 0 : index
    %c0_53 = arith.constant 0 : index
    %43 = vector.load %arg2[%c7_51, %c0_52, %c0_53] : memref<25x20x256xf32, #tpu.memory_space<vmem>>, vector<1x20x256xf32>
    %44 = vector.shape_cast %43 : vector<1x20x256xf32> to vector<20x256xf32>
    %cst_54 = arith.constant dense<0.000000e+00> : vector<91x256xf32>
    %45 = tpu.matmul %42, %44, %cst_54 {dimension_numbers = #tpu.dot_dimension_numbers<[1], [0], [0], [1], [0, 0, 1, 1], [], []>} : vector<91x20xf32>, vector<20x256xf32>, vector<91x256xf32> -> vector<91x256xf32>
    %46 = arith.addf %40, %45 : vector<91x256xf32>
    %c0_55 = arith.constant 0 : index
    %c8 = arith.constant 8 : index
    %c0_56 = arith.constant 0 : index
    %c0_57 = arith.constant 0 : index
    %47 = vector.load %arg1[%c0_55, %c8, %c0_56, %c0_57] : memref<1x16x92x20xf32, #tpu.memory_space<vmem>>, vector<1x1x91x20xf32>
    %48 = vector.shape_cast %47 : vector<1x1x91x20xf32> to vector<91x20xf32>
    %c8_58 = arith.constant 8 : index
    %c0_59 = arith.constant 0 : index
    %c0_60 = arith.constant 0 : index
    %49 = vector.load %arg2[%c8_58, %c0_59, %c0_60] : memref<25x20x256xf32, #tpu.memory_space<vmem>>, vector<1x20x256xf32>
    %50 = vector.shape_cast %49 : vector<1x20x256xf32> to vector<20x256xf32>
    %cst_61 = arith.constant dense<0.000000e+00> : vector<91x256xf32>
    %51 = tpu.matmul %48, %50, %cst_61 {dimension_numbers = #tpu.dot_dimension_numbers<[1], [0], [0], [1], [0, 0, 1, 1], [], []>} : vector<91x20xf32>, vector<20x256xf32>, vector<91x256xf32> -> vector<91x256xf32>
    %52 = arith.addf %46, %51 : vector<91x256xf32>
    %c0_62 = arith.constant 0 : index
    %c9 = arith.constant 9 : index
    %c0_63 = arith.constant 0 : index
    %c0_64 = arith.constant 0 : index
    %53 = vector.load %arg1[%c0_62, %c9, %c0_63, %c0_64] : memref<1x16x92x20xf32, #tpu.memory_space<vmem>>, vector<1x1x91x20xf32>
    %54 = vector.shape_cast %53 : vector<1x1x91x20xf32> to vector<91x20xf32>
    %c9_65 = arith.constant 9 : index
    %c0_66 = arith.constant 0 : index
    %c0_67 = arith.constant 0 : index
    %55 = vector.load %arg2[%c9_65, %c0_66, %c0_67] : memref<25x20x256xf32, #tpu.memory_space<vmem>>, vector<1x20x256xf32>
    %56 = vector.shape_cast %55 : vector<1x20x256xf32> to vector<20x256xf32>
    %cst_68 = arith.constant dense<0.000000e+00> : vector<91x256xf32>
    %57 = tpu.matmul %54, %56, %cst_68 {dimension_numbers = #tpu.dot_dimension_numbers<[1], [0], [0], [1], [0, 0, 1, 1], [], []>} : vector<91x20xf32>, vector<20x256xf32>, vector<91x256xf32> -> vector<91x256xf32>
    %58 = arith.addf %52, %57 : vector<91x256xf32>
    %c0_69 = arith.constant 0 : index
    %c10 = arith.constant 10 : index
    %c0_70 = arith.constant 0 : index
    %c0_71 = arith.constant 0 : index
    %59 = vector.load %arg1[%c0_69, %c10, %c0_70, %c0_71] : memref<1x16x92x20xf32, #tpu.memory_space<vmem>>, vector<1x1x91x20xf32>
    %60 = vector.shape_cast %59 : vector<1x1x91x20xf32> to vector<91x20xf32>
    %c10_72 = arith.constant 10 : index
    %c0_73 = arith.constant 0 : index
    %c0_74 = arith.constant 0 : index
    %61 = vector.load %arg2[%c10_72, %c0_73, %c0_74] : memref<25x20x256xf32, #tpu.memory_space<vmem>>, vector<1x20x256xf32>
    %62 = vector.shape_cast %61 : vector<1x20x256xf32> to vector<20x256xf32>
    %cst_75 = arith.constant dense<0.000000e+00> : vector<91x256xf32>
    %63 = tpu.matmul %60, %62, %cst_75 {dimension_numbers = #tpu.dot_dimension_numbers<[1], [0], [0], [1], [0, 0, 1, 1], [], []>} : vector<91x20xf32>, vector<20x256xf32>, vector<91x256xf32> -> vector<91x256xf32>
    %64 = arith.addf %58, %63 : vector<91x256xf32>
    %c0_76 = arith.constant 0 : index
    %c11 = arith.constant 11 : index
    %c0_77 = arith.constant 0 : index
    %c0_78 = arith.constant 0 : index
    %65 = vector.load %arg1[%c0_76, %c11, %c0_77, %c0_78] : memref<1x16x92x20xf32, #tpu.memory_space<vmem>>, vector<1x1x91x20xf32>
    %66 = vector.shape_cast %65 : vector<1x1x91x20xf32> to vector<91x20xf32>
    %c11_79 = arith.constant 11 : index
    %c0_80 = arith.constant 0 : index
    %c0_81 = arith.constant 0 : index
    %67 = vector.load %arg2[%c11_79, %c0_80, %c0_81] : memref<25x20x256xf32, #tpu.memory_space<vmem>>, vector<1x20x256xf32>
    %68 = vector.shape_cast %67 : vector<1x20x256xf32> to vector<20x256xf32>
    %cst_82 = arith.constant dense<0.000000e+00> : vector<91x256xf32>
    %69 = tpu.matmul %66, %68, %cst_82 {dimension_numbers = #tpu.dot_dimension_numbers<[1], [0], [0], [1], [0, 0, 1, 1], [], []>} : vector<91x20xf32>, vector<20x256xf32>, vector<91x256xf32> -> vector<91x256xf32>
    %70 = arith.addf %64, %69 : vector<91x256xf32>
    %c0_83 = arith.constant 0 : index
    %c12 = arith.constant 12 : index
    %c0_84 = arith.constant 0 : index
    %c0_85 = arith.constant 0 : index
    %71 = vector.load %arg1[%c0_83, %c12, %c0_84, %c0_85] : memref<1x16x92x20xf32, #tpu.memory_space<vmem>>, vector<1x1x91x20xf32>
    %72 = vector.shape_cast %71 : vector<1x1x91x20xf32> to vector<91x20xf32>
    %c12_86 = arith.constant 12 : index
    %c0_87 = arith.constant 0 : index
    %c0_88 = arith.constant 0 : index
    %73 = vector.load %arg2[%c12_86, %c0_87, %c0_88] : memref<25x20x256xf32, #tpu.memory_space<vmem>>, vector<1x20x256xf32>
    %74 = vector.shape_cast %73 : vector<1x20x256xf32> to vector<20x256xf32>
    %cst_89 = arith.constant dense<0.000000e+00> : vector<91x256xf32>
    %75 = tpu.matmul %72, %74, %cst_89 {dimension_numbers = #tpu.dot_dimension_numbers<[1], [0], [0], [1], [0, 0, 1, 1], [], []>} : vector<91x20xf32>, vector<20x256xf32>, vector<91x256xf32> -> vector<91x256xf32>
    %76 = arith.addf %70, %75 : vector<91x256xf32>
    %c0_90 = arith.constant 0 : index
    %c13 = arith.constant 13 : index
    %c0_91 = arith.constant 0 : index
    %c0_92 = arith.constant 0 : index
    %77 = vector.load %arg1[%c0_90, %c13, %c0_91, %c0_92] : memref<1x16x92x20xf32, #tpu.memory_space<vmem>>, vector<1x1x91x20xf32>
    %78 = vector.shape_cast %77 : vector<1x1x91x20xf32> to vector<91x20xf32>
    %c13_93 = arith.constant 13 : index
    %c0_94 = arith.constant 0 : index
    %c0_95 = arith.constant 0 : index
    %79 = vector.load %arg2[%c13_93, %c0_94, %c0_95] : memref<25x20x256xf32, #tpu.memory_space<vmem>>, vector<1x20x256xf32>
    %80 = vector.shape_cast %79 : vector<1x20x256xf32> to vector<20x256xf32>
    %cst_96 = arith.constant dense<0.000000e+00> : vector<91x256xf32>
    %81 = tpu.matmul %78, %80, %cst_96 {dimension_numbers = #tpu.dot_dimension_numbers<[1], [0], [0], [1], [0, 0, 1, 1], [], []>} : vector<91x20xf32>, vector<20x256xf32>, vector<91x256xf32> -> vector<91x256xf32>
    %82 = arith.addf %76, %81 : vector<91x256xf32>
    %c0_97 = arith.constant 0 : index
    %c14 = arith.constant 14 : index
    %c0_98 = arith.constant 0 : index
    %c0_99 = arith.constant 0 : index
    %83 = vector.load %arg1[%c0_97, %c14, %c0_98, %c0_99] : memref<1x16x92x20xf32, #tpu.memory_space<vmem>>, vector<1x1x91x20xf32>
    %84 = vector.shape_cast %83 : vector<1x1x91x20xf32> to vector<91x20xf32>
    %c14_100 = arith.constant 14 : index
    %c0_101 = arith.constant 0 : index
    %c0_102 = arith.constant 0 : index
    %85 = vector.load %arg2[%c14_100, %c0_101, %c0_102] : memref<25x20x256xf32, #tpu.memory_space<vmem>>, vector<1x20x256xf32>
    %86 = vector.shape_cast %85 : vector<1x20x256xf32> to vector<20x256xf32>
    %cst_103 = arith.constant dense<0.000000e+00> : vector<91x256xf32>
    %87 = tpu.matmul %84, %86, %cst_103 {dimension_numbers = #tpu.dot_dimension_numbers<[1], [0], [0], [1], [0, 0, 1, 1], [], []>} : vector<91x20xf32>, vector<20x256xf32>, vector<91x256xf32> -> vector<91x256xf32>
    %88 = arith.addf %82, %87 : vector<91x256xf32>
    %c0_104 = arith.constant 0 : index
    %c15 = arith.constant 15 : index
    %c0_105 = arith.constant 0 : index
    %c0_106 = arith.constant 0 : index
    %89 = vector.load %arg1[%c0_104, %c15, %c0_105, %c0_106] : memref<1x16x92x20xf32, #tpu.memory_space<vmem>>, vector<1x1x91x20xf32>
    %90 = vector.shape_cast %89 : vector<1x1x91x20xf32> to vector<91x20xf32>
    %c15_107 = arith.constant 15 : index
    %c0_108 = arith.constant 0 : index
    %c0_109 = arith.constant 0 : index
    %91 = vector.load %arg2[%c15_107, %c0_108, %c0_109] : memref<25x20x256xf32, #tpu.memory_space<vmem>>, vector<1x20x256xf32>
    %92 = vector.shape_cast %91 : vector<1x20x256xf32> to vector<20x256xf32>
    %cst_110 = arith.constant dense<0.000000e+00> : vector<91x256xf32>
    %93 = tpu.matmul %90, %92, %cst_110 {dimension_numbers = #tpu.dot_dimension_numbers<[1], [0], [0], [1], [0, 0, 1, 1], [], []>} : vector<91x20xf32>, vector<20x256xf32>, vector<91x256xf32> -> vector<91x256xf32>
    %94 = arith.addf %88, %93 : vector<91x256xf32>
    %c0_111 = arith.constant 0 : index
    %c0_112 = arith.constant 0 : index
    %c1_113 = arith.constant 1 : index
    %c0_114 = arith.constant 0 : index
    %95 = vector.load %arg1[%c0_111, %c0_112, %c1_113, %c0_114] : memref<1x16x92x20xf32, #tpu.memory_space<vmem>>, vector<1x1x91x20xf32>
    %96 = vector.shape_cast %95 : vector<1x1x91x20xf32> to vector<91x20xf32>
    %c16 = arith.constant 16 : index
    %c0_115 = arith.constant 0 : index
    %c0_116 = arith.constant 0 : index
    %97 = vector.load %arg2[%c16, %c0_115, %c0_116] : memref<25x20x256xf32, #tpu.memory_space<vmem>>, vector<1x20x256xf32>
    %98 = vector.shape_cast %97 : vector<1x20x256xf32> to vector<20x256xf32>
    %cst_117 = arith.constant dense<0.000000e+00> : vector<91x256xf32>
    %99 = tpu.matmul %96, %98, %cst_117 {dimension_numbers = #tpu.dot_dimension_numbers<[1], [0], [0], [1], [0, 0, 1, 1], [], []>} : vector<91x20xf32>, vector<20x256xf32>, vector<91x256xf32> -> vector<91x256xf32>
    %100 = arith.addf %94, %99 : vector<91x256xf32>
    %c0_118 = arith.constant 0 : index
    %c1_119 = arith.constant 1 : index
    %c1_120 = arith.constant 1 : index
    %c0_121 = arith.constant 0 : index
    %101 = vector.load %arg1[%c0_118, %c1_119, %c1_120, %c0_121] : memref<1x16x92x20xf32, #tpu.memory_space<vmem>>, vector<1x1x91x20xf32>
    %102 = vector.shape_cast %101 : vector<1x1x91x20xf32> to vector<91x20xf32>
    %c17 = arith.constant 17 : index
    %c0_122 = arith.constant 0 : index
    %c0_123 = arith.constant 0 : index
    %103 = vector.load %arg2[%c17, %c0_122, %c0_123] : memref<25x20x256xf32, #tpu.memory_space<vmem>>, vector<1x20x256xf32>
    %104 = vector.shape_cast %103 : vector<1x20x256xf32> to vector<20x256xf32>
    %cst_124 = arith.constant dense<0.000000e+00> : vector<91x256xf32>
    %105 = tpu.matmul %102, %104, %cst_124 {dimension_numbers = #tpu.dot_dimension_numbers<[1], [0], [0], [1], [0, 0, 1, 1], [], []>} : vector<91x20xf32>, vector<20x256xf32>, vector<91x256xf32> -> vector<91x256xf32>
    %106 = arith.addf %100, %105 : vector<91x256xf32>
    %c0_125 = arith.constant 0 : index
    %c2_126 = arith.constant 2 : index
    %c1_127 = arith.constant 1 : index
    %c0_128 = arith.constant 0 : index
    %107 = vector.load %arg1[%c0_125, %c2_126, %c1_127, %c0_128] : memref<1x16x92x20xf32, #tpu.memory_space<vmem>>, vector<1x1x91x20xf32>
    %108 = vector.shape_cast %107 : vector<1x1x91x20xf32> to vector<91x20xf32>
    %c18 = arith.constant 18 : index
    %c0_129 = arith.constant 0 : index
    %c0_130 = arith.constant 0 : index
    %109 = vector.load %arg2[%c18, %c0_129, %c0_130] : memref<25x20x256xf32, #tpu.memory_space<vmem>>, vector<1x20x256xf32>
    %110 = vector.shape_cast %109 : vector<1x20x256xf32> to vector<20x256xf32>
    %cst_131 = arith.constant dense<0.000000e+00> : vector<91x256xf32>
    %111 = tpu.matmul %108, %110, %cst_131 {dimension_numbers = #tpu.dot_dimension_numbers<[1], [0], [0], [1], [0, 0, 1, 1], [], []>} : vector<91x20xf32>, vector<20x256xf32>, vector<91x256xf32> -> vector<91x256xf32>
    %112 = arith.addf %106, %111 : vector<91x256xf32>
    %c0_132 = arith.constant 0 : index
    %c3_133 = arith.constant 3 : index
    %c1_134 = arith.constant 1 : index
    %c0_135 = arith.constant 0 : index
    %113 = vector.load %arg1[%c0_132, %c3_133, %c1_134, %c0_135] : memref<1x16x92x20xf32, #tpu.memory_space<vmem>>, vector<1x1x91x20xf32>
    %114 = vector.shape_cast %113 : vector<1x1x91x20xf32> to vector<91x20xf32>
    %c19 = arith.constant 19 : index
    %c0_136 = arith.constant 0 : index
    %c0_137 = arith.constant 0 : index
    %115 = vector.load %arg2[%c19, %c0_136, %c0_137] : memref<25x20x256xf32, #tpu.memory_space<vmem>>, vector<1x20x256xf32>
    %116 = vector.shape_cast %115 : vector<1x20x256xf32> to vector<20x256xf32>
    %cst_138 = arith.constant dense<0.000000e+00> : vector<91x256xf32>
    %117 = tpu.matmul %114, %116, %cst_138 {dimension_numbers = #tpu.dot_dimension_numbers<[1], [0], [0], [1], [0, 0, 1, 1], [], []>} : vector<91x20xf32>, vector<20x256xf32>, vector<91x256xf32> -> vector<91x256xf32>
    %118 = arith.addf %112, %117 : vector<91x256xf32>
    %c0_139 = arith.constant 0 : index
    %c4_140 = arith.constant 4 : index
    %c1_141 = arith.constant 1 : index
    %c0_142 = arith.constant 0 : index
    %119 = vector.load %arg1[%c0_139, %c4_140, %c1_141, %c0_142] : memref<1x16x92x20xf32, #tpu.memory_space<vmem>>, vector<1x1x91x20xf32>
    %120 = vector.shape_cast %119 : vector<1x1x91x20xf32> to vector<91x20xf32>
    %c20 = arith.constant 20 : index
    %c0_143 = arith.constant 0 : index
    %c0_144 = arith.constant 0 : index
    %121 = vector.load %arg2[%c20, %c0_143, %c0_144] : memref<25x20x256xf32, #tpu.memory_space<vmem>>, vector<1x20x256xf32>
    %122 = vector.shape_cast %121 : vector<1x20x256xf32> to vector<20x256xf32>
    %cst_145 = arith.constant dense<0.000000e+00> : vector<91x256xf32>
    %123 = tpu.matmul %120, %122, %cst_145 {dimension_numbers = #tpu.dot_dimension_numbers<[1], [0], [0], [1], [0, 0, 1, 1], [], []>} : vector<91x20xf32>, vector<20x256xf32>, vector<91x256xf32> -> vector<91x256xf32>
    %124 = arith.addf %118, %123 : vector<91x256xf32>
    %c0_146 = arith.constant 0 : index
    %c5_147 = arith.constant 5 : index
    %c1_148 = arith.constant 1 : index
    %c0_149 = arith.constant 0 : index
    %125 = vector.load %arg1[%c0_146, %c5_147, %c1_148, %c0_149] : memref<1x16x92x20xf32, #tpu.memory_space<vmem>>, vector<1x1x91x20xf32>
    %126 = vector.shape_cast %125 : vector<1x1x91x20xf32> to vector<91x20xf32>
    %c21 = arith.constant 21 : index
    %c0_150 = arith.constant 0 : index
    %c0_151 = arith.constant 0 : index
    %127 = vector.load %arg2[%c21, %c0_150, %c0_151] : memref<25x20x256xf32, #tpu.memory_space<vmem>>, vector<1x20x256xf32>
    %128 = vector.shape_cast %127 : vector<1x20x256xf32> to vector<20x256xf32>
    %cst_152 = arith.constant dense<0.000000e+00> : vector<91x256xf32>
    %129 = tpu.matmul %126, %128, %cst_152 {dimension_numbers = #tpu.dot_dimension_numbers<[1], [0], [0], [1], [0, 0, 1, 1], [], []>} : vector<91x20xf32>, vector<20x256xf32>, vector<91x256xf32> -> vector<91x256xf32>
    %130 = arith.addf %124, %129 : vector<91x256xf32>
    %c0_153 = arith.constant 0 : index
    %c6_154 = arith.constant 6 : index
    %c1_155 = arith.constant 1 : index
    %c0_156 = arith.constant 0 : index
    %131 = vector.load %arg1[%c0_153, %c6_154, %c1_155, %c0_156] : memref<1x16x92x20xf32, #tpu.memory_space<vmem>>, vector<1x1x91x20xf32>
    %132 = vector.shape_cast %131 : vector<1x1x91x20xf32> to vector<91x20xf32>
    %c22 = arith.constant 22 : index
    %c0_157 = arith.constant 0 : index
    %c0_158 = arith.constant 0 : index
    %133 = vector.load %arg2[%c22, %c0_157, %c0_158] : memref<25x20x256xf32, #tpu.memory_space<vmem>>, vector<1x20x256xf32>
    %134 = vector.shape_cast %133 : vector<1x20x256xf32> to vector<20x256xf32>
    %cst_159 = arith.constant dense<0.000000e+00> : vector<91x256xf32>
    %135 = tpu.matmul %132, %134, %cst_159 {dimension_numbers = #tpu.dot_dimension_numbers<[1], [0], [0], [1], [0, 0, 1, 1], [], []>} : vector<91x20xf32>, vector<20x256xf32>, vector<91x256xf32> -> vector<91x256xf32>
    %136 = arith.addf %130, %135 : vector<91x256xf32>
    %c0_160 = arith.constant 0 : index
    %c7_161 = arith.constant 7 : index
    %c1_162 = arith.constant 1 : index
    %c0_163 = arith.constant 0 : index
    %137 = vector.load %arg1[%c0_160, %c7_161, %c1_162, %c0_163] : memref<1x16x92x20xf32, #tpu.memory_space<vmem>>, vector<1x1x91x20xf32>
    %138 = vector.shape_cast %137 : vector<1x1x91x20xf32> to vector<91x20xf32>
    %c23 = arith.constant 23 : index
    %c0_164 = arith.constant 0 : index
    %c0_165 = arith.constant 0 : index
    %139 = vector.load %arg2[%c23, %c0_164, %c0_165] : memref<25x20x256xf32, #tpu.memory_space<vmem>>, vector<1x20x256xf32>
    %140 = vector.shape_cast %139 : vector<1x20x256xf32> to vector<20x256xf32>
    %cst_166 = arith.constant dense<0.000000e+00> : vector<91x256xf32>
    %141 = tpu.matmul %138, %140, %cst_166 {dimension_numbers = #tpu.dot_dimension_numbers<[1], [0], [0], [1], [0, 0, 1, 1], [], []>} : vector<91x20xf32>, vector<20x256xf32>, vector<91x256xf32> -> vector<91x256xf32>
    %142 = arith.addf %136, %141 : vector<91x256xf32>
    %c0_167 = arith.constant 0 : index
    %c8_168 = arith.constant 8 : index
    %c1_169 = arith.constant 1 : index
    %c0_170 = arith.constant 0 : index
    %143 = vector.load %arg1[%c0_167, %c8_168, %c1_169, %c0_170] : memref<1x16x92x20xf32, #tpu.memory_space<vmem>>, vector<1x1x91x20xf32>
    %144 = vector.shape_cast %143 : vector<1x1x91x20xf32> to vector<91x20xf32>
    %c24 = arith.constant 24 : index
    %c0_171 = arith.constant 0 : index
    %c0_172 = arith.constant 0 : index
    %145 = vector.load %arg2[%c24, %c0_171, %c0_172] : memref<25x20x256xf32, #tpu.memory_space<vmem>>, vector<1x20x256xf32>
    %146 = vector.shape_cast %145 : vector<1x20x256xf32> to vector<20x256xf32>
    %cst_173 = arith.constant dense<0.000000e+00> : vector<91x256xf32>
    %147 = tpu.matmul %144, %146, %cst_173 {dimension_numbers = #tpu.dot_dimension_numbers<[1], [0], [0], [1], [0, 0, 1, 1], [], []>} : vector<91x20xf32>, vector<20x256xf32>, vector<91x256xf32> -> vector<91x256xf32>
    %148 = arith.addf %142, %147 : vector<91x256xf32>
    %c0_174 = arith.constant 0 : index
    %c0_175 = arith.constant 0 : index
    %149 = vector.load %arg3[%c0_174, %c0_175] : memref<1x16xf32, #tpu.memory_space<vmem>>, vector<1x16xf32>
    %150 = vector.extract_strided_slice %148 {offsets = [0, 0], sizes = [91, 16], strides = [1, 1]} : vector<91x256xf32> to vector<91x16xf32>
    %151 = vector.extract_strided_slice %148 {offsets = [0, 16], sizes = [91, 16], strides = [1, 1]} : vector<91x256xf32> to vector<91x16xf32>
    %152 = arith.maximumf %150, %151 : vector<91x16xf32>
    %153 = vector.extract_strided_slice %148 {offsets = [0, 32], sizes = [91, 16], strides = [1, 1]} : vector<91x256xf32> to vector<91x16xf32>
    %154 = arith.maximumf %152, %153 : vector<91x16xf32>
    %155 = vector.extract_strided_slice %148 {offsets = [0, 48], sizes = [91, 16], strides = [1, 1]} : vector<91x256xf32> to vector<91x16xf32>
    %156 = arith.maximumf %154, %155 : vector<91x16xf32>
    %157 = vector.broadcast %149 : vector<1x16xf32> to vector<91x16xf32>
    %158 = arith.addf %156, %157 : vector<91x16xf32>
    %cst_176 = arith.constant 0.000000e+00 : f32
    %159 = vector.broadcast %cst_176 : f32 to vector<91x16xf32>
    %160 = arith.maximumf %158, %159 : vector<91x16xf32>
    %161 = vector.extract_strided_slice %148 {offsets = [0, 64], sizes = [91, 16], strides = [1, 1]} : vector<91x256xf32> to vector<91x16xf32>
    %162 = vector.extract_strided_slice %148 {offsets = [0, 80], sizes = [91, 16], strides = [1, 1]} : vector<91x256xf32> to vector<91x16xf32>
    %163 = arith.maximumf %161, %162 : vector<91x16xf32>
    %164 = vector.extract_strided_slice %148 {offsets = [0, 96], sizes = [91, 16], strides = [1, 1]} : vector<91x256xf32> to vector<91x16xf32>
    %165 = arith.maximumf %163, %164 : vector<91x16xf32>
    %166 = vector.extract_strided_slice %148 {offsets = [0, 112], sizes = [91, 16], strides = [1, 1]} : vector<91x256xf32> to vector<91x16xf32>
    %167 = arith.maximumf %165, %166 : vector<91x16xf32>
    %168 = vector.broadcast %149 : vector<1x16xf32> to vector<91x16xf32>
    %169 = arith.addf %167, %168 : vector<91x16xf32>
    %cst_177 = arith.constant 0.000000e+00 : f32
    %170 = vector.broadcast %cst_177 : f32 to vector<91x16xf32>
    %171 = arith.maximumf %169, %170 : vector<91x16xf32>
    %172 = vector.extract_strided_slice %148 {offsets = [0, 128], sizes = [91, 16], strides = [1, 1]} : vector<91x256xf32> to vector<91x16xf32>
    %173 = vector.extract_strided_slice %148 {offsets = [0, 144], sizes = [91, 16], strides = [1, 1]} : vector<91x256xf32> to vector<91x16xf32>
    %174 = arith.maximumf %172, %173 : vector<91x16xf32>
    %175 = vector.extract_strided_slice %148 {offsets = [0, 160], sizes = [91, 16], strides = [1, 1]} : vector<91x256xf32> to vector<91x16xf32>
    %176 = arith.maximumf %174, %175 : vector<91x16xf32>
    %177 = vector.extract_strided_slice %148 {offsets = [0, 176], sizes = [91, 16], strides = [1, 1]} : vector<91x256xf32> to vector<91x16xf32>
    %178 = arith.maximumf %176, %177 : vector<91x16xf32>
    %179 = vector.broadcast %149 : vector<1x16xf32> to vector<91x16xf32>
    %180 = arith.addf %178, %179 : vector<91x16xf32>
    %cst_178 = arith.constant 0.000000e+00 : f32
    %181 = vector.broadcast %cst_178 : f32 to vector<91x16xf32>
    %182 = arith.maximumf %180, %181 : vector<91x16xf32>
    %183 = vector.extract_strided_slice %148 {offsets = [0, 192], sizes = [91, 16], strides = [1, 1]} : vector<91x256xf32> to vector<91x16xf32>
    %184 = vector.extract_strided_slice %148 {offsets = [0, 208], sizes = [91, 16], strides = [1, 1]} : vector<91x256xf32> to vector<91x16xf32>
    %185 = arith.maximumf %183, %184 : vector<91x16xf32>
    %186 = vector.extract_strided_slice %148 {offsets = [0, 224], sizes = [91, 16], strides = [1, 1]} : vector<91x256xf32> to vector<91x16xf32>
    %187 = arith.maximumf %185, %186 : vector<91x16xf32>
    %188 = vector.extract_strided_slice %148 {offsets = [0, 240], sizes = [91, 16], strides = [1, 1]} : vector<91x256xf32> to vector<91x16xf32>
    %189 = arith.maximumf %187, %188 : vector<91x16xf32>
    %190 = vector.broadcast %149 : vector<1x16xf32> to vector<91x16xf32>
    %191 = arith.addf %189, %190 : vector<91x16xf32>
    %cst_179 = arith.constant 0.000000e+00 : f32
    %192 = vector.broadcast %cst_179 : f32 to vector<91x16xf32>
    %193 = arith.maximumf %191, %192 : vector<91x16xf32>
    %194 = vector.extract_strided_slice %160 {offsets = [0, 0], sizes = [88, 16], strides = [1, 1]} : vector<91x16xf32> to vector<88x16xf32>
    %c0_180 = arith.constant 0 : index
    %c0_181 = arith.constant 0 : index
    %c0_182 = arith.constant 0 : index
    %195 = vector.load %arg4[%c0_180, %c0_181, %c0_182] : memref<13x16x64xf32, #tpu.memory_space<vmem>>, vector<1x16x64xf32>
    %196 = vector.shape_cast %195 : vector<1x16x64xf32> to vector<16x64xf32>
    %cst_183 = arith.constant dense<0.000000e+00> : vector<88x64xf32>
    %197 = tpu.matmul %194, %196, %cst_183 {dimension_numbers = #tpu.dot_dimension_numbers<[1], [0], [0], [1], [0, 0, 1, 1], [], []>} : vector<88x16xf32>, vector<16x64xf32>, vector<88x64xf32> -> vector<88x64xf32>
    %198 = vector.extract_strided_slice %171 {offsets = [0, 0], sizes = [88, 16], strides = [1, 1]} : vector<91x16xf32> to vector<88x16xf32>
    %c1_184 = arith.constant 1 : index
    %c0_185 = arith.constant 0 : index
    %c0_186 = arith.constant 0 : index
    %199 = vector.load %arg4[%c1_184, %c0_185, %c0_186] : memref<13x16x64xf32, #tpu.memory_space<vmem>>, vector<1x16x64xf32>
    %200 = vector.shape_cast %199 : vector<1x16x64xf32> to vector<16x64xf32>
    %cst_187 = arith.constant dense<0.000000e+00> : vector<88x64xf32>
    %201 = tpu.matmul %198, %200, %cst_187 {dimension_numbers = #tpu.dot_dimension_numbers<[1], [0], [0], [1], [0, 0, 1, 1], [], []>} : vector<88x16xf32>, vector<16x64xf32>, vector<88x64xf32> -> vector<88x64xf32>
    %202 = arith.addf %197, %201 : vector<88x64xf32>
    %203 = vector.extract_strided_slice %182 {offsets = [0, 0], sizes = [88, 16], strides = [1, 1]} : vector<91x16xf32> to vector<88x16xf32>
    %c2_188 = arith.constant 2 : index
    %c0_189 = arith.constant 0 : index
    %c0_190 = arith.constant 0 : index
    %204 = vector.load %arg4[%c2_188, %c0_189, %c0_190] : memref<13x16x64xf32, #tpu.memory_space<vmem>>, vector<1x16x64xf32>
    %205 = vector.shape_cast %204 : vector<1x16x64xf32> to vector<16x64xf32>
    %cst_191 = arith.constant dense<0.000000e+00> : vector<88x64xf32>
    %206 = tpu.matmul %203, %205, %cst_191 {dimension_numbers = #tpu.dot_dimension_numbers<[1], [0], [0], [1], [0, 0, 1, 1], [], []>} : vector<88x16xf32>, vector<16x64xf32>, vector<88x64xf32> -> vector<88x64xf32>
    %207 = arith.addf %202, %206 : vector<88x64xf32>
    %208 = vector.extract_strided_slice %193 {offsets = [0, 0], sizes = [88, 16], strides = [1, 1]} : vector<91x16xf32> to vector<88x16xf32>
    %c3_192 = arith.constant 3 : index
    %c0_193 = arith.constant 0 : index
    %c0_194 = arith.constant 0 : index
    %209 = vector.load %arg4[%c3_192, %c0_193, %c0_194] : memref<13x16x64xf32, #tpu.memory_space<vmem>>, vector<1x16x64xf32>
    %210 = vector.shape_cast %209 : vector<1x16x64xf32> to vector<16x64xf32>
    %cst_195 = arith.constant dense<0.000000e+00> : vector<88x64xf32>
    %211 = tpu.matmul %208, %210, %cst_195 {dimension_numbers = #tpu.dot_dimension_numbers<[1], [0], [0], [1], [0, 0, 1, 1], [], []>} : vector<88x16xf32>, vector<16x64xf32>, vector<88x64xf32> -> vector<88x64xf32>
    %212 = arith.addf %207, %211 : vector<88x64xf32>
    %213 = vector.extract_strided_slice %160 {offsets = [1, 0], sizes = [88, 16], strides = [1, 1]} : vector<91x16xf32> to vector<88x16xf32>
    %c4_196 = arith.constant 4 : index
    %c0_197 = arith.constant 0 : index
    %c0_198 = arith.constant 0 : index
    %214 = vector.load %arg4[%c4_196, %c0_197, %c0_198] : memref<13x16x64xf32, #tpu.memory_space<vmem>>, vector<1x16x64xf32>
    %215 = vector.shape_cast %214 : vector<1x16x64xf32> to vector<16x64xf32>
    %cst_199 = arith.constant dense<0.000000e+00> : vector<88x64xf32>
    %216 = tpu.matmul %213, %215, %cst_199 {dimension_numbers = #tpu.dot_dimension_numbers<[1], [0], [0], [1], [0, 0, 1, 1], [], []>} : vector<88x16xf32>, vector<16x64xf32>, vector<88x64xf32> -> vector<88x64xf32>
    %217 = arith.addf %212, %216 : vector<88x64xf32>
    %218 = vector.extract_strided_slice %171 {offsets = [1, 0], sizes = [88, 16], strides = [1, 1]} : vector<91x16xf32> to vector<88x16xf32>
    %c5_200 = arith.constant 5 : index
    %c0_201 = arith.constant 0 : index
    %c0_202 = arith.constant 0 : index
    %219 = vector.load %arg4[%c5_200, %c0_201, %c0_202] : memref<13x16x64xf32, #tpu.memory_space<vmem>>, vector<1x16x64xf32>
    %220 = vector.shape_cast %219 : vector<1x16x64xf32> to vector<16x64xf32>
    %cst_203 = arith.constant dense<0.000000e+00> : vector<88x64xf32>
    %221 = tpu.matmul %218, %220, %cst_203 {dimension_numbers = #tpu.dot_dimension_numbers<[1], [0], [0], [1], [0, 0, 1, 1], [], []>} : vector<88x16xf32>, vector<16x64xf32>, vector<88x64xf32> -> vector<88x64xf32>
    %222 = arith.addf %217, %221 : vector<88x64xf32>
    %223 = vector.extract_strided_slice %182 {offsets = [1, 0], sizes = [88, 16], strides = [1, 1]} : vector<91x16xf32> to vector<88x16xf32>
    %c6_204 = arith.constant 6 : index
    %c0_205 = arith.constant 0 : index
    %c0_206 = arith.constant 0 : index
    %224 = vector.load %arg4[%c6_204, %c0_205, %c0_206] : memref<13x16x64xf32, #tpu.memory_space<vmem>>, vector<1x16x64xf32>
    %225 = vector.shape_cast %224 : vector<1x16x64xf32> to vector<16x64xf32>
    %cst_207 = arith.constant dense<0.000000e+00> : vector<88x64xf32>
    %226 = tpu.matmul %223, %225, %cst_207 {dimension_numbers = #tpu.dot_dimension_numbers<[1], [0], [0], [1], [0, 0, 1, 1], [], []>} : vector<88x16xf32>, vector<16x64xf32>, vector<88x64xf32> -> vector<88x64xf32>
    %227 = arith.addf %222, %226 : vector<88x64xf32>
    %228 = vector.extract_strided_slice %193 {offsets = [1, 0], sizes = [88, 16], strides = [1, 1]} : vector<91x16xf32> to vector<88x16xf32>
    %c7_208 = arith.constant 7 : index
    %c0_209 = arith.constant 0 : index
    %c0_210 = arith.constant 0 : index
    %229 = vector.load %arg4[%c7_208, %c0_209, %c0_210] : memref<13x16x64xf32, #tpu.memory_space<vmem>>, vector<1x16x64xf32>
    %230 = vector.shape_cast %229 : vector<1x16x64xf32> to vector<16x64xf32>
    %cst_211 = arith.constant dense<0.000000e+00> : vector<88x64xf32>
    %231 = tpu.matmul %228, %230, %cst_211 {dimension_numbers = #tpu.dot_dimension_numbers<[1], [0], [0], [1], [0, 0, 1, 1], [], []>} : vector<88x16xf32>, vector<16x64xf32>, vector<88x64xf32> -> vector<88x64xf32>
    %232 = arith.addf %227, %231 : vector<88x64xf32>
    %233 = vector.extract_strided_slice %160 {offsets = [2, 0], sizes = [88, 16], strides = [1, 1]} : vector<91x16xf32> to vector<88x16xf32>
    %c8_212 = arith.constant 8 : index
    %c0_213 = arith.constant 0 : index
    %c0_214 = arith.constant 0 : index
    %234 = vector.load %arg4[%c8_212, %c0_213, %c0_214] : memref<13x16x64xf32, #tpu.memory_space<vmem>>, vector<1x16x64xf32>
    %235 = vector.shape_cast %234 : vector<1x16x64xf32> to vector<16x64xf32>
    %cst_215 = arith.constant dense<0.000000e+00> : vector<88x64xf32>
    %236 = tpu.matmul %233, %235, %cst_215 {dimension_numbers = #tpu.dot_dimension_numbers<[1], [0], [0], [1], [0, 0, 1, 1], [], []>} : vector<88x16xf32>, vector<16x64xf32>, vector<88x64xf32> -> vector<88x64xf32>
    %237 = arith.addf %232, %236 : vector<88x64xf32>
    %238 = vector.extract_strided_slice %171 {offsets = [2, 0], sizes = [88, 16], strides = [1, 1]} : vector<91x16xf32> to vector<88x16xf32>
    %c9_216 = arith.constant 9 : index
    %c0_217 = arith.constant 0 : index
    %c0_218 = arith.constant 0 : index
    %239 = vector.load %arg4[%c9_216, %c0_217, %c0_218] : memref<13x16x64xf32, #tpu.memory_space<vmem>>, vector<1x16x64xf32>
    %240 = vector.shape_cast %239 : vector<1x16x64xf32> to vector<16x64xf32>
    %cst_219 = arith.constant dense<0.000000e+00> : vector<88x64xf32>
    %241 = tpu.matmul %238, %240, %cst_219 {dimension_numbers = #tpu.dot_dimension_numbers<[1], [0], [0], [1], [0, 0, 1, 1], [], []>} : vector<88x16xf32>, vector<16x64xf32>, vector<88x64xf32> -> vector<88x64xf32>
    %242 = arith.addf %237, %241 : vector<88x64xf32>
    %243 = vector.extract_strided_slice %182 {offsets = [2, 0], sizes = [88, 16], strides = [1, 1]} : vector<91x16xf32> to vector<88x16xf32>
    %c10_220 = arith.constant 10 : index
    %c0_221 = arith.constant 0 : index
    %c0_222 = arith.constant 0 : index
    %244 = vector.load %arg4[%c10_220, %c0_221, %c0_222] : memref<13x16x64xf32, #tpu.memory_space<vmem>>, vector<1x16x64xf32>
    %245 = vector.shape_cast %244 : vector<1x16x64xf32> to vector<16x64xf32>
    %cst_223 = arith.constant dense<0.000000e+00> : vector<88x64xf32>
    %246 = tpu.matmul %243, %245, %cst_223 {dimension_numbers = #tpu.dot_dimension_numbers<[1], [0], [0], [1], [0, 0, 1, 1], [], []>} : vector<88x16xf32>, vector<16x64xf32>, vector<88x64xf32> -> vector<88x64xf32>
    %247 = arith.addf %242, %246 : vector<88x64xf32>
    %248 = vector.extract_strided_slice %193 {offsets = [2, 0], sizes = [88, 16], strides = [1, 1]} : vector<91x16xf32> to vector<88x16xf32>
    %c11_224 = arith.constant 11 : index
    %c0_225 = arith.constant 0 : index
    %c0_226 = arith.constant 0 : index
    %249 = vector.load %arg4[%c11_224, %c0_225, %c0_226] : memref<13x16x64xf32, #tpu.memory_space<vmem>>, vector<1x16x64xf32>
    %250 = vector.shape_cast %249 : vector<1x16x64xf32> to vector<16x64xf32>
    %cst_227 = arith.constant dense<0.000000e+00> : vector<88x64xf32>
    %251 = tpu.matmul %248, %250, %cst_227 {dimension_numbers = #tpu.dot_dimension_numbers<[1], [0], [0], [1], [0, 0, 1, 1], [], []>} : vector<88x16xf32>, vector<16x64xf32>, vector<88x64xf32> -> vector<88x64xf32>
    %252 = arith.addf %247, %251 : vector<88x64xf32>
    %253 = vector.extract_strided_slice %160 {offsets = [3, 0], sizes = [88, 16], strides = [1, 1]} : vector<91x16xf32> to vector<88x16xf32>
    %c12_228 = arith.constant 12 : index
    %c0_229 = arith.constant 0 : index
    %c0_230 = arith.constant 0 : index
    %254 = vector.load %arg4[%c12_228, %c0_229, %c0_230] : memref<13x16x64xf32, #tpu.memory_space<vmem>>, vector<1x16x64xf32>
    %255 = vector.shape_cast %254 : vector<1x16x64xf32> to vector<16x64xf32>
    %cst_231 = arith.constant dense<0.000000e+00> : vector<88x64xf32>
    %256 = tpu.matmul %253, %255, %cst_231 {dimension_numbers = #tpu.dot_dimension_numbers<[1], [0], [0], [1], [0, 0, 1, 1], [], []>} : vector<88x16xf32>, vector<16x64xf32>, vector<88x64xf32> -> vector<88x64xf32>
    %257 = arith.addf %252, %256 : vector<88x64xf32>
    %258 = vector.extract_strided_slice %257 {offsets = [0, 0], sizes = [88, 16], strides = [1, 1]} : vector<88x64xf32> to vector<88x16xf32>
    %259 = vector.extract_strided_slice %257 {offsets = [0, 16], sizes = [88, 16], strides = [1, 1]} : vector<88x64xf32> to vector<88x16xf32>
    %260 = arith.maximumf %258, %259 : vector<88x16xf32>
    %261 = vector.extract_strided_slice %257 {offsets = [0, 32], sizes = [88, 16], strides = [1, 1]} : vector<88x64xf32> to vector<88x16xf32>
    %262 = arith.maximumf %260, %261 : vector<88x16xf32>
    %263 = vector.extract_strided_slice %257 {offsets = [0, 48], sizes = [88, 16], strides = [1, 1]} : vector<88x64xf32> to vector<88x16xf32>
    %264 = arith.maximumf %262, %263 : vector<88x16xf32>
    %c0_232 = arith.constant 0 : index
    %c0_233 = arith.constant 0 : index
    %265 = vector.load %arg5[%c0_232, %c0_233] : memref<1x16xf32, #tpu.memory_space<vmem>>, vector<1x16xf32>
    %266 = vector.broadcast %265 : vector<1x16xf32> to vector<88x16xf32>
    %267 = arith.addf %264, %266 : vector<88x16xf32>
    %cst_234 = arith.constant 0.000000e+00 : f32
    %268 = vector.broadcast %cst_234 : f32 to vector<88x16xf32>
    %269 = arith.maximumf %267, %268 : vector<88x16xf32>
    %c0_235 = arith.constant 0 : index
    %c0_236 = arith.constant 0 : index
    %270 = vector.load %arg7[%c0_235, %c0_236] : memref<34x1xf32, #tpu.memory_space<vmem>>, vector<34x1xf32>
    %c0_237 = arith.constant 0 : index
    %c0_238 = arith.constant 0 : index
    %c0_239 = arith.constant 0 : index
    %271 = vector.load %arg6[%c0_237, %c0_238, %c0_239] : memref<16x34x88xf32, #tpu.memory_space<vmem>>, vector<1x34x88xf32>
    %272 = vector.shape_cast %271 : vector<1x34x88xf32> to vector<34x88xf32>
    %273 = vector.extract_strided_slice %269 {offsets = [0, 0], sizes = [88, 1], strides = [1, 1]} : vector<88x16xf32> to vector<88x1xf32>
    %cst_240 = arith.constant dense<0.000000e+00> : vector<34x1xf32>
    %274 = tpu.matmul %272, %273, %cst_240 {dimension_numbers = #tpu.dot_dimension_numbers<[1], [0], [0], [1], [0, 0, 1, 1], [], []>} : vector<34x88xf32>, vector<88x1xf32>, vector<34x1xf32> -> vector<34x1xf32>
    %275 = arith.addf %270, %274 : vector<34x1xf32>
    %c1_241 = arith.constant 1 : index
    %c0_242 = arith.constant 0 : index
    %c0_243 = arith.constant 0 : index
    %276 = vector.load %arg6[%c1_241, %c0_242, %c0_243] : memref<16x34x88xf32, #tpu.memory_space<vmem>>, vector<1x34x88xf32>
    %277 = vector.shape_cast %276 : vector<1x34x88xf32> to vector<34x88xf32>
    %278 = vector.extract_strided_slice %269 {offsets = [0, 1], sizes = [88, 1], strides = [1, 1]} : vector<88x16xf32> to vector<88x1xf32>
    %cst_244 = arith.constant dense<0.000000e+00> : vector<34x1xf32>
    %279 = tpu.matmul %277, %278, %cst_244 {dimension_numbers = #tpu.dot_dimension_numbers<[1], [0], [0], [1], [0, 0, 1, 1], [], []>} : vector<34x88xf32>, vector<88x1xf32>, vector<34x1xf32> -> vector<34x1xf32>
    %280 = arith.addf %275, %279 : vector<34x1xf32>
    %c2_245 = arith.constant 2 : index
    %c0_246 = arith.constant 0 : index
    %c0_247 = arith.constant 0 : index
    %281 = vector.load %arg6[%c2_245, %c0_246, %c0_247] : memref<16x34x88xf32, #tpu.memory_space<vmem>>, vector<1x34x88xf32>
    %282 = vector.shape_cast %281 : vector<1x34x88xf32> to vector<34x88xf32>
    %283 = vector.extract_strided_slice %269 {offsets = [0, 2], sizes = [88, 1], strides = [1, 1]} : vector<88x16xf32> to vector<88x1xf32>
    %cst_248 = arith.constant dense<0.000000e+00> : vector<34x1xf32>
    %284 = tpu.matmul %282, %283, %cst_248 {dimension_numbers = #tpu.dot_dimension_numbers<[1], [0], [0], [1], [0, 0, 1, 1], [], []>} : vector<34x88xf32>, vector<88x1xf32>, vector<34x1xf32> -> vector<34x1xf32>
    %285 = arith.addf %280, %284 : vector<34x1xf32>
    %c3_249 = arith.constant 3 : index
    %c0_250 = arith.constant 0 : index
    %c0_251 = arith.constant 0 : index
    %286 = vector.load %arg6[%c3_249, %c0_250, %c0_251] : memref<16x34x88xf32, #tpu.memory_space<vmem>>, vector<1x34x88xf32>
    %287 = vector.shape_cast %286 : vector<1x34x88xf32> to vector<34x88xf32>
    %288 = vector.extract_strided_slice %269 {offsets = [0, 3], sizes = [88, 1], strides = [1, 1]} : vector<88x16xf32> to vector<88x1xf32>
    %cst_252 = arith.constant dense<0.000000e+00> : vector<34x1xf32>
    %289 = tpu.matmul %287, %288, %cst_252 {dimension_numbers = #tpu.dot_dimension_numbers<[1], [0], [0], [1], [0, 0, 1, 1], [], []>} : vector<34x88xf32>, vector<88x1xf32>, vector<34x1xf32> -> vector<34x1xf32>
    %290 = arith.addf %285, %289 : vector<34x1xf32>
    %c4_253 = arith.constant 4 : index
    %c0_254 = arith.constant 0 : index
    %c0_255 = arith.constant 0 : index
    %291 = vector.load %arg6[%c4_253, %c0_254, %c0_255] : memref<16x34x88xf32, #tpu.memory_space<vmem>>, vector<1x34x88xf32>
    %292 = vector.shape_cast %291 : vector<1x34x88xf32> to vector<34x88xf32>
    %293 = vector.extract_strided_slice %269 {offsets = [0, 4], sizes = [88, 1], strides = [1, 1]} : vector<88x16xf32> to vector<88x1xf32>
    %cst_256 = arith.constant dense<0.000000e+00> : vector<34x1xf32>
    %294 = tpu.matmul %292, %293, %cst_256 {dimension_numbers = #tpu.dot_dimension_numbers<[1], [0], [0], [1], [0, 0, 1, 1], [], []>} : vector<34x88xf32>, vector<88x1xf32>, vector<34x1xf32> -> vector<34x1xf32>
    %295 = arith.addf %290, %294 : vector<34x1xf32>
    %c5_257 = arith.constant 5 : index
    %c0_258 = arith.constant 0 : index
    %c0_259 = arith.constant 0 : index
    %296 = vector.load %arg6[%c5_257, %c0_258, %c0_259] : memref<16x34x88xf32, #tpu.memory_space<vmem>>, vector<1x34x88xf32>
    %297 = vector.shape_cast %296 : vector<1x34x88xf32> to vector<34x88xf32>
    %298 = vector.extract_strided_slice %269 {offsets = [0, 5], sizes = [88, 1], strides = [1, 1]} : vector<88x16xf32> to vector<88x1xf32>
    %cst_260 = arith.constant dense<0.000000e+00> : vector<34x1xf32>
    %299 = tpu.matmul %297, %298, %cst_260 {dimension_numbers = #tpu.dot_dimension_numbers<[1], [0], [0], [1], [0, 0, 1, 1], [], []>} : vector<34x88xf32>, vector<88x1xf32>, vector<34x1xf32> -> vector<34x1xf32>
    %300 = arith.addf %295, %299 : vector<34x1xf32>
    %c6_261 = arith.constant 6 : index
    %c0_262 = arith.constant 0 : index
    %c0_263 = arith.constant 0 : index
    %301 = vector.load %arg6[%c6_261, %c0_262, %c0_263] : memref<16x34x88xf32, #tpu.memory_space<vmem>>, vector<1x34x88xf32>
    %302 = vector.shape_cast %301 : vector<1x34x88xf32> to vector<34x88xf32>
    %303 = vector.extract_strided_slice %269 {offsets = [0, 6], sizes = [88, 1], strides = [1, 1]} : vector<88x16xf32> to vector<88x1xf32>
    %cst_264 = arith.constant dense<0.000000e+00> : vector<34x1xf32>
    %304 = tpu.matmul %302, %303, %cst_264 {dimension_numbers = #tpu.dot_dimension_numbers<[1], [0], [0], [1], [0, 0, 1, 1], [], []>} : vector<34x88xf32>, vector<88x1xf32>, vector<34x1xf32> -> vector<34x1xf32>
    %305 = arith.addf %300, %304 : vector<34x1xf32>
    %c7_265 = arith.constant 7 : index
    %c0_266 = arith.constant 0 : index
    %c0_267 = arith.constant 0 : index
    %306 = vector.load %arg6[%c7_265, %c0_266, %c0_267] : memref<16x34x88xf32, #tpu.memory_space<vmem>>, vector<1x34x88xf32>
    %307 = vector.shape_cast %306 : vector<1x34x88xf32> to vector<34x88xf32>
    %308 = vector.extract_strided_slice %269 {offsets = [0, 7], sizes = [88, 1], strides = [1, 1]} : vector<88x16xf32> to vector<88x1xf32>
    %cst_268 = arith.constant dense<0.000000e+00> : vector<34x1xf32>
    %309 = tpu.matmul %307, %308, %cst_268 {dimension_numbers = #tpu.dot_dimension_numbers<[1], [0], [0], [1], [0, 0, 1, 1], [], []>} : vector<34x88xf32>, vector<88x1xf32>, vector<34x1xf32> -> vector<34x1xf32>
    %310 = arith.addf %305, %309 : vector<34x1xf32>
    %c8_269 = arith.constant 8 : index
    %c0_270 = arith.constant 0 : index
    %c0_271 = arith.constant 0 : index
    %311 = vector.load %arg6[%c8_269, %c0_270, %c0_271] : memref<16x34x88xf32, #tpu.memory_space<vmem>>, vector<1x34x88xf32>
    %312 = vector.shape_cast %311 : vector<1x34x88xf32> to vector<34x88xf32>
    %313 = vector.extract_strided_slice %269 {offsets = [0, 8], sizes = [88, 1], strides = [1, 1]} : vector<88x16xf32> to vector<88x1xf32>
    %cst_272 = arith.constant dense<0.000000e+00> : vector<34x1xf32>
    %314 = tpu.matmul %312, %313, %cst_272 {dimension_numbers = #tpu.dot_dimension_numbers<[1], [0], [0], [1], [0, 0, 1, 1], [], []>} : vector<34x88xf32>, vector<88x1xf32>, vector<34x1xf32> -> vector<34x1xf32>
    %315 = arith.addf %310, %314 : vector<34x1xf32>
    %c9_273 = arith.constant 9 : index
    %c0_274 = arith.constant 0 : index
    %c0_275 = arith.constant 0 : index
    %316 = vector.load %arg6[%c9_273, %c0_274, %c0_275] : memref<16x34x88xf32, #tpu.memory_space<vmem>>, vector<1x34x88xf32>
    %317 = vector.shape_cast %316 : vector<1x34x88xf32> to vector<34x88xf32>
    %318 = vector.extract_strided_slice %269 {offsets = [0, 9], sizes = [88, 1], strides = [1, 1]} : vector<88x16xf32> to vector<88x1xf32>
    %cst_276 = arith.constant dense<0.000000e+00> : vector<34x1xf32>
    %319 = tpu.matmul %317, %318, %cst_276 {dimension_numbers = #tpu.dot_dimension_numbers<[1], [0], [0], [1], [0, 0, 1, 1], [], []>} : vector<34x88xf32>, vector<88x1xf32>, vector<34x1xf32> -> vector<34x1xf32>
    %320 = arith.addf %315, %319 : vector<34x1xf32>
    %c10_277 = arith.constant 10 : index
    %c0_278 = arith.constant 0 : index
    %c0_279 = arith.constant 0 : index
    %321 = vector.load %arg6[%c10_277, %c0_278, %c0_279] : memref<16x34x88xf32, #tpu.memory_space<vmem>>, vector<1x34x88xf32>
    %322 = vector.shape_cast %321 : vector<1x34x88xf32> to vector<34x88xf32>
    %323 = vector.extract_strided_slice %269 {offsets = [0, 10], sizes = [88, 1], strides = [1, 1]} : vector<88x16xf32> to vector<88x1xf32>
    %cst_280 = arith.constant dense<0.000000e+00> : vector<34x1xf32>
    %324 = tpu.matmul %322, %323, %cst_280 {dimension_numbers = #tpu.dot_dimension_numbers<[1], [0], [0], [1], [0, 0, 1, 1], [], []>} : vector<34x88xf32>, vector<88x1xf32>, vector<34x1xf32> -> vector<34x1xf32>
    %325 = arith.addf %320, %324 : vector<34x1xf32>
    %c11_281 = arith.constant 11 : index
    %c0_282 = arith.constant 0 : index
    %c0_283 = arith.constant 0 : index
    %326 = vector.load %arg6[%c11_281, %c0_282, %c0_283] : memref<16x34x88xf32, #tpu.memory_space<vmem>>, vector<1x34x88xf32>
    %327 = vector.shape_cast %326 : vector<1x34x88xf32> to vector<34x88xf32>
    %328 = vector.extract_strided_slice %269 {offsets = [0, 11], sizes = [88, 1], strides = [1, 1]} : vector<88x16xf32> to vector<88x1xf32>
    %cst_284 = arith.constant dense<0.000000e+00> : vector<34x1xf32>
    %329 = tpu.matmul %327, %328, %cst_284 {dimension_numbers = #tpu.dot_dimension_numbers<[1], [0], [0], [1], [0, 0, 1, 1], [], []>} : vector<34x88xf32>, vector<88x1xf32>, vector<34x1xf32> -> vector<34x1xf32>
    %330 = arith.addf %325, %329 : vector<34x1xf32>
    %c12_285 = arith.constant 12 : index
    %c0_286 = arith.constant 0 : index
    %c0_287 = arith.constant 0 : index
    %331 = vector.load %arg6[%c12_285, %c0_286, %c0_287] : memref<16x34x88xf32, #tpu.memory_space<vmem>>, vector<1x34x88xf32>
    %332 = vector.shape_cast %331 : vector<1x34x88xf32> to vector<34x88xf32>
    %333 = vector.extract_strided_slice %269 {offsets = [0, 12], sizes = [88, 1], strides = [1, 1]} : vector<88x16xf32> to vector<88x1xf32>
    %cst_288 = arith.constant dense<0.000000e+00> : vector<34x1xf32>
    %334 = tpu.matmul %332, %333, %cst_288 {dimension_numbers = #tpu.dot_dimension_numbers<[1], [0], [0], [1], [0, 0, 1, 1], [], []>} : vector<34x88xf32>, vector<88x1xf32>, vector<34x1xf32> -> vector<34x1xf32>
    %335 = arith.addf %330, %334 : vector<34x1xf32>
    %c13_289 = arith.constant 13 : index
    %c0_290 = arith.constant 0 : index
    %c0_291 = arith.constant 0 : index
    %336 = vector.load %arg6[%c13_289, %c0_290, %c0_291] : memref<16x34x88xf32, #tpu.memory_space<vmem>>, vector<1x34x88xf32>
    %337 = vector.shape_cast %336 : vector<1x34x88xf32> to vector<34x88xf32>
    %338 = vector.extract_strided_slice %269 {offsets = [0, 13], sizes = [88, 1], strides = [1, 1]} : vector<88x16xf32> to vector<88x1xf32>
    %cst_292 = arith.constant dense<0.000000e+00> : vector<34x1xf32>
    %339 = tpu.matmul %337, %338, %cst_292 {dimension_numbers = #tpu.dot_dimension_numbers<[1], [0], [0], [1], [0, 0, 1, 1], [], []>} : vector<34x88xf32>, vector<88x1xf32>, vector<34x1xf32> -> vector<34x1xf32>
    %340 = arith.addf %335, %339 : vector<34x1xf32>
    %c14_293 = arith.constant 14 : index
    %c0_294 = arith.constant 0 : index
    %c0_295 = arith.constant 0 : index
    %341 = vector.load %arg6[%c14_293, %c0_294, %c0_295] : memref<16x34x88xf32, #tpu.memory_space<vmem>>, vector<1x34x88xf32>
    %342 = vector.shape_cast %341 : vector<1x34x88xf32> to vector<34x88xf32>
    %343 = vector.extract_strided_slice %269 {offsets = [0, 14], sizes = [88, 1], strides = [1, 1]} : vector<88x16xf32> to vector<88x1xf32>
    %cst_296 = arith.constant dense<0.000000e+00> : vector<34x1xf32>
    %344 = tpu.matmul %342, %343, %cst_296 {dimension_numbers = #tpu.dot_dimension_numbers<[1], [0], [0], [1], [0, 0, 1, 1], [], []>} : vector<34x88xf32>, vector<88x1xf32>, vector<34x1xf32> -> vector<34x1xf32>
    %345 = arith.addf %340, %344 : vector<34x1xf32>
    %c15_297 = arith.constant 15 : index
    %c0_298 = arith.constant 0 : index
    %c0_299 = arith.constant 0 : index
    %346 = vector.load %arg6[%c15_297, %c0_298, %c0_299] : memref<16x34x88xf32, #tpu.memory_space<vmem>>, vector<1x34x88xf32>
    %347 = vector.shape_cast %346 : vector<1x34x88xf32> to vector<34x88xf32>
    %348 = vector.extract_strided_slice %269 {offsets = [0, 15], sizes = [88, 1], strides = [1, 1]} : vector<88x16xf32> to vector<88x1xf32>
    %cst_300 = arith.constant dense<0.000000e+00> : vector<34x1xf32>
    %349 = tpu.matmul %347, %348, %cst_300 {dimension_numbers = #tpu.dot_dimension_numbers<[1], [0], [0], [1], [0, 0, 1, 1], [], []>} : vector<34x88xf32>, vector<88x1xf32>, vector<34x1xf32> -> vector<34x1xf32>
    %350 = arith.addf %345, %349 : vector<34x1xf32>
    %cst_301 = arith.constant 0.000000e+00 : f32
    %351 = vector.broadcast %cst_301 : f32 to vector<34x1xf32>
    %352 = arith.maximumf %350, %351 : vector<34x1xf32>
    %c0_302 = arith.constant 0 : index
    %c0_303 = arith.constant 0 : index
    %353 = vector.load %arg8[%c0_302, %c0_303] : memref<2x34xf32, #tpu.memory_space<vmem>>, vector<2x34xf32>
    %cst_304 = arith.constant dense<0.000000e+00> : vector<2x1xf32>
    %354 = tpu.matmul %353, %352, %cst_304 {dimension_numbers = #tpu.dot_dimension_numbers<[1], [0], [0], [1], [0, 0, 1, 1], [], []>} : vector<2x34xf32>, vector<34x1xf32>, vector<2x1xf32> -> vector<2x1xf32>
    %c0_305 = arith.constant 0 : index
    %c0_306 = arith.constant 0 : index
    %355 = vector.load %arg9[%c0_305, %c0_306] : memref<2x1xf32, #tpu.memory_space<vmem>>, vector<2x1xf32>
    %356 = arith.addf %354, %355 : vector<2x1xf32>
    %c0_307 = arith.constant 0 : index
    %c0_308 = arith.constant 0 : index
    %c0_309 = arith.constant 0 : index
    %357 = vector.load %arg10[%c0_307, %c0_308, %c0_309] : memref<1x2x1xf32, #tpu.memory_space<vmem>>, vector<1x2x1xf32>
    %358 = vector.shape_cast %357 : vector<1x2x1xf32> to vector<2x1xf32>
    %359 = vector.shape_cast %356 : vector<2x1xf32> to vector<1x2x1xf32>
    tpu.vector_store %arg10[%c0_307, %c0_308, %c0_309], %359 {strides = array<i32>} : memref<1x2x1xf32, #tpu.memory_space<vmem>>, vector<1x2x1xf32>,
    return
  }
  func.func @transform_0(%arg0: i32) -> (i32, i32, i32, i32) {
    %c0_i32 = arith.constant 0 : i32
    %c0_i32_0 = arith.constant 0 : i32
    %c0_i32_1 = arith.constant 0 : i32
    %c0_i32_2 = arith.constant 0 : i32
    return %arg0, %c0_i32, %c0_i32_0, %c0_i32_1 : i32, i32, i32, i32
  }
  func.func @transform_1(%arg0: i32) -> (i32, i32, i32) {
    %c0_i32 = arith.constant 0 : i32
    %c0_i32_0 = arith.constant 0 : i32
    %c0_i32_1 = arith.constant 0 : i32
    %c0_i32_2 = arith.constant 0 : i32
    return %c0_i32, %c0_i32_0, %c0_i32_1 : i32, i32, i32
  }
  func.func @transform_2(%arg0: i32) -> (i32, i32) {
    %c0_i32 = arith.constant 0 : i32
    %c0_i32_0 = arith.constant 0 : i32
    %c0_i32_1 = arith.constant 0 : i32
    return %c0_i32, %c0_i32_0 : i32, i32
  }
  func.func @transform_3(%arg0: i32) -> (i32, i32, i32) {
    %c0_i32 = arith.constant 0 : i32
    %c0_i32_0 = arith.constant 0 : i32
    %c0_i32_1 = arith.constant 0 : i32
    %c0_i32_2 = arith.constant 0 : i32
    return %c0_i32, %c0_i32_0, %c0_i32_1 : i32, i32, i32
  }
  func.func @transform_4(%arg0: i32) -> (i32, i32) {
    %c0_i32 = arith.constant 0 : i32
    %c0_i32_0 = arith.constant 0 : i32
    %c0_i32_1 = arith.constant 0 : i32
    return %c0_i32, %c0_i32_0 : i32, i32
  }
  func.func @transform_5(%arg0: i32) -> (i32, i32, i32) {
    %c0_i32 = arith.constant 0 : i32
    %c0_i32_0 = arith.constant 0 : i32
    %c0_i32_1 = arith.constant 0 : i32
    %c0_i32_2 = arith.constant 0 : i32
    return %c0_i32, %c0_i32_0, %c0_i32_1 : i32, i32, i32
  }
  func.func @transform_6(%arg0: i32) -> (i32, i32) {
    %c0_i32 = arith.constant 0 : i32
    %c0_i32_0 = arith.constant 0 : i32
    %c0_i32_1 = arith.constant 0 : i32
    return %c0_i32, %c0_i32_0 : i32, i32
  }
  func.func @transform_7(%arg0: i32) -> (i32, i32) {
    %c0_i32 = arith.constant 0 : i32
    %c0_i32_0 = arith.constant 0 : i32
    %c0_i32_1 = arith.constant 0 : i32
    return %c0_i32, %c0_i32_0 : i32, i32
  }
  func.func @transform_8(%arg0: i32) -> (i32, i32) {
    %c0_i32 = arith.constant 0 : i32
    %c0_i32_0 = arith.constant 0 : i32
    %c0_i32_1 = arith.constant 0 : i32
    return %c0_i32, %c0_i32_0 : i32, i32
  }
  func.func @transform_9(%arg0: i32) -> (i32, i32, i32) {
    %c0_i32 = arith.constant 0 : i32
    %c0_i32_0 = arith.constant 0 : i32
    %c0_i32_1 = arith.constant 0 : i32
    return %arg0, %c0_i32, %c0_i32_0 : i32, i32, i32
  }
}

</mosaic_0001>

<bundles_post_ra>
// kernel: audionet_forward.1
= control target key start
LH: loop header
LB: loop body
LE: loop exit
PB: predicated region body
PF: predicated region fallthrough
CT: control target
= control target key end

     0   :  { %s15837_s30 = smov 0   ;;  %s19590_s0 = inlined_call_operand.vmem [shape: f32[2,16,92,20], index: 0, kind: input, shape index: {}]   ;;  %s19591_s1 = inlined_call_operand.vmem [shape: f32[25,20,256], index: 1, kind: input, shape index: {}]   ;;  %s19592_s2 = inlined_call_operand.vmem [shape: f32[1,16], index: 2, kind: input, shape index: {}]   ;;  %s19593_s3 = inlined_call_operand.vmem [shape: f32[13,16,64], index: 3, kind: input, shape index: {}]   ;;  %s19594_s4 = inlined_call_operand.vmem [shape: f32[1,16], index: 4, kind: input, shape index: {}]   ;;  %s19595_s5 = inlined_call_operand.vmem [shape: f32[16,34,88], index: 5, kind: input, shape index: {}]   ;;  %s19596_s6 = inlined_call_operand.vmem [shape: f32[34,1], index: 6, kind: input, shape index: {}]   ;;  %s19597_s7 = inlined_call_operand.vmem [shape: f32[2,34], index: 7, kind: input, shape index: {}]   ;;  %s19598_s8 = inlined_call_operand.vmem [shape: f32[2,1], index: 8, kind: input, shape index: {}]   ;;  %s19599_s9 = inlined_call_operand.vmem [shape: f32[2,2,1], index: 9, kind: output, shape index: {}]  }
   0x1 LB: > { %s11342_s10 = sadd.s32 4294967295, %s15763_s30   ;;  %p11346_p0 = scmp.ge.s32.totalorder %s15763_s30, 1  ;;  %s15763_s30 = sphi %s15837_s30, %s19_s30  }
   0x2   : > { %p287_p1 = scmp.lt.s32.totalorder %s15763_s30, 3 }
   0x4   : > { %p288_p2 = pnand %p11346_p0, %p287_p1 }
   0x6   : > { %291 = sbr.rel (%p288_p2) target bundleno = 3460 (0xd84), region = 56 }
   0xd   : > { %v11408_v0 = vld [vmem:[%s19591_s1 + $0x68] sm:$0xff]  ;;  %v11410_v1 = vld [vmem:[%s19591_s1 + $0x78] sm:$0xff]  ;;  %v11407_v2 = vld [vmem:[%s19591_s1 + $0x60] sm:$0xff]  ;;  %p322_p3 = scmp.lt.s32.totalorder %s11342_s10, 1  ;;  %v19604_v5 = vmov 0.0   ;;  %vm406_vm0 = vcmask 1043456  }
   0xe   : > { %v15854_v3 = vpack.c.bf16 %v11410_v1, %v11408_v0  ;;  %v11409_v4 = vld [vmem:[%s19591_s1 + $0x70] sm:$0xff]  ;;  %855 = vmatprep.mubr.f32.mxu0 %v19604_v5  ;;  %477 = vmatprep.mubr.f32.mxu1 %v19604_v5  ;;  %v11412_v7 = vld [vmem:[%s19591_s1 + $0x88] sm:$0xf]  ;;  %v11440_v8 = vld [vmem:[%s19591_s1 + $0x98] sm:$0xff]  ;;  %vm369_vm1 = vcmask 162816   ;;  %s15766_s24 = smov 64  }
   0xf   : > { %v15861_v6 = vpack.c.bf16 %v11409_v4, %v11407_v2  ;;  %s19693_s10 = smov (!%p322_p3, %s11342_s10), 1  ;;  %v11442_v9 = vld [vmem:[%s19591_s1 + $0xa8] sm:$0xff]  ;;  %v11439_v10 = vld [vmem:[%s19591_s1 + $0x90] sm:$0xff]  ;;  %v11441_v11 = vld [vmem:[%s19591_s1 + $0xa0] sm:$0xff]  ;;  %s15767_s14 = smov 80   ;;  %vm15771_vm2 = vmmov 0  }
  0x10   : > { %13973 = vmatprep.subr.bf16.mxu0 %v15854_v3  ;;  %s15348_s29 = smul.u32 1536, %s19693_s10  ;;  %v11411_v12 = vld [vmem:[%s19591_s1 + $0x80] sm:$0xf]  ;;  %v13976_v13 = vpack.c.bf16 %v11442_v9, %v11440_v8  ;;  %v13978_v14 = vpack.c.bf16 %v11441_v11, %v11439_v10  ;;  %v11444_v16 = vld [vmem:[%s19591_s1 + $0xb8] sm:$0xf]  ;;  %v11472_v17 = vld [vmem:[%s19591_s1 + $0xc8] sm:$0xff] }
  0x11   : > { %13975 = vmatpush1.bf16.msra.mxu0 %v15861_v6  ;;  %v11474_v18 = vld [vmem:[%s19591_s1 + $0xd8] sm:$0xff]  ;;  %v11443_v20 = vld [vmem:[%s19591_s1 + $0xb0] sm:$0xf]  ;;  %v11471_v22 = vld [vmem:[%s19591_s1 + $0xc0] sm:$0xff]  ;;  %s15768_s16 = smov 112   ;;  %vm6961_vm3 = vcmask 1046528  }
  0x12   : > { %11413 = vmatprep.subr.msk.mxu0 %vm406_vm0, %v11412_v7  ;;  %s15890_s15 = scalar_lea.vmem %s19590_s0, %s15348_s29  ;;  %v13980_v21 = vpack.c.bf16 %v11474_v18, %v11472_v17  ;;  %v11473_v23 = vld [vmem:[%s19591_s1 + $0xd0] sm:$0xff]  ;;  %v11476_v26 = vld [vmem:[%s19591_s1 + $0xe8] sm:$0xf]  ;;  %v11504_v27 = vld [vmem:[%s19591_s1 + $0xf8] sm:$0xff]  ;;  %vm7725_vm4 = vcmask 1045504   ;;  %vm6305_vm5 = vcmask 130048  }
  0x13   : > { %v11395_v15 = vld [vmem:[%s15890_s15 + $0xc0] sm:$0xff]  ;;  %v11396_v19 = vld [vmem:[%s15890_s15 + $0xc8] sm:$0xff]  ;;  %v13982_v25 = vpack.c.bf16 %v11473_v23, %v11471_v22  ;;  %v11429_v32 = vld [vmem:[%s15890_s15 + $0x130] sm:$0xff]  ;;  %vm8486_vm6 = vcmask 1044480   ;;  %vm8845_vm7 = vcmask 719872   ;;  %s15773_s27 = smov 126  }
  0x14   : > { %v11427_v24 = vld [vmem:[%s15890_s15 + $0x120] sm:$0xff]  ;;  %v11506_v28 = vld [vmem:[%s19591_s1 + $0x108] sm:$0xff]  ;;  %v11430_v33 = vld [vmem:[%s15890_s15 + $0x138] sm:$0xff]  ;;  %s15774_s18 = smov 125   ;;  %s15775_s21 = smov 124   ;;  %vm11213_vm8 = vcmask 1041408  }
  0x15   : > { %11414 = vmatpush1.msk.msra.mxu0 %vm406_vm0, %v11411_v12  ;;  %v11428_v29 = vld [vmem:[%s15890_s15 + $0x128] sm:$0xff]  ;;  %v11475_v30 = vld [vmem:[%s19591_s1 + $0xe0] sm:$0xf]  ;;  %v13984_v31 = vpack.c.bf16 %v11506_v28, %v11504_v27  ;;  %v11433_v36 = vld [vmem:[%s15890_s15 + $0x150] sm:$0xff]  ;;  %s15776_s22 = smov 123   ;;  %s15777_s23 = smov 122  }
  0x16   : > { %11415 = vmatmul.mubr.msk.f32.vlgmr.msra.gmra.mrb[0].mxu0 %vm369_vm1, %v11395_v15  ;;  %13977 = vmatprep.subr.bf16.mxu0 %v13976_v13  ;;  %v11431_v34 = vld [vmem:[%s15890_s15 + $0x140] sm:$0xff]  ;;  %v11432_v35 = vld [vmem:[%s15890_s15 + $0x148] sm:$0xff]  ;;  %v11434_v37 = vld [vmem:[%s15890_s15 + $0x158] sm:$0xff]  ;;  %s15778_s25 = smov 121   ;;  %s15780_s26 = smov 119   ;;  %vm11209_vm9 = vcmask 277504  }
  0x17   : > { %861 = vmatprep.mubr.f32.mxu0 %v19604_v5  ;;  %13979 = vmatpush1.bf16.msra.mxu0 %v13978_v14  ;;  %v11435_v38 = vld [vmem:[%s15890_s15 + $0x160] sm:$0xff]  ;;  %v11436_v39 = vld [vmem:[%s15890_s15 + $0x168] sm:$0xff]  ;;  %v11437_v40 = vld [vmem:[%s15890_s15 + $0x170] sm:$0xff]  ;;  %s15783_s28 = smov 116   ;;  %s15784_s19 = smov 115   ;;  %vm11287_vm10 = vcmask 1024  }
  0x18   : > { %11445 = vmatprep.subr.msk.mxu0 %vm406_vm0, %v11444_v16  ;;  %v11438_v41 = vld [vmem:[%s15890_s15 + $0x178] sm:$0x7]  ;;  %v11503_v42 = vld [vmem:[%s19591_s1 + $0xf0] sm:$0xff]  ;;  %v11505_v43 = vld [vmem:[%s19591_s1 + $0x100] sm:$0xff] }
  0x19   : > { %v11459_v44 = vld [vmem:[%s15890_s15 + $0x180] sm:$0xff]  ;;  %v13986_v45 = vpack.c.bf16 %v11505_v43, %v11503_v42  ;;  %v11508_v46 = vld [vmem:[%s19591_s1 + $0x118] sm:$0xf]  ;;  %v11536_v47 = vld [vmem:[%s19591_s1 + $0x128] sm:$0xff] }
  0x1a   : > { %11416 = vmatmul.mubr.msk.f32.gmra.mrb[2].mxu0 %vm369_vm1, %v11396_v19  ;;  %v11538_v48 = vld [vmem:[%s19591_s1 + $0x138] sm:$0xff]  ;;  %v11460_v49 = vld [vmem:[%s15890_s15 + $0x188] sm:$0xff]  ;;  %v11507_v50 = vld [vmem:[%s19591_s1 + $0x110] sm:$0xf] }
  0x1b   : > { %11446 = vmatpush1.msk.msra.mxu0 %vm406_vm0, %v11443_v20  ;;  %1078 = vmatprep.mubr.f32.mxu0 %v19604_v5  ;;  %v13988_v51 = vpack.c.bf16 %v11538_v48, %v11536_v47  ;;  %v11461_v52 = vld [vmem:[%s15890_s15 + $0x190] sm:$0xff]  ;;  %v11462_v53 = vld [vmem:[%s15890_s15 + $0x198] sm:$0xff]  ;;  %v11463_v54 = vld [vmem:[%s15890_s15 + $0x1a0] sm:$0xff] }
  0x1c   : > { %13981 = vmatprep.subr.bf16.mxu0 %v13980_v21  ;;  %v11464_v55 = vld [vmem:[%s15890_s15 + $0x1a8] sm:$0xff]  ;;  %v11465_v56 = vld [vmem:[%s15890_s15 + $0x1b0] sm:$0xff]  ;;  %v11466_v57 = vld [vmem:[%s15890_s15 + $0x1b8] sm:$0xff] }
  0x1d   : > { %v11467_v58 = vld [vmem:[%s15890_s15 + $0x1c0] sm:$0xff]  ;;  %v11468_v59 = vld [vmem:[%s15890_s15 + $0x1c8] sm:$0xff]  ;;  %v11469_v60 = vld [vmem:[%s15890_s15 + $0x1d0] sm:$0xff] }
  0x1e   : > { %11447 = vmatmul.mubr.msk.f32.vlgmr.msra.gmra.mrb[0].mxu0 %vm369_vm1, %v11427_v24  ;;  %v11470_v61 = vld [vmem:[%s15890_s15 + $0x1d8] sm:$0x7]  ;;  %v11535_v62 = vld [vmem:[%s19591_s1 + $0x120] sm:$0xff]  ;;  %v11537_v63 = vld [vmem:[%s19591_s1 + $0x130] sm:$0xff] }
  0x1f   : > { %1084 = vmatprep.mubr.f32.mxu0 %v19604_v5  ;;  %13983 = vmatpush1.bf16.msra.mxu0 %v13982_v25  ;;  %v11491_v0 = vld [vmem:[%s15890_s15 + $0x1e0] sm:$0xff]  ;;  %v13990_v1 = vpack.c.bf16 %v11537_v63, %v11535_v62  ;;  %v11540_v2 = vld [vmem:[%s19591_s1 + $0x148] sm:$0xf]  ;;  %v11568_v4 = vld [vmem:[%s19591_s1 + $0x158] sm:$0xff] }
  0x20   : > { %11477 = vmatprep.subr.msk.mxu0 %vm406_vm0, %v11476_v26  ;;  %v11570_v7 = vld [vmem:[%s19591_s1 + $0x168] sm:$0xff]  ;;  %v11539_v9 = vld [vmem:[%s19591_s1 + $0x140] sm:$0xf]  ;;  %v11493_v11 = vld [vmem:[%s15890_s15 + $0x1f0] sm:$0xff] }
  0x21   : > { %v11492_v8 = vld [vmem:[%s15890_s15 + $0x1e8] sm:$0xff]  ;;  %v13992_v10 = vpack.c.bf16 %v11570_v7, %v11568_v4  ;;  %v11494_v12 = vld [vmem:[%s15890_s15 + $0x1f8] sm:$0xff]  ;;  %v11495_v13 = vld [vmem:[%s15890_s15 + $0x200] sm:$0xff] }
  0x22   : > { %11448 = vmatmul.mubr.msk.f32.gmra.mrb[2].mxu0 %vm369_vm1, %v11428_v29  ;;  %v11496_v14 = vld [vmem:[%s15890_s15 + $0x208] sm:$0xff]  ;;  %v11497_v15 = vld [vmem:[%s15890_s15 + $0x210] sm:$0xff]  ;;  %v11498_v16 = vld [vmem:[%s15890_s15 + $0x218] sm:$0xff] }
  0x23   : > { %1090 = vmatprep.mubr.f32.mxu0 %v19604_v5  ;;  %11478 = vmatpush1.msk.msra.mxu0 %vm406_vm0, %v11475_v30  ;;  %v11499_v17 = vld [vmem:[%s15890_s15 + $0x220] sm:$0xff]  ;;  %v11500_v18 = vld [vmem:[%s15890_s15 + $0x228] sm:$0xff]  ;;  %v11501_v19 = vld [vmem:[%s15890_s15 + $0x230] sm:$0xff] }
  0x24   : > { %13985 = vmatprep.subr.bf16.mxu0 %v13984_v31  ;;  %v11502_v20 = vld [vmem:[%s15890_s15 + $0x238] sm:$0x7]  ;;  %v11567_v21 = vld [vmem:[%s19591_s1 + $0x150] sm:$0xff]  ;;  %v11569_v22 = vld [vmem:[%s19591_s1 + $0x160] sm:$0xff] }
  0x25   : > { %v11523_v23 = vld [vmem:[%s15890_s15 + $0x240] sm:$0xff]  ;;  %v13994_v24 = vpack.c.bf16 %v11569_v22, %v11567_v21  ;;  %v11572_v25 = vld [vmem:[%s19591_s1 + $0x178] sm:$0xf]  ;;  %v11600_v26 = vld [vmem:[%s19591_s1 + $0x188] sm:$0xff] }
  0x26   : > { %11449 = vmatmul.mubr.msk.f32.gmra.mrb[4].mxu0 %vm369_vm1, %v11429_v32  ;;  %v11602_v27 = vld [vmem:[%s19591_s1 + $0x198] sm:$0xff]  ;;  %v11524_v28 = vld [vmem:[%s15890_s15 + $0x248] sm:$0xff]  ;;  %v11571_v29 = vld [vmem:[%s19591_s1 + $0x170] sm:$0xf] }
  0x27   : > { %1096 = vmatprep.mubr.f32.mxu0 %v19604_v5  ;;  %v13996_v30 = vpack.c.bf16 %v11602_v27, %v11600_v26  ;;  %v11525_v31 = vld [vmem:[%s15890_s15 + $0x250] sm:$0xff]  ;;  %v11526_v32 = vld [vmem:[%s15890_s15 + $0x258] sm:$0xff]  ;;  %v11555_v43 = vld [vmem:[%s15890_s15 + $0x2a0] sm:$0xff] }
  0x28   : > { %v11601_v42 = vld [vmem:[%s19591_s1 + $0x190] sm:$0xff]  ;;  %v11634_v47 = vld [vmem:[%s19591_s1 + $0x1c8] sm:$0xff]  ;;  %v11633_v62 = vld [vmem:[%s19591_s1 + $0x1c0] sm:$0xff] }
  0x29   : > { %v11556_v48 = vld [vmem:[%s15890_s15 + $0x2a8] sm:$0xff]  ;;  %v11587_v63 = vld [vmem:[%s15890_s15 + $0x300] sm:$0xff]  ;;  %v11666_v4 = vld [vmem:[%s19591_s1 + $0x1f8] sm:$0xff] }
  0x2a   : > { %11450 = vmatmul.mubr.msk.f32.gmra.mrb[6].mxu0 %vm369_vm1, %v11430_v33  ;;  %v11527_v33 = vld [vmem:[%s15890_s15 + $0x260] sm:$0xff]  ;;  %v11588_v7 = vld [vmem:[%s15890_s15 + $0x308] sm:$0xff]  ;;  %v11665_v21 = vld [vmem:[%s19591_s1 + $0x1f0] sm:$0xff] }
  0x2b   : > { %1102 = vmatprep.mubr.f32.mxu0 %v19604_v5  ;;  %v11619_v22 = vld [vmem:[%s15890_s15 + $0x360] sm:$0xff]  ;;  %v11698_v26 = vld [vmem:[%s19591_s1 + $0x228] sm:$0xff] }
  0x2c   : > { %v11620_v27 = vld [vmem:[%s15890_s15 + $0x368] sm:$0xff] }
  0x2e   : > { %11451 = vmatmul.mubr.msk.f32.gmra.mrb[8].mxu0 %vm369_vm1, %v11431_v34  ;;  %v11528_v34 = vld [vmem:[%s15890_s15 + $0x268] sm:$0xff] }
  0x2f   : > { %1108 = vmatprep.mubr.f32.mxu0 %v19604_v5 }
  0x32   : > { %11452 = vmatmul.mubr.msk.f32.gmra.mrb[10].mxu0 %vm369_vm1, %v11432_v35  ;;  %v11529_v35 = vld [vmem:[%s15890_s15 + $0x270] sm:$0xff] }
  0x33   : > { %1114 = vmatprep.mubr.f32.mxu0 %v19604_v5 }
  0x36   : > { %11453 = vmatmul.mubr.msk.f32.gmra.mrb[12].mxu0 %vm369_vm1, %v11433_v36  ;;  %v11530_v36 = vld [vmem:[%s15890_s15 + $0x278] sm:$0xff] }
  0x37   : > { %1120 = vmatprep.mubr.f32.mxu0 %v19604_v5 }
  0x3a   : > { %11454 = vmatmul.mubr.msk.f32.gmra.mrb[14].mxu0 %vm369_vm1, %v11434_v37  ;;  %v11531_v37 = vld [vmem:[%s15890_s15 + $0x280] sm:$0xff] }
  0x3b   : > { %1126 = vmatprep.mubr.f32.mxu0 %v19604_v5 }
  0x3e   : > { %11455 = vmatmul.mubr.msk.f32.gmra.mrb[16].mxu0 %vm369_vm1, %v11435_v38  ;;  %v11532_v38 = vld [vmem:[%s15890_s15 + $0x288] sm:$0xff] }
  0x3f   : > { %1132 = vmatprep.mubr.f32.mxu0 %v19604_v5 }
  0x42   : > { %11456 = vmatmul.mubr.msk.f32.gmra.mrb[18].mxu0 %vm369_vm1, %v11436_v39  ;;  %v11533_v39 = vld [vmem:[%s15890_s15 + $0x290] sm:$0xff] }
  0x43   : > { %1138 = vmatprep.mubr.f32.mxu0 %v19604_v5 }
  0x46   : > { %11457 = vmatmul.mubr.msk.f32.gmra.mrb[20].mxu0 %vm369_vm1, %v11437_v40  ;;  %v11534_v40 = vld [vmem:[%s15890_s15 + $0x298] sm:$0x7] }
  0x47   : > { %1144 = vmatprep.mubr.f32.mxu0 %v19604_v5 }
  0x4a   : > { %11458 = vmatmul.mubr.msk.f32.gmra.mrb[22].mxu0 %vm369_vm1, %v11438_v41  ;;  %v11599_v41 = vld [vmem:[%s19591_s1 + $0x180] sm:$0xff] }
  0x4b   : > { %1301 = vmatprep.mubr.f32.mxu0 %v19604_v5 }
  0x4e   : > { %11479 = vmatmul.mubr.msk.f32.vlgmr.msra.gmra.mrb[0].mxu0 %vm369_vm1, %v11459_v44  ;;  %v13998_v44 = vpack.c.bf16 %v11601_v42, %v11599_v41  ;;  %v11697_v41 = vld [vmem:[%s19591_s1 + $0x220] sm:$0xff] }
  0x4f   : > { %1307 = vmatprep.mubr.f32.mxu0 %v19604_v5  ;;  %13987 = vmatpush1.bf16.msra.mxu0 %v13986_v45  ;;  %v11604_v45 = vld [vmem:[%s19591_s1 + $0x1a8] sm:$0xf]  ;;  %v11651_v42 = vld [vmem:[%s15890_s15 + $0x3c0] sm:$0xff] }
  0x50   : > { %11509 = vmatprep.subr.msk.mxu0 %vm406_vm0, %v11508_v46  ;;  %v11632_v46 = vld [vmem:[%s19591_s1 + $0x1b8] sm:$0xff] }
  0x52   : > { %11480 = vmatmul.mubr.msk.f32.gmra.mrb[2].mxu0 %vm369_vm1, %v11460_v49  ;;  %v11603_v49 = vld [vmem:[%s19591_s1 + $0x1a0] sm:$0xf] }
  0x53   : > { %1313 = vmatprep.mubr.f32.mxu0 %v19604_v5  ;;  %11510 = vmatpush1.msk.msra.mxu0 %vm406_vm0, %v11507_v50  ;;  %v14000_v50 = vpack.c.bf16 %v11634_v47, %v11632_v46  ;;  %v11730_v46 = vld [vmem:[%s19591_s1 + $0x258] sm:$0xff]  ;;  %v11652_v47 = vld [vmem:[%s15890_s15 + $0x3c8] sm:$0xff] }
  0x54   : > { %13989 = vmatprep.subr.bf16.mxu0 %v13988_v51  ;;  %v11557_v51 = vld [vmem:[%s15890_s15 + $0x2b0] sm:$0xff] }
  0x56   : > { %11481 = vmatmul.mubr.msk.f32.gmra.mrb[4].mxu0 %vm369_vm1, %v11461_v52  ;;  %v11558_v52 = vld [vmem:[%s15890_s15 + $0x2b8] sm:$0xff] }
  0x57   : > { %1319 = vmatprep.mubr.f32.mxu0 %v19604_v5 }
  0x5a   : > { %11482 = vmatmul.mubr.msk.f32.gmra.mrb[6].mxu0 %vm369_vm1, %v11462_v53  ;;  %v11559_v53 = vld [vmem:[%s15890_s15 + $0x2c0] sm:$0xff] }
  0x5b   : > { %1325 = vmatprep.mubr.f32.mxu0 %v19604_v5 }
  0x5e   : > { %11483 = vmatmul.mubr.msk.f32.gmra.mrb[8].mxu0 %vm369_vm1, %v11463_v54  ;;  %v11560_v54 = vld [vmem:[%s15890_s15 + $0x2c8] sm:$0xff] }
  0x5f   : > { %1331 = vmatprep.mubr.f32.mxu0 %v19604_v5 }
  0x62   : > { %11484 = vmatmul.mubr.msk.f32.gmra.mrb[10].mxu0 %vm369_vm1, %v11464_v55  ;;  %v11561_v55 = vld [vmem:[%s15890_s15 + $0x2d0] sm:$0xff] }
  0x63   : > { %1337 = vmatprep.mubr.f32.mxu0 %v19604_v5 }
  0x66   : > { %11485 = vmatmul.mubr.msk.f32.gmra.mrb[12].mxu0 %vm369_vm1, %v11465_v56  ;;  %v11562_v56 = vld [vmem:[%s15890_s15 + $0x2d8] sm:$0xff] }
  0x67   : > { %1343 = vmatprep.mubr.f32.mxu0 %v19604_v5 }
  0x6a   : > { %11486 = vmatmul.mubr.msk.f32.gmra.mrb[14].mxu0 %vm369_vm1, %v11466_v57  ;;  %v11563_v57 = vld [vmem:[%s15890_s15 + $0x2e0] sm:$0xff] }
  0x6b   : > { %1349 = vmatprep.mubr.f32.mxu0 %v19604_v5 }
  0x6e   : > { %11487 = vmatmul.mubr.msk.f32.gmra.mrb[16].mxu0 %vm369_vm1, %v11467_v58  ;;  %v11564_v58 = vld [vmem:[%s15890_s15 + $0x2e8] sm:$0xff] }
  0x6f   : > { %1355 = vmatprep.mubr.f32.mxu0 %v19604_v5 }
  0x72   : > { %11488 = vmatmul.mubr.msk.f32.gmra.mrb[18].mxu0 %vm369_vm1, %v11468_v59  ;;  %v11565_v59 = vld [vmem:[%s15890_s15 + $0x2f0] sm:$0xff] }
  0x73   : > { %1361 = vmatprep.mubr.f32.mxu0 %v19604_v5 }
  0x76   : > { %11489 = vmatmul.mubr.msk.f32.gmra.mrb[20].mxu0 %vm369_vm1, %v11469_v60  ;;  %v11566_v60 = vld [vmem:[%s15890_s15 + $0x2f8] sm:$0x7] }
  0x77   : > { %1367 = vmatprep.mubr.f32.mxu0 %v19604_v5 }
  0x7a   : > { %11490 = vmatmul.mubr.msk.f32.gmra.mrb[22].mxu0 %vm369_vm1, %v11470_v61  ;;  %v11631_v61 = vld [vmem:[%s19591_s1 + $0x1b0] sm:$0xff] }
  0x7b   : > { %1524 = vmatprep.mubr.f32.mxu0 %v19604_v5 }
  0x7e   : > { %11511 = vmatmul.mubr.msk.f32.vlgmr.msra.gmra.mrb[0].mxu0 %vm369_vm1, %v11491_v0  ;;  %v14002_v0 = vpack.c.bf16 %v11633_v62, %v11631_v61  ;;  %v11729_v61 = vld [vmem:[%s19591_s1 + $0x250] sm:$0xff]  ;;  %v11683_v62 = vld [vmem:[%s15890_s15 + $0x420] sm:$0xff] }
  0x7f   : > { %1530 = vmatprep.mubr.f32.mxu0 %v19604_v5  ;;  %13991 = vmatpush1.bf16.msra.mxu0 %v13990_v1  ;;  %v11636_v1 = vld [vmem:[%s19591_s1 + $0x1d8] sm:$0xf] }
  0x80   : > { %11541 = vmatprep.subr.msk.mxu0 %vm406_vm0, %v11540_v2  ;;  %v11664_v2 = vld [vmem:[%s19591_s1 + $0x1e8] sm:$0xff] }
  0x82   : > { %11512 = vmatmul.mubr.msk.f32.gmra.mrb[2].mxu0 %vm369_vm1, %v11492_v8  ;;  %v11635_v8 = vld [vmem:[%s19591_s1 + $0x1d0] sm:$0xf] }
  0x83   : > { %1536 = vmatprep.mubr.f32.mxu0 %v19604_v5  ;;  %11542 = vmatpush1.msk.msra.mxu0 %vm406_vm0, %v11539_v9  ;;  %v14004_v9 = vpack.c.bf16 %v11666_v4, %v11664_v2  ;;  %v11762_v2 = vld [vmem:[%s19591_s1 + $0x288] sm:$0xff] }
  0x84   : > { %13993 = vmatprep.subr.bf16.mxu0 %v13992_v10  ;;  %v11589_v10 = vld [vmem:[%s15890_s15 + $0x310] sm:$0xff]  ;;  %v11684_v4 = vld [vmem:[%s15890_s15 + $0x428] sm:$0xff] }
  0x86   : > { %11513 = vmatmul.mubr.msk.f32.gmra.mrb[4].mxu0 %vm369_vm1, %v11493_v11  ;;  %v11590_v11 = vld [vmem:[%s15890_s15 + $0x318] sm:$0xff] }
  0x87   : > { %1542 = vmatprep.mubr.f32.mxu0 %v19604_v5 }
  0x8a   : > { %11514 = vmatmul.mubr.msk.f32.gmra.mrb[6].mxu0 %vm369_vm1, %v11494_v12  ;;  %v11591_v12 = vld [vmem:[%s15890_s15 + $0x320] sm:$0xff] }
  0x8b   : > { %1548 = vmatprep.mubr.f32.mxu0 %v19604_v5 }
  0x8e   : > { %11515 = vmatmul.mubr.msk.f32.gmra.mrb[8].mxu0 %vm369_vm1, %v11495_v13  ;;  %v11592_v13 = vld [vmem:[%s15890_s15 + $0x328] sm:$0xff] }
  0x8f   : > { %1554 = vmatprep.mubr.f32.mxu0 %v19604_v5 }
  0x92   : > { %11516 = vmatmul.mubr.msk.f32.gmra.mrb[10].mxu0 %vm369_vm1, %v11496_v14  ;;  %v11593_v14 = vld [vmem:[%s15890_s15 + $0x330] sm:$0xff] }
  0x93   : > { %1560 = vmatprep.mubr.f32.mxu0 %v19604_v5 }
  0x96   : > { %11517 = vmatmul.mubr.msk.f32.gmra.mrb[12].mxu0 %vm369_vm1, %v11497_v15  ;;  %v11594_v15 = vld [vmem:[%s15890_s15 + $0x338] sm:$0xff] }
  0x97   : > { %1566 = vmatprep.mubr.f32.mxu0 %v19604_v5 }
  0x9a   : > { %11518 = vmatmul.mubr.msk.f32.gmra.mrb[14].mxu0 %vm369_vm1, %v11498_v16  ;;  %v11595_v16 = vld [vmem:[%s15890_s15 + $0x340] sm:$0xff] }
  0x9b   : > { %1572 = vmatprep.mubr.f32.mxu0 %v19604_v5 }
  0x9e   : > { %11519 = vmatmul.mubr.msk.f32.gmra.mrb[16].mxu0 %vm369_vm1, %v11499_v17  ;;  %v11596_v17 = vld [vmem:[%s15890_s15 + $0x348] sm:$0xff] }
  0x9f   : > { %1578 = vmatprep.mubr.f32.mxu0 %v19604_v5 }
  0xa2   : > { %11520 = vmatmul.mubr.msk.f32.gmra.mrb[18].mxu0 %vm369_vm1, %v11500_v18  ;;  %v11597_v18 = vld [vmem:[%s15890_s15 + $0x350] sm:$0xff] }
  0xa3   : > { %1584 = vmatprep.mubr.f32.mxu0 %v19604_v5 }
  0xa6   : > { %11521 = vmatmul.mubr.msk.f32.gmra.mrb[20].mxu0 %vm369_vm1, %v11501_v19  ;;  %v11598_v19 = vld [vmem:[%s15890_s15 + $0x358] sm:$0x7] }
  0xa7   : > { %1590 = vmatprep.mubr.f32.mxu0 %v19604_v5 }
  0xaa   : > { %11522 = vmatmul.mubr.msk.f32.gmra.mrb[22].mxu0 %vm369_vm1, %v11502_v20  ;;  %v11663_v20 = vld [vmem:[%s19591_s1 + $0x1e0] sm:$0xff] }
  0xab   : > { %1747 = vmatprep.mubr.f32.mxu0 %v19604_v5 }
  0xae   : > { %11543 = vmatmul.mubr.msk.f32.vlgmr.msra.gmra.mrb[0].mxu0 %vm369_vm1, %v11523_v23  ;;  %v14006_v23 = vpack.c.bf16 %v11665_v21, %v11663_v20  ;;  %v11761_v20 = vld [vmem:[%s19591_s1 + $0x280] sm:$0xff] }
  0xaf   : > { %1753 = vmatprep.mubr.f32.mxu0 %v19604_v5  ;;  %13995 = vmatpush1.bf16.msra.mxu0 %v13994_v24  ;;  %v11668_v24 = vld [vmem:[%s19591_s1 + $0x208] sm:$0xf]  ;;  %v11715_v21 = vld [vmem:[%s15890_s15 + $0x480] sm:$0xff] }
  0xb0   : > { %11573 = vmatprep.subr.msk.mxu0 %vm406_vm0, %v11572_v25  ;;  %v11696_v25 = vld [vmem:[%s19591_s1 + $0x218] sm:$0xff] }
  0xb2   : > { %11544 = vmatmul.mubr.msk.f32.gmra.mrb[2].mxu0 %vm369_vm1, %v11524_v28  ;;  %v11667_v28 = vld [vmem:[%s19591_s1 + $0x200] sm:$0xf] }
  0xb3   : > { %1759 = vmatprep.mubr.f32.mxu0 %v19604_v5  ;;  %11574 = vmatpush1.msk.msra.mxu0 %vm406_vm0, %v11571_v29  ;;  %v14008_v29 = vpack.c.bf16 %v11698_v26, %v11696_v25  ;;  %v11794_v25 = vld [vmem:[%s19591_s1 + $0x2b8] sm:$0xff]  ;;  %v11716_v26 = vld [vmem:[%s15890_s15 + $0x488] sm:$0xff] }
  0xb4   : > { %13997 = vmatprep.subr.bf16.mxu0 %v13996_v30  ;;  %v11621_v30 = vld [vmem:[%s15890_s15 + $0x370] sm:$0xff] }
  0xb6   : > { %11545 = vmatmul.mubr.msk.f32.gmra.mrb[4].mxu0 %vm369_vm1, %v11525_v31  ;;  %v11622_v31 = vld [vmem:[%s15890_s15 + $0x378] sm:$0xff] }
  0xb7   : > { %1765 = vmatprep.mubr.f32.mxu0 %v19604_v5 }
  0xba   : > { %11546 = vmatmul.mubr.msk.f32.gmra.mrb[6].mxu0 %vm369_vm1, %v11526_v32  ;;  %v11623_v32 = vld [vmem:[%s15890_s15 + $0x380] sm:$0xff] }
  0xbb   : > { %1771 = vmatprep.mubr.f32.mxu0 %v19604_v5 }
  0xbe   : > { %11547 = vmatmul.mubr.msk.f32.gmra.mrb[8].mxu0 %vm369_vm1, %v11527_v33  ;;  %v11624_v33 = vld [vmem:[%s15890_s15 + $0x388] sm:$0xff] }
  0xbf   : > { %1777 = vmatprep.mubr.f32.mxu0 %v19604_v5 }
  0xc2   : > { %11548 = vmatmul.mubr.msk.f32.gmra.mrb[10].mxu0 %vm369_vm1, %v11528_v34  ;;  %v11625_v34 = vld [vmem:[%s15890_s15 + $0x390] sm:$0xff] }
  0xc3   : > { %1783 = vmatprep.mubr.f32.mxu0 %v19604_v5 }
  0xc6   : > { %11549 = vmatmul.mubr.msk.f32.gmra.mrb[12].mxu0 %vm369_vm1, %v11529_v35  ;;  %v11626_v35 = vld [vmem:[%s15890_s15 + $0x398] sm:$0xff] }
  0xc7   : > { %1789 = vmatprep.mubr.f32.mxu0 %v19604_v5 }
  0xca   : > { %11550 = vmatmul.mubr.msk.f32.gmra.mrb[14].mxu0 %vm369_vm1, %v11530_v36  ;;  %v11627_v36 = vld [vmem:[%s15890_s15 + $0x3a0] sm:$0xff] }
  0xcb   : > { %1795 = vmatprep.mubr.f32.mxu0 %v19604_v5 }
  0xce   : > { %11551 = vmatmul.mubr.msk.f32.gmra.mrb[16].mxu0 %vm369_vm1, %v11531_v37  ;;  %v11628_v37 = vld [vmem:[%s15890_s15 + $0x3a8] sm:$0xff] }
  0xcf   : > { %1801 = vmatprep.mubr.f32.mxu0 %v19604_v5 }
  0xd2   : > { %11552 = vmatmul.mubr.msk.f32.gmra.mrb[18].mxu0 %vm369_vm1, %v11532_v38  ;;  %v11629_v38 = vld [vmem:[%s15890_s15 + $0x3b0] sm:$0xff] }
  0xd3   : > { %1807 = vmatprep.mubr.f32.mxu0 %v19604_v5 }
  0xd6   : > { %11553 = vmatmul.mubr.msk.f32.gmra.mrb[20].mxu0 %vm369_vm1, %v11533_v39  ;;  %v11630_v39 = vld [vmem:[%s15890_s15 + $0x3b8] sm:$0x7] }
  0xd7   : > { %1813 = vmatprep.mubr.f32.mxu0 %v19604_v5 }
  0xda   : > { %11554 = vmatmul.mubr.msk.f32.gmra.mrb[22].mxu0 %vm369_vm1, %v11534_v40  ;;  %v11695_v40 = vld [vmem:[%s19591_s1 + $0x210] sm:$0xff] }
  0xdb   : > { %1970 = vmatprep.mubr.f32.mxu0 %v19604_v5 }
  0xde   : > { %11575 = vmatmul.mubr.msk.f32.vlgmr.msra.gmra.mrb[0].mxu0 %vm369_vm1, %v11555_v43  ;;  %v14010_v43 = vpack.c.bf16 %v11697_v41, %v11695_v40  ;;  %v11793_v40 = vld [vmem:[%s19591_s1 + $0x2b0] sm:$0xff]  ;;  %v11747_v41 = vld [vmem:[%s15890_s15 + $0x4e0] sm:$0xff] }
  0xdf   : > { %1976 = vmatprep.mubr.f32.mxu0 %v19604_v5  ;;  %13999 = vmatpush1.bf16.msra.mxu0 %v13998_v44  ;;  %v11700_v44 = vld [vmem:[%s19591_s1 + $0x238] sm:$0xf] }
  0xe0   : > { %11605 = vmatprep.subr.msk.mxu0 %vm406_vm0, %v11604_v45  ;;  %v11728_v45 = vld [vmem:[%s19591_s1 + $0x248] sm:$0xff] }
  0xe2   : > { %11576 = vmatmul.mubr.msk.f32.gmra.mrb[2].mxu0 %vm369_vm1, %v11556_v48  ;;  %v11699_v48 = vld [vmem:[%s19591_s1 + $0x230] sm:$0xf] }
  0xe3   : > { %1982 = vmatprep.mubr.f32.mxu0 %v19604_v5  ;;  %11606 = vmatpush1.msk.msra.mxu0 %vm406_vm0, %v11603_v49  ;;  %v14012_v49 = vpack.c.bf16 %v11730_v46, %v11728_v45  ;;  %v11826_v45 = vld [vmem:[%s19591_s1 + $0x2e8] sm:$0xff] }
  0xe4   : > { %14001 = vmatprep.subr.bf16.mxu0 %v14000_v50  ;;  %v11653_v50 = vld [vmem:[%s15890_s15 + $0x3d0] sm:$0xff]  ;;  %v11748_v46 = vld [vmem:[%s15890_s15 + $0x4e8] sm:$0xff] }
  0xe6   : > { %11577 = vmatmul.mubr.msk.f32.gmra.mrb[4].mxu0 %vm369_vm1, %v11557_v51  ;;  %v11654_v51 = vld [vmem:[%s15890_s15 + $0x3d8] sm:$0xff] }
  0xe7   : > { %1988 = vmatprep.mubr.f32.mxu0 %v19604_v5 }
  0xea   : > { %11578 = vmatmul.mubr.msk.f32.gmra.mrb[6].mxu0 %vm369_vm1, %v11558_v52  ;;  %v11655_v52 = vld [vmem:[%s15890_s15 + $0x3e0] sm:$0xff] }
  0xeb   : > { %1994 = vmatprep.mubr.f32.mxu0 %v19604_v5 }
  0xee   : > { %11579 = vmatmul.mubr.msk.f32.gmra.mrb[8].mxu0 %vm369_vm1, %v11559_v53  ;;  %v11656_v53 = vld [vmem:[%s15890_s15 + $0x3e8] sm:$0xff] }
  0xef   : > { %2000 = vmatprep.mubr.f32.mxu0 %v19604_v5 }
  0xf2   : > { %11580 = vmatmul.mubr.msk.f32.gmra.mrb[10].mxu0 %vm369_vm1, %v11560_v54  ;;  %v11657_v54 = vld [vmem:[%s15890_s15 + $0x3f0] sm:$0xff] }
  0xf3   : > { %2006 = vmatprep.mubr.f32.mxu0 %v19604_v5 }
  0xf6   : > { %11581 = vmatmul.mubr.msk.f32.gmra.mrb[12].mxu0 %vm369_vm1, %v11561_v55  ;;  %v11658_v55 = vld [vmem:[%s15890_s15 + $0x3f8] sm:$0xff] }
  0xf7   : > { %2012 = vmatprep.mubr.f32.mxu0 %v19604_v5 }
  0xfa   : > { %11582 = vmatmul.mubr.msk.f32.gmra.mrb[14].mxu0 %vm369_vm1, %v11562_v56  ;;  %v11659_v56 = vld [vmem:[%s15890_s15 + $0x400] sm:$0xff] }
  0xfb   : > { %2018 = vmatprep.mubr.f32.mxu0 %v19604_v5 }
  0xfe   : > { %11583 = vmatmul.mubr.msk.f32.gmra.mrb[16].mxu0 %vm369_vm1, %v11563_v57  ;;  %v11660_v57 = vld [vmem:[%s15890_s15 + $0x408] sm:$0xff] }
  0xff   : > { %2024 = vmatprep.mubr.f32.mxu0 %v19604_v5 }
 0x102   : > { %11584 = vmatmul.mubr.msk.f32.gmra.mrb[18].mxu0 %vm369_vm1, %v11564_v58  ;;  %v11661_v58 = vld [vmem:[%s15890_s15 + $0x410] sm:$0xff] }
 0x103   : > { %2030 = vmatprep.mubr.f32.mxu0 %v19604_v5 }
 0x106   : > { %11585 = vmatmul.mubr.msk.f32.gmra.mrb[20].mxu0 %vm369_vm1, %v11565_v59  ;;  %v11662_v59 = vld [vmem:[%s15890_s15 + $0x418] sm:$0x7] }
 0x107   : > { %2036 = vmatprep.mubr.f32.mxu0 %v19604_v5 }
 0x10a   : > { %11586 = vmatmul.mubr.msk.f32.gmra.mrb[22].mxu0 %vm369_vm1, %v11566_v60  ;;  %v11727_v60 = vld [vmem:[%s19591_s1 + $0x240] sm:$0xff] }
 0x10b   : > { %2193 = vmatprep.mubr.f32.mxu0 %v19604_v5 }
 0x10e   : > { %11607 = vmatmul.mubr.msk.f32.vlgmr.msra.gmra.mrb[0].mxu0 %vm369_vm1, %v11587_v63  ;;  %v14014_v63 = vpack.c.bf16 %v11729_v61, %v11727_v60  ;;  %v11825_v60 = vld [vmem:[%s19591_s1 + $0x2e0] sm:$0xff] }
 0x10f   : > { %2199 = vmatprep.mubr.f32.mxu0 %v19604_v5  ;;  %14003 = vmatpush1.bf16.msra.mxu0 %v14002_v0  ;;  %v11732_v0 = vld [vmem:[%s19591_s1 + $0x268] sm:$0xf]  ;;  %v11779_v61 = vld [vmem:[%s15890_s15 + $0x540] sm:$0xff] }
 0x110   : > { %11637 = vmatprep.subr.msk.mxu0 %vm406_vm0, %v11636_v1  ;;  %v11760_v1 = vld [vmem:[%s19591_s1 + $0x278] sm:$0xff] }
 0x112   : > { %11608 = vmatmul.mubr.msk.f32.gmra.mrb[2].mxu0 %vm369_vm1, %v11588_v7  ;;  %v11731_v7 = vld [vmem:[%s19591_s1 + $0x260] sm:$0xf] }
 0x113   : > { %2205 = vmatprep.mubr.f32.mxu0 %v19604_v5  ;;  %11638 = vmatpush1.msk.msra.mxu0 %vm406_vm0, %v11635_v8  ;;  %v14016_v8 = vpack.c.bf16 %v11762_v2, %v11760_v1  ;;  %v11846_v1 = vld [vmem:[%s19591_s1 + $0x318] sm:$0xff]  ;;  %v11780_v2 = vld [vmem:[%s15890_s15 + $0x548] sm:$0xff] }
 0x114   : > { %14005 = vmatprep.subr.bf16.mxu0 %v14004_v9  ;;  %v11685_v9 = vld [vmem:[%s15890_s15 + $0x430] sm:$0xff] }
 0x116   : > { %11609 = vmatmul.mubr.msk.f32.gmra.mrb[4].mxu0 %vm369_vm1, %v11589_v10  ;;  %v11686_v10 = vld [vmem:[%s15890_s15 + $0x438] sm:$0xff] }
 0x117   : > { %2211 = vmatprep.mubr.f32.mxu0 %v19604_v5 }
 0x11a   : > { %11610 = vmatmul.mubr.msk.f32.gmra.mrb[6].mxu0 %vm369_vm1, %v11590_v11  ;;  %v11687_v11 = vld [vmem:[%s15890_s15 + $0x440] sm:$0xff] }
 0x11b   : > { %2217 = vmatprep.mubr.f32.mxu0 %v19604_v5 }
 0x11e   : > { %11611 = vmatmul.mubr.msk.f32.gmra.mrb[8].mxu0 %vm369_vm1, %v11591_v12  ;;  %v11688_v12 = vld [vmem:[%s15890_s15 + $0x448] sm:$0xff] }
 0x11f   : > { %2223 = vmatprep.mubr.f32.mxu0 %v19604_v5 }
 0x122   : > { %11612 = vmatmul.mubr.msk.f32.gmra.mrb[10].mxu0 %vm369_vm1, %v11592_v13  ;;  %v11689_v13 = vld [vmem:[%s15890_s15 + $0x450] sm:$0xff] }
 0x123   : > { %2229 = vmatprep.mubr.f32.mxu0 %v19604_v5 }
 0x126   : > { %11613 = vmatmul.mubr.msk.f32.gmra.mrb[12].mxu0 %vm369_vm1, %v11593_v14  ;;  %v11690_v14 = vld [vmem:[%s15890_s15 + $0x458] sm:$0xff] }
 0x127   : > { %2235 = vmatprep.mubr.f32.mxu0 %v19604_v5 }
 0x12a   : > { %11614 = vmatmul.mubr.msk.f32.gmra.mrb[14].mxu0 %vm369_vm1, %v11594_v15  ;;  %v11691_v15 = vld [vmem:[%s15890_s15 + $0x460] sm:$0xff] }
 0x12b   : > { %2241 = vmatprep.mubr.f32.mxu0 %v19604_v5 }
 0x12e   : > { %11615 = vmatmul.mubr.msk.f32.gmra.mrb[16].mxu0 %vm369_vm1, %v11595_v16  ;;  %v11692_v16 = vld [vmem:[%s15890_s15 + $0x468] sm:$0xff] }
 0x12f   : > { %2247 = vmatprep.mubr.f32.mxu0 %v19604_v5 }
 0x132   : > { %11616 = vmatmul.mubr.msk.f32.gmra.mrb[18].mxu0 %vm369_vm1, %v11596_v17  ;;  %v11693_v17 = vld [vmem:[%s15890_s15 + $0x470] sm:$0xff] }
 0x133   : > { %2253 = vmatprep.mubr.f32.mxu0 %v19604_v5 }
 0x136   : > { %11617 = vmatmul.mubr.msk.f32.gmra.mrb[20].mxu0 %vm369_vm1, %v11597_v18  ;;  %v11694_v18 = vld [vmem:[%s15890_s15 + $0x478] sm:$0x7] }
 0x137   : > { %2259 = vmatprep.mubr.f32.mxu0 %v19604_v5 }
 0x13a   : > { %11618 = vmatmul.mubr.msk.f32.gmra.mrb[22].mxu0 %vm369_vm1, %v11598_v19  ;;  %v11759_v19 = vld [vmem:[%s19591_s1 + $0x270] sm:$0xff] }
 0x13b   : > { %2416 = vmatprep.mubr.f32.mxu0 %v19604_v5 }
 0x13e   : > { %11639 = vmatmul.mubr.msk.f32.vlgmr.msra.gmra.mrb[0].mxu0 %vm369_vm1, %v11619_v22  ;;  %v14018_v22 = vpack.c.bf16 %v11761_v20, %v11759_v19  ;;  %v11845_v19 = vld [vmem:[%s19591_s1 + $0x310] sm:$0xff]  ;;  %v11811_v20 = vld [vmem:[%s15890_s15 + $0x5a0] sm:$0xff] }
 0x13f   : > { %2422 = vmatprep.mubr.f32.mxu0 %v19604_v5  ;;  %14007 = vmatpush1.bf16.msra.mxu0 %v14006_v23  ;;  %v11764_v23 = vld [vmem:[%s19591_s1 + $0x298] sm:$0xf] }
 0x140   : > { %11669 = vmatprep.subr.msk.mxu0 %vm406_vm0, %v11668_v24  ;;  %v11792_v24 = vld [vmem:[%s19591_s1 + $0x2a8] sm:$0xff] }
 0x142   : > { %11640 = vmatmul.mubr.msk.f32.gmra.mrb[2].mxu0 %vm369_vm1, %v11620_v27  ;;  %v11763_v27 = vld [vmem:[%s19591_s1 + $0x290] sm:$0xf] }
 0x143   : > { %2428 = vmatprep.mubr.f32.mxu0 %v19604_v5  ;;  %11670 = vmatpush1.msk.msra.mxu0 %vm406_vm0, %v11667_v28  ;;  %v14020_v28 = vpack.c.bf16 %v11794_v25, %v11792_v24  ;;  %v11878_v24 = vld [vmem:[%s19591_s1 + $0x348] sm:$0xff] }
 0x144   : > { %14009 = vmatprep.subr.bf16.mxu0 %v14008_v29  ;;  %v11717_v29 = vld [vmem:[%s15890_s15 + $0x490] sm:$0xff]  ;;  %v11812_v25 = vld [vmem:[%s15890_s15 + $0x5a8] sm:$0xff] }
 0x146   : > { %11641 = vmatmul.mubr.msk.f32.gmra.mrb[4].mxu0 %vm369_vm1, %v11621_v30  ;;  %v11718_v30 = vld [vmem:[%s15890_s15 + $0x498] sm:$0xff] }
 0x147   : > { %2434 = vmatprep.mubr.f32.mxu0 %v19604_v5 }
 0x14a   : > { %11642 = vmatmul.mubr.msk.f32.gmra.mrb[6].mxu0 %vm369_vm1, %v11622_v31  ;;  %v11719_v31 = vld [vmem:[%s15890_s15 + $0x4a0] sm:$0xff] }
 0x14b   : > { %2440 = vmatprep.mubr.f32.mxu0 %v19604_v5 }
 0x14e   : > { %11643 = vmatmul.mubr.msk.f32.gmra.mrb[8].mxu0 %vm369_vm1, %v11623_v32  ;;  %v11720_v32 = vld [vmem:[%s15890_s15 + $0x4a8] sm:$0xff] }
 0x14f   : > { %2446 = vmatprep.mubr.f32.mxu0 %v19604_v5 }
 0x152   : > { %11644 = vmatmul.mubr.msk.f32.gmra.mrb[10].mxu0 %vm369_vm1, %v11624_v33  ;;  %v11721_v33 = vld [vmem:[%s15890_s15 + $0x4b0] sm:$0xff] }
 0x153   : > { %2452 = vmatprep.mubr.f32.mxu0 %v19604_v5 }
 0x156   : > { %11645 = vmatmul.mubr.msk.f32.gmra.mrb[12].mxu0 %vm369_vm1, %v11625_v34  ;;  %v11722_v34 = vld [vmem:[%s15890_s15 + $0x4b8] sm:$0xff] }
 0x157   : > { %2458 = vmatprep.mubr.f32.mxu0 %v19604_v5 }
 0x15a   : > { %11646 = vmatmul.mubr.msk.f32.gmra.mrb[14].mxu0 %vm369_vm1, %v11626_v35  ;;  %v11723_v35 = vld [vmem:[%s15890_s15 + $0x4c0] sm:$0xff] }
 0x15b   : > { %2464 = vmatprep.mubr.f32.mxu0 %v19604_v5 }
 0x15e   : > { %11647 = vmatmul.mubr.msk.f32.gmra.mrb[16].mxu0 %vm369_vm1, %v11627_v36  ;;  %v11724_v36 = vld [vmem:[%s15890_s15 + $0x4c8] sm:$0xff] }
 0x15f   : > { %2470 = vmatprep.mubr.f32.mxu0 %v19604_v5 }
 0x162   : > { %11648 = vmatmul.mubr.msk.f32.gmra.mrb[18].mxu0 %vm369_vm1, %v11628_v37  ;;  %v11725_v37 = vld [vmem:[%s15890_s15 + $0x4d0] sm:$0xff] }
 0x163   : > { %2476 = vmatprep.mubr.f32.mxu0 %v19604_v5 }
 0x166   : > { %11649 = vmatmul.mubr.msk.f32.gmra.mrb[20].mxu0 %vm369_vm1, %v11629_v38  ;;  %v11726_v38 = vld [vmem:[%s15890_s15 + $0x4d8] sm:$0x7] }
 0x167   : > { %2482 = vmatprep.mubr.f32.mxu0 %v19604_v5 }
 0x16a   : > { %11650 = vmatmul.mubr.msk.f32.gmra.mrb[22].mxu0 %vm369_vm1, %v11630_v39  ;;  %v11791_v39 = vld [vmem:[%s19591_s1 + $0x2a0] sm:$0xff] }
 0x16b   : > { %2639 = vmatprep.mubr.f32.mxu0 %v19604_v5 }
 0x16e   : > { %11671 = vmatmul.mubr.msk.f32.vlgmr.msra.gmra.mrb[0].mxu0 %vm369_vm1, %v11651_v42  ;;  %v14022_v42 = vpack.c.bf16 %v11793_v40, %v11791_v39  ;;  %v11877_v39 = vld [vmem:[%s19591_s1 + $0x340] sm:$0xff] }
 0x16f   : > { %2645 = vmatprep.mubr.f32.mxu0 %v19604_v5  ;;  %14011 = vmatpush1.bf16.msra.mxu0 %v14010_v43  ;;  %v11796_v43 = vld [vmem:[%s19591_s1 + $0x2c8] sm:$0xf] }
 0x170   : > { %11701 = vmatprep.subr.msk.mxu0 %vm406_vm0, %v11700_v44  ;;  %v11824_v44 = vld [vmem:[%s19591_s1 + $0x2d8] sm:$0xff]  ;;  %v3851_v40 = vld [vmem:[%s15890_s15 + $0x1] sm:$0xff] }
 0x172   : > { %11672 = vmatmul.mubr.msk.f32.gmra.mrb[2].mxu0 %vm369_vm1, %v11652_v47  ;;  %v11795_v47 = vld [vmem:[%s19591_s1 + $0x2c0] sm:$0xf] }
 0x173   : > { %2651 = vmatprep.mubr.f32.mxu0 %v19604_v5  ;;  %11702 = vmatpush1.msk.msra.mxu0 %vm406_vm0, %v11699_v48  ;;  %v14024_v48 = vpack.c.bf16 %v11826_v45, %v11824_v44  ;;  %v11910_v44 = vld [vmem:[%s19591_s1 + $0x378] sm:$0xff]  ;;  %v3852_v45 = vld [vmem:[%s15890_s15 + $0x9] sm:$0xff] }
 0x174   : > { %14013 = vmatprep.subr.bf16.mxu0 %v14012_v49  ;;  %v11749_v49 = vld [vmem:[%s15890_s15 + $0x4f0] sm:$0xff] }
 0x176   : > { %11673 = vmatmul.mubr.msk.f32.gmra.mrb[4].mxu0 %vm369_vm1, %v11653_v50  ;;  %v11750_v50 = vld [vmem:[%s15890_s15 + $0x4f8] sm:$0xff] }
 0x177   : > { %2657 = vmatprep.mubr.f32.mxu0 %v19604_v5 }
 0x17a   : > { %11674 = vmatmul.mubr.msk.f32.gmra.mrb[6].mxu0 %vm369_vm1, %v11654_v51  ;;  %v11751_v51 = vld [vmem:[%s15890_s15 + $0x500] sm:$0xff] }
 0x17b   : > { %2663 = vmatprep.mubr.f32.mxu0 %v19604_v5 }
 0x17e   : > { %11675 = vmatmul.mubr.msk.f32.gmra.mrb[8].mxu0 %vm369_vm1, %v11655_v52  ;;  %v11752_v52 = vld [vmem:[%s15890_s15 + $0x508] sm:$0xff] }
 0x17f   : > { %2669 = vmatprep.mubr.f32.mxu0 %v19604_v5 }
 0x182   : > { %11676 = vmatmul.mubr.msk.f32.gmra.mrb[10].mxu0 %vm369_vm1, %v11656_v53  ;;  %v11753_v53 = vld [vmem:[%s15890_s15 + $0x510] sm:$0xff] }
 0x183   : > { %2675 = vmatprep.mubr.f32.mxu0 %v19604_v5 }
 0x186   : > { %11677 = vmatmul.mubr.msk.f32.gmra.mrb[12].mxu0 %vm369_vm1, %v11657_v54  ;;  %v11754_v54 = vld [vmem:[%s15890_s15 + $0x518] sm:$0xff] }
 0x187   : > { %2681 = vmatprep.mubr.f32.mxu0 %v19604_v5 }
 0x18a   : > { %11678 = vmatmul.mubr.msk.f32.gmra.mrb[14].mxu0 %vm369_vm1, %v11658_v55  ;;  %v11755_v55 = vld [vmem:[%s15890_s15 + $0x520] sm:$0xff] }
 0x18b   : > { %2687 = vmatprep.mubr.f32.mxu0 %v19604_v5 }
 0x18e   : > { %11679 = vmatmul.mubr.msk.f32.gmra.mrb[16].mxu0 %vm369_vm1, %v11659_v56  ;;  %v11756_v56 = vld [vmem:[%s15890_s15 + $0x528] sm:$0xff] }
 0x18f   : > { %2693 = vmatprep.mubr.f32.mxu0 %v19604_v5 }
 0x192   : > { %11680 = vmatmul.mubr.msk.f32.gmra.mrb[18].mxu0 %vm369_vm1, %v11660_v57  ;;  %v11757_v57 = vld [vmem:[%s15890_s15 + $0x530] sm:$0xff] }
 0x193   : > { %2699 = vmatprep.mubr.f32.mxu0 %v19604_v5 }
 0x196   : > { %11681 = vmatmul.mubr.msk.f32.gmra.mrb[20].mxu0 %vm369_vm1, %v11661_v58  ;;  %v11758_v58 = vld [vmem:[%s15890_s15 + $0x538] sm:$0x7] }
 0x197   : > { %2705 = vmatprep.mubr.f32.mxu0 %v19604_v5 }
 0x19a   : > { %11682 = vmatmul.mubr.msk.f32.gmra.mrb[22].mxu0 %vm369_vm1, %v11662_v59  ;;  %v11823_v59 = vld [vmem:[%s19591_s1 + $0x2d0] sm:$0xff] }
 0x19b   : > { %2862 = vmatprep.mubr.f32.mxu0 %v19604_v5 }
 0x19e   : > { %11703 = vmatmul.mubr.msk.f32.vlgmr.msra.gmra.mrb[0].mxu0 %vm369_vm1, %v11683_v62  ;;  %v14026_v62 = vpack.c.bf16 %v11825_v60, %v11823_v59  ;;  %v11909_v59 = vld [vmem:[%s19591_s1 + $0x370] sm:$0xff]  ;;  %v11863_v60 = vld [vmem:[%s15890_s15 + $0x61] sm:$0xff] }
 0x19f   : > { %2868 = vmatprep.mubr.f32.mxu0 %v19604_v5  ;;  %14015 = vmatpush1.bf16.msra.mxu0 %v14014_v63  ;;  %v11828_v63 = vld [vmem:[%s19591_s1 + $0x2f8] sm:$0xf] }
 0x1a0   : > { %11733 = vmatprep.subr.msk.mxu0 %vm406_vm0, %v11732_v0  ;;  %v11844_v0 = vld [vmem:[%s19591_s1 + $0x308] sm:$0xff] }
 0x1a2   : > { %11704 = vmatmul.mubr.msk.f32.gmra.mrb[2].mxu0 %vm369_vm1, %v11684_v4  ;;  %v11827_v4 = vld [vmem:[%s19591_s1 + $0x2f0] sm:$0xf] }
 0x1a3   : > { %2874 = vmatprep.mubr.f32.mxu0 %v19604_v5  ;;  %11734 = vmatpush1.msk.msra.mxu0 %vm406_vm0, %v11731_v7  ;;  %v14028_v7 = vpack.c.bf16 %v11846_v1, %v11844_v0  ;;  %v11942_v0 = vld [vmem:[%s19591_s1 + $0x3a8] sm:$0xff] }
 0x1a4   : > { %14017 = vmatprep.subr.bf16.mxu0 %v14016_v8  ;;  %v11781_v8 = vld [vmem:[%s15890_s15 + $0x550] sm:$0xff] }
 0x1a5   : > { %v11864_v1 = vld [vmem:[%s15890_s15 + $0x69] sm:$0xff] }
 0x1a6   : > { %11705 = vmatmul.mubr.msk.f32.gmra.mrb[4].mxu0 %vm369_vm1, %v11685_v9  ;;  %v11782_v9 = vld [vmem:[%s15890_s15 + $0x558] sm:$0xff] }
 0x1a7   : > { %2880 = vmatprep.mubr.f32.mxu0 %v19604_v5 }
 0x1aa   : > { %11706 = vmatmul.mubr.msk.f32.gmra.mrb[6].mxu0 %vm369_vm1, %v11686_v10  ;;  %v11783_v10 = vld [vmem:[%s15890_s15 + $0x560] sm:$0xff] }
 0x1ab   : > { %2886 = vmatprep.mubr.f32.mxu0 %v19604_v5 }
 0x1ae   : > { %11707 = vmatmul.mubr.msk.f32.gmra.mrb[8].mxu0 %vm369_vm1, %v11687_v11  ;;  %v11784_v11 = vld [vmem:[%s15890_s15 + $0x568] sm:$0xff] }
 0x1af   : > { %2892 = vmatprep.mubr.f32.mxu0 %v19604_v5 }
 0x1b2   : > { %11708 = vmatmul.mubr.msk.f32.gmra.mrb[10].mxu0 %vm369_vm1, %v11688_v12  ;;  %v11785_v12 = vld [vmem:[%s15890_s15 + $0x570] sm:$0xff] }
 0x1b3   : > { %2898 = vmatprep.mubr.f32.mxu0 %v19604_v5 }
 0x1b6   : > { %11709 = vmatmul.mubr.msk.f32.gmra.mrb[12].mxu0 %vm369_vm1, %v11689_v13  ;;  %v11786_v13 = vld [vmem:[%s15890_s15 + $0x578] sm:$0xff] }
 0x1b7   : > { %2904 = vmatprep.mubr.f32.mxu0 %v19604_v5 }
 0x1ba   : > { %11710 = vmatmul.mubr.msk.f32.gmra.mrb[14].mxu0 %vm369_vm1, %v11690_v14  ;;  %v11787_v14 = vld [vmem:[%s15890_s15 + $0x580] sm:$0xff] }
 0x1bb   : > { %2910 = vmatprep.mubr.f32.mxu0 %v19604_v5 }
 0x1be   : > { %11711 = vmatmul.mubr.msk.f32.gmra.mrb[16].mxu0 %vm369_vm1, %v11691_v15  ;;  %v11788_v15 = vld [vmem:[%s15890_s15 + $0x588] sm:$0xff] }
 0x1bf   : > { %2916 = vmatprep.mubr.f32.mxu0 %v19604_v5 }
 0x1c2   : > { %11712 = vmatmul.mubr.msk.f32.gmra.mrb[18].mxu0 %vm369_vm1, %v11692_v16  ;;  %v11789_v16 = vld [vmem:[%s15890_s15 + $0x590] sm:$0xff] }
 0x1c3   : > { %2922 = vmatprep.mubr.f32.mxu0 %v19604_v5 }
 0x1c6   : > { %11713 = vmatmul.mubr.msk.f32.gmra.mrb[20].mxu0 %vm369_vm1, %v11693_v17  ;;  %v11790_v17 = vld [vmem:[%s15890_s15 + $0x598] sm:$0x7] }
 0x1c7   : > { %2928 = vmatprep.mubr.f32.mxu0 %v19604_v5 }
 0x1ca   : > { %11714 = vmatmul.mubr.msk.f32.gmra.mrb[22].mxu0 %vm369_vm1, %v11694_v18  ;;  %v11843_v18 = vld [vmem:[%s19591_s1 + $0x300] sm:$0xff] }
 0x1cb   : > { %3085 = vmatprep.mubr.f32.mxu0 %v19604_v5 }
 0x1ce   : > { %11735 = vmatmul.mubr.msk.f32.vlgmr.msra.gmra.mrb[0].mxu0 %vm369_vm1, %v11715_v21  ;;  %v14030_v21 = vpack.c.bf16 %v11845_v19, %v11843_v18  ;;  %v11871_v19 = vld [vmem:[%s15890_s15 + $0xa1] sm:$0xff] }
 0x1cf   : > { %3091 = vmatprep.mubr.f32.mxu0 %v19604_v5  ;;  %14019 = vmatpush1.bf16.msra.mxu0 %v14018_v22  ;;  %v11848_v22 = vld [vmem:[%s19591_s1 + $0x328] sm:$0xf] }
 0x1d0   : > { %11765 = vmatprep.subr.msk.mxu0 %vm406_vm0, %v11764_v23  ;;  %v11876_v23 = vld [vmem:[%s19591_s1 + $0x338] sm:$0xff] }
 0x1d2   : > { %11736 = vmatmul.mubr.msk.f32.gmra.mrb[2].mxu0 %vm369_vm1, %v11716_v26  ;;  %v11847_v26 = vld [vmem:[%s19591_s1 + $0x320] sm:$0xf] }
 0x1d3   : > { %3097 = vmatprep.mubr.f32.mxu0 %v19604_v5  ;;  %11766 = vmatpush1.msk.msra.mxu0 %vm406_vm0, %v11763_v27  ;;  %v14032_v27 = vpack.c.bf16 %v11878_v24, %v11876_v23  ;;  %v11872_v23 = vld [vmem:[%s15890_s15 + $0xa9] sm:$0xff] }
 0x1d4   : > { %14021 = vmatprep.subr.bf16.mxu0 %v14020_v28  ;;  %v11813_v28 = vld [vmem:[%s15890_s15 + $0x5b0] sm:$0xff]  ;;  %v11350_v24 = vld [vmem:[%s15890_s15 + $0x68] sm:$0xff] }
 0x1d6   : > { %11737 = vmatmul.mubr.msk.f32.gmra.mrb[4].mxu0 %vm369_vm1, %v11717_v29  ;;  %v11814_v29 = vld [vmem:[%s15890_s15 + $0x5b8] sm:$0xff] }
 0x1d7   : > { %3103 = vmatprep.mubr.f32.mxu0 %v19604_v5 }
 0x1da   : > { %11738 = vmatmul.mubr.msk.f32.gmra.mrb[6].mxu0 %vm369_vm1, %v11718_v30  ;;  %v11815_v30 = vld [vmem:[%s15890_s15 + $0x5c0] sm:$0xff] }
 0x1db   : > { %3109 = vmatprep.mubr.f32.mxu0 %v19604_v5 }
 0x1de   : > { %11739 = vmatmul.mubr.msk.f32.gmra.mrb[8].mxu0 %vm369_vm1, %v11719_v31  ;;  %v11816_v31 = vld [vmem:[%s15890_s15 + $0x5c8] sm:$0xff] }
 0x1df   : > { %3115 = vmatprep.mubr.f32.mxu0 %v19604_v5 }
 0x1e2   : > { %11740 = vmatmul.mubr.msk.f32.gmra.mrb[10].mxu0 %vm369_vm1, %v11720_v32  ;;  %v11817_v32 = vld [vmem:[%s15890_s15 + $0x5d0] sm:$0xff] }
 0x1e3   : > { %3121 = vmatprep.mubr.f32.mxu0 %v19604_v5 }
 0x1e6   : > { %11741 = vmatmul.mubr.msk.f32.gmra.mrb[12].mxu0 %vm369_vm1, %v11721_v33  ;;  %v11818_v33 = vld [vmem:[%s15890_s15 + $0x5d8] sm:$0xff] }
 0x1e7   : > { %3127 = vmatprep.mubr.f32.mxu0 %v19604_v5 }
 0x1ea   : > { %11742 = vmatmul.mubr.msk.f32.gmra.mrb[14].mxu0 %vm369_vm1, %v11722_v34  ;;  %v11819_v34 = vld [vmem:[%s15890_s15 + $0x5e0] sm:$0xff] }
 0x1eb   : > { %3133 = vmatprep.mubr.f32.mxu0 %v19604_v5 }
 0x1ee   : > { %11743 = vmatmul.mubr.msk.f32.gmra.mrb[16].mxu0 %vm369_vm1, %v11723_v35  ;;  %v11820_v35 = vld [vmem:[%s15890_s15 + $0x5e8] sm:$0xff] }
 0x1ef   : > { %3139 = vmatprep.mubr.f32.mxu0 %v19604_v5 }
 0x1f2   : > { %11744 = vmatmul.mubr.msk.f32.gmra.mrb[18].mxu0 %vm369_vm1, %v11724_v36  ;;  %v11821_v36 = vld [vmem:[%s15890_s15 + $0x5f0] sm:$0xff] }
 0x1f3   : > { %3145 = vmatprep.mubr.f32.mxu0 %v19604_v5 }
 0x1f6   : > { %11745 = vmatmul.mubr.msk.f32.gmra.mrb[20].mxu0 %vm369_vm1, %v11725_v37  ;;  %v11822_v37 = vld [vmem:[%s15890_s15 + $0x5f8] sm:$0x7] }
 0x1f7   : > { %3151 = vmatprep.mubr.f32.mxu0 %v19604_v5 }
 0x1fa   : > { %11746 = vmatmul.mubr.msk.f32.gmra.mrb[22].mxu0 %vm369_vm1, %v11726_v38  ;;  %v11875_v38 = vld [vmem:[%s19591_s1 + $0x330] sm:$0xff] }
 0x1fb   : > { %3308 = vmatprep.mubr.f32.mxu0 %v19604_v5 }
 0x1fe   : > { %11767 = vmatmul.mubr.msk.f32.vlgmr.msra.gmra.mrb[0].mxu0 %vm369_vm1, %v11747_v41  ;;  %v14034_v41 = vpack.c.bf16 %v11877_v39, %v11875_v38  ;;  %v11943_v38 = vld [vmem:[%s19591_s1 + $0x3b0] sm:$0xf] }
 0x1ff   : > { %3314 = vmatprep.mubr.f32.mxu0 %v19604_v5  ;;  %14023 = vmatpush1.bf16.msra.mxu0 %v14022_v42  ;;  %v11880_v42 = vld [vmem:[%s19591_s1 + $0x358] sm:$0xf] }
 0x200   : > { %11797 = vmatprep.subr.msk.mxu0 %vm406_vm0, %v11796_v43  ;;  %v11908_v43 = vld [vmem:[%s19591_s1 + $0x368] sm:$0xff] }
 0x202   : > { %11768 = vmatmul.mubr.msk.f32.gmra.mrb[2].mxu0 %vm369_vm1, %v11748_v46  ;;  %v11879_v46 = vld [vmem:[%s19591_s1 + $0x350] sm:$0xf] }
 0x203   : > { %3320 = vmatprep.mubr.f32.mxu0 %v19604_v5  ;;  %11798 = vmatpush1.msk.msra.mxu0 %vm406_vm0, %v11795_v47  ;;  %v14036_v47 = vpack.c.bf16 %v11910_v44, %v11908_v43  ;;  %v11898_v43 = vld [vmem:[%s15890_s15 + $0xd9] sm:$0xff] }
 0x204   : > { %14025 = vmatprep.subr.bf16.mxu0 %v14024_v48  ;;  %v3853_v48 = vld [vmem:[%s15890_s15 + $0x11] sm:$0xff] }
 0x205   : > { %v11356_v44 = vld [vmem:[%s15890_s15 + $0x98] sm:$0xff] }
 0x206   : > { %11769 = vmatmul.mubr.msk.f32.gmra.mrb[4].mxu0 %vm369_vm1, %v11749_v49  ;;  %v3854_v49 = vld [vmem:[%s15890_s15 + $0x19] sm:$0xff] }
 0x207   : > { %3326 = vmatprep.mubr.f32.mxu0 %v19604_v5 }
 0x20a   : > { %11770 = vmatmul.mubr.msk.f32.gmra.mrb[6].mxu0 %vm369_vm1, %v11750_v50  ;;  %v3855_v50 = vld [vmem:[%s15890_s15 + $0x21] sm:$0xff] }
 0x20b   : > { %3332 = vmatprep.mubr.f32.mxu0 %v19604_v5 }
 0x20e   : > { %11771 = vmatmul.mubr.msk.f32.gmra.mrb[8].mxu0 %vm369_vm1, %v11751_v51  ;;  %v3856_v51 = vld [vmem:[%s15890_s15 + $0x29] sm:$0xff] }
 0x20f   : > { %3338 = vmatprep.mubr.f32.mxu0 %v19604_v5 }
 0x212   : > { %11772 = vmatmul.mubr.msk.f32.gmra.mrb[10].mxu0 %vm369_vm1, %v11752_v52  ;;  %v3857_v52 = vld [vmem:[%s15890_s15 + $0x31] sm:$0xff] }
 0x213   : > { %3344 = vmatprep.mubr.f32.mxu0 %v19604_v5 }
 0x216   : > { %11773 = vmatmul.mubr.msk.f32.gmra.mrb[12].mxu0 %vm369_vm1, %v11753_v53  ;;  %v3858_v53 = vld [vmem:[%s15890_s15 + $0x39] sm:$0xff] }
 0x217   : > { %3350 = vmatprep.mubr.f32.mxu0 %v19604_v5 }
 0x21a   : > { %11774 = vmatmul.mubr.msk.f32.gmra.mrb[14].mxu0 %vm369_vm1, %v11754_v54  ;;  %v3859_v54 = vld [vmem:[%s15890_s15 + $0x41] sm:$0xff] }
 0x21b   : > { %3356 = vmatprep.mubr.f32.mxu0 %v19604_v5 }
 0x21e   : > { %11775 = vmatmul.mubr.msk.f32.gmra.mrb[16].mxu0 %vm369_vm1, %v11755_v55  ;;  %v3860_v55 = vld [vmem:[%s15890_s15 + $0x49] sm:$0xff] }
 0x21f   : > { %3362 = vmatprep.mubr.f32.mxu0 %v19604_v5 }
 0x222   : > { %11776 = vmatmul.mubr.msk.f32.gmra.mrb[18].mxu0 %vm369_vm1, %v11756_v56  ;;  %v3861_v56 = vld [vmem:[%s15890_s15 + $0x51] sm:$0xff] }
 0x223   : > { %3368 = vmatprep.mubr.f32.mxu0 %v19604_v5 }
 0x226   : > { %11777 = vmatmul.mubr.msk.f32.gmra.mrb[20].mxu0 %vm369_vm1, %v11757_v57  ;;  %v3862_v57 = vld [vmem:[%s15890_s15 + $0x59] sm:$0x7] }
 0x227   : > { %3374 = vmatprep.mubr.f32.mxu0 %v19604_v5 }
 0x22a   : > { %11778 = vmatmul.mubr.msk.f32.gmra.mrb[22].mxu0 %vm369_vm1, %v11758_v58  ;;  %v11907_v58 = vld [vmem:[%s19591_s1 + $0x360] sm:$0xff] }
 0x22b   : > { %3531 = vmatprep.mubr.f32.mxu0 %v19604_v5 }
 0x22e   : > { %11799 = vmatmul.mubr.msk.f32.vlgmr.msra.gmra.mrb[0].mxu0 %vm369_vm1, %v11779_v61  ;;  %v14038_v61 = vpack.c.bf16 %v11909_v59, %v11907_v58  ;;  %v11360_v58 = vld [vmem:[%s15890_s15 + $0xb8] sm:$0x7]  ;;  %v11903_v59 = vld [vmem:[%s15890_s15 + $0x101] sm:$0xff] }
 0x22f   : > { %3537 = vmatprep.mubr.f32.mxu0 %v19604_v5  ;;  %14027 = vmatpush1.bf16.msra.mxu0 %v14026_v62  ;;  %v11912_v62 = vld [vmem:[%s19591_s1 + $0x388] sm:$0xf] }
 0x230   : > { %11829 = vmatprep.subr.msk.mxu0 %vm406_vm0, %v11828_v63  ;;  %v11940_v63 = vld [vmem:[%s19591_s1 + $0x398] sm:$0xff] }
 0x232   : > { %11800 = vmatmul.mubr.msk.f32.gmra.mrb[2].mxu0 %vm369_vm1, %v11780_v2  ;;  %v11911_v2 = vld [vmem:[%s19591_s1 + $0x380] sm:$0xf] }
 0x233   : > { %3543 = vmatprep.mubr.f32.mxu0 %v19604_v5  ;;  %11830 = vmatpush1.msk.msra.mxu0 %vm406_vm0, %v11827_v4  ;;  %v14040_v4 = vpack.c.bf16 %v11942_v0, %v11940_v63  ;;  %v11904_v63 = vld [vmem:[%s15890_s15 + $0x109] sm:$0xff] }
 0x234   : > { %14029 = vmatprep.subr.bf16.mxu0 %v14028_v7  ;;  %v11865_v7 = vld [vmem:[%s15890_s15 + $0x71] sm:$0xff]  ;;  %v332_v0 = vld [vmem:[%s15890_s15 + $0x8] sm:$0xff] }
 0x236   : > { %11801 = vmatmul.mubr.msk.f32.gmra.mrb[4].mxu0 %vm369_vm1, %v11781_v8  ;;  %v11866_v8 = vld [vmem:[%s15890_s15 + $0x79] sm:$0xff] }
 0x237   : > { %3549 = vmatprep.mubr.f32.mxu0 %v19604_v5 }
 0x23a   : > { %11802 = vmatmul.mubr.msk.f32.gmra.mrb[6].mxu0 %vm369_vm1, %v11782_v9  ;;  %v11867_v9 = vld [vmem:[%s15890_s15 + $0x81] sm:$0xff] }
 0x23b   : > { %3555 = vmatprep.mubr.f32.mxu0 %v19604_v5 }
 0x23e   : > { %11803 = vmatmul.mubr.msk.f32.gmra.mrb[8].mxu0 %vm369_vm1, %v11783_v10  ;;  %v11868_v10 = vld [vmem:[%s15890_s15 + $0x89] sm:$0xff] }
 0x23f   : > { %3561 = vmatprep.mubr.f32.mxu0 %v19604_v5 }
 0x242   : > { %11804 = vmatmul.mubr.msk.f32.gmra.mrb[10].mxu0 %vm369_vm1, %v11784_v11  ;;  %v11869_v11 = vld [vmem:[%s15890_s15 + $0x91] sm:$0xff] }
 0x243   : > { %3567 = vmatprep.mubr.f32.mxu0 %v19604_v5 }
 0x246   : > { %11805 = vmatmul.mubr.msk.f32.gmra.mrb[12].mxu0 %vm369_vm1, %v11785_v12  ;;  %v11870_v12 = vld [vmem:[%s15890_s15 + $0x99] sm:$0xff] }
 0x247   : > { %3573 = vmatprep.mubr.f32.mxu0 %v19604_v5 }
 0x24a   : > { %11806 = vmatmul.mubr.msk.f32.gmra.mrb[14].mxu0 %vm369_vm1, %v11786_v13  ;;  %v11362_v13 = vld [vmem:[%s19591_s1 + $0x38] sm:$0xff] }
 0x24b   : > { %3579 = vmatprep.mubr.f32.mxu0 %v19604_v5 }
 0x24e   : > { %11807 = vmatmul.mubr.msk.f32.gmra.mrb[16].mxu0 %vm369_vm1, %v11787_v14  ;;  %v11364_v14 = vld [vmem:[%s19591_s1 + $0x48] sm:$0xff] }
 0x24f   : > { %3585 = vmatprep.mubr.f32.mxu0 %v19604_v5 }
 0x252   : > { %11808 = vmatmul.mubr.msk.f32.gmra.mrb[18].mxu0 %vm369_vm1, %v11788_v15  ;;  %v13964_v15 = vpack.c.bf16 %v11364_v14, %v11362_v13  ;;  %v12004_v13 = vld [vmem:[%s19591_s1 + $0x3f8] sm:$0xff]  ;;  %v12006_v14 = vld [vmem:[%s19591_s1 + $0x408] sm:$0xff] }
 0x253   : > { %3591 = vmatprep.mubr.f32.mxu0 %v19604_v5 }
 0x254   : > { %13965 = vmatprep.subr.bf16.mxu1 %v13964_v15  ;;  %v335_v15 = vld [vmem:[%s15890_s15 + $0x20] sm:$0xff] }
 0x256   : > { %11809 = vmatmul.mubr.msk.f32.gmra.mrb[20].mxu0 %vm369_vm1, %v11789_v16  ;;  %v11361_v16 = vld [vmem:[%s19591_s1 + $0x30] sm:$0xff] }
 0x257   : > { %3597 = vmatprep.mubr.f32.mxu0 %v19604_v5 }
 0x25a   : > { %11810 = vmatmul.mubr.msk.f32.gmra.mrb[22].mxu0 %vm369_vm1, %v11790_v17  ;;  %v11363_v17 = vld [vmem:[%s19591_s1 + $0x40] sm:$0xff] }
 0x25b   : > { %3754 = vmatprep.mubr.f32.mxu0 %v19604_v5  ;;  %v13966_v18 = vpack.c.bf16 %v11363_v17, %v11361_v16  ;;  %v11928_v16 = vld [vmem:[%s15890_s15 + $0x129] sm:$0xff]  ;;  %v11975_v17 = vld [vmem:[%s19591_s1 + $0x3e0] sm:$0xf] }
 0x25d   : > { %13967 = vmatpush1.bf16.msra.mxu1 %v13966_v18  ;;  %v14048_v18 = vpack.c.bf16 %v12006_v14, %v12004_v13  ;;  %v11993_v13 = vld [vmem:[%s15890_s15 + $0x1f1] sm:$0xff]  ;;  %v11994_v14 = vld [vmem:[%s15890_s15 + $0x1f9] sm:$0xff] }
 0x25e   : > { %11831 = vmatmul.mubr.msk.f32.vlgmr.msra.gmra.mrb[0].mxu0 %vm369_vm1, %v11811_v20  ;;  %v11366_v20 = vld [vmem:[%s19591_s1 + $0x58] sm:$0xf] }
 0x25f   : > { %3760 = vmatprep.mubr.f32.mxu0 %v19604_v5  ;;  %14031 = vmatpush1.bf16.msra.mxu0 %v14030_v21  ;;  %v11365_v21 = vld [vmem:[%s19591_s1 + $0x50] sm:$0xf] }
 0x260   : > { %11849 = vmatprep.subr.msk.mxu0 %vm406_vm0, %v11848_v22  ;;  %v11349_v22 = vld [vmem:[%s15890_s15 + $0x60] sm:$0xff]  ;;  %11367 = vmatprep.subr.msk.mxu1 %vm406_vm0, %v11366_v20  ;;  %v11929_v20 = vld [vmem:[%s15890_s15 + $0x131] sm:$0xff] }
 0x261   : > { %11368 = vmatpush1.msk.msra.mxu1 %vm406_vm0, %v11365_v21  ;;  %v337_v21 = vld [vmem:[%s15890_s15 + $0x30] sm:$0xff] }
 0x262   : > { %11832 = vmatmul.mubr.msk.f32.gmra.mrb[2].mxu0 %vm369_vm1, %v11812_v25  ;;  %11369 = vmatmul.mubr.msk.f32.vlgmr.msra.gmra.mrb[0].mxu1 %vm369_vm1, %v11349_v22  ;;  %v11873_v25 = vld [vmem:[%s15890_s15 + $0xb1] sm:$0xff]  ;;  %v11930_v22 = vld [vmem:[%s15890_s15 + $0x139] sm:$0xff] }
 0x263   : > { %3766 = vmatprep.mubr.f32.mxu0 %v19604_v5  ;;  %11850 = vmatpush1.msk.msra.mxu0 %vm406_vm0, %v11847_v26  ;;  %v11351_v26 = vld [vmem:[%s15890_s15 + $0x70] sm:$0xff] }
 0x264   : > { %14033 = vmatprep.subr.bf16.mxu0 %v14032_v27  ;;  %483 = vmatprep.mubr.f32.mxu1 %v19604_v5  ;;  %v11874_v27 = vld [vmem:[%s15890_s15 + $0xb9] sm:$0x7] }
 0x266   : > { %11833 = vmatmul.mubr.msk.f32.gmra.mrb[4].mxu0 %vm369_vm1, %v11813_v28  ;;  %11370 = vmatmul.mubr.msk.f32.gmra.mrb[2].mxu1 %vm369_vm1, %v11350_v24  ;;  %v11939_v28 = vld [vmem:[%s19591_s1 + $0x390] sm:$0xff]  ;;  %v11931_v24 = vld [vmem:[%s15890_s15 + $0x141] sm:$0xff] }
 0x267   : > { %3772 = vmatprep.mubr.f32.mxu0 %v19604_v5  ;;  %489 = vmatprep.mubr.f32.mxu1 %v19604_v5 }
 0x26a   : > { %11834 = vmatmul.mubr.msk.f32.gmra.mrb[6].mxu0 %vm369_vm1, %v11814_v29  ;;  %v11941_v29 = vld [vmem:[%s19591_s1 + $0x3a0] sm:$0xff]  ;;  %11371 = vmatmul.mubr.msk.f32.gmra.mrb[4].mxu1 %vm369_vm1, %v11351_v26  ;;  %v11932_v26 = vld [vmem:[%s15890_s15 + $0x149] sm:$0xff] }
 0x26b   : > { %3778 = vmatprep.mubr.f32.mxu0 %v19604_v5  ;;  %495 = vmatprep.mubr.f32.mxu1 %v19604_v5 }
 0x26e   : > { %11835 = vmatmul.mubr.msk.f32.gmra.mrb[8].mxu0 %vm369_vm1, %v11815_v30  ;;  %v11352_v30 = vld [vmem:[%s15890_s15 + $0x78] sm:$0xff] }
 0x26f   : > { %3784 = vmatprep.mubr.f32.mxu0 %v19604_v5  ;;  %11372 = vmatmul.mubr.msk.f32.gmra.mrb[6].mxu1 %vm369_vm1, %v11352_v30  ;;  %v11934_v30 = vld [vmem:[%s15890_s15 + $0x159] sm:$0xff] }
 0x270   : > { %501 = vmatprep.mubr.f32.mxu1 %v19604_v5 }
 0x272   : > { %11836 = vmatmul.mubr.msk.f32.gmra.mrb[10].mxu0 %vm369_vm1, %v11816_v31  ;;  %v11895_v31 = vld [vmem:[%s15890_s15 + $0xc1] sm:$0xff] }
 0x273   : > { %3790 = vmatprep.mubr.f32.mxu0 %v19604_v5 }
 0x276   : > { %11837 = vmatmul.mubr.msk.f32.gmra.mrb[12].mxu0 %vm369_vm1, %v11817_v32  ;;  %v14042_v32 = vpack.c.bf16 %v11941_v29, %v11939_v28  ;;  %v11933_v28 = vld [vmem:[%s15890_s15 + $0x151] sm:$0xff] }
 0x277   : > { %3796 = vmatprep.mubr.f32.mxu0 %v19604_v5  ;;  %v341_v29 = vld [vmem:[%s15890_s15 + $0x50] sm:$0xff] }
 0x27a   : > { %11838 = vmatmul.mubr.msk.f32.gmra.mrb[14].mxu0 %vm369_vm1, %v11818_v33  ;;  %v11944_v33 = vld [vmem:[%s19591_s1 + $0x3b8] sm:$0xf] }
 0x27b   : > { %3802 = vmatprep.mubr.f32.mxu0 %v19604_v5 }
 0x27e   : > { %11839 = vmatmul.mubr.msk.f32.gmra.mrb[16].mxu0 %vm369_vm1, %v11819_v34  ;;  %v11972_v34 = vld [vmem:[%s19591_s1 + $0x3c8] sm:$0xff] }
 0x27f   : > { %3808 = vmatprep.mubr.f32.mxu0 %v19604_v5 }
 0x282   : > { %11840 = vmatmul.mubr.msk.f32.gmra.mrb[18].mxu0 %vm369_vm1, %v11820_v35  ;;  %v11974_v35 = vld [vmem:[%s19591_s1 + $0x3d8] sm:$0xff] }
 0x283   : > { %3814 = vmatprep.mubr.f32.mxu0 %v19604_v5  ;;  %v14044_v39 = vpack.c.bf16 %v11974_v35, %v11972_v34  ;;  %v11936_v34 = vld [vmem:[%s15890_s15 + $0x169] sm:$0xff]  ;;  %v11398_v35 = vld [vmem:[%s15890_s15 + $0xd8] sm:$0xff] }
 0x286   : > { %11841 = vmatmul.mubr.msk.f32.gmra.mrb[20].mxu0 %vm369_vm1, %v11821_v36  ;;  %v11353_v36 = vld [vmem:[%s15890_s15 + $0x80] sm:$0xff] }
 0x287   : > { %3820 = vmatprep.mubr.f32.mxu0 %v19604_v5  ;;  %11373 = vmatmul.mubr.msk.f32.gmra.mrb[8].mxu1 %vm369_vm1, %v11353_v36  ;;  %v11937_v36 = vld [vmem:[%s15890_s15 + $0x171] sm:$0xff] }
 0x288   : > { %507 = vmatprep.mubr.f32.mxu1 %v19604_v5 }
 0x28a   : > { %11842 = vmatmul.mubr.msk.f32.gmra.mrb[22].mxu0 %vm369_vm1, %v11822_v37  ;;  %v11896_v37 = vld [vmem:[%s15890_s15 + $0xc9] sm:$0xff] }
 0x28b   : > { %3976 = vmatprep.mubr.f32.mxu0 %v19604_v5 }
 0x28e   : > { %11851 = vmatmul.mubr.msk.f32.vlgmr.msra.gmra.mrb[0].mxu0 %vm369_vm1, %v3851_v40  ;;  %v11354_v40 = vld [vmem:[%s15890_s15 + $0x88] sm:$0xff] }
 0x28f   : > { %3982 = vmatprep.mubr.f32.mxu0 %v19604_v5  ;;  %14035 = vmatpush1.bf16.msra.mxu0 %v14034_v41  ;;  %v11897_v41 = vld [vmem:[%s15890_s15 + $0xd1] sm:$0xff] }
 0x290   : > { %11881 = vmatprep.subr.msk.mxu0 %vm406_vm0, %v11880_v42  ;;  %11374 = vmatmul.mubr.msk.f32.gmra.mrb[10].mxu1 %vm369_vm1, %v11354_v40  ;;  %v11355_v42 = vld [vmem:[%s15890_s15 + $0x90] sm:$0xff]  ;;  %v12005_v40 = vld [vmem:[%s19591_s1 + $0x400] sm:$0xff] }
 0x291   : > { %513 = vmatprep.mubr.f32.mxu1 %v19604_v5 }
 0x292   : > { %11852 = vmatmul.mubr.msk.f32.gmra.mrb[2].mxu0 %vm369_vm1, %v3852_v45  ;;  %v11899_v45 = vld [vmem:[%s15890_s15 + $0xe1] sm:$0xff] }
 0x293   : > { %3988 = vmatprep.mubr.f32.mxu0 %v19604_v5  ;;  %11882 = vmatpush1.msk.msra.mxu0 %vm406_vm0, %v11879_v46  ;;  %v11357_v46 = vld [vmem:[%s15890_s15 + $0xa0] sm:$0xff] }
 0x294   : > { %14037 = vmatprep.subr.bf16.mxu0 %v14036_v47  ;;  %11375 = vmatmul.mubr.msk.f32.gmra.mrb[12].mxu1 %vm369_vm1, %v11355_v42  ;;  %v11900_v47 = vld [vmem:[%s15890_s15 + $0xe9] sm:$0xff]  ;;  %v11959_v42 = vld [vmem:[%s15890_s15 + $0x181] sm:$0xff] }
 0x295   : > { %519 = vmatprep.mubr.f32.mxu1 %v19604_v5 }
 0x296   : > { %11853 = vmatmul.mubr.msk.f32.gmra.mrb[4].mxu0 %vm369_vm1, %v3853_v48  ;;  %v11358_v48 = vld [vmem:[%s15890_s15 + $0xa8] sm:$0xff] }
 0x297   : > { %3994 = vmatprep.mubr.f32.mxu0 %v19604_v5 }
 0x298   : > { %11376 = vmatmul.mubr.msk.f32.gmra.mrb[14].mxu1 %vm369_vm1, %v11356_v44  ;;  %v12008_v44 = vld [vmem:[%s19591_s1 + $0x418] sm:$0xf] }
 0x299   : > { %525 = vmatprep.mubr.f32.mxu1 %v19604_v5 }
 0x29a   : > { %11854 = vmatmul.mubr.msk.f32.gmra.mrb[6].mxu0 %vm369_vm1, %v3854_v49  ;;  %v11901_v49 = vld [vmem:[%s15890_s15 + $0xf1] sm:$0xff] }
 0x29b   : > { %4000 = vmatprep.mubr.f32.mxu0 %v19604_v5 }
 0x29c   : > { %11377 = vmatmul.mubr.msk.f32.gmra.mrb[16].mxu1 %vm369_vm1, %v11357_v46  ;;  %v12038_v46 = vld [vmem:[%s19591_s1 + $0x438] sm:$0xff] }
 0x29d   : > { %531 = vmatprep.mubr.f32.mxu1 %v19604_v5 }
 0x29e   : > { %11855 = vmatmul.mubr.msk.f32.gmra.mrb[8].mxu0 %vm369_vm1, %v3855_v50  ;;  %v11359_v50 = vld [vmem:[%s15890_s15 + $0xb0] sm:$0xff] }
 0x29f   : > { %4006 = vmatprep.mubr.f32.mxu0 %v19604_v5 }
 0x2a0   : > { %11378 = vmatmul.mubr.msk.f32.gmra.mrb[18].mxu1 %vm369_vm1, %v11358_v48  ;;  %v11960_v48 = vld [vmem:[%s15890_s15 + $0x189] sm:$0xff] }
 0x2a1   : > { %537 = vmatprep.mubr.f32.mxu1 %v19604_v5 }
 0x2a2   : > { %11856 = vmatmul.mubr.msk.f32.gmra.mrb[10].mxu0 %vm369_vm1, %v3856_v51  ;;  %v11902_v51 = vld [vmem:[%s15890_s15 + $0xf9] sm:$0xff] }
 0x2a3   : > { %4012 = vmatprep.mubr.f32.mxu0 %v19604_v5 }
 0x2a4   : > { %11379 = vmatmul.mubr.msk.f32.gmra.mrb[20].mxu1 %vm369_vm1, %v11359_v50 }
 0x2a5   : > { %543 = vmatprep.mubr.f32.mxu1 %v19604_v5 }
 0x2a6   : > { %11857 = vmatmul.mubr.msk.f32.gmra.mrb[12].mxu0 %vm369_vm1, %v3857_v52  ;;  %v344_v52 = vld [vmem:[%s19591_s1 + $0x8] sm:$0xff] }
 0x2a7   : > { %4018 = vmatprep.mubr.f32.mxu0 %v19604_v5 }
 0x2a8   : > { %11380 = vmatmul.mubr.msk.f32.gmra.mrb[22].mxu1 %vm369_vm1, %v11360_v58  ;;  %v11964_v58 = vld [vmem:[%s15890_s15 + $0x1a9] sm:$0xff] }
 0x2a9   : > { %656 = vmatprep.mubr.f32.mxu1 %v19604_v5 }
 0x2aa   : > { %11858 = vmatmul.mubr.msk.f32.gmra.mrb[14].mxu0 %vm369_vm1, %v3858_v53  ;;  %v346_v53 = vld [vmem:[%s19591_s1 + $0x18] sm:$0xff] }
 0x2ab   : > { %4024 = vmatprep.mubr.f32.mxu0 %v19604_v5 }
 0x2ae   : > { %11859 = vmatmul.mubr.msk.f32.gmra.mrb[16].mxu0 %vm369_vm1, %v3859_v54  ;;  %v13968_v54 = vpack.c.bf16 %v346_v53, %v344_v52  ;;  %v11961_v52 = vld [vmem:[%s15890_s15 + $0x191] sm:$0xff]  ;;  %v11403_v53 = vld [vmem:[%s15890_s15 + $0x100] sm:$0xff] }
 0x2af   : > { %4030 = vmatprep.mubr.f32.mxu0 %v19604_v5 }
 0x2b0   : > { %13969 = vmatprep.subr.bf16.mxu1 %v13968_v54  ;;  %v11962_v54 = vld [vmem:[%s15890_s15 + $0x199] sm:$0xff] }
 0x2b2   : > { %11860 = vmatmul.mubr.msk.f32.gmra.mrb[18].mxu0 %vm369_vm1, %v3860_v55  ;;  %v343_v55 = vld [vmem:[%s19591_s1] sm:$0xff] }
 0x2b3   : > { %4036 = vmatprep.mubr.f32.mxu0 %v19604_v5 }
 0x2b6   : > { %11861 = vmatmul.mubr.msk.f32.gmra.mrb[20].mxu0 %vm369_vm1, %v3861_v56  ;;  %v345_v56 = vld [vmem:[%s19591_s1 + $0x10] sm:$0xff] }
 0x2b7   : > { %4042 = vmatprep.mubr.f32.mxu0 %v19604_v5 }
 0x2ba   : > { %11862 = vmatmul.mubr.msk.f32.gmra.mrb[22].mxu0 %vm369_vm1, %v3862_v57  ;;  %v13970_v57 = vpack.c.bf16 %v345_v56, %v343_v55  ;;  %v11404_v55 = vld [vmem:[%s15890_s15 + $0x108] sm:$0xff] }
 0x2bb   : > { %4198 = vmatprep.mubr.f32.mxu0 %v19604_v5  ;;  %v11963_v56 = vld [vmem:[%s15890_s15 + $0x1a1] sm:$0xff] }
 0x2bc   : > { %13971 = vmatpush1.bf16.msra.mxu1 %v13970_v57  ;;  %v11405_v57 = vld [vmem:[%s15890_s15 + $0x110] sm:$0xff] }
 0x2be   : > { %11883 = vmatmul.mubr.msk.f32.vlgmr.msra.gmra.mrb[0].mxu0 %vm369_vm1, %v11863_v60  ;;  %v348_v60 = vld [vmem:[%s19591_s1 + $0x28] sm:$0xf] }
 0x2bf   : > { %4204 = vmatprep.mubr.f32.mxu0 %v19604_v5  ;;  %14039 = vmatpush1.bf16.msra.mxu0 %v14038_v61  ;;  %v347_v61 = vld [vmem:[%s19591_s1 + $0x20] sm:$0xf] }
 0x2c0   : > { %11913 = vmatprep.subr.msk.mxu0 %vm406_vm0, %v11912_v62  ;;  %v331_v62 = vld [vmem:[%s15890_s15] sm:$0xff]  ;;  %11381 = vmatprep.subr.msk.mxu1 %vm406_vm0, %v348_v60  ;;  %v11965_v60 = vld [vmem:[%s15890_s15 + $0x1b1] sm:$0xff] }
 0x2c1   : > { %11382 = vmatpush1.msk.msra.mxu1 %vm406_vm0, %v347_v61  ;;  %v11966_v61 = vld [vmem:[%s15890_s15 + $0x1b9] sm:$0xff] }
 0x2c2   : > { %11884 = vmatmul.mubr.msk.f32.gmra.mrb[2].mxu0 %vm369_vm1, %v11864_v1  ;;  %11383 = vmatmul.mubr.msk.f32.vlgmr.msra.gmra.mrb[0].mxu1 %vm369_vm1, %v331_v62  ;;  %v11905_v1 = vld [vmem:[%s15890_s15 + $0x111] sm:$0xff]  ;;  %v11967_v62 = vld [vmem:[%s15890_s15 + $0x1c1] sm:$0xff] }
 0x2c3   : > { %4210 = vmatprep.mubr.f32.mxu0 %v19604_v5  ;;  %11914 = vmatpush1.msk.msra.mxu0 %vm406_vm0, %v11911_v2  ;;  %v15754_v2 = vld [vmem:[%s19591_s1 + $0x88] sm:$0xf] }
 0x2c4   : > { %14041 = vmatprep.subr.bf16.mxu0 %v14040_v4  ;;  %14349 = vmatprep.subr.bf16.mxu1 %v15854_v3  ;;  %v333_v3 = vld [vmem:[%s15890_s15 + $0x10] sm:$0xff]  ;;  %v11906_v4 = vld [vmem:[%s15890_s15 + $0x119] sm:$0x7] }
 0x2c5   : > { %662 = vmatprep.mubr.f32.mxu1 %v19604_v5  ;;  %14351 = vmatpush1.bf16.msra.mxu1 %v15861_v6  ;;  %v15755_v6 = vld [vmem:[%s19591_s1 + $0x80] sm:$0xf] }
 0x2c6   : > { %11885 = vmatmul.mubr.msk.f32.gmra.mrb[4].mxu0 %vm369_vm1, %v11865_v7  ;;  %14350 = vmatprep.subr.msk.mxu1 %vm406_vm0, %v15754_v2  ;;  %v11971_v7 = vld [vmem:[%s19591_s1 + $0x3c0] sm:$0xff] }
 0x2c7   : > { %4216 = vmatprep.mubr.f32.mxu0 %v19604_v5  ;;  %11384 = vmatmul.mubr.msk.f32.gmra.mrb[2].mxu1 %vm369_vm1, %v332_v0  ;;  %v11969_v0 = vld [vmem:[%s15890_s15 + $0x1d1] sm:$0xff]  ;;  %v12035_v2 = vld [vmem:[%s19591_s1 + $0x420] sm:$0xff] }
 0x2c8   : > { %668 = vmatprep.mubr.f32.mxu1 %v19604_v5 }
 0x2c9   : > { %14352 = vmatpush1.msk.msra.mxu1 %vm406_vm0, %v15755_v6 }
 0x2ca   : > { %11886 = vmatmul.mubr.msk.f32.gmra.mrb[6].mxu0 %vm369_vm1, %v11866_v8  ;;  %v11973_v8 = vld [vmem:[%s19591_s1 + $0x3d0] sm:$0xff] }
 0x2cb   : > { %4222 = vmatprep.mubr.f32.mxu0 %v19604_v5  ;;  %11385 = vmatmul.mubr.msk.f32.gmra.mrb[4].mxu1 %vm369_vm1, %v333_v3  ;;  %v12037_v3 = vld [vmem:[%s19591_s1 + $0x430] sm:$0xff] }
 0x2cc   : > { %674 = vmatprep.mubr.f32.mxu1 %v19604_v5  ;;  %v14054_v6 = vpack.c.bf16 %v12037_v3, %v12035_v2  ;;  %v12088_v2 = vld [vmem:[%s15890_s15 + $0x309] sm:$0xff]  ;;  %v12089_v3 = vld [vmem:[%s15890_s15 + $0x311] sm:$0xff] }
 0x2ce   : > { %11887 = vmatmul.mubr.msk.f32.gmra.mrb[8].mxu0 %vm369_vm1, %v11867_v9  ;;  %v334_v9 = vld [vmem:[%s15890_s15 + $0x18] sm:$0xff] }
 0x2cf   : > { %4228 = vmatprep.mubr.f32.mxu0 %v19604_v5  ;;  %11386 = vmatmul.mubr.msk.f32.gmra.mrb[6].mxu1 %vm369_vm1, %v334_v9  ;;  %v12070_v9 = vld [vmem:[%s19591_s1 + $0x468] sm:$0xff] }
 0x2d0   : > { %680 = vmatprep.mubr.f32.mxu1 %v19604_v5 }
 0x2d2   : > { %11888 = vmatmul.mubr.msk.f32.gmra.mrb[10].mxu0 %vm369_vm1, %v11868_v10  ;;  %v11927_v10 = vld [vmem:[%s15890_s15 + $0x121] sm:$0xff] }
 0x2d3   : > { %4234 = vmatprep.mubr.f32.mxu0 %v19604_v5  ;;  %11387 = vmatmul.mubr.msk.f32.gmra.mrb[8].mxu1 %vm369_vm1, %v335_v15  ;;  %v11995_v15 = vld [vmem:[%s15890_s15 + $0x201] sm:$0xff] }
 0x2d4   : > { %686 = vmatprep.mubr.f32.mxu1 %v19604_v5 }
 0x2d6   : > { %11889 = vmatmul.mubr.msk.f32.gmra.mrb[12].mxu0 %vm369_vm1, %v11869_v11  ;;  %v14046_v11 = vpack.c.bf16 %v11973_v8, %v11971_v7  ;;  %v12040_v7 = vld [vmem:[%s19591_s1 + $0x448] sm:$0xf]  ;;  %v12068_v8 = vld [vmem:[%s19591_s1 + $0x458] sm:$0xff] }
 0x2d7   : > { %4240 = vmatprep.mubr.f32.mxu0 %v19604_v5 }
 0x2da   : > { %11890 = vmatmul.mubr.msk.f32.gmra.mrb[14].mxu0 %vm369_vm1, %v11870_v12  ;;  %v11976_v12 = vld [vmem:[%s19591_s1 + $0x3e8] sm:$0xf] }
 0x2db   : > { %4246 = vmatprep.mubr.f32.mxu0 %v19604_v5 }
 0x2de   : > { %11891 = vmatmul.mubr.msk.f32.gmra.mrb[16].mxu0 %vm369_vm1, %v11871_v19  ;;  %v336_v19 = vld [vmem:[%s15890_s15 + $0x28] sm:$0xff] }
 0x2df   : > { %4252 = vmatprep.mubr.f32.mxu0 %v19604_v5  ;;  %11388 = vmatmul.mubr.msk.f32.gmra.mrb[10].mxu1 %vm369_vm1, %v336_v19  ;;  %v11999_v19 = vld [vmem:[%s15890_s15 + $0x221] sm:$0xff] }
 0x2e0   : > { %692 = vmatprep.mubr.f32.mxu1 %v19604_v5 }
 0x2e2   : > { %11892 = vmatmul.mubr.msk.f32.gmra.mrb[18].mxu0 %vm369_vm1, %v11872_v23  ;;  %v338_v23 = vld [vmem:[%s15890_s15 + $0x38] sm:$0xff] }
 0x2e3   : > { %4258 = vmatprep.mubr.f32.mxu0 %v19604_v5  ;;  %11389 = vmatmul.mubr.msk.f32.gmra.mrb[12].mxu1 %vm369_vm1, %v337_v21  ;;  %v12001_v21 = vld [vmem:[%s15890_s15 + $0x231] sm:$0xff] }
 0x2e4   : > { %698 = vmatprep.mubr.f32.mxu1 %v19604_v5 }
 0x2e6   : > { %11893 = vmatmul.mubr.msk.f32.gmra.mrb[20].mxu0 %vm369_vm1, %v11873_v25  ;;  %v339_v25 = vld [vmem:[%s15890_s15 + $0x40] sm:$0xff] }
 0x2e7   : > { %4264 = vmatprep.mubr.f32.mxu0 %v19604_v5  ;;  %11390 = vmatmul.mubr.msk.f32.gmra.mrb[14].mxu1 %vm369_vm1, %v338_v23  ;;  %v12067_v23 = vld [vmem:[%s19591_s1 + $0x450] sm:$0xff] }
 0x2e8   : > { %704 = vmatprep.mubr.f32.mxu1 %v19604_v5 }
 0x2ea   : > { %11894 = vmatmul.mubr.msk.f32.gmra.mrb[22].mxu0 %vm369_vm1, %v11874_v27  ;;  %v340_v27 = vld [vmem:[%s15890_s15 + $0x48] sm:$0xff] }
 0x2eb   : > { %4420 = vmatprep.mubr.f32.mxu0 %v19604_v5  ;;  %11391 = vmatmul.mubr.msk.f32.gmra.mrb[16].mxu1 %vm369_vm1, %v339_v25  ;;  %v12023_v25 = vld [vmem:[%s15890_s15 + $0x241] sm:$0xff] }
 0x2ec   : > { %710 = vmatprep.mubr.f32.mxu1 %v19604_v5 }
 0x2ee   : > { %11915 = vmatmul.mubr.msk.f32.vlgmr.msra.gmra.mrb[0].mxu0 %vm369_vm1, %v11895_v31  ;;  %v342_v31 = vld [vmem:[%s15890_s15 + $0x58] sm:$0x7] }
 0x2ef   : > { %4426 = vmatprep.mubr.f32.mxu0 %v19604_v5  ;;  %14043 = vmatpush1.bf16.msra.mxu0 %v14042_v32  ;;  %v11935_v32 = vld [vmem:[%s15890_s15 + $0x161] sm:$0xff] }
 0x2f0   : > { %11945 = vmatprep.subr.msk.mxu0 %vm406_vm0, %v11944_v33  ;;  %11392 = vmatmul.mubr.msk.f32.gmra.mrb[18].mxu1 %vm369_vm1, %v340_v27  ;;  %v11397_v33 = vld [vmem:[%s15890_s15 + $0xd0] sm:$0xff]  ;;  %v12072_v27 = vld [vmem:[%s19591_s1 + $0x478] sm:$0xf] }
 0x2f1   : > { %716 = vmatprep.mubr.f32.mxu1 %v19604_v5 }
 0x2f2   : > { %11916 = vmatmul.mubr.msk.f32.gmra.mrb[2].mxu0 %vm369_vm1, %v11896_v37  ;;  %v11399_v37 = vld [vmem:[%s15890_s15 + $0xe0] sm:$0xff] }
 0x2f3   : > { %4432 = vmatprep.mubr.f32.mxu0 %v19604_v5  ;;  %11946 = vmatpush1.msk.msra.mxu0 %vm406_vm0, %v11943_v38  ;;  %v11938_v38 = vld [vmem:[%s15890_s15 + $0x179] sm:$0x7] }
 0x2f4   : > { %14045 = vmatprep.subr.bf16.mxu0 %v14044_v39  ;;  %11393 = vmatmul.mubr.msk.f32.gmra.mrb[20].mxu1 %vm369_vm1, %v341_v29  ;;  %v12003_v39 = vld [vmem:[%s19591_s1 + $0x3f0] sm:$0xff]  ;;  %v12102_v29 = vld [vmem:[%s19591_s1 + $0x498] sm:$0xff] }
 0x2f5   : > { %722 = vmatprep.mubr.f32.mxu1 %v19604_v5 }
 0x2f6   : > { %11917 = vmatmul.mubr.msk.f32.gmra.mrb[4].mxu0 %vm369_vm1, %v11897_v41  ;;  %v11400_v41 = vld [vmem:[%s15890_s15 + $0xe8] sm:$0xff] }
 0x2f7   : > { %4438 = vmatprep.mubr.f32.mxu0 %v19604_v5 }
 0x2f8   : > { %11394 = vmatmul.mubr.msk.f32.gmra.mrb[22].mxu1 %vm369_vm1, %v342_v31  ;;  %v12071_v31 = vld [vmem:[%s19591_s1 + $0x470] sm:$0xf] }
 0x2f9   : > { %867 = vmatprep.mubr.f32.mxu1 %v19604_v5 }
 0x2fa   : > { %11918 = vmatmul.mubr.msk.f32.gmra.mrb[6].mxu0 %vm369_vm1, %v11898_v43  ;;  %v14050_v43 = vpack.c.bf16 %v12005_v40, %v12003_v39  ;;  %v12030_v39 = vld [vmem:[%s15890_s15 + $0x279] sm:$0xff]  ;;  %v12031_v40 = vld [vmem:[%s15890_s15 + $0x281] sm:$0xff] }
 0x2fb   : > { %4444 = vmatprep.mubr.f32.mxu0 %v19604_v5 }
 0x2fc   : > { %11417 = vmatmul.mubr.msk.f32.vlgmr.msra.gmra.mrb[4].mxu1 %vm369_vm1, %v11397_v33  ;;  %v12025_v33 = vld [vmem:[%s15890_s15 + $0x251] sm:$0xff] }
 0x2fd   : > { %873 = vmatprep.mubr.f32.mxu1 %v19604_v5 }
 0x2fe   : > { %11919 = vmatmul.mubr.msk.f32.gmra.mrb[8].mxu0 %vm369_vm1, %v11899_v45  ;;  %v12036_v45 = vld [vmem:[%s19591_s1 + $0x428] sm:$0xff] }
 0x2ff   : > { %4450 = vmatprep.mubr.f32.mxu0 %v19604_v5  ;;  %v14052_v50 = vpack.c.bf16 %v12038_v46, %v12036_v45  ;;  %v12101_v45 = vld [vmem:[%s19591_s1 + $0x490] sm:$0xff]  ;;  %v12055_v46 = vld [vmem:[%s15890_s15 + $0x2a1] sm:$0xff] }
 0x300   : > { %11418 = vmatmul.mubr.msk.f32.gmra.mrb[6].mxu1 %vm369_vm1, %v11398_v35  ;;  %v17162_v35 = vld [vmem:[%s19592_s2] ss:$0 sm:$0xff] }
 0x301   : > { %879 = vmatprep.mubr.f32.mxu1 %v19604_v5  ;;  %6036 = vrot.lane.b32.xlu1 %v17162_v35, %s15766_s24 }
 0x302   : > { %11920 = vmatmul.mubr.msk.f32.gmra.mrb[10].mxu0 %vm369_vm1, %v11900_v47  ;;  %v11401_v47 = vld [vmem:[%s15890_s15 + $0xf0] sm:$0xff] }
 0x303   : > { %4456 = vmatprep.mubr.f32.mxu0 %v19604_v5 }
 0x304   : > { %11419 = vmatmul.mubr.msk.f32.gmra.mrb[8].mxu1 %vm369_vm1, %v11399_v37  ;;  %v12028_v37 = vld [vmem:[%s15890_s15 + $0x269] sm:$0xff] }
 0x305   : > { %885 = vmatprep.mubr.f32.mxu1 %v19604_v5 }
 0x306   : > { %11921 = vmatmul.mubr.msk.f32.gmra.mrb[12].mxu0 %vm369_vm1, %v11901_v49  ;;  %v12007_v49 = vld [vmem:[%s19591_s1 + $0x410] sm:$0xf] }
 0x307   : > { %4462 = vmatprep.mubr.f32.mxu0 %v19604_v5 }
 0x308   : > { %11420 = vmatmul.mubr.msk.f32.gmra.mrb[10].mxu1 %vm369_vm1, %v11400_v41  ;;  %v12032_v41 = vld [vmem:[%s15890_s15 + $0x289] sm:$0xff] }
 0x309   : > { %891 = vmatprep.mubr.f32.mxu1 %v19604_v5 }
 0x30a   : > { %11922 = vmatmul.mubr.msk.f32.gmra.mrb[14].mxu0 %vm369_vm1, %v11902_v51  ;;  %v11402_v51 = vld [vmem:[%s15890_s15 + $0xf8] sm:$0xff] }
 0x30b   : > { %4468 = vmatprep.mubr.f32.mxu0 %v19604_v5 }
 0x30c   : > { %11421 = vmatmul.mubr.msk.f32.gmra.mrb[12].mxu1 %vm369_vm1, %v11401_v47 }
 0x30d   : > { %897 = vmatprep.mubr.f32.mxu1 %v19604_v5 }
 0x30e   : > { %11923 = vmatmul.mubr.msk.f32.gmra.mrb[16].mxu0 %vm369_vm1, %v11903_v59  ;;  %v11406_v59 = vld [vmem:[%s15890_s15 + $0x118] sm:$0x7] }
 0x30f   : > { %4474 = vmatprep.mubr.f32.mxu0 %v19604_v5 }
 0x310   : > { %11422 = vmatmul.mubr.msk.f32.gmra.mrb[14].mxu1 %vm369_vm1, %v11402_v51  ;;  %v12057_v51 = vld [vmem:[%s15890_s15 + $0x2b1] sm:$0xff] }
 0x311   : > { %903 = vmatprep.mubr.f32.mxu1 %v19604_v5 }
 0x312   : > { %11924 = vmatmul.mubr.msk.f32.gmra.mrb[18].mxu0 %vm369_vm1, %v11904_v63  ;;  %v11968_v63 = vld [vmem:[%s15890_s15 + $0x1c9] sm:$0xff] }
 0x313   : > { %4480 = vmatprep.mubr.f32.mxu0 %v19604_v5 }
 0x314   : > { %11423 = vmatmul.mubr.msk.f32.gmra.mrb[16].mxu1 %vm369_vm1, %v11403_v53 }
 0x315   : > { %909 = vmatprep.mubr.f32.mxu1 %v19604_v5 }
 0x316   : > { %11925 = vmatmul.mubr.msk.f32.gmra.mrb[20].mxu0 %vm369_vm1, %v11905_v1  ;;  %v11970_v1 = vld [vmem:[%s15890_s15 + $0x1d9] sm:$0x7] }
 0x317   : > { %4486 = vmatprep.mubr.f32.mxu0 %v19604_v5 }
 0x318   : > { %11424 = vmatmul.mubr.msk.f32.gmra.mrb[18].mxu1 %vm369_vm1, %v11404_v55 }
 0x319   : > { %915 = vmatprep.mubr.f32.mxu1 %v19604_v5 }
 0x31a   : > { %11926 = vmatmul.mubr.msk.f32.gmra.mrb[22].mxu0 %vm369_vm1, %v11906_v4  ;;  %v11991_v4 = vld [vmem:[%s15890_s15 + $0x1e1] sm:$0xff] }
 0x31b   : > { %4642 = vmatprep.mubr.f32.mxu0 %v19604_v5 }
 0x31c   : > { %11425 = vmatmul.mubr.msk.f32.gmra.mrb[20].mxu1 %vm369_vm1, %v11405_v57  ;;  %v12059_v57 = vld [vmem:[%s15890_s15 + $0x2c1] sm:$0xff] }
 0x31d   : > { %921 = vmatprep.mubr.f32.mxu1 %v19604_v5 }
 0x31e   : > { %11947 = vmatmul.mubr.msk.f32.vlgmr.msra.gmra.mrb[0].mxu0 %vm369_vm1, %v11927_v10  ;;  %v11992_v10 = vld [vmem:[%s15890_s15 + $0x1e9] sm:$0xff] }
 0x31f   : > { %4648 = vmatprep.mubr.f32.mxu0 %v19604_v5  ;;  %14047 = vmatpush1.bf16.msra.mxu0 %v14046_v11  ;;  %v12039_v11 = vld [vmem:[%s19591_s1 + $0x440] sm:$0xf] }
 0x320   : > { %11977 = vmatprep.subr.msk.mxu0 %vm406_vm0, %v11976_v12  ;;  %11426 = vmatmul.mubr.msk.f32.gmra.mrb[22].mxu1 %vm369_vm1, %v11406_v59  ;;  %v14056_v12 = vpack.c.bf16 %v12070_v9, %v12068_v8  ;;  %v12061_v59 = vld [vmem:[%s15890_s15 + $0x2d1] sm:$0xff] }
 0x321   : > { %12882 = vmatprep.mubr.msk.f32.mxu1 %vm15771_vm2, %v19604_v5 }
 0x322   : > { %11948 = vmatmul.mubr.msk.f32.gmra.mrb[2].mxu0 %vm369_vm1, %v11928_v16  ;;  %v11996_v16 = vld [vmem:[%s15890_s15 + $0x209] sm:$0xff] }
 0x323   : > { %4654 = vmatprep.mubr.f32.mxu0 %v19604_v5  ;;  %11978 = vmatpush1.msk.msra.mxu0 %vm406_vm0, %v11975_v17  ;;  %v11997_v17 = vld [vmem:[%s15890_s15 + $0x211] sm:$0xff] }
 0x324   : > { %14049 = vmatprep.subr.bf16.mxu0 %v14048_v18  ;;  %v11998_v18 = vld [vmem:[%s15890_s15 + $0x219] sm:$0xff] }
 0x326   : > { %11949 = vmatmul.mubr.msk.f32.gmra.mrb[4].mxu0 %vm369_vm1, %v11929_v20  ;;  %v12000_v20 = vld [vmem:[%s15890_s15 + $0x229] sm:$0xff] }
 0x327   : > { %4660 = vmatprep.mubr.f32.mxu0 %v19604_v5 }
 0x32a   : > { %11950 = vmatmul.mubr.msk.f32.gmra.mrb[6].mxu0 %vm369_vm1, %v11930_v22  ;;  %v12002_v22 = vld [vmem:[%s15890_s15 + $0x239] sm:$0x7] }
 0x32b   : > { %4666 = vmatprep.mubr.f32.mxu0 %v19604_v5 }
 0x32e   : > { %11951 = vmatmul.mubr.msk.f32.gmra.mrb[8].mxu0 %vm369_vm1, %v11931_v24  ;;  %v12069_v24 = vld [vmem:[%s19591_s1 + $0x460] sm:$0xff] }
 0x32f   : > { %4672 = vmatprep.mubr.f32.mxu0 %v19604_v5 }
 0x332   : > { %11952 = vmatmul.mubr.msk.f32.gmra.mrb[10].mxu0 %vm369_vm1, %v11932_v26  ;;  %v14058_v26 = vpack.c.bf16 %v12069_v24, %v12067_v23 }
 0x333   : > { %4678 = vmatprep.mubr.f32.mxu0 %v19604_v5 }
 0x336   : > { %11953 = vmatmul.mubr.msk.f32.gmra.mrb[12].mxu0 %vm369_vm1, %v11933_v28  ;;  %v12100_v28 = vld [vmem:[%s19591_s1 + $0x488] sm:$0xff] }
 0x337   : > { %4684 = vmatprep.mubr.f32.mxu0 %v19604_v5 }
 0x33a   : > { %11954 = vmatmul.mubr.msk.f32.gmra.mrb[14].mxu0 %vm369_vm1, %v11934_v30  ;;  %v12024_v30 = vld [vmem:[%s15890_s15 + $0x249] sm:$0xff] }
 0x33b   : > { %4690 = vmatprep.mubr.f32.mxu0 %v19604_v5 }
 0x33e   : > { %11955 = vmatmul.mubr.msk.f32.gmra.mrb[16].mxu0 %vm369_vm1, %v11935_v32  ;;  %v14060_v32 = vpack.c.bf16 %v12102_v29, %v12100_v28  ;;  %v12097_v28 = vld [vmem:[%s15890_s15 + $0x351] sm:$0xff] }
 0x33f   : > { %4696 = vmatprep.mubr.f32.mxu0 %v19604_v5 }
 0x342   : > { %11956 = vmatmul.mubr.msk.f32.gmra.mrb[18].mxu0 %vm369_vm1, %v11936_v34  ;;  %v12026_v34 = vld [vmem:[%s15890_s15 + $0x259] sm:$0xff] }
 0x343   : > { %4702 = vmatprep.mubr.f32.mxu0 %v19604_v5 }
 0x346   : > { %11957 = vmatmul.mubr.msk.f32.gmra.mrb[20].mxu0 %vm369_vm1, %v11937_v36  ;;  %v12027_v36 = vld [vmem:[%s15890_s15 + $0x261] sm:$0xff] }
 0x347   : > { %4708 = vmatprep.mubr.f32.mxu0 %v19604_v5 }
 0x34a   : > { %11958 = vmatmul.mubr.msk.f32.gmra.mrb[22].mxu0 %vm369_vm1, %v11938_v38  ;;  %v12029_v38 = vld [vmem:[%s15890_s15 + $0x271] sm:$0xff] }
 0x34b   : > { %4864 = vmatprep.mubr.f32.mxu0 %v19604_v5 }
 0x34e   : > { %11979 = vmatmul.mubr.msk.f32.vlgmr.msra.gmra.mrb[0].mxu0 %vm369_vm1, %v11959_v42  ;;  %v12033_v42 = vld [vmem:[%s15890_s15 + $0x291] sm:$0xff] }
 0x34f   : > { %4870 = vmatprep.mubr.f32.mxu0 %v19604_v5  ;;  %14051 = vmatpush1.bf16.msra.mxu0 %v14050_v43  ;;  %v12034_v43 = vld [vmem:[%s15890_s15 + $0x299] sm:$0x7] }
 0x350   : > { %12009 = vmatprep.subr.msk.mxu0 %vm406_vm0, %v12008_v44  ;;  %v12099_v44 = vld [vmem:[%s19591_s1 + $0x480] sm:$0xff] }
 0x351   : > { %v14062_v47 = vpack.c.bf16 %v12101_v45, %v12099_v44 }
 0x352   : > { %11980 = vmatmul.mubr.msk.f32.gmra.mrb[2].mxu0 %vm369_vm1, %v11960_v48  ;;  %v12104_v48 = vld [vmem:[%s19591_s1 + $0x4a8] sm:$0xf] }
 0x353   : > { %4876 = vmatprep.mubr.f32.mxu0 %v19604_v5  ;;  %12010 = vmatpush1.msk.msra.mxu0 %vm406_vm0, %v12007_v49  ;;  %v12056_v49 = vld [vmem:[%s15890_s15 + $0x2a9] sm:$0xff] }
 0x354   : > { %14053 = vmatprep.subr.bf16.mxu0 %v14052_v50  ;;  %v12103_v50 = vld [vmem:[%s19591_s1 + $0x4a0] sm:$0xf] }
 0x356   : > { %11981 = vmatmul.mubr.msk.f32.gmra.mrb[4].mxu0 %vm369_vm1, %v11961_v52 }
 0x357   : > { %4882 = vmatprep.mubr.f32.mxu0 %v19604_v5 }
 0x35a   : > { %11982 = vmatmul.mubr.msk.f32.gmra.mrb[6].mxu0 %vm369_vm1, %v11962_v54  ;;  %v12058_v54 = vld [vmem:[%s15890_s15 + $0x2b9] sm:$0xff] }
 0x35b   : > { %4888 = vmatprep.mubr.f32.mxu0 %v19604_v5 }
 0x35e   : > { %11983 = vmatmul.mubr.msk.f32.gmra.mrb[8].mxu0 %vm369_vm1, %v11963_v56 }
 0x35f   : > { %4894 = vmatprep.mubr.f32.mxu0 %v19604_v5 }
 0x362   : > { %11984 = vmatmul.mubr.msk.f32.gmra.mrb[10].mxu0 %vm369_vm1, %v11964_v58  ;;  %v12060_v58 = vld [vmem:[%s15890_s15 + $0x2c9] sm:$0xff] }
 0x363   : > { %4900 = vmatprep.mubr.f32.mxu0 %v19604_v5 }
 0x366   : > { %11985 = vmatmul.mubr.msk.f32.gmra.mrb[12].mxu0 %vm369_vm1, %v11965_v60  ;;  %v12062_v60 = vld [vmem:[%s15890_s15 + $0x2d9] sm:$0xff] }
 0x367   : > { %4906 = vmatprep.mubr.f32.mxu0 %v19604_v5 }
 0x36a   : > { %11986 = vmatmul.mubr.msk.f32.gmra.mrb[14].mxu0 %vm369_vm1, %v11966_v61  ;;  %v12063_v61 = vld [vmem:[%s15890_s15 + $0x2e1] sm:$0xff] }
 0x36b   : > { %4912 = vmatprep.mubr.f32.mxu0 %v19604_v5 }
 0x36e   : > { %11987 = vmatmul.mubr.msk.f32.gmra.mrb[16].mxu0 %vm369_vm1, %v11967_v62  ;;  %v12064_v62 = vld [vmem:[%s15890_s15 + $0x2e9] sm:$0xff] }
 0x36f   : > { %4918 = vmatprep.mubr.f32.mxu0 %v19604_v5 }
 0x372   : > { %11988 = vmatmul.mubr.msk.f32.gmra.mrb[18].mxu0 %vm369_vm1, %v11968_v63  ;;  %v12065_v63 = vld [vmem:[%s15890_s15 + $0x2f1] sm:$0xff] }
 0x373   : > { %4924 = vmatprep.mubr.f32.mxu0 %v19604_v5 }
 0x376   : > { %11989 = vmatmul.mubr.msk.f32.gmra.mrb[20].mxu0 %vm369_vm1, %v11969_v0  ;;  %v12066_v0 = vld [vmem:[%s15890_s15 + $0x2f9] sm:$0x7] }
 0x377   : > { %4930 = vmatprep.mubr.f32.mxu0 %v19604_v5 }
 0x37a   : > { %11990 = vmatmul.mubr.msk.f32.gmra.mrb[22].mxu0 %vm369_vm1, %v11970_v1  ;;  %v12087_v1 = vld [vmem:[%s15890_s15 + $0x301] sm:$0xff] }
 0x37b   : > { %5086 = vmatprep.mubr.f32.mxu0 %v19604_v5 }
 0x37e   : > { %12011 = vmatmul.mubr.msk.f32.vlgmr.msra.gmra.mrb[0].mxu0 %vm369_vm1, %v11991_v4 }
 0x37f   : > { %5092 = vmatprep.mubr.f32.mxu0 %v19604_v5  ;;  %14055 = vmatpush1.bf16.msra.mxu0 %v14054_v6 }
 0x380   : > { %12041 = vmatprep.subr.msk.mxu0 %vm406_vm0, %v12040_v7  ;;  %v12090_v7 = vld [vmem:[%s15890_s15 + $0x319] sm:$0xff] }
 0x382   : > { %12012 = vmatmul.mubr.msk.f32.gmra.mrb[2].mxu0 %vm369_vm1, %v11992_v10  ;;  %v12091_v10 = vld [vmem:[%s15890_s15 + $0x321] sm:$0xff] }
 0x383   : > { %5098 = vmatprep.mubr.f32.mxu0 %v19604_v5  ;;  %12042 = vmatpush1.msk.msra.mxu0 %vm406_vm0, %v12039_v11 }
 0x384   : > { %14057 = vmatprep.subr.bf16.mxu0 %v14056_v12 }
 0x386   : > { %12013 = vmatmul.mubr.msk.f32.gmra.mrb[4].mxu0 %vm369_vm1, %v11993_v13  ;;  %v12092_v13 = vld [vmem:[%s15890_s15 + $0x329] sm:$0xff] }
 0x387   : > { %5104 = vmatprep.mubr.f32.mxu0 %v19604_v5 }
 0x38a   : > { %12014 = vmatmul.mubr.msk.f32.gmra.mrb[6].mxu0 %vm369_vm1, %v11994_v14 }
 0x38b   : > { %5110 = vmatprep.mubr.f32.mxu0 %v19604_v5 }
 0x38e   : > { %12015 = vmatmul.mubr.msk.f32.gmra.mrb[8].mxu0 %vm369_vm1, %v11995_v15 }
 0x38f   : > { %5116 = vmatprep.mubr.f32.mxu0 %v19604_v5 }
 0x392   : > { %12016 = vmatmul.mubr.msk.f32.gmra.mrb[10].mxu0 %vm369_vm1, %v11996_v16  ;;  %v12093_v16 = vld [vmem:[%s15890_s15 + $0x331] sm:$0xff] }
 0x393   : > { %5122 = vmatprep.mubr.f32.mxu0 %v19604_v5 }
 0x395   : > { %v17212_v52 = vpop.f32.mrb[0].mxu1 }
 0x396   : > { %12017 = vmatmul.mubr.msk.f32.gmra.mrb[12].mxu0 %vm369_vm1, %v11997_v17  ;;  %v17214_v53 = vpop.f32.mrb[1].mxu1 }
 0x397   : > { %5128 = vmatprep.mubr.f32.mxu0 %v19604_v5 }
 0x39a   : > { %12018 = vmatmul.mubr.msk.f32.gmra.mrb[14].mxu0 %vm369_vm1, %v11998_v18  ;;  %v17219_v55 = vpop.f32.mrb[2].mxu1 }
 0x39b   : > { %5134 = vmatprep.mubr.f32.mxu0 %v19604_v5  ;;  %v17221_v56 = vpop.f32.mrb[3].mxu1 }
 0x39e   : > { %12019 = vmatmul.mubr.msk.f32.gmra.mrb[16].mxu0 %vm369_vm1, %v11999_v19  ;;  %v12094_v19 = vld [vmem:[%s15890_s15 + $0x339] sm:$0xff] }
 0x39f   : > { %5140 = vmatprep.mubr.f32.mxu0 %v19604_v5 }
 0x3a2   : > { %12020 = vmatmul.mubr.msk.f32.gmra.mrb[18].mxu0 %vm369_vm1, %v12000_v20 }
 0x3a3   : > { %5146 = vmatprep.mubr.f32.mxu0 %v19604_v5 }
 0x3a6   : > { %12021 = vmatmul.mubr.msk.f32.gmra.mrb[20].mxu0 %vm369_vm1, %v12001_v21 }
 0x3a7   : > { %5152 = vmatprep.mubr.f32.mxu0 %v19604_v5 }
 0x3aa   : > { %12022 = vmatmul.mubr.msk.f32.gmra.mrb[22].mxu0 %vm369_vm1, %v12002_v22  ;;  %v12095_v22 = vld [vmem:[%s15890_s15 + $0x341] sm:$0xff] }
 0x3ab   : > { %5308 = vmatprep.mubr.f32.mxu0 %v19604_v5 }
 0x3ae   : > { %12043 = vmatmul.mubr.msk.f32.vlgmr.msra.gmra.mrb[0].mxu0 %vm369_vm1, %v12023_v25  ;;  %v12096_v25 = vld [vmem:[%s15890_s15 + $0x349] sm:$0xff] }
 0x3af   : > { %5314 = vmatprep.mubr.f32.mxu0 %v19604_v5  ;;  %14059 = vmatpush1.bf16.msra.mxu0 %v14058_v26 }
 0x3b0   : > { %12073 = vmatprep.subr.msk.mxu0 %vm406_vm0, %v12072_v27 }
 0x3b2   : > { %12044 = vmatmul.mubr.msk.f32.gmra.mrb[2].mxu0 %vm369_vm1, %v12024_v30 }
 0x3b3   : > { %5320 = vmatprep.mubr.f32.mxu0 %v19604_v5  ;;  %12074 = vmatpush1.msk.msra.mxu0 %vm406_vm0, %v12071_v31  ;;  %v12098_v31 = vld [vmem:[%s15890_s15 + $0x359] sm:$0x7]  ;;  %s15769_s15 = smov 96  }
 0x3b4   : > { %14061 = vmatprep.subr.bf16.mxu0 %v14060_v32 }
 0x3b6   : > { %12045 = vmatmul.mubr.msk.f32.gmra.mrb[4].mxu0 %vm369_vm1, %v12025_v33 }
 0x3b7   : > { %5326 = vmatprep.mubr.f32.mxu0 %v19604_v5 }
 0x3ba   : > { %12046 = vmatmul.mubr.msk.f32.gmra.mrb[6].mxu0 %vm369_vm1, %v12026_v34 }
 0x3bb   : > { %5332 = vmatprep.mubr.f32.mxu0 %v19604_v5 }
 0x3be   : > { %12047 = vmatmul.mubr.msk.f32.gmra.mrb[8].mxu0 %vm369_vm1, %v12027_v36 }
 0x3bf   : > { %5338 = vmatprep.mubr.f32.mxu0 %v19604_v5 }
 0x3c2   : > { %12048 = vmatmul.mubr.msk.f32.gmra.mrb[10].mxu0 %vm369_vm1, %v12028_v37 }
 0x3c3   : > { %5344 = vmatprep.mubr.f32.mxu0 %v19604_v5 }
 0x3c6   : > { %12049 = vmatmul.mubr.msk.f32.gmra.mrb[12].mxu0 %vm369_vm1, %v12029_v38 }
 0x3c7   : > { %5350 = vmatprep.mubr.f32.mxu0 %v19604_v5 }
 0x3ca   : > { %12050 = vmatmul.mubr.msk.f32.gmra.mrb[14].mxu0 %vm369_vm1, %v12030_v39 }
 0x3cb   : > { %5356 = vmatprep.mubr.f32.mxu0 %v19604_v5 }
 0x3ce   : > { %12051 = vmatmul.mubr.msk.f32.gmra.mrb[16].mxu0 %vm369_vm1, %v12031_v40 }
 0x3cf   : > { %5362 = vmatprep.mubr.f32.mxu0 %v19604_v5  ;;  %v17256_v4 = vpop.f32.mrb[4].mxu1 }
 0x3d0   : > { %v17258_v6 = vpop.f32.mrb[5].mxu1 }
 0x3d2   : > { %12052 = vmatmul.mubr.msk.f32.gmra.mrb[18].mxu0 %vm369_vm1, %v12032_v41 }
 0x3d3   : > { %5368 = vmatprep.mubr.f32.mxu0 %v19604_v5  ;;  %v17263_v8 = vpop.f32.mrb[6].mxu1 }
 0x3d4   : > { %v17265_v9 = vpop.f32.mrb[7].mxu1 }
 0x3d6   : > { %12053 = vmatmul.mubr.msk.f32.gmra.mrb[20].mxu0 %vm369_vm1, %v12033_v42 }
 0x3d7   : > { %5374 = vmatprep.mubr.f32.mxu0 %v19604_v5  ;;  %v17270_v11 = vpop.f32.mrb[8].mxu1 }
 0x3d8   : > { %v17272_v12 = vpop.f32.mrb[9].mxu1 }
 0x3da   : > { %12054 = vmatmul.mubr.msk.f32.gmra.mrb[22].mxu0 %vm369_vm1, %v12034_v43 }
 0x3db   : > { %5530 = vmatprep.mubr.f32.mxu0 %v19604_v5  ;;  %v17277_v14 = vpop.f32.mrb[10].mxu1 }
 0x3dc   : > { %v17279_v15 = vpop.f32.mrb[11].mxu1 }
 0x3de   : > { %12075 = vmatmul.mubr.msk.f32.vlgmr.msra.gmra.mrb[0].mxu0 %vm369_vm1, %v12055_v46 }
 0x3df   : > { %5536 = vmatprep.mubr.f32.mxu0 %v19604_v5  ;;  %14063 = vmatpush1.bf16.msra.mxu0 %v14062_v47  ;;  %v17284_v17 = vpop.f32.mrb[12].mxu1 }
 0x3e0   : > { %12105 = vmatprep.subr.msk.mxu0 %vm406_vm0, %v12104_v48  ;;  %v17286_v18 = vpop.f32.mrb[13].mxu1 }
 0x3e2   : > { %12076 = vmatmul.mubr.msk.f32.gmra.mrb[2].mxu0 %vm369_vm1, %v12056_v49 }
 0x3e3   : > { %5542 = vmatprep.mubr.f32.mxu0 %v19604_v5  ;;  %12106 = vmatpush1.msk.msra.mxu0 %vm406_vm0, %v12103_v50  ;;  %v17291_v20 = vpop.f32.mrb[14].mxu1 }
 0x3e4   : > { %v17293_v21 = vpop.f32.mrb[15].mxu1 }
 0x3e6   : > { %12077 = vmatmul.mubr.msk.f32.gmra.mrb[4].mxu0 %vm369_vm1, %v12057_v51 }
 0x3e7   : > { %5548 = vmatprep.mubr.f32.mxu0 %v19604_v5  ;;  %v17298_v23 = vpop.f32.mrb[16].mxu1 }
 0x3e8   : > { %v17300_v24 = vpop.f32.mrb[17].mxu1 }
 0x3ea   : > { %12078 = vmatmul.mubr.msk.f32.gmra.mrb[6].mxu0 %vm369_vm1, %v12058_v54 }
 0x3eb   : > { %5554 = vmatprep.mubr.f32.mxu0 %v19604_v5  ;;  %v17305_v26 = vpop.f32.mrb[18].mxu1 }
 0x3ec   : > { %v17307_v27 = vpop.f32.mrb[19].mxu1 }
 0x3ee   : > { %12079 = vmatmul.mubr.msk.f32.gmra.mrb[8].mxu0 %vm369_vm1, %v12059_v57 }
 0x3ef   : > { %5560 = vmatprep.mubr.f32.mxu0 %v19604_v5  ;;  %v17312_v29 = vpop.f32.mrb[20].mxu1 }
 0x3f0   : > { %v17314_v30 = vpop.f32.mrb[21].mxu1 }
 0x3f2   : > { %12080 = vmatmul.mubr.msk.f32.gmra.mrb[10].mxu0 %vm369_vm1, %v12060_v58 }
 0x3f3   : > { %5566 = vmatprep.mubr.f32.mxu0 %v19604_v5  ;;  %v17319_v32 = vpop.f32.mrb[22].mxu1 }
 0x3f4   : > { %v17321_v33 = vpop.f32.mrb[23].mxu1 }
 0x3f6   : > { %12081 = vmatmul.mubr.msk.f32.gmra.mrb[12].mxu0 %vm369_vm1, %v12061_v59 }
 0x3f7   : > { %5572 = vmatprep.mubr.f32.mxu0 %v19604_v5 }
 0x3fa   : > { %12082 = vmatmul.mubr.msk.f32.gmra.mrb[14].mxu0 %vm369_vm1, %v12062_v60 }
 0x3fb   : > { %5578 = vmatprep.mubr.f32.mxu0 %v19604_v5 }
 0x3fe   : > { %12083 = vmatmul.mubr.msk.f32.gmra.mrb[16].mxu0 %vm369_vm1, %v12063_v61 }
 0x3ff   : > { %5584 = vmatprep.mubr.f32.mxu0 %v19604_v5 }
 0x402   : > { %12084 = vmatmul.mubr.msk.f32.gmra.mrb[18].mxu0 %vm369_vm1, %v12064_v62 }
 0x403   : > { %5590 = vmatprep.mubr.f32.mxu0 %v19604_v5 }
 0x406   : > { %12085 = vmatmul.mubr.msk.f32.gmra.mrb[20].mxu0 %vm369_vm1, %v12065_v63 }
 0x407   : > { %5596 = vmatprep.mubr.f32.mxu0 %v19604_v5 }
 0x40a   : > { %12086 = vmatmul.mubr.msk.f32.gmra.mrb[22].mxu0 %vm369_vm1, %v12066_v0 }
 0x40b   : > { %5752 = vmatprep.mubr.f32.mxu0 %v19604_v5 }
 0x40e   : > { %12107 = vmatmul.mubr.msk.f32.vlgmr.msra.gmra.mrb[0].mxu0 %vm369_vm1, %v12087_v1 }
 0x40f   : > { %5758 = vmatprep.mubr.f32.mxu0 %v19604_v5 }
 0x412   : > { %12108 = vmatmul.mubr.msk.f32.gmra.mrb[2].mxu0 %vm369_vm1, %v12088_v2 }
 0x413   : > { %5764 = vmatprep.mubr.f32.mxu0 %v19604_v5 }
 0x416   : > { %12109 = vmatmul.mubr.msk.f32.gmra.mrb[4].mxu0 %vm369_vm1, %v12089_v3 }
 0x417   : > { %5770 = vmatprep.mubr.f32.mxu0 %v19604_v5 }
 0x41a   : > { %12110 = vmatmul.mubr.msk.f32.gmra.mrb[6].mxu0 %vm369_vm1, %v12090_v7 }
 0x41b   : > { %5776 = vmatprep.mubr.f32.mxu0 %v19604_v5 }
 0x41e   : > { %12111 = vmatmul.mubr.msk.f32.gmra.mrb[8].mxu0 %vm369_vm1, %v12091_v10 }
 0x41f   : > { %5782 = vmatprep.mubr.f32.mxu0 %v19604_v5 }
 0x422   : > { %12112 = vmatmul.mubr.msk.f32.gmra.mrb[10].mxu0 %vm369_vm1, %v12092_v13 }
 0x423   : > { %5788 = vmatprep.mubr.f32.mxu0 %v19604_v5 }
 0x426   : > { %12113 = vmatmul.mubr.msk.f32.gmra.mrb[12].mxu0 %vm369_vm1, %v12093_v16 }
 0x427   : > { %5794 = vmatprep.mubr.f32.mxu0 %v19604_v5 }
 0x42a   : > { %12114 = vmatmul.mubr.msk.f32.gmra.mrb[14].mxu0 %vm369_vm1, %v12094_v19 }
 0x42b   : > { %5800 = vmatprep.mubr.f32.mxu0 %v19604_v5 }
 0x42e   : > { %12115 = vmatmul.mubr.msk.f32.gmra.mrb[16].mxu0 %vm369_vm1, %v12095_v22  ;;  %v12121_v22 = vld [vmem:[%s19593_s3 + $0x18] sm:$0xff] }
 0x42f   : > { %5806 = vmatprep.mubr.f32.mxu0 %v19604_v5 }
 0x432   : > { %12116 = vmatmul.mubr.msk.f32.gmra.mrb[18].mxu0 %vm369_vm1, %v12096_v25 }
 0x433   : > { %5812 = vmatprep.mubr.f32.mxu0 %v19604_v5 }
 0x436   : > { %12117 = vmatmul.mubr.msk.f32.gmra.mrb[20].mxu0 %vm369_vm1, %v12097_v28 }
 0x437   : > { %5818 = vmatprep.mubr.f32.mxu0 %v19604_v5 }
 0x43a   : > { %12118 = vmatmul.mubr.msk.f32.gmra.mrb[22].mxu0 %vm369_vm1, %v12098_v31 }
 0x4e1   : > { %v5754_v34 = vpop.f32.mrb[0].mxu0 }
 0x4e2   : > { %v17325_v36 = vadd.f32 %v5754_v34, %v17212_v52  ;;  %v5756_v37 = vpop.f32.mrb[1].mxu0 }
 0x4e3   : > { %v17328_v38 = vadd.f32 %v5756_v37, %v17214_v53 }
 0x4e4   : > { %5958 = vrot.lane.b32.xlu1 %v17325_v36, %s15767_s14  ;;  %5862 = vrot.lane.b32.xlu0 %v17325_v36, %s15768_s16 }
 0x4e5   : > { %v5760_v39 = vpop.f32.mrb[2].mxu0 }
 0x4e6   : > { %v17335_v40 = vadd.f32 %v5760_v39, %v17219_v55  ;;  %v5762_v41 = vpop.f32.mrb[3].mxu0 }
 0x4e7   : > { %v17338_v42 = vadd.f32 %v5762_v41, %v17221_v56 }
 0x4e8   : > { %5910 = vrot.lane.b32.xlu0 %v17325_v36, %s15769_s15  ;;  %5864 = vrot.lane.b32.xlu1 %v17335_v40, %s15768_s16 }
 0x4e9   : > { %v5766_v43 = vpop.f32.mrb[4].mxu0 }
 0x4ea   : > { %v17345_v44 = vadd.f32 %v5766_v43, %v17256_v4  ;;  %v5768_v45 = vpop.f32.mrb[5].mxu0 }
 0x4eb   : > { %v17348_v46 = vadd.f32 %v5768_v45, %v17258_v6 }
 0x4ec   : > { %5912 = vrot.lane.b32.xlu0 %v17335_v40, %s15769_s15  ;;  %5960 = vrot.lane.b32.xlu1 %v17335_v40, %s15767_s14 }
 0x4ed   : > { %v5772_v47 = vpop.f32.mrb[6].mxu0 }
 0x4ee   : > { %v17355_v48 = vadd.f32 %v5772_v47, %v17263_v8  ;;  %v5774_v49 = vpop.f32.mrb[7].mxu0 }
 0x4ef   : > { %v17358_v50 = vadd.f32 %v5774_v49, %v17265_v9 }
 0x4f0   : > { %5866 = vrot.lane.b32.xlu0 %v17345_v44, %s15768_s16  ;;  %5868 = vrot.lane.b32.xlu1 %v17355_v48, %s15768_s16 }
 0x4f1   : > { %v5778_v51 = vpop.f32.mrb[8].mxu0 }
 0x4f2   : > { %v17365_v52 = vadd.f32 %v5778_v51, %v17270_v11  ;;  %v5780_v53 = vpop.f32.mrb[9].mxu0 }
 0x4f3   : > { %v17368_v54 = vadd.f32 %v5780_v53, %v17272_v12 }
 0x4f4   : > { %5914 = vrot.lane.b32.xlu0 %v17345_v44, %s15769_s15  ;;  %5916 = vrot.lane.b32.xlu1 %v17355_v48, %s15769_s15 }
 0x4f5   : > { %v5784_v55 = vpop.f32.mrb[10].mxu0 }
 0x4f6   : > { %v17375_v56 = vadd.f32 %v5784_v55, %v17277_v14  ;;  %v5786_v57 = vpop.f32.mrb[11].mxu0 }
 0x4f7   : > { %v17378_v58 = vadd.f32 %v5786_v57, %v17279_v15 }
 0x4f8   : > { %5962 = vrot.lane.b32.xlu0 %v17345_v44, %s15767_s14  ;;  %5964 = vrot.lane.b32.xlu1 %v17355_v48, %s15767_s14 }
 0x4f9   : > { %v5790_v59 = vpop.f32.mrb[12].mxu0 }
 0x4fa   : > { %v17385_v60 = vadd.f32 %v5790_v59, %v17284_v17  ;;  %v5792_v61 = vpop.f32.mrb[13].mxu0 }
 0x4fb   : > { %v17388_v62 = vadd.f32 %v5792_v61, %v17286_v18 }
 0x4fc   : > { %5870 = vrot.lane.b32.xlu0 %v17365_v52, %s15768_s16  ;;  %5872 = vrot.lane.b32.xlu1 %v17375_v56, %s15768_s16 }
 0x4fd   : > { %v5796_v63 = vpop.f32.mrb[14].mxu0 }
 0x4fe   : > { %v17395_v0 = vadd.f32 %v5796_v63, %v17291_v20  ;;  %v5798_v1 = vpop.f32.mrb[15].mxu0  ;;  %v17462_v20 = vpop.permute.xlu1 %6036 }
 0x4ff   : > { %v17398_v2 = vadd.f32 %v5798_v1, %v17293_v21  ;;  %v12120_v21 = vld [vmem:[%s19593_s3 + $0x10] sm:$0xff] }
 0x500   : > { %5918 = vrot.lane.b32.xlu0 %v17365_v52, %s15769_s15  ;;  %5920 = vrot.lane.b32.xlu1 %v17375_v56, %s15769_s15 }
 0x501   : > { %v5802_v3 = vpop.f32.mrb[16].mxu0 }
 0x502   : > { %v17405_v4 = vadd.f32 %v5802_v3, %v17298_v23  ;;  %v5804_v6 = vpop.f32.mrb[17].mxu0  ;;  %v19602_v23 = vmov 0.0|0.0  }
 0x503   : > { %v17408_v7 = vadd.f32 %v5804_v6, %v17300_v24  ;;  %14064 = vmatprep.subr.bf16.mxu1 %v19602_v23  ;;  %v14065_v24 = vpack.c.bf16 %v12121_v22, %v12120_v21 }
 0x504   : > { %5966 = vrot.lane.b32.xlu0 %v17365_v52, %s15767_s14  ;;  %5968 = vrot.lane.b32.xlu1 %v17375_v56, %s15767_s14 }
 0x505   : > { %v5808_v8 = vpop.f32.mrb[18].mxu0  ;;  %14066 = vmatpush3.bf16.msra.mxu1 %v14065_v24 }
 0x506   : > { %v17415_v9 = vadd.f32 %v5808_v8, %v17305_v26  ;;  %v5810_v10 = vpop.f32.mrb[19].mxu0  ;;  %14067 = vmatprep.subr.bf16.mxu1 %v19602_v23 }
 0x507   : > { %v17418_v11 = vadd.f32 %v5810_v10, %v17307_v27 }
 0x508   : > { %5874 = vrot.lane.b32.xlu0 %v17385_v60, %s15768_s16  ;;  %5876 = vrot.lane.b32.xlu1 %v17395_v0, %s15768_s16 }
 0x509   : > { %v5814_v12 = vpop.f32.mrb[20].mxu0 }
 0x50a   : > { %v17425_v13 = vadd.f32 %v5814_v12, %v17312_v29  ;;  %v5816_v14 = vpop.f32.mrb[21].mxu0 }
 0x50b   : > { %v17428_v15 = vadd.f32 %v5816_v14, %v17314_v30 }
 0x50c   : > { %5922 = vrot.lane.b32.xlu0 %v17385_v60, %s15769_s15  ;;  %5924 = vrot.lane.b32.xlu1 %v17395_v0, %s15769_s15 }
 0x50d   : > { %v5820_v16 = vpop.f32.mrb[22].mxu0 }
 0x50e   : > { %v17435_v17 = vadd.f32 %v5820_v16, %v17319_v32  ;;  %v5822_v18 = vpop.f32.mrb[23].mxu0 }
 0x50f   : > { %v17438_v19 = vadd.f32 %v5822_v18, %v17321_v33 }
 0x510   : > { %5970 = vrot.lane.b32.xlu0 %v17385_v60, %s15767_s14  ;;  %5972 = vrot.lane.b32.xlu1 %v17395_v0, %s15767_s14 }
 0x514   : > { %5878 = vrot.lane.b32.xlu0 %v17405_v4, %s15768_s16  ;;  %5880 = vrot.lane.b32.xlu1 %v17415_v9, %s15768_s16 }
 0x518   : > { %5926 = vrot.lane.b32.xlu0 %v17405_v4, %s15769_s15  ;;  %5928 = vrot.lane.b32.xlu1 %v17415_v9, %s15769_s15 }
 0x51c   : > { %5974 = vrot.lane.b32.xlu0 %v17405_v4, %s15767_s14  ;;  %5976 = vrot.lane.b32.xlu1 %v17415_v9, %s15767_s14 }
 0x520   : > { %5978 = vrot.lane.b32.xlu1 %v17425_v13, %s15767_s14  ;;  %5882 = vrot.lane.b32.xlu0 %v17425_v13, %s15768_s16 }
 0x524   : > { %5930 = vrot.lane.b32.xlu0 %v17425_v13, %s15769_s15 }
 0x556   : > { %v5959_v25 = vpop.permute.xlu1 %5958  ;;  %v5863_v26 = vpop.permute.xlu0 %5862 }
 0x557   : > { %v5898_v27 = vmax.f32 %v17325_v36, %v5863_v26 }
 0x55a   : > { %v5911_v28 = vpop.permute.xlu0 %5910  ;;  %v5865_v29 = vpop.permute.xlu1 %5864 }
 0x55b   : > { %v5946_v30 = vmax.f32 %v5898_v27, %v5911_v28  ;;  %v5899_v32 = vmax.f32 %v17335_v40, %v5865_v29 }
 0x55d   : > { %v17475_v31 = vmax.f32 %v5946_v30, %v5959_v25 }
 0x55e   : > { %v5913_v33 = vpop.permute.xlu0 %5912  ;;  %v5961_v34 = vpop.permute.xlu1 %5960 }
 0x55f   : > { %v5947_v37 = vmax.f32 %v5899_v32, %v5913_v33  ;;  %v6039_v39 = vadd.f32 %v17462_v20, %v17475_v31 }
 0x561   : > { %v17480_v41 = vmax.f32 %v5947_v37, %v5961_v34  ;;  %v6051_v43 = vmax.f32 %v6039_v39, 0.0 }
 0x562   : > { %v5867_v45 = vpop.permute.xlu0 %5866  ;;  %v5869_v47 = vpop.permute.xlu1 %5868 }
 0x563   : > { %v6040_v36 = vadd.f32 %v17462_v20, %v17480_v41  ;;  %6283 = vrot.lane.b32.xlu0 %v6051_v43, %s15766_s24  ;;  %v5900_v40 = vmax.f32 %v17345_v44, %v5867_v45  ;;  %v5901_v55 = vmax.f32 %v17355_v48, %v5869_v47  ;;  %v7142_v59 = vrot.slane %v6051_v43, 1 }
 0x564   : > { %v7905_v61 = vrot.slane %v6051_v43, 2 }
 0x565   : > { %v6052_v49 = vmax.f32 %v6040_v36, 0.0 }
 0x566   : > { %v5915_v51 = vpop.permute.xlu0 %5914  ;;  %v5917_v53 = vpop.permute.xlu1 %5916 }
 0x567   : > { %6285 = vrot.lane.b32.xlu1 %v6052_v49, %s15766_s24  ;;  %v7143_v57 = vrot.slane %v6052_v49, 1  ;;  %v7906_v63 = vrot.slane %v6052_v49, 2  ;;  %v5948_v1 = vmax.f32 %v5900_v40, %v5915_v51  ;;  %v5949_v3 = vmax.f32 %v5901_v55, %v5917_v53 }
 0x569   : > { %v17489_v10 = vsel %vm6961_vm3, %v7142_v59, %v7143_v57  ;;  %v17492_v12 = vsel %vm7725_vm4, %v7905_v61, %v7906_v63 }
 0x56a   : > { %v5963_v6 = vpop.permute.xlu0 %5962  ;;  %v5965_v8 = vpop.permute.xlu1 %5964 }
 0x56b   : > { %v17494_v44 = vmax.f32 %v5948_v1, %v5963_v6  ;;  %v17496_v48 = vmax.f32 %v5949_v3, %v5965_v8 }
 0x56d   : > { %v6041_v14 = vadd.f32 %v17462_v20, %v17494_v44  ;;  %v6042_v16 = vadd.f32 %v17462_v20, %v17496_v48 }
 0x56e   : > { %v5871_v18 = vpop.permute.xlu0 %5870  ;;  %v5873_v21 = vpop.permute.xlu1 %5872 }
 0x56f   : > { %v6054_v22 = vmax.f32 %v6042_v16, 0.0  ;;  %v6053_v24 = vmax.f32 %v6041_v14, 0.0  ;;  %v5902_v32 = vmax.f32 %v17365_v52, %v5871_v18  ;;  %v5903_v33 = vmax.f32 %v17375_v56, %v5873_v21 }
 0x571   : > { %6289 = vrot.lane.b32.xlu1 %v6054_v22, %s15766_s24  ;;  %6287 = vrot.lane.b32.xlu0 %v6053_v24, %s15766_s24  ;;  %v7145_v27 = vrot.slane %v6053_v24, 1  ;;  %v7147_v28 = vrot.slane %v6054_v22, 1  ;;  %v7908_v29 = vrot.slane %v6053_v24, 2  ;;  %v7910_v30 = vrot.slane %v6054_v22, 2 }
 0x572   : > { %v5919_v25 = vpop.permute.xlu0 %5918  ;;  %v5921_v26 = vpop.permute.xlu1 %5920 }
 0x573   : > { %v17507_v34 = vsel %vm6961_vm3, %v7143_v57, %v7145_v27  ;;  %v17510_v37 = vsel %vm6961_vm3, %v7145_v27, %v7147_v28  ;;  %v17513_v39 = vsel %vm7725_vm4, %v7908_v29, %v7910_v30  ;;  %v17516_v43 = vsel %vm7725_vm4, %v7906_v63, %v7908_v29 }
 0x574   : > { %19620 = vst [vmem:[#allocation2_spill] sm:$0xff] %v17516_v43  ;;  %v5950_v45 = vmax.f32 %v5902_v32, %v5919_v25  ;;  %v5951_v47 = vmax.f32 %v5903_v33, %v5921_v26 }
 0x576   : > { %v5967_v36 = vpop.permute.xlu0 %5966  ;;  %v5969_v49 = vpop.permute.xlu1 %5968 }
 0x577   : > { %v17518_v51 = vmax.f32 %v5950_v45, %v5967_v36  ;;  %v17520_v52 = vmax.f32 %v5951_v47, %v5969_v49 }
 0x579   : > { %v6043_v56 = vadd.f32 %v17462_v20, %v17518_v51  ;;  %v6044_v53 = vadd.f32 %v17462_v20, %v17520_v52 }
 0x57a   : > { %v5875_v40 = vpop.permute.xlu0 %5874  ;;  %v5877_v55 = vpop.permute.xlu1 %5876 }
 0x57b   : > { %v6056_v57 = vmax.f32 %v6044_v53, 0.0  ;;  %v6055_v59 = vmax.f32 %v6043_v56, 0.0  ;;  %v5904_v14 = vmax.f32 %v17385_v60, %v5875_v40  ;;  %v5905_v16 = vmax.f32 %v17395_v0, %v5877_v55 }
 0x57d   : > { %6293 = vrot.lane.b32.xlu1 %v6056_v57, %s15766_s24  ;;  %6291 = vrot.lane.b32.xlu0 %v6055_v59, %s15766_s24  ;;  %v7149_v1 = vrot.slane %v6055_v59, 1  ;;  %v7151_v3 = vrot.slane %v6056_v57, 1  ;;  %v7912_v6 = vrot.slane %v6055_v59, 2  ;;  %v7914_v8 = vrot.slane %v6056_v57, 2 }
 0x57e   : > { %v5923_v61 = vpop.permute.xlu0 %5922  ;;  %v5925_v63 = vpop.permute.xlu1 %5924 }
 0x57f   : > { %v17531_v18 = vsel %vm6961_vm3, %v7147_v28, %v7149_v1  ;;  %v17534_v21 = vsel %vm6961_vm3, %v7149_v1, %v7151_v3  ;;  %v17537_v22 = vsel %vm7725_vm4, %v7912_v6, %v7914_v8  ;;  %v17540_v24 = vsel %vm7725_vm4, %v7910_v30, %v7912_v6 }
 0x580   : > { %19621 = vst [vmem:[#allocation3_spill] sm:$0xff] %v17540_v24  ;;  %v5952_v25 = vmax.f32 %v5904_v14, %v5923_v61  ;;  %v5953_v26 = vmax.f32 %v5905_v16, %v5925_v63 }
 0x582   : > { %v5971_v27 = vpop.permute.xlu0 %5970  ;;  %v5973_v29 = vpop.permute.xlu1 %5972 }
 0x583   : > { %v17542_v32 = vmax.f32 %v5952_v25, %v5971_v27  ;;  %v17544_v60 = vmax.f32 %v5953_v26, %v5973_v29 }
 0x585   : > { %v6045_v0 = vadd.f32 %v17462_v20, %v17542_v32  ;;  %v6046_v28 = vadd.f32 %v17462_v20, %v17544_v60 }
 0x586   : > { %v5879_v33 = vpop.permute.xlu0 %5878  ;;  %v5881_v45 = vpop.permute.xlu1 %5880 }
 0x587   : > { %v6058_v47 = vmax.f32 %v6046_v28, 0.0  ;;  %v6057_v36 = vmax.f32 %v6045_v0, 0.0  ;;  %v5906_v57 = vmax.f32 %v17405_v4, %v5879_v33  ;;  %v5907_v59 = vmax.f32 %v17415_v9, %v5881_v45 }
 0x589   : > { %6297 = vrot.lane.b32.xlu1 %v6058_v47, %s15766_s24  ;;  %6295 = vrot.lane.b32.xlu0 %v6057_v36, %s15766_s24  ;;  %v7153_v56 = vrot.slane %v6057_v36, 1  ;;  %v7155_v53 = vrot.slane %v6058_v47, 1  ;;  %v7916_v40 = vrot.slane %v6057_v36, 2  ;;  %v7918_v55 = vrot.slane %v6058_v47, 2 }
 0x58a   : > { %v5927_v30 = vpop.permute.xlu0 %5926  ;;  %v5929_v49 = vpop.permute.xlu1 %5928 }
 0x58b   : > { %v17555_v61 = vsel %vm6961_vm3, %v7151_v3, %v7153_v56  ;;  %v17558_v63 = vsel %vm6961_vm3, %v7153_v56, %v7155_v53  ;;  %v17561_v1 = vsel %vm7725_vm4, %v7916_v40, %v7918_v55  ;;  %v17564_v6 = vsel %vm7725_vm4, %v7914_v8, %v7916_v40 }
 0x58c   : > { %19622 = vst [vmem:[#allocation4_spill] sm:$0xff] %v17564_v6  ;;  %v5954_v14 = vmax.f32 %v5906_v57, %v5927_v30  ;;  %v5955_v16 = vmax.f32 %v5907_v59, %v5929_v49 }
 0x58e   : > { %v5975_v25 = vpop.permute.xlu0 %5974  ;;  %v5977_v26 = vpop.permute.xlu1 %5976 }
 0x58f   : > { %v17566_v27 = vmax.f32 %v5954_v14, %v5975_v25  ;;  %v17568_v4 = vmax.f32 %v5955_v16, %v5977_v26  ;;  %v6268_v25 = vld [vmem:[%s19593_s3 + $0x8] sm:$0xff] }
 0x591   : > { %v6047_v9 = vadd.f32 %v17462_v20, %v17566_v27  ;;  %v6048_v3 = vadd.f32 %v17462_v20, %v17568_v4 }
 0x592   : > { %v5883_v29 = vpop.permute.xlu0 %5882  ;;  %v5979_v56 = vpop.permute.xlu1 %5978 }
 0x593   : > { %v17574_v0 = vmax.f32 %v6048_v3, 0.0  ;;  %v6059_v28 = vmax.f32 %v6047_v9, 0.0  ;;  %v5908_v8 = vmax.f32 %v17425_v13, %v5883_v29 }
 0x595   : > { %6301 = vrot.lane.b32.xlu1 %v17574_v0, %s15766_s24  ;;  %v19601_v33 = vrot.slane %v17574_v0, 1  ;;  %v19600_v45 = vrot.slane %v17574_v0, 2  ;;  %6299 = vrot.lane.b32.xlu0 %v6059_v28, %s15766_s24  ;;  %v7157_v36 = vrot.slane %v6059_v28, 1  ;;  %v7920_v30 = vrot.slane %v6059_v28, 2 }
 0x596   : > { %v5931_v47 = vpop.permute.xlu0 %5930 }
 0x597   : > { %v5956_v49 = vmax.f32 %v5908_v8, %v5931_v47  ;;  %v17583_v40 = vsel %vm6961_vm3, %v7155_v53, %v7157_v36  ;;  %v17588_v13 = vsel %vm6961_vm3, %v7157_v36, %v19601_v33  ;;  %v17593_v57 = vsel %vm7725_vm4, %v7920_v30, %v19600_v45 }
 0x598   : > { %v17596_v59 = vsel %vm7725_vm4, %v7918_v55, %v7920_v30  ;;  %v6267_v55 = vld [vmem:[%s19593_s3] sm:$0xff] }
 0x599   : > { %19623 = vst [vmem:[#allocation5_spill] sm:$0xff] %v17596_v59  ;;  %v17598_v14 = vmax.f32 %v5956_v49, %v5979_v56  ;;  %6075 = vrot.lane.b32.xlu1 %v17328_v38, %s15768_s16  ;;  %v14068_v26 = vpack.c.bf16 %v6268_v25, %v6267_v55  ;;  %v6012_v25 = vadd.f32 %v17162_v35, %v17475_v31 }
 0x59a   : > { %v6013_v31 = vadd.f32 %v17162_v35, %v17480_v41 }
 0x59b   : > { %v6049_v53 = vadd.f32 %v17462_v20, %v17598_v14 }
 0x59d   : > { %6077 = vrot.lane.b32.xlu1 %v17338_v42, %s15768_s16  ;;  %v17606_v16 = vmax.f32 %v6049_v53, 0.0 }
 0x59f   : > { %6303 = vrot.lane.b32.xlu0 %v17606_v16, %s15766_s24 }
 0x5a1   : > { %6125 = vrot.lane.b32.xlu1 %v17338_v42, %s15769_s15 }
 0x5a3   : > { %6123 = vrot.lane.b32.xlu0 %v17328_v38, %s15769_s15 }
 0x5a5   : > { %6173 = vrot.lane.b32.xlu1 %v17338_v42, %s15767_s14 }
 0x5a7   : > { %6171 = vrot.lane.b32.xlu0 %v17328_v38, %s15767_s14 }
 0x5a9   : > { %6081 = vrot.lane.b32.xlu1 %v17358_v50, %s15768_s16 }
 0x5ab   : > { %6079 = vrot.lane.b32.xlu0 %v17348_v46, %s15768_s16 }
 0x5ad   : > { %6129 = vrot.lane.b32.xlu1 %v17358_v50, %s15769_s15 }
 0x5af   : > { %6127 = vrot.lane.b32.xlu0 %v17348_v46, %s15769_s15 }
 0x5b1   : > { %6177 = vrot.lane.b32.xlu1 %v17358_v50, %s15767_s14 }
 0x5b3   : > { %6175 = vrot.lane.b32.xlu0 %v17348_v46, %s15767_s14 }
 0x5b5   : > { %6085 = vrot.lane.b32.xlu1 %v17378_v58, %s15768_s16 }
 0x5b7   : > { %6083 = vrot.lane.b32.xlu0 %v17368_v54, %s15768_s16 }
 0x5b9   : > { %6133 = vrot.lane.b32.xlu1 %v17378_v58, %s15769_s15 }
 0x5bb   : > { %6131 = vrot.lane.b32.xlu0 %v17368_v54, %s15769_s15 }
 0x5bd   : > { %6181 = vrot.lane.b32.xlu1 %v17378_v58, %s15767_s14 }
 0x5bf   : > { %6179 = vrot.lane.b32.xlu0 %v17368_v54, %s15767_s14 }
 0x5c1   : > { %6089 = vrot.lane.b32.xlu1 %v17398_v2, %s15768_s16 }
 0x5c3   : > { %6087 = vrot.lane.b32.xlu0 %v17388_v62, %s15768_s16 }
 0x5c5   : > { %6137 = vrot.lane.b32.xlu1 %v17398_v2, %s15769_s15 }
 0x5c7   : > { %6135 = vrot.lane.b32.xlu0 %v17388_v62, %s15769_s15 }
 0x5c9   : > { %6185 = vrot.lane.b32.xlu1 %v17398_v2, %s15767_s14 }
 0x5cb   : > { %6183 = vrot.lane.b32.xlu0 %v17388_v62, %s15767_s14 }
 0x5cd   : > { %6093 = vrot.lane.b32.xlu1 %v17418_v11, %s15768_s16 }
 0x5cf   : > { %6091 = vrot.lane.b32.xlu0 %v17408_v7, %s15768_s16 }
 0x5d1   : > { %6141 = vrot.lane.b32.xlu1 %v17418_v11, %s15769_s15 }
 0x5d3   : > { %6139 = vrot.lane.b32.xlu0 %v17408_v7, %s15769_s15 }
 0x5d5   : > { %6189 = vrot.lane.b32.xlu1 %v17418_v11, %s15767_s14  ;;  %v6284_v9 = vpop.permute.xlu0 %6283 }
 0x5d6   : > { %12883 = vmatmul.mubr.msk.f32.vlgmr.msra.gmra.mrb[24].mxu1 %vm6305_vm5, %v6284_v9  ;;  %v12145_v9 = vld [vmem:[%s19593_s3 + $0x28] sm:$0xff] }
 0x5d7   : > { %6187 = vrot.lane.b32.xlu0 %v17408_v7, %s15767_s14  ;;  %12885 = vmatprep.mubr.msk.f32.mxu1 %vm15771_vm2, %v19604_v5 }
 0x5d8   : > { %14069 = vmatpush3.bf16.msra.mxu1 %v14068_v26  ;;  %v12144_v26 = vld [vmem:[%s19593_s3 + $0x20] sm:$0xff] }
 0x5d9   : > { %v6286_v3 = vpop.permute.xlu1 %6285  ;;  %6191 = vrot.lane.b32.xlu1 %v17428_v15, %s15767_s14  ;;  %14070 = vmatprep.subr.bf16.mxu1 %v19602_v23 }
 0x5da   : > { %12886 = vmatmul.mubr.msk.f32.gmra.mrb[26].mxu1 %vm6305_vm5, %v6286_v3 }
 0x5db   : > { %6095 = vrot.lane.b32.xlu0 %v17428_v15, %s15768_s16  ;;  %12888 = vmatprep.mubr.msk.f32.mxu1 %vm15771_vm2, %v19604_v5 }
 0x5df   : > { %6143 = vrot.lane.b32.xlu0 %v17428_v15, %s15769_s15 }
 0x5e3   : > { %v6288_v29 = vpop.permute.xlu0 %6287  ;;  %v6290_v28 = vpop.permute.xlu1 %6289 }
 0x5e4   : > { %12889 = vmatmul.mubr.msk.f32.gmra.mrb[28].mxu1 %vm6305_vm5, %v6288_v29 }
 0x5e5   : > { %12891 = vmatprep.mubr.msk.f32.mxu1 %vm15771_vm2, %v19604_v5 }
 0x5e8   : > { %12892 = vmatmul.mubr.msk.f32.gmra.mrb[30].mxu1 %vm6305_vm5, %v6290_v28  ;;  %v14071_v28 = vpack.c.bf16 %v12145_v9, %v12144_v26  ;;  %v17730_v26 = vmax.f32 %v6013_v31, 0.0 }
 0x5e9   : > { %12894 = vmatprep.mubr.msk.f32.mxu1 %vm15771_vm2, %v19604_v5 }
 0x5ef   : > { %v6292_v8 = vpop.permute.xlu0 %6291  ;;  %v6294_v47 = vpop.permute.xlu1 %6293 }
 0x5f0   : > { %12895 = vmatmul.mubr.msk.f32.gmra.mrb[32].mxu1 %vm6305_vm5, %v6292_v8  ;;  %v17720_v8 = vmax.f32 %v6012_v25, 0.0  ;;  %v6014_v25 = vadd.f32 %v17162_v35, %v17494_v44 }
 0x5f1   : > { %12897 = vmatprep.mubr.msk.f32.mxu1 %vm15771_vm2, %v19604_v5 }
 0x5f2   : > { %v17743_v44 = vmax.f32 %v6014_v25, 0.0 }
 0x5f4   : > { %12898 = vmatmul.mubr.msk.f32.gmra.mrb[34].mxu1 %vm6305_vm5, %v6294_v47 }
 0x5f5   : > { %12900 = vmatprep.mubr.msk.f32.mxu1 %vm15771_vm2, %v19604_v5 }
 0x5fb   : > { %v6296_v36 = vpop.permute.xlu0 %6295  ;;  %v6298_v30 = vpop.permute.xlu1 %6297 }
 0x5fc   : > { %12901 = vmatmul.mubr.msk.f32.gmra.mrb[36].mxu1 %vm6305_vm5, %v6296_v36 }
 0x5fd   : > { %12903 = vmatprep.mubr.msk.f32.mxu1 %vm15771_vm2, %v19604_v5 }
 0x600   : > { %12904 = vmatmul.mubr.msk.f32.gmra.mrb[38].mxu1 %vm6305_vm5, %v6298_v30 }
 0x601   : > { %12906 = vmatprep.mubr.msk.f32.mxu1 %vm15771_vm2, %v19604_v5 }
 0x607   : > { %v6302_v49 = vpop.permute.xlu1 %6301  ;;  %v6300_v56 = vpop.permute.xlu0 %6299 }
 0x608   : > { %12907 = vmatmul.mubr.msk.f32.gmra.mrb[40].mxu1 %vm6305_vm5, %v6300_v56 }
 0x609   : > { %12909 = vmatprep.mubr.msk.f32.mxu1 %vm15771_vm2, %v19604_v5 }
 0x60b   : > { %v6076_v53 = vpop.permute.xlu1 %6075 }
 0x60c   : > { %12910 = vmatmul.mubr.msk.f32.gmra.mrb[42].mxu1 %vm6305_vm5, %v6302_v49  ;;  %v6111_v30 = vmax.f32 %v17328_v38, %v6076_v53 }
 0x60d   : > { %12912 = vmatprep.mubr.msk.f32.mxu1 %vm15771_vm2, %v19604_v5 }
 0x60f   : > { %v6078_v55 = vpop.permute.xlu1 %6077 }
 0x610   : > { %v6112_v47 = vmax.f32 %v17338_v42, %v6078_v55 }
 0x611   : > { %v6304_v3 = vpop.permute.xlu0 %6303 }
 0x612   : > { %12913 = vmatmul.mubr.msk.f32.gmra.mrb[44].mxu1 %vm6305_vm5, %v6304_v3  ;;  %v6015_v3 = vadd.f32 %v17162_v35, %v17496_v48 }
 0x613   : > { %v6126_v29 = vpop.permute.xlu1 %6125  ;;  %12919 = vmatprep.mubr.msk.f32.mxu1 %vm15771_vm2, %v19604_v5 }
 0x614   : > { %v6160_v49 = vmax.f32 %v6112_v47, %v6126_v29  ;;  %v17755_v48 = vmax.f32 %v6015_v3, 0.0 }
 0x615   : > { %v6124_v36 = vpop.permute.xlu0 %6123 }
 0x616   : > { %12920 = vmatmul.mubr.msk.f32.vlgmr.msra.gmra.mrb[24].mxu1 %vm6305_vm5, %v17720_v8  ;;  %v6159_v41 = vmax.f32 %v6111_v30, %v6124_v36 }
 0x617   : > { %v6174_v56 = vpop.permute.xlu1 %6173  ;;  %12922 = vmatprep.mubr.msk.f32.mxu1 %vm15771_vm2, %v19604_v5  ;;  %14072 = vmatpush3.bf16.msra.mxu1 %v14071_v28 }
 0x618   : > { %v6208_v9 = vmax.f32 %v6160_v49, %v6174_v56  ;;  %14073 = vmatprep.subr.bf16.mxu1 %v19602_v23  ;;  %v6016_v56 = vadd.f32 %v17162_v35, %v17518_v51 }
 0x619   : > { %v6172_v42 = vpop.permute.xlu0 %6171 }
 0x61a   : > { %v6220_v38 = vadd.f32 %v17162_v35, %v6208_v9  ;;  %v6244_v53 = vadd.f32 %v6208_v9, %v17462_v20  ;;  %v6207_v55 = vmax.f32 %v6159_v41, %v6172_v42  ;;  %12923 = vmatmul.mubr.msk.f32.gmra.mrb[26].mxu1 %vm6305_vm5, %v17730_v26 }
 0x61b   : > { %v6082_v29 = vpop.permute.xlu1 %6081  ;;  %12925 = vmatprep.mubr.msk.f32.mxu1 %vm15771_vm2, %v19604_v5 }
 0x61c   : > { %v17745_v28 = vmax.f32 %v6220_v38, 0.0  ;;  %v6219_v31 = vadd.f32 %v17162_v35, %v6207_v55  ;;  %v6243_v47 = vadd.f32 %v6207_v55, %v17462_v20  ;;  %v17749_v30 = vmax.f32 %v6244_v53, 0.0 }
 0x61d   : > { %v6080_v36 = vpop.permute.xlu0 %6079  ;;  %v6114_v25 = vmax.f32 %v17358_v50, %v6082_v29 }
 0x61e   : > { %v17751_v49 = vmax.f32 %v6219_v31, 0.0  ;;  %12926 = vmatmul.mubr.msk.f32.gmra.mrb[28].mxu1 %vm6305_vm5, %v17743_v44  ;;  %6784 = vrot.lane.b32.xlu1 %v17749_v30, %s15766_s24  ;;  %v6255_v9 = vmax.f32 %v6243_v47, 0.0  ;;  %v19606_v42 = vrot.slane %v17745_v28, 1  ;;  %v19607_v38 = vrot.slane %v17745_v28, 2 }
 0x61f   : > { %v6130_v41 = vpop.permute.xlu1 %6129  ;;  %12928 = vmatprep.mubr.msk.f32.mxu1 %vm15771_vm2, %v19604_v5  ;;  %v7525_v50 = vrot.slane %v17749_v30, 1  ;;  %v8286_v3 = vrot.slane %v17749_v30, 2  ;;  %v6113_v47 = vmax.f32 %v17348_v46, %v6080_v36  ;;  %v19626_v30 = vmov 0.0  }
 0x620   : > { %v7344_v53 = vrot.slane %v17751_v49, 1  ;;  %v8106_v55 = vrot.slane %v17751_v49, 2  ;;  %6782 = vrot.lane.b32.xlu0 %v6255_v9, %s15766_s24  ;;  %v7524_v29 = vrot.slane %v6255_v9, 1  ;;  %v8285_v31 = vrot.slane %v6255_v9, 2 }
 0x621   : > { %v6128_v51 = vpop.permute.xlu0 %6127  ;;  %v6162_v45 = vmax.f32 %v6114_v25, %v6130_v41  ;;  %v17792_v25 = vmax.f32 %v6016_v56, 0.0  ;;  %v6017_v41 = vadd.f32 %v17162_v35, %v17520_v52  ;;  %v6019_v56 = vadd.f32 %v17162_v35, %v17544_v60  ;;  %v17811_v52 = vld [vmem:[%s19592_s2] ss:$0 sm:$0xff] }
 0x622   : > { %12929 = vmatmul.mubr.msk.f32.gmra.mrb[30].mxu1 %vm6305_vm5, %v17755_v48  ;;  %v17777_v33 = vsel %vm6961_vm3, %v7344_v53, %v19606_v42  ;;  %v17782_v23 = vsel %vm7725_vm4, %v8106_v55, %v19607_v38  ;;  %v17787_v46 = vsel %vm6961_vm3, %v7524_v29, %v7525_v50  ;;  %v17790_v36 = vsel %vm7725_vm4, %v8285_v31, %v8286_v3 }
 0x623   : > { %19624 = vst [vmem:[#allocation6_spill] sm:$0xff] %v17777_v33  ;;  %19625 = vst [vmem:[#allocation7_spill] sm:$0xff] %v17782_v23  ;;  %v6178_v5 = vpop.permute.xlu1 %6177  ;;  %12931 = vmatprep.mubr.msk.f32.mxu1 %vm15771_vm2, %v19626_v30  ;;  %v6161_v9 = vmax.f32 %v6113_v47, %v6128_v51  ;;  %v6018_v29 = vadd.f32 %v17162_v35, %v17542_v32  ;;  %v19631_v24 = vrot.slane %v17745_v28, 1 }
 0x624   : > { %19627 = vst [vmem:[#allocation8_spill] sm:$0xff] %v17787_v46  ;;  %19628 = vst [vmem:[#allocation9_spill] sm:$0xff] %v17790_v36  ;;  %v6210_v53 = vmax.f32 %v6162_v45, %v6178_v5  ;;  %v17806_v5 = vmax.f32 %v6017_v41, 0.0  ;;  %v6020_v43 = vadd.f32 %v17811_v52, %v17566_v27 }
 0x625   : > { %v6176_v42 = vpop.permute.xlu0 %6175  ;;  %v17823_v41 = vmax.f32 %v6018_v29, 0.0 }
 0x626   : > { %v6222_v55 = vadd.f32 %v17162_v35, %v6210_v53  ;;  %v6246_v38 = vadd.f32 %v6210_v53, %v17462_v20  ;;  %v6209_v23 = vmax.f32 %v6161_v9, %v6176_v42  ;;  %12932 = vmatmul.mubr.msk.f32.gmra.mrb[32].mxu1 %vm6305_vm5, %v17792_v25  ;;  %v17825_v9 = vmax.f32 %v6019_v56, 0.0 }
 0x627   : > { %v6086_v31 = vpop.permute.xlu1 %6085  ;;  %12934 = vmatprep.mubr.msk.f32.mxu1 %vm15771_vm2, %v19626_v30  ;;  %v17882_v27 = vmax.f32 %v6020_v43, 0.0  ;;  %v6022_v43 = vadd.f32 %v17811_v52, %v17598_v14 }
 0x628   : > { %v6221_v45 = vadd.f32 %v17811_v52, %v6209_v23  ;;  %v6245_v42 = vadd.f32 %v6209_v23, %v17462_v20  ;;  %v17815_v51 = vmax.f32 %v6222_v55, 0.0  ;;  %v17817_v47 = vmax.f32 %v6246_v38, 0.0  ;;  %19629 = vst [vmem:[#allocation10_spill] sm:$0xff] %v17825_v9 }
 0x629   : > { %v6084_v32 = vpop.permute.xlu0 %6083  ;;  %v6116_v53 = vmax.f32 %v17378_v58, %v6086_v31  ;;  %19638 = vst [vmem:[#allocation17_spill] sm:$0xff] %v17882_v27 }
 0x62a   : > { %v17819_v35 = vmax.f32 %v6221_v45, 0.0  ;;  %12935 = vmatmul.mubr.msk.f32.gmra.mrb[34].mxu1 %vm6305_vm5, %v17806_v5  ;;  %v6257_v60 = vmax.f32 %v6245_v42, 0.0  ;;  %v6115_v36 = vmax.f32 %v17368_v54, %v6084_v32  ;;  %6788 = vrot.lane.b32.xlu1 %v17817_v47, %s15766_s24  ;;  %v7529_v55 = vrot.slane %v17817_v47, 1 }
 0x62b   : > { %v6134_v23 = vpop.permute.xlu1 %6133  ;;  %12937 = vmatprep.mubr.msk.f32.mxu1 %vm15771_vm2, %v19626_v30  ;;  %v8290_v58 = vrot.slane %v17817_v47, 2  ;;  %v7349_v54 = vrot.slane %v17815_v51, 1  ;;  %v8111_v42 = vrot.slane %v17815_v51, 2 }
 0x62c   : > { %6786 = vrot.lane.b32.xlu0 %v6257_v60, %s15766_s24  ;;  %v7527_v38 = vrot.slane %v6257_v60, 1  ;;  %v8288_v29 = vrot.slane %v6257_v60, 2  ;;  %v7347_v56 = vrot.slane %v17819_v35, 1  ;;  %v8109_v31 = vrot.slane %v17819_v35, 2 }
 0x62d   : > { %v6132_v45 = vpop.permute.xlu0 %6131  ;;  %v6164_v32 = vmax.f32 %v6116_v53, %v6134_v23 }
 0x62e   : > { %12938 = vmatmul.mubr.msk.f32.gmra.mrb[36].mxu1 %vm6305_vm5, %v17823_v41  ;;  %v17843_v59 = vsel %vm6961_vm3, %v7525_v50, %v7527_v38  ;;  %v17846_v60 = vsel %vm7725_vm4, %v8286_v3, %v8288_v29  ;;  %v17849_v6 = vsel %vm6961_vm3, %v7527_v38, %v7529_v55  ;;  %v17856_v53 = vsel %vm6961_vm3, %v19631_v24, %v7347_v56 }
 0x62f   : > { %19630 = vst [vmem:[#allocation11_spill] sm:$0xff] %v17849_v6  ;;  %v6182_v47 = vpop.permute.xlu1 %6181  ;;  %12940 = vmatprep.mubr.msk.f32.mxu1 %vm15771_vm2, %v19626_v30  ;;  %19632 = vst [vmem:[#allocation12_spill] sm:$0xff] %v17856_v53  ;;  %v17859_v23 = vsel %vm6961_vm3, %v7347_v56, %v7349_v54  ;;  %v17862_v50 = vsel %vm7725_vm4, %v8288_v29, %v8290_v58  ;;  %v19635_v3 = vrot.slane %v17745_v28, 2 }
 0x630   : > { %19633 = vst [vmem:[#allocation13_spill] sm:$0xff] %v17859_v23  ;;  %19634 = vst [vmem:[#allocation14_spill] sm:$0xff] %v17862_v50  ;;  %v6163_v33 = vmax.f32 %v6115_v36, %v6132_v45  ;;  %v6212_v6 = vmax.f32 %v6164_v32, %v6182_v47  ;;  %v17872_v46 = vsel %vm7725_vm4, %v8109_v31, %v8111_v42 }
 0x631   : > { %v17867_v38 = vsel %vm7725_vm4, %v19635_v3, %v8109_v31  ;;  %19637 = vst [vmem:[#allocation16_spill] sm:$0xff] %v17872_v46  ;;  %v6180_v24 = vpop.permute.xlu0 %6179  ;;  %v6021_v3 = vadd.f32 %v17811_v52, %v17568_v4 }
 0x632   : > { %19636 = vst [vmem:[#allocation15_spill] sm:$0xff] %v17867_v38  ;;  %v6224_v56 = vadd.f32 %v17811_v52, %v6212_v6  ;;  %v6248_v23 = vadd.f32 %v6212_v6, %v17462_v20  ;;  %v6211_v29 = vmax.f32 %v6163_v33, %v6180_v24  ;;  %12941 = vmatmul.mubr.msk.f32.gmra.mrb[38].mxu1 %vm6305_vm5, %v17825_v9 }
 0x633   : > { %v6090_v38 = vpop.permute.xlu1 %6089  ;;  %12943 = vmatprep.mubr.msk.f32.mxu1 %vm15771_vm2, %v19626_v30  ;;  %v17894_v47 = vmax.f32 %v6021_v3, 0.0 }
 0x634   : > { %v6223_v36 = vadd.f32 %v17811_v52, %v6211_v29  ;;  %v6247_v45 = vadd.f32 %v6211_v29, %v17462_v20  ;;  %v17886_v31 = vmax.f32 %v6224_v56, 0.0  ;;  %v17888_v33 = vmax.f32 %v6248_v23, 0.0 }
 0x635   : > { %v6088_v6 = vpop.permute.xlu0 %6087  ;;  %19639 = vst [vmem:[#allocation18_spill] sm:$0xff] %v17894_v47  ;;  %v6118_v24 = vmax.f32 %v17398_v2, %v6090_v38 }
 0x636   : > { %v17890_v32 = vmax.f32 %v6223_v36, 0.0  ;;  %12944 = vmatmul.mubr.msk.f32.gmra.mrb[40].mxu1 %vm6305_vm5, %v17882_v27  ;;  %v6259_v4 = vmax.f32 %v6247_v45, 0.0  ;;  %v6117_v29 = vmax.f32 %v17388_v62, %v6088_v6  ;;  %6792 = vrot.lane.b32.xlu1 %v17888_v33, %s15766_s24  ;;  %v19612_v3 = vrot.slane %v17888_v33, 1 }
 0x637   : > { %v6138_v23 = vpop.permute.xlu1 %6137  ;;  %12946 = vmatprep.mubr.msk.f32.mxu1 %vm15771_vm2, %v19626_v30  ;;  %v8294_v2 = vrot.slane %v17888_v33, 2  ;;  %v7353_v62 = vrot.slane %v17886_v31, 1  ;;  %v8115_v6 = vrot.slane %v17886_v31, 2 }
 0x638   : > { %6790 = vrot.lane.b32.xlu0 %v6259_v4, %s15766_s24  ;;  %v7531_v56 = vrot.slane %v6259_v4, 1  ;;  %v8292_v36 = vrot.slane %v6259_v4, 2  ;;  %v7351_v45 = vrot.slane %v17890_v32, 1  ;;  %v8113_v38 = vrot.slane %v17890_v32, 2 }
 0x639   : > { %v6136_v14 = vpop.permute.xlu0 %6135  ;;  %v6166_v46 = vmax.f32 %v6118_v24, %v6138_v23 }
 0x63a   : > { %12947 = vmatmul.mubr.msk.f32.gmra.mrb[42].mxu1 %vm6305_vm5, %v17894_v47  ;;  %v17914_v50 = vsel %vm6961_vm3, %v7529_v55, %v7531_v56  ;;  %v17917_v4 = vsel %vm7725_vm4, %v8290_v58, %v8292_v36  ;;  %v17922_v53 = vsel %vm6961_vm3, %v7531_v56, %v19612_v3  ;;  %v17927_v24 = vsel %vm6961_vm3, %v7349_v54, %v7351_v45  ;;  %v12157_v54 = vld [vmem:[%s19593_s3 + $0x30] sm:$0xff] }
 0x63b   : > { %19640 = vst [vmem:[#allocation19_spill] sm:$0xff] %v17922_v53  ;;  %v6186_v27 = vpop.permute.xlu1 %6185  ;;  %12949 = vmatprep.mubr.msk.f32.mxu1 %vm15771_vm2, %v19626_v30  ;;  %19641 = vst [vmem:[#allocation20_spill] sm:$0xff] %v17927_v24  ;;  %v17930_v23 = vsel %vm6961_vm3, %v7351_v45, %v7353_v62  ;;  %v17933_v55 = vsel %vm7725_vm4, %v8292_v36, %v8294_v2  ;;  %v17936_v58 = vsel %vm7725_vm4, %v8111_v42, %v8113_v38  ;;  %v12158_v36 = vld [vmem:[%s19593_s3 + $0x38] sm:$0xff] }
 0x63c   : > { %19642 = vst [vmem:[#allocation21_spill] sm:$0xff] %v17930_v23  ;;  %19643 = vst [vmem:[#allocation22_spill] sm:$0xff] %v17933_v55  ;;  %v17938_v47 = vmax.f32 %v6022_v43, 0.0  ;;  %v6165_v56 = vmax.f32 %v6117_v29, %v6136_v14  ;;  %v6214_v3 = vmax.f32 %v6166_v46, %v6186_v27  ;;  %v17941_v53 = vsel %vm7725_vm4, %v8113_v38, %v8115_v6 }
 0x63d   : > { %19644 = vst [vmem:[#allocation23_spill] sm:$0xff] %v17936_v58  ;;  %19646 = vst [vmem:[#allocation25_spill] sm:$0xff] %v17941_v53  ;;  %v6184_v9 = vpop.permute.xlu0 %6183  ;;  %v14074_v14 = vpack.c.bf16 %v12158_v36, %v12157_v54 }
 0x63e   : > { %19645 = vst [vmem:[#allocation24_spill] sm:$0xff] %v17938_v47  ;;  %v6226_v45 = vadd.f32 %v17811_v52, %v6214_v3  ;;  %v6250_v42 = vadd.f32 %v6214_v3, %v17462_v20  ;;  %v6213_v43 = vmax.f32 %v6165_v56, %v6184_v9  ;;  %12950 = vmatmul.mubr.msk.f32.gmra.mrb[44].mxu1 %vm6305_vm5, %v17938_v47 }
 0x63f   : > { %v6094_v46 = vpop.permute.xlu1 %6093  ;;  %12956 = vmatprep.mubr.msk.f32.mxu1 %vm15771_vm2, %v19626_v30 }
 0x640   : > { %v6225_v27 = vadd.f32 %v17811_v52, %v6213_v43  ;;  %v6249_v29 = vadd.f32 %v6213_v43, %v17462_v20  ;;  %v17957_v38 = vmax.f32 %v6226_v45, 0.0  ;;  %v17959_v58 = vmax.f32 %v6250_v42, 0.0 }
 0x641   : > { %v6092_v53 = vpop.permute.xlu0 %6091  ;;  %v6120_v3 = vmax.f32 %v17418_v11, %v6094_v46  ;;  %v19647_v43 = vmov 0.0|0.0  }
 0x642   : > { %v17961_v55 = vmax.f32 %v6225_v27, 0.0  ;;  %12957 = vmatmul.mubr.msk.f32.vlgmr.msra.gmra.mrb[24].mxu1 %vm6305_vm5, %v17751_v49  ;;  %v17965_v9 = vmax.f32 %v6249_v29, 0.0  ;;  %6796 = vrot.lane.b32.xlu1 %v17959_v58, %s15766_s24  ;;  %v19615_v36 = vrot.slane %v17959_v58, 1  ;;  %v6119_v11 = vmax.f32 %v17408_v7, %v6092_v53 }
 0x643   : > { %v6142_v56 = vpop.permute.xlu1 %6141  ;;  %12959 = vmatprep.mubr.msk.f32.mxu1 %vm15771_vm2, %v19626_v30  ;;  %14075 = vmatpush3.bf16.msra.mxu1 %v14074_v14  ;;  %v8298_v46 = vrot.slane %v17959_v58, 2  ;;  %v7357_v27 = vrot.slane %v17957_v38, 1  ;;  %v8119_v53 = vrot.slane %v17957_v38, 2 }
 0x644   : > { %6794 = vrot.lane.b32.xlu0 %v17965_v9, %s15766_s24  ;;  %v19616_v54 = vrot.slane %v17965_v9, 1  ;;  %v8296_v49 = vrot.slane %v17965_v9, 2  ;;  %v7355_v45 = vrot.slane %v17961_v55, 1  ;;  %14076 = vmatprep.subr.bf16.mxu1 %v19647_v43  ;;  %v8117_v29 = vrot.slane %v17961_v55, 2 }
 0x645   : > { %v6140_v42 = vpop.permute.xlu0 %6139  ;;  %v6168_v23 = vmax.f32 %v6120_v3, %v6142_v56 }
 0x646   : > { %12960 = vmatmul.mubr.msk.f32.gmra.mrb[26].mxu1 %vm6305_vm5, %v17745_v28  ;;  %v17986_v14 = vsel %vm7725_vm4, %v8294_v2, %v8296_v49  ;;  %v17993_v7 = vsel %vm6961_vm3, %v19616_v54, %v19615_v36  ;;  %v17999_v3 = vsel %vm6961_vm3, %v7353_v62, %v7355_v45  ;;  %v18002_v28 = vsel %vm6961_vm3, %v7355_v45, %v7357_v27 }
 0x647   : > { %19648 = vst [vmem:[#allocation26_spill] sm:$0xff] %v17986_v14  ;;  %19649 = vst [vmem:[#allocation27_spill] sm:$0xff] %v17993_v7  ;;  %v6190_v24 = vpop.permute.xlu1 %6189  ;;  %12962 = vmatprep.mubr.msk.f32.mxu1 %vm15771_vm2, %v19626_v30  ;;  %v18005_v2 = vsel %vm7725_vm4, %v8296_v49, %v8298_v46  ;;  %v18008_v56 = vsel %vm7725_vm4, %v8115_v6, %v8117_v29  ;;  %v6167_v36 = vmax.f32 %v6119_v11, %v6140_v42 }
 0x648   : > { %19650 = vst [vmem:[#allocation28_spill] sm:$0xff] %v17999_v3  ;;  %19651 = vst [vmem:[#allocation29_spill] sm:$0xff] %v18005_v2  ;;  %v6216_v54 = vmax.f32 %v6168_v23, %v6190_v24  ;;  %v18011_v47 = vsel %vm7725_vm4, %v8117_v29, %v8119_v53 }
 0x649   : > { %19652 = vst [vmem:[#allocation30_spill] sm:$0xff] %v18008_v56  ;;  %19653 = vst [vmem:[#allocation31_spill] sm:$0xff] %v18011_v47  ;;  %v6188_v7 = vpop.permute.xlu0 %6187 }
 0x64a   : > { %v6228_v14 = vadd.f32 %v17811_v52, %v6216_v54  ;;  %v6252_v62 = vadd.f32 %v6216_v54, %v17462_v20  ;;  %v6215_v3 = vmax.f32 %v6167_v36, %v6188_v7  ;;  %12963 = vmatmul.mubr.msk.f32.gmra.mrb[28].mxu1 %vm6305_vm5, %v17819_v35 }
 0x64b   : > { %12965 = vmatprep.mubr.msk.f32.mxu1 %vm15771_vm2, %v19626_v30 }
 0x64c   : > { %v6227_v6 = vadd.f32 %v17811_v52, %v6215_v3  ;;  %v6251_v49 = vadd.f32 %v6215_v3, %v17462_v20  ;;  %v18021_v24 = vmax.f32 %v6252_v62, 0.0  ;;  %v6240_v23 = vmax.f32 %v6228_v14, 0.0 }
 0x64d   : > { %v6096_v45 = vpop.permute.xlu0 %6095 }
 0x64e   : > { %v6239_v11 = vmax.f32 %v6227_v6, 0.0  ;;  %12966 = vmatmul.mubr.msk.f32.gmra.mrb[30].mxu1 %vm6305_vm5, %v17815_v51  ;;  %6800 = vrot.lane.b32.xlu1 %v18021_v24, %s15766_s24  ;;  %v18027_v54 = vmax.f32 %v6251_v49, 0.0  ;;  %v6121_v35 = vmax.f32 %v17428_v15, %v6096_v45  ;;  %v7541_v7 = vrot.slane %v18021_v24, 1  ;;  %v6192_v45 = vpop.permute.xlu1 %6191 }
 0x64f   : > { %12968 = vmatprep.mubr.msk.f32.mxu1 %vm15771_vm2, %v19626_v30  ;;  %v7361_v62 = vrot.slane %v6240_v23, 1  ;;  %v8123_v49 = vrot.slane %v6240_v23, 2 }
 0x650   : > { %6798 = vrot.lane.b32.xlu0 %v18027_v54, %s15766_s24  ;;  %v19619_v36 = vrot.slane %v18027_v54, 1  ;;  %v8300_v42 = vrot.slane %v18027_v54, 2  ;;  %v7359_v29 = vrot.slane %v6239_v11, 1  ;;  %v8121_v14 = vrot.slane %v6239_v11, 2 }
 0x651   : > { %v6144_v51 = vpop.permute.xlu0 %6143 }
 0x652   : > { %v6169_v6 = vmax.f32 %v6121_v35, %v6144_v51  ;;  %12969 = vmatmul.mubr.msk.f32.gmra.mrb[32].mxu1 %vm6305_vm5, %v17890_v32  ;;  %5884 = vrot.lane.b32.xlu1 %v17435_v17, %s15768_s16  ;;  %v18043_v15 = vsel %vm7725_vm4, %v8298_v46, %v8300_v42  ;;  %v18050_v3 = vsel %vm6961_vm3, %v19619_v36, %v7541_v7  ;;  %v19654_v51 = vrot.slane %v18021_v24, 2 }
 0x653   : > { %12971 = vmatprep.mubr.msk.f32.mxu1 %vm15771_vm2, %v19626_v30  ;;  %v18053_v35 = vsel %vm6961_vm3, %v7357_v27, %v7359_v29  ;;  %v18056_v32 = vsel %vm6961_vm3, %v7359_v29, %v7361_v62  ;;  %v18064_v56 = vsel %vm7725_vm4, %v8119_v53, %v8121_v14  ;;  %v18067_v2 = vsel %vm7725_vm4, %v8121_v14, %v8123_v49  ;;  %v12183_v14 = vld [vmem:[%s19593_s3 + $0x50] sm:$0xff] }
 0x654   : > { %v18061_v46 = vsel %vm7725_vm4, %v8300_v42, %v19654_v51  ;;  %v6217_v47 = vmax.f32 %v6169_v6, %v6192_v45  ;;  %v6962_v45 = vrot.slane %v17720_v8, 1 }
 0x656   : > { %v6229_v36 = vadd.f32 %v17811_v52, %v6217_v47  ;;  %12972 = vmatmul.mubr.msk.f32.gmra.mrb[34].mxu1 %vm6305_vm5, %v17886_v31  ;;  %5980 = vrot.lane.b32.xlu1 %v17435_v17, %s15767_s14  ;;  %v6253_v27 = vadd.f32 %v6217_v47, %v17462_v20 }
 0x657   : > { %12974 = vmatprep.mubr.msk.f32.mxu1 %vm15771_vm2, %v19626_v30 }
 0x658   : > { %v18077_v42 = vmax.f32 %v6229_v36, 0.0  ;;  %v18079_v53 = vmax.f32 %v6253_v27, 0.0 }
 0x65a   : > { %12975 = vmatmul.mubr.msk.f32.gmra.mrb[36].mxu1 %vm6305_vm5, %v17961_v55  ;;  %6802 = vrot.lane.b32.xlu0 %v18079_v53, %s15766_s24  ;;  %v7363_v31 = vrot.slane %v18077_v42, 1  ;;  %v8125_v29 = vrot.slane %v18077_v42, 2 }
 0x65b   : > { %7167 = vrot.lane.b32.xlu1 %v17507_v34, %s15766_s24  ;;  %12977 = vmatprep.mubr.msk.f32.mxu1 %vm15771_vm2, %v19626_v30  ;;  %v7161_v34 = vrot.slane %v17606_v16, 1 }
 0x65c   : > { %v18094_v47 = vsel %vm6961_vm3, %v7361_v62, %v7363_v31  ;;  %v18099_v55 = vsel %vm7725_vm4, %v8123_v49, %v8125_v29  ;;  %v6963_v62 = vrot.slane %v17730_v26, 1 }
 0x65e   : > { %12978 = vmatmul.mubr.msk.f32.gmra.mrb[38].mxu1 %vm6305_vm5, %v17957_v38  ;;  %5932 = vrot.lane.b32.xlu0 %v17435_v17, %s15769_s15  ;;  %v7543_v38 = vrot.slane %v18079_v53, 1 }
 0x65f   : > { %7171 = vrot.lane.b32.xlu1 %v17531_v18, %s15766_s24  ;;  %12980 = vmatprep.mubr.msk.f32.mxu1 %vm15771_vm2, %v19626_v30  ;;  %v19656_v18 = vrot.slane %v17965_v9, 1 }
 0x662   : > { %12981 = vmatmul.mubr.msk.f32.gmra.mrb[40].mxu1 %vm6305_vm5, %v6239_v11  ;;  %7165 = vrot.lane.b32.xlu0 %v17489_v10, %s15766_s24  ;;  %v19655_v10 = vrot.slane %v17574_v0, 1 }
 0x663   : > { %7175 = vrot.lane.b32.xlu1 %v17555_v61, %s15766_s24  ;;  %12983 = vmatprep.mubr.msk.f32.mxu1 %vm15771_vm2, %v19626_v30 }
 0x666   : > { %12984 = vmatmul.mubr.msk.f32.gmra.mrb[42].mxu1 %vm6305_vm5, %v6240_v23  ;;  %7169 = vrot.lane.b32.xlu0 %v17510_v37, %s15766_s24  ;;  %v7162_v37 = vsel %vm6961_vm3, %v19655_v10, %v7161_v34 }
 0x667   : > { %7179 = vrot.lane.b32.xlu1 %v17583_v40, %s15766_s24  ;;  %12986 = vmatprep.mubr.msk.f32.mxu1 %vm15771_vm2, %v19626_v30  ;;  %v19659_v40 = vrot.slane %v17959_v58, 1 }
 0x66a   : > { %12987 = vmatmul.mubr.msk.f32.gmra.mrb[44].mxu1 %vm6305_vm5, %v18077_v42  ;;  %7173 = vrot.lane.b32.xlu0 %v17534_v21, %s15766_s24  ;;  %v19657_v21 = vrot.slane %v17888_v33, 1  ;;  %v12171_v33 = vld [vmem:[%s19593_s3 + $0x48] sm:$0xff] }
 0x66b   : > { %7183 = vrot.lane.b32.xlu1 %v7162_v37, %s15766_s24  ;;  %12993 = vmatprep.mubr.msk.f32.mxu1 %vm15771_vm2, %v19626_v30  ;;  %v6964_v37 = vsel %vm6961_vm3, %v6962_v45, %v6963_v62 }
 0x66c   : > { %v7536_v61 = vsel %vm6961_vm3, %v19657_v21, %v19656_v18  ;;  %v6965_v18 = vrot.slane %v17743_v44, 1 }
 0x66e   : > { %7177 = vrot.lane.b32.xlu0 %v17558_v63, %s15766_s24  ;;  %v19658_v63 = vrot.slane %v18027_v54, 1 }
 0x66f   : > { %6097 = vrot.lane.b32.xlu1 %v17438_v19, %s15768_s16 }
 0x672   : > { %7181 = vrot.lane.b32.xlu0 %v17588_v13, %s15766_s24  ;;  %v7540_v13 = vsel %vm6961_vm3, %v19659_v40, %v19658_v63  ;;  %v6966_v40 = vsel %vm6961_vm3, %v6963_v62, %v6965_v18 }
 0x673   : > { %6193 = vrot.lane.b32.xlu1 %v17438_v19, %s15767_s14 }
 0x677   : > { %7549 = vrot.lane.b32.xlu1 %v17843_v59, %s15766_s24  ;;  %v7544_v59 = vsel %vm6961_vm3, %v7541_v7, %v7543_v38  ;;  %v12184_v7 = vld [vmem:[%s19593_s3 + $0x58] sm:$0xff] }
 0x678   : > { %v14080_v51 = vpack.c.bf16 %v12184_v7, %v12183_v14  ;;  %v19663_v7 = vld [vmem:[#allocation26_spill] sm:$0xff] }
 0x67b   : > { %7553 = vrot.lane.b32.xlu1 %v17914_v50, %s15766_s24  ;;  %v12170_v50 = vld [vmem:[%s19593_s3 + $0x40] sm:$0xff] }
 0x67c   : > { %v14077_v58 = vpack.c.bf16 %v12171_v33, %v12170_v50  ;;  %v6969_v33 = vrot.slane %v17792_v25, 1 }
 0x67f   : > { %7557 = vrot.lane.b32.xlu1 %v7536_v61, %s15766_s24 }
 0x683   : > { %7561 = vrot.lane.b32.xlu1 %v7540_v13, %s15766_s24 }
 0x687   : > { %7565 = vrot.lane.b32.xlu1 %v7544_v59, %s15766_s24 }
 0x68b   : > { %7928 = vrot.lane.b32.xlu1 %v17492_v12, %s15766_s24 }
 0x68f   : > { %7932 = vrot.lane.b32.xlu1 %v17513_v39, %s15766_s24 }
 0x690   : > { %v6785_v12 = vpop.permute.xlu1 %6784 }
 0x692   : > { %v6783_v9 = vpop.permute.xlu0 %6782 }
 0x693   : > { %7936 = vrot.lane.b32.xlu1 %v17537_v22, %s15766_s24  ;;  %12994 = vmatmul.mubr.msk.f32.vlgmr.msra.gmra.mrb[24].mxu1 %vm6305_vm5, %v6783_v9  ;;  %v7924_v9 = vrot.slane %v17606_v16, 2  ;;  %v12223_v16 = vld [vmem:[%s19593_s3 + $0x88] sm:$0xff] }
 0x694   : > { %12996 = vmatprep.mubr.msk.f32.mxu1 %vm15771_vm2, %v19626_v30  ;;  %14078 = vmatpush3.bf16.msra.mxu1 %v14077_v58 }
 0x695   : > { %14079 = vmatprep.subr.bf16.mxu1 %v19647_v43 }
 0x697   : > { %7940 = vrot.lane.b32.xlu1 %v17561_v1, %s15766_s24  ;;  %12997 = vmatmul.mubr.msk.f32.gmra.mrb[26].mxu1 %vm6305_vm5, %v6785_v12 }
 0x698   : > { %12999 = vmatprep.mubr.msk.f32.mxu1 %vm15771_vm2, %v19626_v30 }
 0x69b   : > { %7944 = vrot.lane.b32.xlu1 %v17593_v57, %s15766_s24 }
 0x69c   : > { %v6789_v22 = vpop.permute.xlu1 %6788 }
 0x69e   : > { %v6787_v39 = vpop.permute.xlu0 %6786 }
 0x69f   : > { %13000 = vmatmul.mubr.msk.f32.gmra.mrb[28].mxu1 %vm6305_vm5, %v6787_v39 }
 0x6a0   : > { %13002 = vmatprep.mubr.msk.f32.mxu1 %vm15771_vm2, %v19626_v30 }
 0x6a3   : > { %13003 = vmatmul.mubr.msk.f32.gmra.mrb[30].mxu1 %vm6305_vm5, %v6789_v22 }
 0x6a4   : > { %13005 = vmatprep.mubr.msk.f32.mxu1 %vm15771_vm2, %v19626_v30 }
 0x6a8   : > { %v6793_v23 = vpop.permute.xlu1 %6792 }
 0x6aa   : > { %v6791_v1 = vpop.permute.xlu0 %6790 }
 0x6ab   : > { %13006 = vmatmul.mubr.msk.f32.gmra.mrb[32].mxu1 %vm6305_vm5, %v6791_v1 }
 0x6ac   : > { %13008 = vmatprep.mubr.msk.f32.mxu1 %vm15771_vm2, %v19626_v30 }
 0x6af   : > { %13009 = vmatmul.mubr.msk.f32.gmra.mrb[34].mxu1 %vm6305_vm5, %v6793_v23  ;;  %v6971_v23 = vrot.slane %v17806_v5, 1 }
 0x6b0   : > { %13011 = vmatprep.mubr.msk.f32.mxu1 %vm15771_vm2, %v19626_v30 }
 0x6b4   : > { %v6797_v11 = vpop.permute.xlu1 %6796 }
 0x6b6   : > { %v6795_v57 = vpop.permute.xlu0 %6794 }
 0x6b7   : > { %13012 = vmatmul.mubr.msk.f32.gmra.mrb[36].mxu1 %vm6305_vm5, %v6795_v57  ;;  %v6973_v57 = vrot.slane %v17823_v41, 1 }
 0x6b8   : > { %13014 = vmatprep.mubr.msk.f32.mxu1 %vm15771_vm2, %v19626_v30 }
 0x6bb   : > { %13015 = vmatmul.mubr.msk.f32.gmra.mrb[38].mxu1 %vm6305_vm5, %v6797_v11  ;;  %v19660_v11 = vld [vmem:[#allocation8_spill] sm:$0xff] }
 0x6bc   : > { %13017 = vmatprep.mubr.msk.f32.mxu1 %vm15771_vm2, %v19626_v30 }
 0x6c0   : > { %v6801_v36 = vpop.permute.xlu1 %6800 }
 0x6c2   : > { %v6799_v54 = vpop.permute.xlu0 %6798 }
 0x6c3   : > { %13018 = vmatmul.mubr.msk.f32.gmra.mrb[40].mxu1 %vm6305_vm5, %v6799_v54  ;;  %v6974_v54 = vsel %vm6961_vm3, %v6971_v23, %v6973_v57 }
 0x6c4   : > { %13020 = vmatprep.mubr.msk.f32.mxu1 %vm15771_vm2, %v19626_v30  ;;  %v5885_v6 = vpop.permute.xlu1 %5884 }
 0x6c5   : > { %v5909_v27 = vmax.f32 %v17435_v17, %v5885_v6  ;;  %v6967_v17 = vrot.slane %v17755_v48, 1  ;;  %v19664_v6 = vld [vmem:[#allocation17_spill] sm:$0xff] }
 0x6c7   : > { %13021 = vmatmul.mubr.msk.f32.gmra.mrb[42].mxu1 %vm6305_vm5, %v6801_v36  ;;  %v6968_v50 = vsel %vm6961_vm3, %v6965_v18, %v6967_v17  ;;  %v6970_v1 = vsel %vm6961_vm3, %v6967_v17, %v6969_v33  ;;  %v19661_v36 = vld [vmem:[#allocation10_spill] sm:$0xff]  ;;  %v19667_v18 = vrot.slane %v18021_v24, 2 }
 0x6c8   : > { %13023 = vmatprep.mubr.msk.f32.mxu1 %vm15771_vm2, %v19626_v30  ;;  %v5981_v61 = vpop.permute.xlu1 %5980  ;;  %v6975_v14 = vrot.slane %v19661_v36, 1 }
 0x6ca   : > { %v6976_v62 = vsel %vm6961_vm3, %v6973_v57, %v6975_v14 }
 0x6cc   : > { %v6803_v49 = vpop.permute.xlu0 %6802 }
 0x6cd   : > { %13024 = vmatmul.mubr.msk.f32.gmra.mrb[44].mxu1 %vm6305_vm5, %v6803_v49  ;;  %v6977_v49 = vrot.slane %v19664_v6, 1 }
 0x6ce   : > { %13030 = vmatprep.mubr.msk.f32.mxu1 %vm15771_vm2, %v19626_v30 }
 0x6d0   : > { %v5933_v10 = vpop.permute.xlu0 %5932 }
 0x6d1   : > { %v5957_v21 = vmax.f32 %v5909_v27, %v5933_v10  ;;  %13031 = vmatmul.mubr.msk.f32.vlgmr.msra.gmra.mrb[24].mxu1 %vm6305_vm5, %v6964_v37  ;;  %v6978_v27 = vsel %vm6961_vm3, %v6975_v14, %v6977_v49  ;;  %v19666_v10 = vld [vmem:[#allocation18_spill] sm:$0xff]  ;;  %v12209_v14 = vld [vmem:[%s19593_s3 + $0x70] sm:$0xff] }
 0x6d2   : > { %13033 = vmatprep.mubr.msk.f32.mxu1 %vm15771_vm2, %v19626_v30  ;;  %14081 = vmatpush3.bf16.msra.mxu1 %v14080_v51  ;;  %v19665_v51 = vld [vmem:[#allocation19_spill] sm:$0xff]  ;;  %v6979_v37 = vrot.slane %v19666_v10, 1 }
 0x6d3   : > { %v6005_v63 = vmax.f32 %v5957_v21, %v5981_v61  ;;  %14082 = vmatprep.subr.bf16.mxu1 %v19647_v43 }
 0x6d5   : > { %v6050_v13 = vadd.f32 %v17462_v20, %v6005_v63  ;;  %13034 = vmatmul.mubr.msk.f32.gmra.mrb[26].mxu1 %vm6305_vm5, %v6966_v40  ;;  %v6023_v45 = vadd.f32 %v17811_v52, %v6005_v63  ;;  %v19668_v63 = vld [vmem:[#allocation27_spill] sm:$0xff]  ;;  %v19669_v40 = vld [vmem:[#allocation24_spill] sm:$0xff] }
 0x6d6   : > { %13036 = vmatprep.mubr.msk.f32.mxu1 %vm15771_vm2, %v19626_v30  ;;  %v6981_v17 = vrot.slane %v19669_v40, 1 }
 0x6d7   : > { %v6062_v59 = vmax.f32 %v6050_v13, 0.0  ;;  %v18298_v61 = vmax.f32 %v6023_v45, 0.0 }
 0x6d8   : > { %v6982_v24 = vsel %vm6961_vm3, %v6979_v37, %v6981_v17 }
 0x6d9   : > { %13037 = vmatmul.mubr.msk.f32.gmra.mrb[28].mxu1 %vm6305_vm5, %v6968_v50  ;;  %v7163_v58 = vrot.slane %v6062_v59, 1  ;;  %v7926_v12 = vrot.slane %v6062_v59, 2  ;;  %v6983_v13 = vrot.slane %v18298_v61, 1  ;;  %v12196_v59 = vld [vmem:[%s19593_s3 + $0x60] sm:$0xff]  ;;  %v12197_v50 = vld [vmem:[%s19593_s3 + $0x68] sm:$0xff] }
 0x6da   : > { %13039 = vmatprep.mubr.msk.f32.mxu1 %vm15771_vm2, %v19626_v30 }
 0x6db   : > { %v7164_v39 = vsel %vm6961_vm3, %v7161_v34, %v7163_v58  ;;  %v7927_v22 = vsel %vm7725_vm4, %v7924_v9, %v7926_v12  ;;  %v6972_v34 = vsel %vm6961_vm3, %v6969_v33, %v6971_v23  ;;  %v6984_v33 = vsel %vm6961_vm3, %v6981_v17, %v6983_v13  ;;  %v7166_v58 = vpop.permute.xlu0 %7165  ;;  %v7168_v12 = vpop.permute.xlu1 %7167  ;;  %v19671_v17 = vld [vmem:[#allocation12_spill] sm:$0xff]  ;;  %v19672_v13 = vld [vmem:[#allocation13_spill] sm:$0xff] }
 0x6dc   : > { %7185 = vrot.lane.b32.xlu0 %v7164_v39, %s15766_s24  ;;  %7948 = vrot.lane.b32.xlu1 %v7927_v22, %s15766_s24 }
 0x6dd   : > { %13040 = vmatmul.mubr.msk.f32.gmra.mrb[30].mxu1 %vm6305_vm5, %v6970_v1 }
 0x6de   : > { %13042 = vmatprep.mubr.msk.f32.mxu1 %vm15771_vm2, %v19626_v30 }
 0x6df   : > { %v7170_v39 = vpop.permute.xlu0 %7169  ;;  %v7172_v22 = vpop.permute.xlu1 %7171 }
 0x6e0   : > { %6145 = vrot.lane.b32.xlu0 %v17438_v19, %s15769_s15  ;;  %8310 = vrot.lane.b32.xlu1 %v17846_v60, %s15766_s24  ;;  %v19662_v60 = vld [vmem:[#allocation11_spill] sm:$0xff] }
 0x6e1   : > { %13043 = vmatmul.mubr.msk.f32.gmra.mrb[32].mxu1 %vm6305_vm5, %v6972_v34 }
 0x6e2   : > { %13045 = vmatprep.mubr.msk.f32.mxu1 %vm15771_vm2, %v19626_v30 }
 0x6e3   : > { %v7174_v1 = vpop.permute.xlu0 %7173  ;;  %v7176_v23 = vpop.permute.xlu1 %7175 }
 0x6e4   : > { %7547 = vrot.lane.b32.xlu0 %v19660_v11, %s15766_s24  ;;  %8314 = vrot.lane.b32.xlu1 %v17917_v4, %s15766_s24  ;;  %v8304_v4 = vrot.slane %v18079_v53, 2 }
 0x6e5   : > { %13046 = vmatmul.mubr.msk.f32.gmra.mrb[34].mxu1 %vm6305_vm5, %v6974_v54 }
 0x6e6   : > { %13048 = vmatprep.mubr.msk.f32.mxu1 %vm15771_vm2, %v19626_v30  ;;  %v8305_v21 = vsel %vm7725_vm4, %v19667_v18, %v8304_v4 }
 0x6e7   : > { %v7178_v34 = vpop.permute.xlu0 %7177  ;;  %v7180_v57 = vpop.permute.xlu1 %7179 }
 0x6e8   : > { %7551 = vrot.lane.b32.xlu0 %v19662_v60, %s15766_s24  ;;  %8318 = vrot.lane.b32.xlu1 %v19663_v7, %s15766_s24  ;;  %v12210_v60 = vld [vmem:[%s19593_s3 + $0x78] sm:$0xff] }
 0x6e9   : > { %13049 = vmatmul.mubr.msk.f32.gmra.mrb[36].mxu1 %vm6305_vm5, %v6976_v62 }
 0x6ea   : > { %13051 = vmatprep.mubr.msk.f32.mxu1 %vm15771_vm2, %v19626_v30 }
 0x6eb   : > { %v7182_v11 = vpop.permute.xlu0 %7181  ;;  %v7184_v54 = vpop.permute.xlu1 %7183 }
 0x6ec   : > { %7555 = vrot.lane.b32.xlu0 %v19665_v51, %s15766_s24  ;;  %8322 = vrot.lane.b32.xlu1 %v18043_v15, %s15766_s24  ;;  %v6980_v15 = vsel %vm6961_vm3, %v6977_v49, %v6979_v37  ;;  %v14086_v49 = vpack.c.bf16 %v12210_v60, %v12209_v14  ;;  %v19670_v37 = vld [vmem:[#allocation6_spill] sm:$0xff] }
 0x6ed   : > { %13052 = vmatmul.mubr.msk.f32.gmra.mrb[38].mxu1 %vm6305_vm5, %v6978_v27 }
 0x6ee   : > { %13054 = vmatprep.mubr.msk.f32.mxu1 %vm15771_vm2, %v19626_v30 }
 0x6ef   : > { %v6098_v7 = vpop.permute.xlu1 %6097 }
 0x6f0   : > { %7559 = vrot.lane.b32.xlu0 %v19668_v63, %s15766_s24  ;;  %8326 = vrot.lane.b32.xlu1 %v8305_v21, %s15766_s24  ;;  %v6122_v45 = vmax.f32 %v17438_v19, %v6098_v7 }
 0x6f1   : > { %13055 = vmatmul.mubr.msk.f32.gmra.mrb[40].mxu1 %vm6305_vm5, %v6980_v15 }
 0x6f2   : > { %13057 = vmatprep.mubr.msk.f32.mxu1 %vm15771_vm2, %v19626_v30 }
 0x6f3   : > { %v6194_v18 = vpop.permute.xlu1 %6193 }
 0x6f4   : > { %7563 = vrot.lane.b32.xlu0 %v18050_v3, %s15766_s24  ;;  %v14083_v3 = vpack.c.bf16 %v12197_v50, %v12196_v59 }
 0x6f5   : > { %13058 = vmatmul.mubr.msk.f32.gmra.mrb[42].mxu1 %vm6305_vm5, %v6982_v24 }
 0x6f6   : > { %13060 = vmatprep.mubr.msk.f32.mxu1 %vm15771_vm2, %v19626_v30 }
 0x6f7   : > { %v7550_v42 = vpop.permute.xlu1 %7549 }
 0x6f9   : > { %13061 = vmatmul.mubr.msk.f32.gmra.mrb[44].mxu1 %vm6305_vm5, %v6984_v33  ;;  %v19673_v33 = vld [vmem:[#allocation20_spill] sm:$0xff] }
 0x6fa   : > { %13067 = vmatprep.mubr.msk.f32.mxu1 %vm15771_vm2, %v19626_v30 }
 0x6fb   : > { %v7554_v14 = vpop.permute.xlu1 %7553 }
 0x6fd   : > { %13068 = vmatmul.mubr.msk.f32.vlgmr.msra.gmra.mrb[24].mxu1 %vm6305_vm5, %v7166_v58  ;;  %v19675_v58 = vld [vmem:[#allocation21_spill] sm:$0xff] }
 0x6fe   : > { %13070 = vmatprep.mubr.msk.f32.mxu1 %vm15771_vm2, %v19626_v30  ;;  %14084 = vmatpush3.bf16.msra.mxu1 %v14083_v3  ;;  %v19674_v3 = vld [vmem:[#allocation2_spill] sm:$0xff] }
 0x6ff   : > { %14085 = vmatprep.subr.bf16.mxu1 %v19647_v43 }
 0x701   : > { %13071 = vmatmul.mubr.msk.f32.gmra.mrb[26].mxu1 %vm6305_vm5, %v7168_v12  ;;  %v19678_v12 = vld [vmem:[#allocation4_spill] sm:$0xff] }
 0x702   : > { %13073 = vmatprep.mubr.msk.f32.mxu1 %vm15771_vm2, %v19626_v30 }
 0x705   : > { %13074 = vmatmul.mubr.msk.f32.gmra.mrb[28].mxu1 %vm6305_vm5, %v7170_v39  ;;  %v19679_v39 = vld [vmem:[#allocation5_spill] sm:$0xff] }
 0x706   : > { %13076 = vmatprep.mubr.msk.f32.mxu1 %vm15771_vm2, %v19626_v30 }
 0x709   : > { %13077 = vmatmul.mubr.msk.f32.gmra.mrb[30].mxu1 %vm6305_vm5, %v7172_v22  ;;  %v19680_v22 = vrot.slane %v17574_v0, 2  ;;  %v12222_v0 = vld [vmem:[%s19593_s3 + $0x80] sm:$0xff] }
 0x70a   : > { %13079 = vmatprep.mubr.msk.f32.mxu1 %vm15771_vm2, %v19626_v30 }
 0x70d   : > { %13080 = vmatmul.mubr.msk.f32.gmra.mrb[32].mxu1 %vm6305_vm5, %v7174_v1  ;;  %v7925_v1 = vsel %vm7725_vm4, %v19680_v22, %v7924_v9  ;;  %v7745_v22 = vrot.slane %v19669_v40, 2 }
 0x70e   : > { %13082 = vmatprep.mubr.msk.f32.mxu1 %vm15771_vm2, %v19626_v30 }
 0x711   : > { %13083 = vmatmul.mubr.msk.f32.gmra.mrb[34].mxu1 %vm6305_vm5, %v7176_v23 }
 0x712   : > { %13085 = vmatprep.mubr.msk.f32.mxu1 %vm15771_vm2, %v19626_v30 }
 0x715   : > { %13086 = vmatmul.mubr.msk.f32.gmra.mrb[36].mxu1 %vm6305_vm5, %v7178_v34  ;;  %v19683_v34 = vld [vmem:[#allocation22_spill] sm:$0xff] }
 0x716   : > { %13088 = vmatprep.mubr.msk.f32.mxu1 %vm15771_vm2, %v19626_v30 }
 0x719   : > { %13089 = vmatmul.mubr.msk.f32.gmra.mrb[38].mxu1 %vm6305_vm5, %v7180_v57 }
 0x71a   : > { %13091 = vmatprep.mubr.msk.f32.mxu1 %vm15771_vm2, %v19626_v30 }
 0x71d   : > { %13092 = vmatmul.mubr.msk.f32.gmra.mrb[40].mxu1 %vm6305_vm5, %v7182_v11 }
 0x71e   : > { %13094 = vmatprep.mubr.msk.f32.mxu1 %vm15771_vm2, %v19626_v30 }
 0x721   : > { %13095 = vmatmul.mubr.msk.f32.gmra.mrb[42].mxu1 %vm6305_vm5, %v7184_v54 }
 0x722   : > { %13097 = vmatprep.mubr.msk.f32.mxu1 %vm15771_vm2, %v19626_v30 }
 0x74e   : > { %v7186_v62 = vpop.permute.xlu0 %7185 }
 0x74f   : > { %13098 = vmatmul.mubr.msk.f32.gmra.mrb[44].mxu1 %vm6305_vm5, %v7186_v62 }
 0x750   : > { %13104 = vmatprep.mubr.msk.f32.mxu1 %vm15771_vm2, %v19626_v30 }
 0x752   : > { %v6146_v51 = vpop.permute.xlu0 %6145 }
 0x753   : > { %v6170_v27 = vmax.f32 %v6122_v45, %v6146_v51  ;;  %13105 = vmatmul.mubr.msk.f32.vlgmr.msra.gmra.mrb[24].mxu1 %vm6305_vm5, %v19670_v37  ;;  %v12236_v45 = vld [vmem:[%s19593_s3 + $0x98] sm:$0xff]  ;;  %v7727_v51 = vrot.slane %v17730_v26, 2  ;;  %v7726_v37 = vrot.slane %v17720_v8, 2 }
 0x754   : > { %13107 = vmatprep.mubr.msk.f32.mxu1 %vm15771_vm2, %v19626_v30  ;;  %14087 = vmatpush3.bf16.msra.mxu1 %v14086_v49  ;;  %v12235_v49 = vld [vmem:[%s19593_s3 + $0x90] sm:$0xff] }
 0x755   : > { %v6218_v21 = vmax.f32 %v6170_v27, %v6194_v18  ;;  %14088 = vmatprep.subr.bf16.mxu1 %v19647_v43  ;;  %v14092_v18 = vpack.c.bf16 %v12236_v45, %v12235_v49  ;;  %v19687_v49 = vld [vmem:[#allocation16_spill] sm:$0xff]  ;;  %v19688_v45 = vld [vmem:[#allocation23_spill] sm:$0xff] }
 0x756   : > { %v7548_v23 = vpop.permute.xlu0 %7547 }
 0x757   : > { %v6230_v63 = vadd.f32 %v17811_v52, %v6218_v21  ;;  %v6254_v15 = vadd.f32 %v6218_v21, %v17462_v20  ;;  %13108 = vmatmul.mubr.msk.f32.gmra.mrb[26].mxu1 %vm6305_vm5, %v19671_v17  ;;  %v7728_v21 = vsel %vm7725_vm4, %v7726_v37, %v7727_v51  ;;  %v7731_v17 = vrot.slane %v17755_v48, 2  ;;  %v19691_v37 = vld [vmem:[#allocation31_spill] sm:$0xff] }
 0x758   : > { %13110 = vmatprep.mubr.msk.f32.mxu1 %vm15771_vm2, %v19626_v30 }
 0x759   : > { %v6242_v19 = vmax.f32 %v6230_v63, 0.0  ;;  %v6266_v24 = vmax.f32 %v6254_v15, 0.0  ;;  %v7729_v63 = vrot.slane %v17743_v44, 2 }
 0x75a   : > { %v7552_v11 = vpop.permute.xlu0 %7551 }
 0x75b   : > { %13111 = vmatmul.mubr.msk.f32.gmra.mrb[28].mxu1 %vm6305_vm5, %v19672_v13  ;;  %v7545_v59 = vrot.slane %v6266_v24, 1  ;;  %v8127_v50 = vrot.slane %v6242_v19, 2  ;;  %v8306_v57 = vrot.slane %v6266_v24, 2  ;;  %v7730_v15 = vsel %vm7725_vm4, %v7727_v51, %v7729_v63  ;;  %v19689_v51 = vld [vmem:[#allocation25_spill] sm:$0xff] }
 0x75c   : > { %13113 = vmatprep.mubr.msk.f32.mxu1 %vm15771_vm2, %v19626_v30  ;;  %v7733_v24 = vrot.slane %v17792_v25, 2 }
 0x75d   : > { %v7546_v20 = vsel %vm6961_vm3, %v7543_v38, %v7545_v59  ;;  %v18387_v52 = vsel %vm7725_vm4, %v8125_v29, %v8127_v50  ;;  %v19676_v29 = vld [vmem:[#allocation3_spill] sm:$0xff]  ;;  %v19677_v38 = vld [vmem:[#allocation28_spill] sm:$0xff]  ;;  %v8307_v54 = vsel %vm7725_vm4, %v8304_v4, %v8306_v57  ;;  %v7735_v59 = vrot.slane %v17806_v5, 2 }
 0x75e   : > { %7567 = vrot.lane.b32.xlu0 %v7546_v20, %s15766_s24  ;;  %v7556_v60 = vpop.permute.xlu0 %7555  ;;  %v7734_v13 = vsel %vm7725_vm4, %v7731_v17, %v7733_v24  ;;  %v7737_v20 = vrot.slane %v17823_v41, 2 }
 0x75f   : > { %13114 = vmatmul.mubr.msk.f32.gmra.mrb[30].mxu1 %vm6305_vm5, %v19673_v33  ;;  %v7736_v50 = vsel %vm7725_vm4, %v7733_v24, %v7735_v59 }
 0x760   : > { %13116 = vmatprep.mubr.msk.f32.mxu1 %vm15771_vm2, %v19626_v30  ;;  %v7738_v33 = vsel %vm7725_vm4, %v7735_v59, %v7737_v20 }
 0x762   : > { %7930 = vrot.lane.b32.xlu0 %v19674_v3, %s15766_s24  ;;  %v7560_v53 = vpop.permute.xlu0 %7559  ;;  %v7739_v3 = vrot.slane %v19661_v36, 2 }
 0x763   : > { %13117 = vmatmul.mubr.msk.f32.gmra.mrb[32].mxu1 %vm6305_vm5, %v19675_v58 }
 0x764   : > { %13119 = vmatprep.mubr.msk.f32.mxu1 %vm15771_vm2, %v19626_v30  ;;  %v7740_v58 = vsel %vm7725_vm4, %v7737_v20, %v7739_v3 }
 0x766   : > { %7934 = vrot.lane.b32.xlu0 %v19676_v29, %s15766_s24  ;;  %v7564_v7 = vpop.permute.xlu0 %7563  ;;  %v7741_v29 = vrot.slane %v19664_v6, 2 }
 0x767   : > { %13120 = vmatmul.mubr.msk.f32.gmra.mrb[34].mxu1 %vm6305_vm5, %v19677_v38 }
 0x768   : > { %13122 = vmatprep.mubr.msk.f32.mxu1 %vm15771_vm2, %v19626_v30  ;;  %v7742_v38 = vsel %vm7725_vm4, %v7739_v3, %v7741_v29 }
 0x76a   : > { %7938 = vrot.lane.b32.xlu0 %v19678_v12, %s15766_s24  ;;  %v7743_v12 = vrot.slane %v19666_v10, 2 }
 0x76b   : > { %13123 = vmatmul.mubr.msk.f32.gmra.mrb[36].mxu1 %vm6305_vm5, %v18002_v28  ;;  %v19681_v28 = vld [vmem:[#allocation9_spill] sm:$0xff] }
 0x76c   : > { %13125 = vmatprep.mubr.msk.f32.mxu1 %vm15771_vm2, %v19626_v30 }
 0x76e   : > { %7942 = vrot.lane.b32.xlu0 %v19679_v39, %s15766_s24  ;;  %v7744_v39 = vsel %vm7725_vm4, %v7741_v29, %v7743_v12  ;;  %v8492_v29 = vrot.slane %v17755_v48, 3 }
 0x76f   : > { %13126 = vmatmul.mubr.msk.f32.gmra.mrb[38].mxu1 %vm6305_vm5, %v18053_v35  ;;  %v7365_v35 = vrot.slane %v6242_v19, 1  ;;  %v7732_v19 = vsel %vm7725_vm4, %v7729_v63, %v7731_v17 }
 0x770   : > { %13128 = vmatprep.mubr.msk.f32.mxu1 %vm15771_vm2, %v19626_v30 }
 0x771   : > { %v7366_v9 = vsel %vm6961_vm3, %v7363_v31, %v7365_v35  ;;  %v19684_v31 = vld [vmem:[#allocation29_spill] sm:$0xff]  ;;  %v12248_v35 = vld [vmem:[%s19593_s3 + $0xa0] sm:$0xff] }
 0x772   : > { %7946 = vrot.lane.b32.xlu0 %v7925_v1, %s15766_s24  ;;  %v7746_v1 = vsel %vm7725_vm4, %v7743_v12, %v7745_v22  ;;  %v8496_v12 = vrot.slane %v17806_v5, 3 }
 0x773   : > { %13129 = vmatmul.mubr.msk.f32.gmra.mrb[40].mxu1 %vm6305_vm5, %v18056_v32  ;;  %v19682_v32 = vld [vmem:[#allocation14_spill] sm:$0xff] }
 0x774   : > { %13131 = vmatprep.mubr.msk.f32.mxu1 %vm15771_vm2, %v19626_v30 }
 0x776   : > { %8308 = vrot.lane.b32.xlu0 %v19681_v28, %s15766_s24  ;;  %v7747_v28 = vrot.slane %v18298_v61, 2 }
 0x777   : > { %13132 = vmatmul.mubr.msk.f32.gmra.mrb[42].mxu1 %vm6305_vm5, %v18094_v47  ;;  %v14089_v47 = vpack.c.bf16 %v12223_v16, %v12222_v0  ;;  %v12249_v0 = vld [vmem:[%s19593_s3 + $0xa8] sm:$0xff] }
 0x778   : > { %13134 = vmatprep.mubr.msk.f32.mxu1 %vm15771_vm2, %v19626_v30  ;;  %v7748_v16 = vsel %vm7725_vm4, %v7745_v22, %v7747_v28  ;;  %v8500_v22 = vrot.slane %v19661_v36, 3  ;;  %v8504_v28 = vrot.slane %v19666_v10, 3 }
 0x77a   : > { %8312 = vrot.lane.b32.xlu0 %v19682_v32, %s15766_s24  ;;  %v14095_v32 = vpack.c.bf16 %v12249_v0, %v12248_v35  ;;  %v8506_v35 = vrot.slane %v19669_v40, 3  ;;  %v8508_v0 = vrot.slane %v18298_v61, 3 }
 0x77b   : > { %13135 = vmatmul.mubr.msk.f32.gmra.mrb[44].mxu1 %vm6305_vm5, %v7366_v9 }
 0x77c   : > { %13141 = vmatprep.mubr.msk.f32.mxu1 %vm15771_vm2, %v19626_v30  ;;  %v8509_v10 = vsel %vm8486_vm6, %v8506_v35, %v8508_v0 }
 0x77e   : > { %8316 = vrot.lane.b32.xlu0 %v19683_v34, %s15766_s24 }
 0x77f   : > { %13142 = vmatmul.mubr.msk.f32.vlgmr.msra.gmra.mrb[24].mxu1 %vm6305_vm5, %v7548_v23 }
 0x780   : > { %13144 = vmatprep.mubr.msk.f32.mxu1 %vm15771_vm2, %v19626_v30  ;;  %14090 = vmatpush3.bf16.msra.mxu1 %v14089_v47 }
 0x781   : > { %14091 = vmatprep.subr.bf16.mxu1 %v19647_v43 }
 0x782   : > { %8320 = vrot.lane.b32.xlu0 %v19684_v31, %s15766_s24 }
 0x783   : > { %13145 = vmatmul.mubr.msk.f32.gmra.mrb[26].mxu1 %vm6305_vm5, %v7550_v42 }
 0x784   : > { %13147 = vmatprep.mubr.msk.f32.mxu1 %vm15771_vm2, %v19626_v30 }
 0x786   : > { %8324 = vrot.lane.b32.xlu0 %v18061_v46, %s15766_s24  ;;  %v7558_v46 = vpop.permute.xlu1 %7557 }
 0x787   : > { %13148 = vmatmul.mubr.msk.f32.gmra.mrb[28].mxu1 %vm6305_vm5, %v7552_v11 }
 0x788   : > { %13150 = vmatprep.mubr.msk.f32.mxu1 %vm15771_vm2, %v19626_v30 }
 0x78a   : > { %8328 = vrot.lane.b32.xlu0 %v8307_v54, %s15766_s24  ;;  %v7562_v4 = vpop.permute.xlu1 %7561  ;;  %s15779_s24 = smov 120  }
 0x78b   : > { %13151 = vmatmul.mubr.msk.f32.gmra.mrb[30].mxu1 %vm6305_vm5, %v7554_v14 }
 0x78c   : > { %13153 = vmatprep.mubr.msk.f32.mxu1 %vm15771_vm2, %v19626_v30 }
 0x78e   : > { %v7566_v62 = vpop.permute.xlu1 %7565 }
 0x78f   : > { %13154 = vmatmul.mubr.msk.f32.gmra.mrb[32].mxu1 %vm6305_vm5, %v7556_v60  ;;  %v12261_v60 = vld [vmem:[%s19593_s3 + $0xb0] sm:$0xff] }
 0x790   : > { %13156 = vmatprep.mubr.msk.f32.mxu1 %vm15771_vm2, %v19626_v30 }
 0x792   : > { %v7929_v9 = vpop.permute.xlu1 %7928 }
 0x793   : > { %13157 = vmatmul.mubr.msk.f32.gmra.mrb[34].mxu1 %vm6305_vm5, %v7558_v46  ;;  %v12262_v46 = vld [vmem:[%s19593_s3 + $0xb8] sm:$0xff] }
 0x794   : > { %13159 = vmatprep.mubr.msk.f32.mxu1 %vm15771_vm2, %v19626_v30 }
 0x796   : > { %v7933_v23 = vpop.permute.xlu1 %7932 }
 0x797   : > { %13160 = vmatmul.mubr.msk.f32.gmra.mrb[36].mxu1 %vm6305_vm5, %v7560_v53 }
 0x798   : > { %13162 = vmatprep.mubr.msk.f32.mxu1 %vm15771_vm2, %v19626_v30 }
 0x79a   : > { %v7937_v42 = vpop.permute.xlu1 %7936 }
 0x79b   : > { %13163 = vmatmul.mubr.msk.f32.gmra.mrb[38].mxu1 %vm6305_vm5, %v7562_v4  ;;  %v14098_v4 = vpack.c.bf16 %v12262_v46, %v12261_v60 }
 0x79c   : > { %13165 = vmatprep.mubr.msk.f32.mxu1 %vm15771_vm2, %v19626_v30 }
 0x79e   : > { %v7941_v57 = vpop.permute.xlu1 %7940 }
 0x79f   : > { %13166 = vmatmul.mubr.msk.f32.gmra.mrb[40].mxu1 %vm6305_vm5, %v7564_v7  ;;  %v19685_v7 = vld [vmem:[#allocation7_spill] sm:$0xff] }
 0x7a0   : > { %13168 = vmatprep.mubr.msk.f32.mxu1 %vm15771_vm2, %v19626_v30 }
 0x7a2   : > { %v7945_v54 = vpop.permute.xlu1 %7944 }
 0x7a3   : > { %13169 = vmatmul.mubr.msk.f32.gmra.mrb[42].mxu1 %vm6305_vm5, %v7566_v62  ;;  %v19686_v62 = vld [vmem:[#allocation15_spill] sm:$0xff] }
 0x7a4   : > { %13171 = vmatprep.mubr.msk.f32.mxu1 %vm15771_vm2, %v19626_v30 }
 0x7a6   : > { %v7949_v53 = vpop.permute.xlu1 %7948 }
 0x7d0   : > { %v7568_v27 = vpop.permute.xlu0 %7567 }
 0x7d1   : > { %13172 = vmatmul.mubr.msk.f32.gmra.mrb[44].mxu1 %vm6305_vm5, %v7568_v27  ;;  %v19690_v27 = vld [vmem:[#allocation30_spill] sm:$0xff] }
 0x7d2   : > { %13178 = vmatprep.mubr.msk.f32.mxu1 %vm15771_vm2, %v19626_v30 }
 0x7d4   : > { %v7931_v47 = vpop.permute.xlu0 %7930 }
 0x7d5   : > { %13179 = vmatmul.mubr.msk.f32.vlgmr.msra.gmra.mrb[24].mxu1 %vm6305_vm5, %v7728_v21 }
 0x7d6   : > { %13181 = vmatprep.mubr.msk.f32.mxu1 %vm15771_vm2, %v19626_v30  ;;  %14093 = vmatpush3.bf16.msra.mxu1 %v14092_v18  ;;  %v12274_v18 = vld [vmem:[%s19593_s3 + $0xc0] sm:$0xff] }
 0x7d7   : > { %14094 = vmatprep.subr.bf16.mxu1 %v19647_v43 }
 0x7d8   : > { %v7935_v34 = vpop.permute.xlu0 %7934 }
 0x7d9   : > { %13182 = vmatmul.mubr.msk.f32.gmra.mrb[26].mxu1 %vm6305_vm5, %v7730_v15 }
 0x7da   : > { %13184 = vmatprep.mubr.msk.f32.mxu1 %vm15771_vm2, %v19626_v30 }
 0x7dc   : > { %v7939_v31 = vpop.permute.xlu0 %7938 }
 0x7dd   : > { %13185 = vmatmul.mubr.msk.f32.gmra.mrb[28].mxu1 %vm6305_vm5, %v7732_v19 }
 0x7de   : > { %13187 = vmatprep.mubr.msk.f32.mxu1 %vm15771_vm2, %v19626_v30 }
 0x7e0   : > { %v7943_v11 = vpop.permute.xlu0 %7942 }
 0x7e1   : > { %13188 = vmatmul.mubr.msk.f32.gmra.mrb[30].mxu1 %vm6305_vm5, %v7734_v13 }
 0x7e2   : > { %13190 = vmatprep.mubr.msk.f32.mxu1 %vm15771_vm2, %v19626_v30 }
 0x7e4   : > { %v7947_v14 = vpop.permute.xlu0 %7946 }
 0x7e5   : > { %13191 = vmatmul.mubr.msk.f32.gmra.mrb[32].mxu1 %vm6305_vm5, %v7736_v50  ;;  %v8488_v50 = vrot.slane %v17730_v26, 3 }
 0x7e6   : > { %13193 = vmatprep.mubr.msk.f32.mxu1 %vm15771_vm2, %v19626_v30 }
 0x7e8   : > { %v8309_v21 = vpop.permute.xlu0 %8308 }
 0x7e9   : > { %13194 = vmatmul.mubr.msk.f32.gmra.mrb[34].mxu1 %vm6305_vm5, %v7738_v33  ;;  %v8487_v33 = vrot.slane %v17720_v8, 3 }
 0x7ea   : > { %13196 = vmatprep.mubr.msk.f32.mxu1 %vm15771_vm2, %v19626_v30 }
 0x7eb   : > { %v8489_v3 = vsel %vm8486_vm6, %v8487_v33, %v8488_v50 }
 0x7ed   : > { %13197 = vmatmul.mubr.msk.f32.gmra.mrb[36].mxu1 %vm6305_vm5, %v7740_v58  ;;  %v8490_v58 = vrot.slane %v17743_v44, 3 }
 0x7ee   : > { %13199 = vmatprep.mubr.msk.f32.mxu1 %vm15771_vm2, %v19626_v30 }
 0x7ef   : > { %v8491_v26 = vsel %vm8486_vm6, %v8488_v50, %v8490_v58  ;;  %v8493_v8 = vsel %vm8486_vm6, %v8490_v58, %v8492_v29 }
 0x7f1   : > { %13200 = vmatmul.mubr.msk.f32.gmra.mrb[38].mxu1 %vm6305_vm5, %v7742_v38  ;;  %v8494_v38 = vrot.slane %v17792_v25, 3 }
 0x7f2   : > { %13202 = vmatprep.mubr.msk.f32.mxu1 %vm15771_vm2, %v19626_v30 }
 0x7f3   : > { %v8495_v44 = vsel %vm8486_vm6, %v8492_v29, %v8494_v38  ;;  %v8497_v48 = vsel %vm8486_vm6, %v8494_v38, %v8496_v12 }
 0x7f5   : > { %13203 = vmatmul.mubr.msk.f32.gmra.mrb[40].mxu1 %vm6305_vm5, %v7744_v39  ;;  %v8498_v39 = vrot.slane %v17823_v41, 3 }
 0x7f6   : > { %13205 = vmatprep.mubr.msk.f32.mxu1 %vm15771_vm2, %v19626_v30 }
 0x7f7   : > { %v8499_v25 = vsel %vm8486_vm6, %v8496_v12, %v8498_v39  ;;  %v8501_v5 = vsel %vm8486_vm6, %v8498_v39, %v8500_v22 }
 0x7f9   : > { %13206 = vmatmul.mubr.msk.f32.gmra.mrb[42].mxu1 %vm6305_vm5, %v7746_v1  ;;  %v8502_v1 = vrot.slane %v19664_v6, 3  ;;  %v8507_v6 = vsel %vm8486_vm6, %v8504_v28, %v8506_v35 }
 0x7fa   : > { %13208 = vmatprep.mubr.msk.f32.mxu1 %vm15771_vm2, %v19626_v30 }
 0x7fb   : > { %v8503_v41 = vsel %vm8486_vm6, %v8500_v22, %v8502_v1  ;;  %v8505_v36 = vsel %vm8486_vm6, %v8502_v1, %v8504_v28 }
 0x7fd   : > { %13209 = vmatmul.mubr.msk.f32.gmra.mrb[44].mxu1 %vm6305_vm5, %v7748_v16 }
 0x7fe   : > { %13215 = vmatprep.mubr.msk.f32.mxu1 %vm15771_vm2, %v19626_v30 }
 0x801   : > { %13216 = vmatmul.mubr.msk.f32.vlgmr.msra.gmra.mrb[24].mxu1 %vm6305_vm5, %v7929_v9 }
 0x802   : > { %13218 = vmatprep.mubr.msk.f32.mxu1 %vm15771_vm2, %v19626_v30  ;;  %14096 = vmatpush3.bf16.msra.mxu1 %v14095_v32 }
 0x803   : > { %14097 = vmatprep.subr.bf16.mxu1 %v19647_v43 }
 0x805   : > { %13219 = vmatmul.mubr.msk.f32.gmra.mrb[26].mxu1 %vm6305_vm5, %v7931_v47 }
 0x806   : > { %13221 = vmatprep.mubr.msk.f32.mxu1 %vm15771_vm2, %v19626_v30 }
 0x809   : > { %13222 = vmatmul.mubr.msk.f32.gmra.mrb[28].mxu1 %vm6305_vm5, %v7933_v23 }
 0x80a   : > { %13224 = vmatprep.mubr.msk.f32.mxu1 %vm15771_vm2, %v19626_v30 }
 0x80d   : > { %13225 = vmatmul.mubr.msk.f32.gmra.mrb[30].mxu1 %vm6305_vm5, %v7935_v34 }
 0x80e   : > { %13227 = vmatprep.mubr.msk.f32.mxu1 %vm15771_vm2, %v19626_v30 }
 0x811   : > { %13228 = vmatmul.mubr.msk.f32.gmra.mrb[32].mxu1 %vm6305_vm5, %v7937_v42 }
 0x812   : > { %13230 = vmatprep.mubr.msk.f32.mxu1 %vm15771_vm2, %v19626_v30 }
 0x815   : > { %13231 = vmatmul.mubr.msk.f32.gmra.mrb[34].mxu1 %vm6305_vm5, %v7939_v31 }
 0x816   : > { %13233 = vmatprep.mubr.msk.f32.mxu1 %vm15771_vm2, %v19626_v30 }
 0x819   : > { %13234 = vmatmul.mubr.msk.f32.gmra.mrb[36].mxu1 %vm6305_vm5, %v7941_v57 }
 0x81a   : > { %13236 = vmatprep.mubr.msk.f32.mxu1 %vm15771_vm2, %v19626_v30 }
 0x81d   : > { %13237 = vmatmul.mubr.msk.f32.gmra.mrb[38].mxu1 %vm6305_vm5, %v7943_v11 }
 0x81e   : > { %13239 = vmatprep.mubr.msk.f32.mxu1 %vm15771_vm2, %v19626_v30 }
 0x821   : > { %13240 = vmatmul.mubr.msk.f32.gmra.mrb[40].mxu1 %vm6305_vm5, %v7945_v54 }
 0x822   : > { %13242 = vmatprep.mubr.msk.f32.mxu1 %vm15771_vm2, %v19626_v30 }
 0x825   : > { %13243 = vmatmul.mubr.msk.f32.gmra.mrb[42].mxu1 %vm6305_vm5, %v7947_v14 }
 0x826   : > { %13245 = vmatprep.mubr.msk.f32.mxu1 %vm15771_vm2, %v19626_v30 }
 0x829   : > { %13246 = vmatmul.mubr.msk.f32.gmra.mrb[44].mxu1 %vm6305_vm5, %v7949_v53 }
 0x82a   : > { %13252 = vmatprep.mubr.msk.f32.mxu1 %vm15771_vm2, %v19626_v30 }
 0x82d   : > { %13253 = vmatmul.mubr.msk.f32.vlgmr.msra.gmra.mrb[24].mxu1 %vm6305_vm5, %v19685_v7 }
 0x82e   : > { %13255 = vmatprep.mubr.msk.f32.mxu1 %vm15771_vm2, %v19626_v30  ;;  %14099 = vmatpush3.bf16.msra.mxu1 %v14098_v4 }
 0x82f   : > { %14100 = vmatprep.subr.bf16.mxu1 %v19647_v43 }
 0x831   : > { %13256 = vmatmul.mubr.msk.f32.gmra.mrb[26].mxu1 %vm6305_vm5, %v19686_v62 }
 0x832   : > { %13258 = vmatprep.mubr.msk.f32.mxu1 %vm15771_vm2, %v19626_v30 }
 0x835   : > { %13259 = vmatmul.mubr.msk.f32.gmra.mrb[28].mxu1 %vm6305_vm5, %v19687_v49 }
 0x836   : > { %13261 = vmatprep.mubr.msk.f32.mxu1 %vm15771_vm2, %v19626_v30 }
 0x839   : > { %13262 = vmatmul.mubr.msk.f32.gmra.mrb[30].mxu1 %vm6305_vm5, %v19688_v45 }
 0x83a   : > { %13264 = vmatprep.mubr.msk.f32.mxu1 %vm15771_vm2, %v19626_v30 }
 0x83d   : > { %13265 = vmatmul.mubr.msk.f32.gmra.mrb[32].mxu1 %vm6305_vm5, %v19689_v51 }
 0x83e   : > { %13267 = vmatprep.mubr.msk.f32.mxu1 %vm15771_vm2, %v19626_v30 }
 0x841   : > { %13268 = vmatmul.mubr.msk.f32.gmra.mrb[34].mxu1 %vm6305_vm5, %v19690_v27 }
 0x842   : > { %13270 = vmatprep.mubr.msk.f32.mxu1 %vm15771_vm2, %v19626_v30 }
 0x845   : > { %13271 = vmatmul.mubr.msk.f32.gmra.mrb[36].mxu1 %vm6305_vm5, %v19691_v37 }
 0x846   : > { %13273 = vmatprep.mubr.msk.f32.mxu1 %vm15771_vm2, %v19626_v30 }
 0x849   : > { %13274 = vmatmul.mubr.msk.f32.gmra.mrb[38].mxu1 %vm6305_vm5, %v18064_v56  ;;  %v12275_v56 = vld [vmem:[%s19593_s3 + $0xc8] sm:$0xff] }
 0x84a   : > { %13276 = vmatprep.mubr.msk.f32.mxu1 %vm15771_vm2, %v19626_v30 }
 0x84d   : > { %13277 = vmatmul.mubr.msk.f32.gmra.mrb[40].mxu1 %vm6305_vm5, %v18067_v2  ;;  %v14101_v2 = vpack.c.bf16 %v12275_v56, %v12274_v18 }
 0x84e   : > { %13279 = vmatprep.mubr.msk.f32.mxu1 %vm15771_vm2, %v19626_v30 }
 0x851   : > { %13280 = vmatmul.mubr.msk.f32.gmra.mrb[42].mxu1 %vm6305_vm5, %v18099_v55  ;;  %v8311_v55 = vpop.permute.xlu1 %8310 }
 0x852   : > { %13282 = vmatprep.mubr.msk.f32.mxu1 %vm15771_vm2, %v19626_v30 }
 0x855   : > { %13283 = vmatmul.mubr.msk.f32.gmra.mrb[44].mxu1 %vm6305_vm5, %v18387_v52  ;;  %v8313_v52 = vpop.permute.xlu0 %8312  ;;  %v8315_v63 = vpop.permute.xlu1 %8314 }
 0x856   : > { %13289 = vmatprep.mubr.msk.f32.mxu1 %vm15771_vm2, %v19626_v30 }
 0x859   : > { %13290 = vmatmul.mubr.msk.f32.vlgmr.msra.gmra.mrb[24].mxu1 %vm6305_vm5, %v8309_v21  ;;  %v8317_v15 = vpop.permute.xlu0 %8316  ;;  %v8319_v17 = vpop.permute.xlu1 %8318 }
 0x85a   : > { %13292 = vmatprep.mubr.msk.f32.mxu1 %vm15771_vm2, %v19626_v30  ;;  %14102 = vmatpush3.bf16.msra.mxu1 %v14101_v2 }
 0x85b   : > { %14103 = vmatprep.subr.bf16.mxu1 %v19647_v43 }
 0x85d   : > { %13293 = vmatmul.mubr.msk.f32.gmra.mrb[26].mxu1 %vm6305_vm5, %v8311_v55  ;;  %v8321_v19 = vpop.permute.xlu0 %8320  ;;  %v8323_v24 = vpop.permute.xlu1 %8322 }
 0x85e   : > { %13295 = vmatprep.mubr.msk.f32.mxu1 %vm15771_vm2, %v19626_v30 }
 0x861   : > { %13296 = vmatmul.mubr.msk.f32.gmra.mrb[28].mxu1 %vm6305_vm5, %v8313_v52  ;;  %v8325_v13 = vpop.permute.xlu0 %8324  ;;  %v8327_v59 = vpop.permute.xlu1 %8326 }
 0x862   : > { %13298 = vmatprep.mubr.msk.f32.mxu1 %vm15771_vm2, %v19626_v30 }
 0x865   : > { %13299 = vmatmul.mubr.msk.f32.gmra.mrb[30].mxu1 %vm6305_vm5, %v8315_v63  ;;  %v8329_v20 = vpop.permute.xlu0 %8328  ;;  %v18829_v63 = vld [vmem:[%s19594_s4] ss:$0 sm:$0xff] }
 0x866   : > { %13301 = vmatprep.mubr.msk.f32.mxu1 %vm15771_vm2, %v19626_v30 }
 0x869   : > { %13302 = vmatmul.mubr.msk.f32.gmra.mrb[32].mxu1 %vm6305_vm5, %v8317_v15 }
 0x86a   : > { %13304 = vmatprep.mubr.msk.f32.mxu1 %vm15771_vm2, %v19626_v30 }
 0x86d   : > { %13305 = vmatmul.mubr.msk.f32.gmra.mrb[34].mxu1 %vm6305_vm5, %v8319_v17 }
 0x86e   : > { %13307 = vmatprep.mubr.msk.f32.mxu1 %vm15771_vm2, %v19626_v30 }
 0x871   : > { %13308 = vmatmul.mubr.msk.f32.gmra.mrb[36].mxu1 %vm6305_vm5, %v8321_v19 }
 0x872   : > { %13310 = vmatprep.mubr.msk.f32.mxu1 %vm15771_vm2, %v19626_v30 }
 0x875   : > { %13311 = vmatmul.mubr.msk.f32.gmra.mrb[38].mxu1 %vm6305_vm5, %v8323_v24 }
 0x876   : > { %13313 = vmatprep.mubr.msk.f32.mxu1 %vm15771_vm2, %v19626_v30 }
 0x879   : > { %13314 = vmatmul.mubr.msk.f32.gmra.mrb[40].mxu1 %vm6305_vm5, %v8325_v13 }
 0x87a   : > { %13316 = vmatprep.mubr.msk.f32.mxu1 %vm15771_vm2, %v19626_v30 }
 0x87d   : > { %13317 = vmatmul.mubr.msk.f32.gmra.mrb[42].mxu1 %vm6305_vm5, %v8327_v59 }
 0x87e   : > { %13319 = vmatprep.mubr.msk.f32.mxu1 %vm15771_vm2, %v19626_v30 }
 0x881   : > { %13320 = vmatmul.mubr.msk.f32.gmra.mrb[44].mxu1 %vm6305_vm5, %v8329_v20 }
 0x882   : > { %13326 = vmatprep.mubr.msk.f32.mxu1 %vm15771_vm2, %v19626_v30 }
 0x885   : > { %13327 = vmatmul.mubr.msk.f32.vlgmr.msra.gmra.mrb[24].mxu1 %vm6305_vm5, %v8489_v3 }
 0x886   : > { %13329 = vmatprep.mubr.msk.f32.mxu1 %vm15771_vm2, %v19626_v30 }
 0x889   : > { %13330 = vmatmul.mubr.msk.f32.gmra.mrb[26].mxu1 %vm6305_vm5, %v8491_v26 }
 0x88a   : > { %13332 = vmatprep.mubr.msk.f32.mxu1 %vm15771_vm2, %v19626_v30 }
 0x88d   : > { %13333 = vmatmul.mubr.msk.f32.gmra.mrb[28].mxu1 %vm6305_vm5, %v8493_v8 }
 0x88e   : > { %13335 = vmatprep.mubr.msk.f32.mxu1 %vm15771_vm2, %v19626_v30 }
 0x891   : > { %13336 = vmatmul.mubr.msk.f32.gmra.mrb[30].mxu1 %vm6305_vm5, %v8495_v44 }
 0x892   : > { %13338 = vmatprep.mubr.msk.f32.mxu1 %vm15771_vm2, %v19626_v30 }
 0x895   : > { %13339 = vmatmul.mubr.msk.f32.gmra.mrb[32].mxu1 %vm6305_vm5, %v8497_v48 }
 0x896   : > { %13341 = vmatprep.mubr.msk.f32.mxu1 %vm15771_vm2, %v19626_v30 }
 0x899   : > { %13342 = vmatmul.mubr.msk.f32.gmra.mrb[34].mxu1 %vm6305_vm5, %v8499_v25 }
 0x89a   : > { %13344 = vmatprep.mubr.msk.f32.mxu1 %vm15771_vm2, %v19626_v30 }
 0x89d   : > { %13345 = vmatmul.mubr.msk.f32.gmra.mrb[36].mxu1 %vm6305_vm5, %v8501_v5 }
 0x89e   : > { %13347 = vmatprep.mubr.msk.f32.mxu1 %vm15771_vm2, %v19626_v30 }
 0x8a1   : > { %13348 = vmatmul.mubr.msk.f32.gmra.mrb[38].mxu1 %vm6305_vm5, %v8503_v41 }
 0x8a2   : > { %13350 = vmatprep.mubr.msk.f32.mxu1 %vm15771_vm2, %v19626_v30 }
 0x8a5   : > { %13351 = vmatmul.mubr.msk.f32.gmra.mrb[40].mxu1 %vm6305_vm5, %v8505_v36 }
 0x8a6   : > { %13353 = vmatprep.mubr.msk.f32.mxu1 %vm15771_vm2, %v19626_v30 }
 0x8a9   : > { %13354 = vmatmul.mubr.msk.f32.gmra.mrb[42].mxu1 %vm6305_vm5, %v8507_v6 }
 0x8aa   : > { %13356 = vmatprep.mubr.msk.f32.mxu1 %vm15771_vm2, %v19626_v30 }
 0x8ad   : > { %13357 = vmatmul.mubr.msk.f32.gmra.mrb[44].mxu1 %vm6305_vm5, %v8509_v10 }
 0x8ae   : > { %13381 = vmatprep.mubr.msk.f32.mxu1 %vm15771_vm2, %v19626_v30 }
 0x958   : > { %v8598_v40 = vpop.f32.mrb[24].mxu1 }
 0x959   : > { %8674 = vrot.lane.b32.xlu1 %v8598_v40, %s15768_s16  ;;  %v13328_v16 = vpop.f32.mrb[25].mxu1 }
 0x95c   : > { %v18743_v32 = vpop.f32.mrb[26].mxu1 }
 0x95d   : > { %8718 = vrot.lane.b32.xlu1 %v8598_v40, %s15769_s15  ;;  %8676 = vrot.lane.b32.xlu0 %v18743_v32, %s15768_s16  ;;  %v13331_v61 = vpop.f32.mrb[27].mxu1 }
 0x960   : > { %v18748_v9 = vpop.f32.mrb[28].mxu1 }
 0x961   : > { %8762 = vrot.lane.b32.xlu1 %v8598_v40, %s15767_s14  ;;  %8720 = vrot.lane.b32.xlu0 %v18743_v32, %s15769_s15  ;;  %v13334_v47 = vpop.f32.mrb[29].mxu1 }
 0x964   : > { %v18753_v23 = vpop.f32.mrb[30].mxu1 }
 0x965   : > { %8764 = vrot.lane.b32.xlu0 %v18743_v32, %s15767_s14  ;;  %8678 = vrot.lane.b32.xlu1 %v18748_v9, %s15768_s16  ;;  %v13337_v34 = vpop.f32.mrb[31].mxu1 }
 0x968   : > { %v18759_v42 = vpop.f32.mrb[32].mxu1 }
 0x969   : > { %8722 = vrot.lane.b32.xlu1 %v18748_v9, %s15769_s15  ;;  %8680 = vrot.lane.b32.xlu0 %v18753_v23, %s15768_s16  ;;  %v13340_v31 = vpop.f32.mrb[33].mxu1 }
 0x96c   : > { %v18765_v57 = vpop.f32.mrb[34].mxu1 }
 0x96d   : > { %8766 = vrot.lane.b32.xlu1 %v18748_v9, %s15767_s14  ;;  %8724 = vrot.lane.b32.xlu0 %v18753_v23, %s15769_s15  ;;  %v13343_v11 = vpop.f32.mrb[35].mxu1 }
 0x970   : > { %v18771_v54 = vpop.f32.mrb[36].mxu1 }
 0x971   : > { %8768 = vrot.lane.b32.xlu0 %v18753_v23, %s15767_s14  ;;  %8682 = vrot.lane.b32.xlu1 %v18759_v42, %s15768_s16  ;;  %v13346_v14 = vpop.f32.mrb[37].mxu1 }
 0x974   : > { %v18777_v60 = vpop.f32.mrb[38].mxu1 }
 0x975   : > { %8726 = vrot.lane.b32.xlu1 %v18759_v42, %s15769_s15  ;;  %8684 = vrot.lane.b32.xlu0 %v18765_v57, %s15768_s16  ;;  %v13349_v46 = vpop.f32.mrb[39].mxu1 }
 0x978   : > { %v18783_v53 = vpop.f32.mrb[40].mxu1 }
 0x979   : > { %8770 = vrot.lane.b32.xlu1 %v18759_v42, %s15767_s14  ;;  %8728 = vrot.lane.b32.xlu0 %v18765_v57, %s15769_s15  ;;  %v13352_v4 = vpop.f32.mrb[41].mxu1 }
 0x97c   : > { %v18789_v7 = vpop.f32.mrb[42].mxu1 }
 0x97d   : > { %8772 = vrot.lane.b32.xlu0 %v18765_v57, %s15767_s14  ;;  %8686 = vrot.lane.b32.xlu1 %v18771_v54, %s15768_s16  ;;  %v13355_v62 = vpop.f32.mrb[43].mxu1 }
 0x980   : > { %v18795_v49 = vpop.f32.mrb[44].mxu1 }
 0x981   : > { %8730 = vrot.lane.b32.xlu1 %v18771_v54, %s15769_s15  ;;  %8688 = vrot.lane.b32.xlu0 %v18777_v60, %s15768_s16  ;;  %v13358_v45 = vpop.f32.mrb[45].mxu1 }
 0x985   : > { %8774 = vrot.lane.b32.xlu1 %v18771_v54, %s15767_s14  ;;  %8732 = vrot.lane.b32.xlu0 %v18777_v60, %s15769_s15 }
 0x989   : > { %8776 = vrot.lane.b32.xlu0 %v18777_v60, %s15767_s14  ;;  %8690 = vrot.lane.b32.xlu1 %v18783_v53, %s15768_s16 }
 0x98d   : > { %8734 = vrot.lane.b32.xlu1 %v18783_v53, %s15769_s15  ;;  %8692 = vrot.lane.b32.xlu0 %v18789_v7, %s15768_s16 }
 0x991   : > { %8778 = vrot.lane.b32.xlu1 %v18783_v53, %s15767_s14  ;;  %8736 = vrot.lane.b32.xlu0 %v18789_v7, %s15769_s15 }
 0x995   : > { %8780 = vrot.lane.b32.xlu0 %v18789_v7, %s15767_s14  ;;  %8694 = vrot.lane.b32.xlu1 %v18795_v49, %s15768_s16  ;;  %s15782_s16 = smov 117  }
 0x999   : > { %8738 = vrot.lane.b32.xlu0 %v18795_v49, %s15769_s15  ;;  %8782 = vrot.lane.b32.xlu1 %v18795_v49, %s15767_s14  ;;  %s15772_s14 = smov 127  }
 0x9cb   : > { %v8675_v51 = vpop.permute.xlu1 %8674 }
 0x9cc   : > { %v8707_v18 = vmax.f32 %v8598_v40, %v8675_v51 }
 0x9cf   : > { %v8719_v27 = vpop.permute.xlu1 %8718  ;;  %v8677_v37 = vpop.permute.xlu0 %8676 }
 0x9d0   : > { %v8751_v56 = vmax.f32 %v8707_v18, %v8719_v27  ;;  %v8708_v55 = vmax.f32 %v18743_v32, %v8677_v37 }
 0x9d3   : > { %v8763_v2 = vpop.permute.xlu1 %8762  ;;  %v8721_v21 = vpop.permute.xlu0 %8720 }
 0x9d4   : > { %v8795_v52 = vmax.f32 %v8751_v56, %v8763_v2  ;;  %v8752_v15 = vmax.f32 %v8708_v55, %v8721_v21 }
 0x9d6   : > { %v8813_v24 = vadd.f32 %v18829_v63, %v8795_v52 }
 0x9d7   : > { %v8765_v17 = vpop.permute.xlu0 %8764  ;;  %v8679_v19 = vpop.permute.xlu1 %8678 }
 0x9d8   : > { %v8796_v13 = vmax.f32 %v8752_v15, %v8765_v17  ;;  %v8709_v50 = vmax.f32 %v18748_v9, %v8679_v19  ;;  %v8824_v3 = vmax.f32 %v8813_v24, 0.0 }
 0x9da   : > { %v8814_v59 = vadd.f32 %v18829_v63, %v8796_v13 }
 0x9db   : > { %v8723_v20 = vpop.permute.xlu1 %8722  ;;  %v8681_v33 = vpop.permute.xlu0 %8680 }
 0x9dc   : > { %v8825_v58 = vmax.f32 %v8814_v59, 0.0  ;;  %v8753_v26 = vmax.f32 %v8709_v50, %v8723_v20  ;;  %v8710_v12 = vmax.f32 %v18753_v23, %v8681_v33 }
 0x9de   : > { %v14104_v29 = vpack.c.bf16 %v8825_v58, %v8824_v3  ;;  %v18834_v8 = vpack.i.bf16 %v8825_v58, %v8824_v3 }
 0x9df   : > { %v8767_v38 = vpop.permute.xlu1 %8766  ;;  %v8725_v44 = vpop.permute.xlu0 %8724 }
 0x9e0   : > { %v8797_v48 = vmax.f32 %v8753_v26, %v8767_v38  ;;  %14105 = vmatpush3.bf16.msra.mxu1 %v14104_v29  ;;  %15380 = vrot.lane.b32.xlu0 %v18834_v8, %s15772_s14  ;;  %v8754_v39 = vmax.f32 %v8710_v12, %v8725_v44 }
 0x9e1   : > { %14106 = vmatprep.subr.bf16.mxu1 %v19647_v43 }
 0x9e2   : > { %v8815_v5 = vadd.f32 %v18829_v63, %v8797_v48 }
 0x9e3   : > { %v8769_v25 = vpop.permute.xlu0 %8768  ;;  %v8683_v22 = vpop.permute.xlu1 %8682 }
 0x9e4   : > { %v8798_v1 = vmax.f32 %v8754_v39, %v8769_v25  ;;  %v8711_v28 = vmax.f32 %v18759_v42, %v8683_v22  ;;  %v8826_v6 = vmax.f32 %v8815_v5, 0.0 }
 0x9e6   : > { %v8816_v41 = vadd.f32 %v18829_v63, %v8798_v1 }
 0x9e7   : > { %v8727_v36 = vpop.permute.xlu1 %8726  ;;  %v8685_v35 = vpop.permute.xlu0 %8684 }
 0x9e8   : > { %v8827_v0 = vmax.f32 %v8816_v41, 0.0  ;;  %v8755_v10 = vmax.f32 %v8711_v28, %v8727_v36  ;;  %v8712_v9 = vmax.f32 %v18765_v57, %v8685_v35 }
 0x9ea   : > { %v14107_v40 = vpack.c.bf16 %v8827_v0, %v8826_v6  ;;  %v18843_v16 = vpack.i.bf16 %v8827_v0, %v8826_v6 }
 0x9eb   : > { %v8771_v32 = vpop.permute.xlu1 %8770  ;;  %v8729_v61 = vpop.permute.xlu0 %8728 }
 0x9ec   : > { %v8799_v47 = vmax.f32 %v8755_v10, %v8771_v32  ;;  %14108 = vmatpush3.bf16.msra.mxu1 %v14107_v40  ;;  %15385 = vrot.lane.b32.xlu1 %v18843_v16, %s15772_s14  ;;  %v8756_v23 = vmax.f32 %v8712_v9, %v8729_v61  ;;  %v8842_v40 = vld [vmem:[%s19595_s5 + $0x10] sm:$0xff]  ;;  %v8843_v32 = vld [vmem:[%s19595_s5 + $0x18] sm:$0xff]  ;;  %v8844_v61 = vld [vmem:[%s19595_s5 + $0x20] sm:$0x3] }
 0x9ed   : > { %14109 = vmatprep.subr.bf16.mxu1 %v19647_v43 }
 0x9ee   : > { %v8817_v31 = vadd.f32 %v18829_v63, %v8799_v47 }
 0x9ef   : > { %v8773_v34 = vpop.permute.xlu0 %8772  ;;  %v8687_v42 = vpop.permute.xlu1 %8686 }
 0x9f0   : > { %v8800_v11 = vmax.f32 %v8756_v23, %v8773_v34  ;;  %v8713_v46 = vmax.f32 %v18771_v54, %v8687_v42  ;;  %v8828_v57 = vmax.f32 %v8817_v31, 0.0 }
 0x9f2   : > { %v8818_v14 = vadd.f32 %v18829_v63, %v8800_v11 }
 0x9f3   : > { %v8731_v4 = vpop.permute.xlu1 %8730  ;;  %v8689_v62 = vpop.permute.xlu0 %8688 }
 0x9f4   : > { %v8829_v45 = vmax.f32 %v8818_v14, 0.0  ;;  %v8757_v51 = vmax.f32 %v8713_v46, %v8731_v4  ;;  %v8714_v2 = vmax.f32 %v18777_v60, %v8689_v62 }
 0x9f6   : > { %v14110_v27 = vpack.c.bf16 %v8829_v45, %v8828_v57  ;;  %v18852_v37 = vpack.i.bf16 %v8829_v45, %v8828_v57 }
 0x9f7   : > { %v8775_v18 = vpop.permute.xlu1 %8774  ;;  %v8733_v56 = vpop.permute.xlu0 %8732 }
 0x9f8   : > { %v8801_v21 = vmax.f32 %v8757_v51, %v8775_v18  ;;  %14111 = vmatpush3.bf16.msra.mxu1 %v14110_v27  ;;  %15390 = vrot.lane.b32.xlu0 %v18852_v37, %s15772_s14  ;;  %v8758_v54 = vmax.f32 %v8714_v2, %v8733_v56 }
 0x9f9   : > { %14112 = vmatprep.subr.bf16.mxu1 %v19647_v43 }
 0x9fa   : > { %v8819_v15 = vadd.f32 %v18829_v63, %v8801_v21 }
 0x9fb   : > { %v8777_v55 = vpop.permute.xlu0 %8776  ;;  %v8691_v52 = vpop.permute.xlu1 %8690 }
 0x9fc   : > { %v8802_v17 = vmax.f32 %v8758_v54, %v8777_v55  ;;  %v8715_v24 = vmax.f32 %v18783_v53, %v8691_v52  ;;  %v8830_v60 = vmax.f32 %v8819_v15, 0.0 }
 0x9fe   : > { %v8820_v19 = vadd.f32 %v18829_v63, %v8802_v17 }
 0x9ff   : > { %v8735_v13 = vpop.permute.xlu1 %8734  ;;  %v8693_v59 = vpop.permute.xlu0 %8692 }
 0xa00   : > { %v8831_v50 = vmax.f32 %v8820_v19, 0.0  ;;  %v8759_v20 = vmax.f32 %v8715_v24, %v8735_v13  ;;  %v8716_v29 = vmax.f32 %v18789_v7, %v8693_v59  ;;  %v12293_v24 = vld [vmem:[%s19595_s5 + $0x28] sm:$0xff] }
 0xa02   : > { %v14113_v33 = vpack.c.bf16 %v8831_v50, %v8830_v60  ;;  %v18861_v3 = vpack.i.bf16 %v8831_v50, %v8830_v60 }
 0xa03   : > { %v8779_v58 = vpop.permute.xlu1 %8778  ;;  %v8737_v26 = vpop.permute.xlu0 %8736 }
 0xa04   : > { %v8803_v38 = vmax.f32 %v8759_v20, %v8779_v58  ;;  %14114 = vmatpush3.bf16.msra.mxu1 %v14113_v33  ;;  %15395 = vrot.lane.b32.xlu1 %v18861_v3, %s15772_s14  ;;  %v8760_v53 = vmax.f32 %v8716_v29, %v8737_v26  ;;  %v12294_v20 = vld [vmem:[%s19595_s5 + $0x30] sm:$0xff] }
 0xa05   : > { %14115 = vmatprep.subr.bf16.mxu1 %v19647_v43 }
 0xa06   : > { %v8821_v48 = vadd.f32 %v18829_v63, %v8803_v38  ;;  %v12295_v38 = vld [vmem:[%s19595_s5 + $0x38] sm:$0xff] }
 0xa07   : > { %v8781_v44 = vpop.permute.xlu0 %8780  ;;  %v8695_v12 = vpop.permute.xlu1 %8694 }
 0xa08   : > { %v8804_v39 = vmax.f32 %v8760_v53, %v8781_v44  ;;  %v8717_v22 = vmax.f32 %v18795_v49, %v8695_v12  ;;  %v8832_v1 = vmax.f32 %v8821_v48, 0.0  ;;  %v8840_v49 = vld [vmem:[%s19595_s5] sm:$0xff] }
 0xa0a   : > { %v8822_v25 = vadd.f32 %v18829_v63, %v8804_v39  ;;  %v12296_v39 = vld [vmem:[%s19595_s5 + $0x40] sm:$0xff] }
 0xa0b   : > { %v8739_v5 = vpop.permute.xlu0 %8738  ;;  %v8783_v28 = vpop.permute.xlu1 %8782 }
 0xa0c   : > { %v8833_v7 = vmax.f32 %v8822_v25, 0.0  ;;  %v8761_v41 = vmax.f32 %v8717_v22, %v8739_v5 }
 0xa0e   : > { %v8805_v36 = vmax.f32 %v8761_v41, %v8783_v28  ;;  %v14116_v35 = vpack.c.bf16 %v8833_v7, %v8832_v1  ;;  %v18870_v6 = vpack.i.bf16 %v8833_v7, %v8832_v1  ;;  %v12297_v7 = vld [vmem:[%s19595_s5 + $0x48] sm:$0x3] }
 0xa10   : > { %v8823_v0 = vadd.f32 %v18829_v63, %v8805_v36  ;;  %14117 = vmatpush3.bf16.msra.mxu1 %v14116_v35  ;;  %15400 = vrot.lane.b32.xlu0 %v18870_v6, %s15772_s14  ;;  %v8841_v63 = vld [vmem:[%s19595_s5 + $0x8] sm:$0xff] }
 0xa11   : > { %13379 = vmatprep.subr.mxu1 %v19626_v30 }
 0xa12   : > { %v18876_v10 = vmax.f32 %v8823_v0, 0.0 }
 0xa14   : > { %15405 = vrot.lane.b32.xlu0 %v18834_v8, %s15773_s27  ;;  %8993 = vrot.lane.b32.xlu1 %v18876_v10, %s15772_s14  ;;  %s15781_s14 = smov 118  }
 0xa15   : > { %13380 = vmatpush3.msra.mxu1 %v18876_v10 }
 0xa16   : > { %14118 = vmatprep.subr.bf16.mxu1 %v19647_v43  ;;  %13382 = vmatmul.mubr.msk.f32.vlgmr.msra.gmra.mrb[46].mxu1 %vm8845_vm7, %v8840_v49  ;;  %v12303_v49 = vld [vmem:[%s19595_s5 + $0x50] sm:$0xff] }
 0xa17   : > { %13384 = vmatprep.mubr.msk.f32.mxu1 %vm15771_vm2, %v19626_v30 }
 0xa18   : > { %15415 = vrot.lane.b32.xlu0 %v18852_v37, %s15773_s27  ;;  %15410 = vrot.lane.b32.xlu1 %v18843_v16, %s15773_s27 }
 0xa1a   : > { %13385 = vmatmul.mubr.msk.f32.gmra.mrb[48].mxu1 %vm8845_vm7, %v8841_v63 }
 0xa1b   : > { %13387 = vmatprep.mubr.msk.f32.mxu1 %vm15771_vm2, %v19626_v30 }
 0xa1c   : > { %15425 = vrot.lane.b32.xlu0 %v18870_v6, %s15773_s27  ;;  %15420 = vrot.lane.b32.xlu1 %v18861_v3, %s15773_s27 }
 0xa1e   : > { %13388 = vmatmul.mubr.msk.f32.gmra.mrb[50].mxu1 %vm8845_vm7, %v8842_v40 }
 0xa1f   : > { %13390 = vmatprep.mubr.msk.f32.mxu1 %vm15771_vm2, %v19626_v30 }
 0xa20   : > { %15430 = vrot.lane.b32.xlu0 %v18834_v8, %s15774_s18  ;;  %9142 = vrot.lane.b32.xlu1 %v18876_v10, %s15773_s27 }
 0xa22   : > { %13391 = vmatmul.mubr.msk.f32.gmra.mrb[52].mxu1 %vm8845_vm7, %v8843_v32 }
 0xa23   : > { %13393 = vmatprep.mubr.msk.f32.mxu1 %vm15771_vm2, %v19626_v30 }
 0xa24   : > { %15440 = vrot.lane.b32.xlu0 %v18852_v37, %s15774_s18  ;;  %15435 = vrot.lane.b32.xlu1 %v18843_v16, %s15774_s18 }
 0xa26   : > { %13394 = vmatmul.mubr.msk.f32.gmra.mrb[54].mxu1 %vm8845_vm7, %v8844_v61 }
 0xa27   : > { %13418 = vmatprep.mubr.msk.f32.mxu1 %vm15771_vm2, %v19626_v30 }
 0xa28   : > { %15450 = vrot.lane.b32.xlu0 %v18870_v6, %s15774_s18  ;;  %15445 = vrot.lane.b32.xlu1 %v18861_v3, %s15774_s18 }
 0xa2c   : > { %15455 = vrot.lane.b32.xlu0 %v18834_v8, %s15775_s21  ;;  %9291 = vrot.lane.b32.xlu1 %v18876_v10, %s15774_s18 }
 0xa30   : > { %15465 = vrot.lane.b32.xlu0 %v18852_v37, %s15775_s21  ;;  %15460 = vrot.lane.b32.xlu1 %v18843_v16, %s15775_s21 }
 0xa34   : > { %15475 = vrot.lane.b32.xlu0 %v18870_v6, %s15775_s21  ;;  %15470 = vrot.lane.b32.xlu1 %v18861_v3, %s15775_s21 }
 0xa38   : > { %15480 = vrot.lane.b32.xlu0 %v18834_v8, %s15776_s22  ;;  %9440 = vrot.lane.b32.xlu1 %v18876_v10, %s15775_s21 }
 0xa3c   : > { %15490 = vrot.lane.b32.xlu0 %v18852_v37, %s15776_s22  ;;  %15485 = vrot.lane.b32.xlu1 %v18843_v16, %s15776_s22 }
 0xa40   : > { %15500 = vrot.lane.b32.xlu0 %v18870_v6, %s15776_s22  ;;  %15495 = vrot.lane.b32.xlu1 %v18861_v3, %s15776_s22 }
 0xa44   : > { %15505 = vrot.lane.b32.xlu0 %v18834_v8, %s15777_s23  ;;  %9589 = vrot.lane.b32.xlu1 %v18876_v10, %s15776_s22 }
 0xa48   : > { %15515 = vrot.lane.b32.xlu0 %v18852_v37, %s15777_s23  ;;  %15510 = vrot.lane.b32.xlu1 %v18843_v16, %s15777_s23 }
 0xa4c   : > { %15525 = vrot.lane.b32.xlu0 %v18870_v6, %s15777_s23  ;;  %15520 = vrot.lane.b32.xlu1 %v18861_v3, %s15777_s23 }
 0xa50   : > { %15530 = vrot.lane.b32.xlu0 %v18834_v8, %s15778_s25  ;;  %9738 = vrot.lane.b32.xlu1 %v18876_v10, %s15777_s23 }
 0xa52   : > { %v15381_v9 = vpop.permute.xlu0 %15380 }
 0xa53   : > { %v15383_v47 = vunpack.i.h.bf16 %v15381_v9  ;;  %v15382_v23 = vunpack.i.l.bf16 %v15381_v9  ;;  %v12304_v9 = vld [vmem:[%s19595_s5 + $0x58] sm:$0xff] }
 0xa54   : > { %15540 = vrot.lane.b32.xlu0 %v18852_v37, %s15778_s25  ;;  %15535 = vrot.lane.b32.xlu1 %v18843_v16, %s15778_s25 }
 0xa55   : > { %v14119_v34 = vpack.c.bf16 %v15383_v47, %v15382_v23 }
 0xa57   : > { %14120 = vmatpush3.bf16.msra.mxu1 %v14119_v34 }
 0xa58   : > { %15550 = vrot.lane.b32.xlu0 %v18870_v6, %s15778_s25  ;;  %15545 = vrot.lane.b32.xlu1 %v18861_v3, %s15778_s25 }
 0xa59   : > { %14121 = vmatprep.subr.bf16.mxu1 %v19647_v43 }
 0xa5c   : > { %15555 = vrot.lane.b32.xlu0 %v18834_v8, %s15779_s24  ;;  %9887 = vrot.lane.b32.xlu1 %v18876_v10, %s15778_s25  ;;  %s15785_s25 = smov 114  }
 0xa5e   : > { %v15386_v42 = vpop.permute.xlu1 %15385 }
 0xa5f   : > { %v15388_v31 = vunpack.i.h.bf16 %v15386_v42  ;;  %v15387_v11 = vunpack.i.l.bf16 %v15386_v42 }
 0xa60   : > { %15565 = vrot.lane.b32.xlu0 %v18852_v37, %s15779_s24  ;;  %15560 = vrot.lane.b32.xlu1 %v18843_v16, %s15779_s24 }
 0xa61   : > { %v14122_v14 = vpack.c.bf16 %v15388_v31, %v15387_v11  ;;  %v12305_v31 = vld [vmem:[%s19595_s5 + $0x60] sm:$0xff] }
 0xa63   : > { %14123 = vmatpush3.bf16.msra.mxu1 %v14122_v14 }
 0xa64   : > { %15575 = vrot.lane.b32.xlu0 %v18870_v6, %s15779_s24  ;;  %15570 = vrot.lane.b32.xlu1 %v18861_v3, %s15779_s24 }
 0xa65   : > { %14124 = vmatprep.subr.bf16.mxu1 %v19647_v43 }
 0xa68   : > { %15580 = vrot.lane.b32.xlu0 %v18834_v8, %s15780_s26  ;;  %10036 = vrot.lane.b32.xlu1 %v18876_v10, %s15779_s24 }
 0xa6a   : > { %v15391_v46 = vpop.permute.xlu0 %15390 }
 0xa6b   : > { %v15393_v4 = vunpack.i.h.bf16 %v15391_v46  ;;  %v15392_v62 = vunpack.i.l.bf16 %v15391_v46 }
 0xa6c   : > { %15590 = vrot.lane.b32.xlu0 %v18852_v37, %s15780_s26  ;;  %15585 = vrot.lane.b32.xlu1 %v18843_v16, %s15780_s26 }
 0xa6d   : > { %v14125_v57 = vpack.c.bf16 %v15393_v4, %v15392_v62  ;;  %v12306_v62 = vld [vmem:[%s19595_s5 + $0x68] sm:$0xff] }
 0xa6f   : > { %14126 = vmatpush3.bf16.msra.mxu1 %v14125_v57 }
 0xa70   : > { %15600 = vrot.lane.b32.xlu0 %v18870_v6, %s15780_s26  ;;  %15595 = vrot.lane.b32.xlu1 %v18861_v3, %s15780_s26 }
 0xa71   : > { %14127 = vmatprep.subr.bf16.mxu1 %v19647_v43 }
 0xa74   : > { %15605 = vrot.lane.b32.xlu0 %v18834_v8, %s15781_s14  ;;  %10185 = vrot.lane.b32.xlu1 %v18876_v10, %s15780_s26 }
 0xa76   : > { %v15396_v45 = vpop.permute.xlu1 %15395 }
 0xa77   : > { %v15398_v51 = vunpack.i.h.bf16 %v15396_v45  ;;  %v15397_v27 = vunpack.i.l.bf16 %v15396_v45 }
 0xa78   : > { %15615 = vrot.lane.b32.xlu0 %v18852_v37, %s15781_s14  ;;  %15610 = vrot.lane.b32.xlu1 %v18843_v16, %s15781_s14 }
 0xa79   : > { %v14128_v18 = vpack.c.bf16 %v15398_v51, %v15397_v27 }
 0xa7b   : > { %14129 = vmatpush3.bf16.msra.mxu1 %v14128_v18  ;;  %v12307_v18 = vld [vmem:[%s19595_s5 + $0x70] sm:$0x3] }
 0xa7c   : > { %15625 = vrot.lane.b32.xlu0 %v18870_v6, %s15781_s14  ;;  %15620 = vrot.lane.b32.xlu1 %v18861_v3, %s15781_s14 }
 0xa7d   : > { %14130 = vmatprep.subr.bf16.mxu1 %v19647_v43 }
 0xa80   : > { %15630 = vrot.lane.b32.xlu0 %v18834_v8, %s15782_s16  ;;  %10334 = vrot.lane.b32.xlu1 %v18876_v10, %s15781_s14 }
 0xa82   : > { %v15401_v56 = vpop.permute.xlu0 %15400 }
 0xa83   : > { %v15403_v2 = vunpack.i.h.bf16 %v15401_v56  ;;  %v15402_v21 = vunpack.i.l.bf16 %v15401_v56 }
 0xa84   : > { %15640 = vrot.lane.b32.xlu0 %v18852_v37, %s15782_s16  ;;  %15635 = vrot.lane.b32.xlu1 %v18843_v16, %s15782_s16 }
 0xa85   : > { %v14131_v54 = vpack.c.bf16 %v15403_v2, %v15402_v21 }
 0xa86   : > { %v15406_v55 = vpop.permute.xlu0 %15405  ;;  %v8994_v52 = vpop.permute.xlu1 %8993 }
 0xa87   : > { %14132 = vmatpush3.bf16.msra.mxu1 %v14131_v54  ;;  %v15408_v15 = vunpack.i.h.bf16 %v15406_v55  ;;  %v15407_v17 = vunpack.i.l.bf16 %v15406_v55  ;;  %v12313_v55 = vld [vmem:[%s19595_s5 + $0x78] sm:$0xff] }
 0xa88   : > { %15650 = vrot.lane.b32.xlu0 %v18870_v6, %s15782_s16  ;;  %15645 = vrot.lane.b32.xlu1 %v18861_v3, %s15782_s16 }
 0xa89   : > { %13416 = vmatprep.subr.mxu1 %v19626_v30  ;;  %v14134_v13 = vpack.c.bf16 %v15408_v15, %v15407_v17  ;;  %v12314_v17 = vld [vmem:[%s19595_s5 + $0x80] sm:$0xff] }
 0xa8a   : > { %v15411_v19 = vpop.permute.xlu1 %15410  ;;  %v15416_v50 = vpop.permute.xlu0 %15415 }
 0xa8b   : > { %13417 = vmatpush3.msra.mxu1 %v8994_v52  ;;  %v15413_v59 = vunpack.i.h.bf16 %v15411_v19  ;;  %v15412_v60 = vunpack.i.l.bf16 %v15411_v19  ;;  %v15418_v33 = vunpack.i.h.bf16 %v15416_v50  ;;  %v15417_v58 = vunpack.i.l.bf16 %v15416_v50 }
 0xa8c   : > { %15655 = vrot.lane.b32.xlu0 %v18834_v8, %s15783_s28  ;;  %10483 = vrot.lane.b32.xlu1 %v18876_v10, %s15782_s16 }
 0xa8d   : > { %14133 = vmatprep.subr.bf16.mxu1 %v19647_v43  ;;  %13419 = vmatmul.mubr.msk.f32.vlgmr.msra.gmra.mrb[46].mxu1 %vm8845_vm7, %v12293_v24  ;;  %v14137_v26 = vpack.c.bf16 %v15413_v59, %v15412_v60  ;;  %v14140_v53 = vpack.c.bf16 %v15418_v33, %v15417_v58 }
 0xa8e   : > { %14135 = vmatpush3.bf16.msra.mxu1 %v14134_v13  ;;  %13421 = vmatprep.mubr.msk.f32.mxu1 %vm15771_vm2, %v19626_v30  ;;  %v15421_v29 = vpop.permute.xlu1 %15420  ;;  %v15426_v48 = vpop.permute.xlu0 %15425  ;;  %v12315_v13 = vld [vmem:[%s19595_s5 + $0x88] sm:$0xff] }
 0xa8f   : > { %14136 = vmatprep.subr.bf16.mxu1 %v19647_v43  ;;  %v15423_v44 = vunpack.i.h.bf16 %v15421_v29  ;;  %v15422_v12 = vunpack.i.l.bf16 %v15421_v29  ;;  %v15428_v25 = vunpack.i.h.bf16 %v15426_v48  ;;  %v15427_v22 = vunpack.i.l.bf16 %v15426_v48 }
 0xa90   : > { %15665 = vrot.lane.b32.xlu0 %v18852_v37, %s15783_s28  ;;  %15660 = vrot.lane.b32.xlu1 %v18843_v16, %s15783_s28 }
 0xa91   : > { %13422 = vmatmul.mubr.msk.f32.gmra.mrb[48].mxu1 %vm8845_vm7, %v12294_v20  ;;  %v14143_v5 = vpack.c.bf16 %v15423_v44, %v15422_v12  ;;  %v14146_v28 = vpack.c.bf16 %v15428_v25, %v15427_v22  ;;  %v12323_v25 = vld [vmem:[%s19595_s5 + $0xa0] sm:$0xff] }
 0xa92   : > { %14138 = vmatpush3.bf16.msra.mxu1 %v14137_v26  ;;  %13424 = vmatprep.mubr.msk.f32.mxu1 %vm15771_vm2, %v19626_v30  ;;  %v9143_v1 = vpop.permute.xlu1 %9142  ;;  %v15431_v41 = vpop.permute.xlu0 %15430 }
 0xa93   : > { %14139 = vmatprep.subr.bf16.mxu1 %v19647_v43  ;;  %v15433_v36 = vunpack.i.h.bf16 %v15431_v41  ;;  %v15432_v35 = vunpack.i.l.bf16 %v15431_v41  ;;  %v12324_v41 = vld [vmem:[%s19595_s5 + $0xa8] sm:$0xff] }
 0xa94   : > { %15675 = vrot.lane.b32.xlu0 %v18870_v6, %s15783_s28  ;;  %15670 = vrot.lane.b32.xlu1 %v18861_v3, %s15783_s28 }
 0xa95   : > { %13425 = vmatmul.mubr.msk.f32.gmra.mrb[50].mxu1 %vm8845_vm7, %v12295_v38  ;;  %v14149_v63 = vpack.c.bf16 %v15433_v36, %v15432_v35  ;;  %v12317_v38 = vld [vmem:[%s19595_s5 + $0x98] sm:$0x3] }
 0xa96   : > { %14141 = vmatpush3.bf16.msra.mxu1 %v14140_v53  ;;  %13427 = vmatprep.mubr.msk.f32.mxu1 %vm15771_vm2, %v19626_v30  ;;  %v15436_v0 = vpop.permute.xlu1 %15435  ;;  %v15441_v61 = vpop.permute.xlu0 %15440 }
 0xa97   : > { %14142 = vmatprep.subr.bf16.mxu1 %v19647_v43  ;;  %v15438_v40 = vunpack.i.h.bf16 %v15436_v0  ;;  %v15437_v32 = vunpack.i.l.bf16 %v15436_v0  ;;  %v15443_v47 = vunpack.i.h.bf16 %v15441_v61  ;;  %v15442_v23 = vunpack.i.l.bf16 %v15441_v61 }
 0xa98   : > { %15680 = vrot.lane.b32.xlu0 %v18834_v8, %s15784_s19  ;;  %10632 = vrot.lane.b32.xlu1 %v18876_v10, %s15783_s28  ;;  %s15786_s28 = smov 113  }
 0xa99   : > { %13428 = vmatmul.mubr.msk.f32.gmra.mrb[52].mxu1 %vm8845_vm7, %v12296_v39  ;;  %v14152_v34 = vpack.c.bf16 %v15438_v40, %v15437_v32  ;;  %v14155_v11 = vpack.c.bf16 %v15443_v47, %v15442_v23 }
 0xa9a   : > { %14144 = vmatpush3.bf16.msra.mxu1 %v14143_v5  ;;  %13430 = vmatprep.mubr.msk.f32.mxu1 %vm15771_vm2, %v19626_v30  ;;  %v15446_v42 = vpop.permute.xlu1 %15445  ;;  %v15451_v4 = vpop.permute.xlu0 %15450 }
 0xa9b   : > { %14145 = vmatprep.subr.bf16.mxu1 %v19647_v43  ;;  %v15448_v14 = vunpack.i.h.bf16 %v15446_v42  ;;  %v15447_v46 = vunpack.i.l.bf16 %v15446_v42  ;;  %v15453_v57 = vunpack.i.h.bf16 %v15451_v4  ;;  %v15452_v45 = vunpack.i.l.bf16 %v15451_v4 }
 0xa9c   : > { %15690 = vrot.lane.b32.xlu0 %v18852_v37, %s15784_s19  ;;  %15685 = vrot.lane.b32.xlu1 %v18843_v16, %s15784_s19 }
 0xa9d   : > { %13431 = vmatmul.mubr.msk.f32.gmra.mrb[54].mxu1 %vm8845_vm7, %v12297_v7  ;;  %v14158_v51 = vpack.c.bf16 %v15448_v14, %v15447_v46  ;;  %v14161_v56 = vpack.c.bf16 %v15453_v57, %v15452_v45  ;;  %v12333_v57 = vld [vmem:[%s19595_s5 + $0xc8] sm:$0xff] }
 0xa9e   : > { %14147 = vmatpush3.bf16.msra.mxu1 %v14146_v28  ;;  %13455 = vmatprep.mubr.msk.f32.mxu1 %vm15771_vm2, %v19626_v30  ;;  %v9292_v27 = vpop.permute.xlu1 %9291  ;;  %v15456_v2 = vpop.permute.xlu0 %15455 }
 0xa9f   : > { %13453 = vmatprep.subr.mxu1 %v19626_v30  ;;  %v15457_v21 = vunpack.i.l.bf16 %v15456_v2 }
 0xaa0   : > { %15700 = vrot.lane.b32.xlu0 %v18870_v6, %s15784_s19  ;;  %15695 = vrot.lane.b32.xlu1 %v18861_v3, %s15784_s19 }
 0xaa2   : > { %13454 = vmatpush3.msra.mxu1 %v9143_v1  ;;  %v15461_v54 = vpop.permute.xlu1 %15460 }
 0xaa3   : > { %14148 = vmatprep.subr.bf16.mxu1 %v19647_v43  ;;  %13456 = vmatmul.mubr.msk.f32.vlgmr.msra.gmra.mrb[46].mxu1 %vm8845_vm7, %v12303_v49  ;;  %v15463_v52 = vunpack.i.h.bf16 %v15461_v54  ;;  %v15462_v15 = vunpack.i.l.bf16 %v15461_v54  ;;  %v12325_v49 = vld [vmem:[%s19595_s5 + $0xb0] sm:$0xff] }
 0xaa4   : > { %14150 = vmatpush3.bf16.msra.mxu1 %v14149_v63  ;;  %15705 = vrot.lane.b32.xlu0 %v18834_v8, %s15785_s25 }
 0xaa5   : > { %10781 = vrot.lane.b32.xlu1 %v18876_v10, %s15784_s19  ;;  %14151 = vmatprep.subr.bf16.mxu1 %v19647_v43  ;;  %v14167_v24 = vpack.c.bf16 %v15463_v52, %v15462_v15 }
 0xaa6   : > { %13458 = vmatprep.mubr.msk.f32.mxu1 %vm15771_vm2, %v19626_v30 }
 0xaa7   : > { %13459 = vmatmul.mubr.msk.f32.gmra.mrb[48].mxu1 %vm8845_vm7, %v12304_v9  ;;  %v12326_v9 = vld [vmem:[%s19595_s5 + $0xb8] sm:$0xff] }
 0xaa8   : > { %14153 = vmatpush3.bf16.msra.mxu1 %v14152_v34  ;;  %15715 = vrot.lane.b32.xlu0 %v18852_v37, %s15785_s25 }
 0xaa9   : > { %15710 = vrot.lane.b32.xlu1 %v18843_v16, %s15785_s25  ;;  %14154 = vmatprep.subr.bf16.mxu1 %v19647_v43 }
 0xaaa   : > { %13461 = vmatprep.mubr.msk.f32.mxu1 %vm15771_vm2, %v19626_v30 }
 0xaab   : > { %13462 = vmatmul.mubr.msk.f32.gmra.mrb[50].mxu1 %vm8845_vm7, %v12305_v31  ;;  %v12327_v31 = vld [vmem:[%s19595_s5 + $0xc0] sm:$0x3] }
 0xaac   : > { %14156 = vmatpush3.bf16.msra.mxu1 %v14155_v11  ;;  %15725 = vrot.lane.b32.xlu0 %v18870_v6, %s15785_s25 }
 0xaad   : > { %15720 = vrot.lane.b32.xlu1 %v18861_v3, %s15785_s25  ;;  %14157 = vmatprep.subr.bf16.mxu1 %v19647_v43 }
 0xaae   : > { %13464 = vmatprep.mubr.msk.f32.mxu1 %vm15771_vm2, %v19626_v30 }
 0xaaf   : > { %13465 = vmatmul.mubr.msk.f32.gmra.mrb[52].mxu1 %vm8845_vm7, %v12306_v62 }
 0xab0   : > { %14159 = vmatpush3.bf16.msra.mxu1 %v14158_v51  ;;  %15730 = vrot.lane.b32.xlu0 %v18834_v8, %s15786_s28  ;;  %v15458_v8 = vunpack.i.h.bf16 %v15456_v2 }
 0xab1   : > { %10930 = vrot.lane.b32.xlu1 %v18876_v10, %s15785_s25  ;;  %14160 = vmatprep.subr.bf16.mxu1 %v19647_v43  ;;  %s11348_s25 = sshll.u32 %s19693_s10, 1 }
 0xab2   : > { %13467 = vmatprep.mubr.msk.f32.mxu1 %vm15771_vm2, %v19626_v30  ;;  %s330_s15 = scalar_lea.vmem %s19599_s9, %s11348_s25 }
 0xab3   : > { %13468 = vmatmul.mubr.msk.f32.gmra.mrb[54].mxu1 %vm8845_vm7, %v12307_v18 }
 0xab4   : > { %14162 = vmatpush3.bf16.msra.mxu1 %v14161_v56  ;;  %15740 = vrot.lane.b32.xlu0 %v18852_v37, %s15786_s28  ;;  %v14164_v37 = vpack.c.bf16 %v15458_v8, %v15457_v21  ;;  %v12334_v56 = vld [vmem:[%s19595_s5 + $0xd0] sm:$0xff] }
 0xab5   : > { %15735 = vrot.lane.b32.xlu1 %v18843_v16, %s15786_s28  ;;  %13490 = vmatprep.subr.mxu1 %v19626_v30  ;;  %v15466_v16 = vpop.permute.xlu0 %15465 }
 0xab6   : > { %13492 = vmatprep.mubr.msk.f32.mxu1 %vm15771_vm2, %v19626_v30  ;;  %v15467_v19 = vunpack.i.l.bf16 %v15466_v16 }
 0xab8   : > { %13491 = vmatpush3.msra.mxu1 %v9292_v27  ;;  %15750 = vrot.lane.b32.xlu0 %v18870_v6, %s15786_s28  ;;  %v15468_v6 = vunpack.i.h.bf16 %v15466_v16 }
 0xab9   : > { %15745 = vrot.lane.b32.xlu1 %v18861_v3, %s15786_s28  ;;  %14163 = vmatprep.subr.bf16.mxu1 %v19647_v43  ;;  %v15471_v3 = vpop.permute.xlu1 %15470  ;;  %v15476_v20 = vpop.permute.xlu0 %15475 }
 0xaba   : > { %13493 = vmatmul.mubr.msk.f32.vlgmr.msra.gmra.mrb[46].mxu1 %vm8845_vm7, %v12313_v55  ;;  %v14170_v59 = vpack.c.bf16 %v15468_v6, %v15467_v19  ;;  %v15473_v60 = vunpack.i.h.bf16 %v15471_v3  ;;  %v15472_v50 = vunpack.i.l.bf16 %v15471_v3  ;;  %v15478_v33 = vunpack.i.h.bf16 %v15476_v20  ;;  %v12335_v55 = vld [vmem:[%s19595_s5 + $0xd8] sm:$0xff] }
 0xabb   : > { %14165 = vmatpush3.bf16.msra.mxu1 %v14164_v37  ;;  %13495 = vmatprep.mubr.msk.f32.mxu1 %vm15771_vm2, %v19626_v30  ;;  %v15477_v58 = vunpack.i.l.bf16 %v15476_v20 }
 0xabc   : > { %14166 = vmatprep.subr.bf16.mxu1 %v19647_v43  ;;  %v14173_v26 = vpack.c.bf16 %v15473_v60, %v15472_v50 }
 0xabd   : > { %11079 = vrot.lane.b32.xlu1 %v18876_v10, %s15786_s28  ;;  %v12316_v10 = vld [vmem:[%s19595_s5 + $0x90] sm:$0xff]  ;;  %v9441_v29 = vpop.permute.xlu1 %9440  ;;  %v15481_v53 = vpop.permute.xlu0 %15480  ;;  %v14176_v44 = vpack.c.bf16 %v15478_v33, %v15477_v58 }
 0xabe   : > { %13496 = vmatmul.mubr.msk.f32.gmra.mrb[48].mxu1 %vm8845_vm7, %v12314_v17  ;;  %v15483_v12 = vunpack.i.h.bf16 %v15481_v53  ;;  %v15482_v48 = vunpack.i.l.bf16 %v15481_v53  ;;  %v12336_v17 = vld [vmem:[%s19595_s5 + $0xe0] sm:$0xff]  ;;  %v12343_v33 = vld [vmem:[%s19595_s5 + $0xf0] sm:$0xff]  ;;  %v12344_v53 = vld [vmem:[%s19595_s5 + $0xf8] sm:$0xff] }
 0xabf   : > { %14168 = vmatpush3.bf16.msra.mxu1 %v14167_v24  ;;  %13498 = vmatprep.mubr.msk.f32.mxu1 %vm15771_vm2, %v19626_v30 }
 0xac0   : > { %14169 = vmatprep.subr.bf16.mxu1 %v19647_v43  ;;  %v14179_v22 = vpack.c.bf16 %v15483_v12, %v15482_v48 }
 0xac1   : > { %v15486_v39 = vpop.permute.xlu1 %15485  ;;  %v15491_v7 = vpop.permute.xlu0 %15490 }
 0xac2   : > { %13499 = vmatmul.mubr.msk.f32.gmra.mrb[50].mxu1 %vm8845_vm7, %v12315_v13  ;;  %v15488_v5 = vunpack.i.h.bf16 %v15486_v39  ;;  %v15487_v1 = vunpack.i.l.bf16 %v15486_v39  ;;  %v15493_v28 = vunpack.i.h.bf16 %v15491_v7  ;;  %v15492_v36 = vunpack.i.l.bf16 %v15491_v7  ;;  %v12337_v13 = vld [vmem:[%s19595_s5 + $0xe8] sm:$0x3] }
 0xac3   : > { %14171 = vmatpush3.bf16.msra.mxu1 %v14170_v59  ;;  %13501 = vmatprep.mubr.msk.f32.mxu1 %vm15771_vm2, %v19626_v30 }
 0xac4   : > { %14172 = vmatprep.subr.bf16.mxu1 %v19647_v43  ;;  %v14182_v35 = vpack.c.bf16 %v15488_v5, %v15487_v1  ;;  %v14185_v63 = vpack.c.bf16 %v15493_v28, %v15492_v36 }
 0xac5   : > { %v15496_v0 = vpop.permute.xlu1 %15495  ;;  %v15501_v61 = vpop.permute.xlu0 %15500 }
 0xac6   : > { %13502 = vmatmul.mubr.msk.f32.gmra.mrb[52].mxu1 %vm8845_vm7, %v12316_v10  ;;  %v15498_v40 = vunpack.i.h.bf16 %v15496_v0  ;;  %v15497_v32 = vunpack.i.l.bf16 %v15496_v0  ;;  %v15503_v47 = vunpack.i.h.bf16 %v15501_v61  ;;  %v15502_v23 = vunpack.i.l.bf16 %v15501_v61 }
 0xac7   : > { %14174 = vmatpush3.bf16.msra.mxu1 %v14173_v26  ;;  %13504 = vmatprep.mubr.msk.f32.mxu1 %vm15771_vm2, %v19626_v30 }
 0xac8   : > { %14175 = vmatprep.subr.bf16.mxu1 %v19647_v43  ;;  %v14188_v34 = vpack.c.bf16 %v15498_v40, %v15497_v32  ;;  %v14191_v14 = vpack.c.bf16 %v15503_v47, %v15502_v23  ;;  %v12353_v47 = vld [vmem:[%s19595_s5 + $0x118] sm:$0xff] }
 0xac9   : > { %v9590_v42 = vpop.permute.xlu1 %9589  ;;  %v15506_v11 = vpop.permute.xlu0 %15505 }
 0xaca   : > { %13505 = vmatmul.mubr.msk.f32.gmra.mrb[54].mxu1 %vm8845_vm7, %v12317_v38  ;;  %v15508_v46 = vunpack.i.h.bf16 %v15506_v11  ;;  %v15507_v4 = vunpack.i.l.bf16 %v15506_v11  ;;  %v12354_v11 = vld [vmem:[%s19595_s5 + $0x120] sm:$0xff] }
 0xacb   : > { %14177 = vmatpush3.bf16.msra.mxu1 %v14176_v44  ;;  %13529 = vmatprep.mubr.msk.f32.mxu1 %vm15771_vm2, %v19626_v30 }
 0xacc   : > { %13527 = vmatprep.subr.mxu1 %v19626_v30  ;;  %v14194_v45 = vpack.c.bf16 %v15508_v46, %v15507_v4 }
 0xacd   : > { %v15511_v62 = vpop.permute.xlu1 %15510  ;;  %v15516_v18 = vpop.permute.xlu0 %15515 }
 0xace   : > { %v15513_v51 = vunpack.i.h.bf16 %v15511_v62  ;;  %v15512_v27 = vunpack.i.l.bf16 %v15511_v62  ;;  %v15518_v2 = vunpack.i.h.bf16 %v15516_v18  ;;  %v15517_v8 = vunpack.i.l.bf16 %v15516_v18 }
 0xacf   : > { %13528 = vmatpush3.msra.mxu1 %v9441_v29 }
 0xad0   : > { %14178 = vmatprep.subr.bf16.mxu1 %v19647_v43  ;;  %13530 = vmatmul.mubr.msk.f32.vlgmr.msra.gmra.mrb[46].mxu1 %vm8845_vm7, %v12323_v25  ;;  %v14197_v21 = vpack.c.bf16 %v15513_v51, %v15512_v27  ;;  %v14200_v37 = vpack.c.bf16 %v15518_v2, %v15517_v8  ;;  %v12345_v25 = vld [vmem:[%s19595_s5 + $0x100] sm:$0xff] }
 0xad1   : > { %14180 = vmatpush3.bf16.msra.mxu1 %v14179_v22  ;;  %13532 = vmatprep.mubr.msk.f32.mxu1 %vm15771_vm2, %v19626_v30  ;;  %v15521_v54 = vpop.permute.xlu1 %15520  ;;  %v15526_v16 = vpop.permute.xlu0 %15525 }
 0xad2   : > { %14181 = vmatprep.subr.bf16.mxu1 %v19647_v43  ;;  %v15523_v52 = vunpack.i.h.bf16 %v15521_v54  ;;  %v15522_v15 = vunpack.i.l.bf16 %v15521_v54  ;;  %v15528_v6 = vunpack.i.h.bf16 %v15526_v16  ;;  %v15527_v19 = vunpack.i.l.bf16 %v15526_v16 }
 0xad4   : > { %13533 = vmatmul.mubr.msk.f32.gmra.mrb[48].mxu1 %vm8845_vm7, %v12324_v41  ;;  %v14203_v24 = vpack.c.bf16 %v15523_v52, %v15522_v15  ;;  %v14206_v60 = vpack.c.bf16 %v15528_v6, %v15527_v19  ;;  %v12346_v41 = vld [vmem:[%s19595_s5 + $0x108] sm:$0xff]  ;;  %v12363_v6 = vld [vmem:[%s19595_s5 + $0x140] sm:$0xff] }
 0xad5   : > { %14183 = vmatpush3.bf16.msra.mxu1 %v14182_v35  ;;  %13535 = vmatprep.mubr.msk.f32.mxu1 %vm15771_vm2, %v19626_v30  ;;  %v9739_v3 = vpop.permute.xlu1 %9738  ;;  %v15531_v59 = vpop.permute.xlu0 %15530 }
 0xad6   : > { %14184 = vmatprep.subr.bf16.mxu1 %v19647_v43  ;;  %v15533_v50 = vunpack.i.h.bf16 %v15531_v59  ;;  %v15532_v20 = vunpack.i.l.bf16 %v15531_v59  ;;  %v12364_v59 = vld [vmem:[%s19595_s5 + $0x148] sm:$0xff] }
 0xad8   : > { %13536 = vmatmul.mubr.msk.f32.gmra.mrb[50].mxu1 %vm8845_vm7, %v12325_v49  ;;  %v14209_v58 = vpack.c.bf16 %v15533_v50, %v15532_v20  ;;  %v12347_v49 = vld [vmem:[%s19595_s5 + $0x110] sm:$0x3] }
 0xad9   : > { %14186 = vmatpush3.bf16.msra.mxu1 %v14185_v63  ;;  %13538 = vmatprep.mubr.msk.f32.mxu1 %vm15771_vm2, %v19626_v30  ;;  %v15536_v10 = vpop.permute.xlu1 %15535  ;;  %v15541_v38 = vpop.permute.xlu0 %15540 }
 0xada   : > { %14187 = vmatprep.subr.bf16.mxu1 %v19647_v43  ;;  %v15538_v26 = vunpack.i.h.bf16 %v15536_v10  ;;  %v15537_v29 = vunpack.i.l.bf16 %v15536_v10  ;;  %v15543_v44 = vunpack.i.h.bf16 %v15541_v38  ;;  %v15542_v12 = vunpack.i.l.bf16 %v15541_v38 }
 0xadc   : > { %13539 = vmatmul.mubr.msk.f32.gmra.mrb[52].mxu1 %vm8845_vm7, %v12326_v9  ;;  %v14212_v48 = vpack.c.bf16 %v15538_v26, %v15537_v29  ;;  %v14215_v22 = vpack.c.bf16 %v15543_v44, %v15542_v12 }
 0xadd   : > { %14189 = vmatpush3.bf16.msra.mxu1 %v14188_v34  ;;  %13541 = vmatprep.mubr.msk.f32.mxu1 %vm15771_vm2, %v19626_v30  ;;  %v15546_v39 = vpop.permute.xlu1 %15545  ;;  %v15551_v7 = vpop.permute.xlu0 %15550 }
 0xade   : > { %14190 = vmatprep.subr.bf16.mxu1 %v19647_v43  ;;  %v15548_v5 = vunpack.i.h.bf16 %v15546_v39  ;;  %v15547_v1 = vunpack.i.l.bf16 %v15546_v39  ;;  %v15553_v28 = vunpack.i.h.bf16 %v15551_v7  ;;  %v15552_v36 = vunpack.i.l.bf16 %v15551_v7 }
 0xae0   : > { %13542 = vmatmul.mubr.msk.f32.gmra.mrb[54].mxu1 %vm8845_vm7, %v12327_v31  ;;  %v14218_v35 = vpack.c.bf16 %v15548_v5, %v15547_v1  ;;  %v14221_v40 = vpack.c.bf16 %v15553_v28, %v15552_v36  ;;  %v12373_v28 = vld [vmem:[%s19595_s5 + $0x168] sm:$0xff] }
 0xae1   : > { %14192 = vmatpush3.bf16.msra.mxu1 %v14191_v14  ;;  %13566 = vmatprep.mubr.msk.f32.mxu1 %vm15771_vm2, %v19626_v30  ;;  %v9888_v0 = vpop.permute.xlu1 %9887  ;;  %v15556_v63 = vpop.permute.xlu0 %15555 }
 0xae2   : > { %13564 = vmatprep.subr.mxu1 %v19626_v30  ;;  %v15558_v32 = vunpack.i.h.bf16 %v15556_v63  ;;  %v15557_v61 = vunpack.i.l.bf16 %v15556_v63  ;;  %v12374_v63 = vld [vmem:[%s19595_s5 + $0x170] sm:$0xff] }
 0xae4   : > { %v14224_v23 = vpack.c.bf16 %v15558_v32, %v15557_v61 }
 0xae5   : > { %13565 = vmatpush3.msra.mxu1 %v9590_v42  ;;  %v15561_v9 = vpop.permute.xlu1 %15560  ;;  %v15566_v31 = vpop.permute.xlu0 %15565 }
 0xae6   : > { %14193 = vmatprep.subr.bf16.mxu1 %v19647_v43  ;;  %13567 = vmatmul.mubr.msk.f32.vlgmr.msra.gmra.mrb[46].mxu1 %vm8845_vm7, %v12333_v57  ;;  %v15563_v34 = vunpack.i.h.bf16 %v15561_v9  ;;  %v15562_v42 = vunpack.i.l.bf16 %v15561_v9  ;;  %v15568_v14 = vunpack.i.h.bf16 %v15566_v31  ;;  %v15567_v46 = vunpack.i.l.bf16 %v15566_v31  ;;  %v12355_v57 = vld [vmem:[%s19595_s5 + $0x128] sm:$0xff] }
 0xae7   : > { %14195 = vmatpush3.bf16.msra.mxu1 %v14194_v45  ;;  %13569 = vmatprep.mubr.msk.f32.mxu1 %vm15771_vm2, %v19626_v30 }
 0xae8   : > { %14196 = vmatprep.subr.bf16.mxu1 %v19647_v43  ;;  %v14227_v4 = vpack.c.bf16 %v15563_v34, %v15562_v42  ;;  %v14230_v45 = vpack.c.bf16 %v15568_v14, %v15567_v46 }
 0xae9   : > { %v15571_v62 = vpop.permute.xlu1 %15570  ;;  %v15576_v18 = vpop.permute.xlu0 %15575 }
 0xaea   : > { %13570 = vmatmul.mubr.msk.f32.gmra.mrb[48].mxu1 %vm8845_vm7, %v12334_v56  ;;  %v15573_v51 = vunpack.i.h.bf16 %v15571_v62  ;;  %v15572_v27 = vunpack.i.l.bf16 %v15571_v62  ;;  %v12356_v56 = vld [vmem:[%s19595_s5 + $0x130] sm:$0xff]  ;;  %v15578_v2 = vunpack.i.h.bf16 %v15576_v18  ;;  %v15577_v8 = vunpack.i.l.bf16 %v15576_v18 }
 0xaeb   : > { %14198 = vmatpush3.bf16.msra.mxu1 %v14197_v21  ;;  %13572 = vmatprep.mubr.msk.f32.mxu1 %vm15771_vm2, %v19626_v30 }
 0xaec   : > { %14199 = vmatprep.subr.bf16.mxu1 %v19647_v43  ;;  %v14233_v21 = vpack.c.bf16 %v15573_v51, %v15572_v27  ;;  %v14236_v52 = vpack.c.bf16 %v15578_v2, %v15577_v8  ;;  %v12383_v2 = vld [vmem:[%s19595_s5 + $0x190] sm:$0xff] }
 0xaed   : > { %v10037_v54 = vpop.permute.xlu1 %10036 }
 0xaee   : > { %13573 = vmatmul.mubr.msk.f32.gmra.mrb[50].mxu1 %vm8845_vm7, %v12335_v55  ;;  %v12357_v55 = vld [vmem:[%s19595_s5 + $0x138] sm:$0x3] }
 0xaef   : > { %14201 = vmatpush3.bf16.msra.mxu1 %v14200_v37  ;;  %13575 = vmatprep.mubr.msk.f32.mxu1 %vm15771_vm2, %v19626_v30  ;;  %v15581_v37 = vpop.permute.xlu0 %15580 }
 0xaf0   : > { %14202 = vmatprep.subr.bf16.mxu1 %v19647_v43  ;;  %v15583_v15 = vunpack.i.h.bf16 %v15581_v37  ;;  %v15582_v16 = vunpack.i.l.bf16 %v15581_v37  ;;  %v12384_v37 = vld [vmem:[%s19595_s5 + $0x198] sm:$0xff] }
 0xaf2   : > { %13576 = vmatmul.mubr.msk.f32.gmra.mrb[52].mxu1 %vm8845_vm7, %v12336_v17  ;;  %v15586_v17 = vpop.permute.xlu1 %15585  ;;  %v14239_v19 = vpack.c.bf16 %v15583_v15, %v15582_v16 }
 0xaf3   : > { %14204 = vmatpush3.bf16.msra.mxu1 %v14203_v24  ;;  %13578 = vmatprep.mubr.msk.f32.mxu1 %vm15771_vm2, %v19626_v30  ;;  %v15588_v24 = vunpack.i.h.bf16 %v15586_v17 }
 0xaf4   : > { %14205 = vmatprep.subr.bf16.mxu1 %v19647_v43 }
 0xaf6   : > { %13579 = vmatmul.mubr.msk.f32.gmra.mrb[54].mxu1 %vm8845_vm7, %v12337_v13  ;;  %v15591_v13 = vpop.permute.xlu0 %15590  ;;  %v15596_v10 = vpop.permute.xlu1 %15595 }
 0xaf7   : > { %14207 = vmatpush3.bf16.msra.mxu1 %v14206_v60  ;;  %13603 = vmatprep.mubr.msk.f32.mxu1 %vm15771_vm2, %v19626_v30  ;;  %v15593_v60 = vunpack.i.h.bf16 %v15591_v13  ;;  %v15592_v50 = vunpack.i.l.bf16 %v15591_v13  ;;  %v15598_v26 = vunpack.i.h.bf16 %v15596_v10  ;;  %v15597_v29 = vunpack.i.l.bf16 %v15596_v10 }
 0xaf8   : > { %13601 = vmatprep.subr.mxu1 %v19626_v30 }
 0xafa   : > { %v15601_v38 = vpop.permute.xlu0 %15600  ;;  %v10186_v39 = vpop.permute.xlu1 %10185 }
 0xafb   : > { %13602 = vmatpush3.msra.mxu1 %v9739_v3  ;;  %v15587_v3 = vunpack.i.l.bf16 %v15586_v17  ;;  %v15603_v44 = vunpack.i.h.bf16 %v15601_v38  ;;  %v15602_v12 = vunpack.i.l.bf16 %v15601_v38 }
 0xafc   : > { %14208 = vmatprep.subr.bf16.mxu1 %v19647_v43  ;;  %13604 = vmatmul.mubr.msk.f32.vlgmr.msra.gmra.mrb[46].mxu1 %vm8845_vm7, %v12343_v33  ;;  %v12365_v33 = vld [vmem:[%s19595_s5 + $0x150] sm:$0xff] }
 0xafd   : > { %14210 = vmatpush3.bf16.msra.mxu1 %v14209_v58  ;;  %13606 = vmatprep.mubr.msk.f32.mxu1 %vm15771_vm2, %v19626_v30  ;;  %v14242_v20 = vpack.c.bf16 %v15588_v24, %v15587_v3  ;;  %v14245_v58 = vpack.c.bf16 %v15593_v60, %v15592_v50  ;;  %v14251_v5 = vpack.c.bf16 %v15603_v44, %v15602_v12  ;;  %v12393_v44 = vld [vmem:[%s19595_s5 + $0x1b8] sm:$0xff] }
 0xafe   : > { %14211 = vmatprep.subr.bf16.mxu1 %v19647_v43 }
 0xb00   : > { %13607 = vmatmul.mubr.msk.f32.gmra.mrb[48].mxu1 %vm8845_vm7, %v12344_v53  ;;  %v12366_v53 = vld [vmem:[%s19595_s5 + $0x158] sm:$0xff] }
 0xb01   : > { %14213 = vmatpush3.bf16.msra.mxu1 %v14212_v48  ;;  %13609 = vmatprep.mubr.msk.f32.mxu1 %vm15771_vm2, %v19626_v30  ;;  %v14248_v48 = vpack.c.bf16 %v15598_v26, %v15597_v29 }
 0xb02   : > { %14214 = vmatprep.subr.bf16.mxu1 %v19647_v43 }
 0xb04   : > { %13610 = vmatmul.mubr.msk.f32.gmra.mrb[50].mxu1 %vm8845_vm7, %v12345_v25  ;;  %v12367_v25 = vld [vmem:[%s19595_s5 + $0x160] sm:$0x3] }
 0xb05   : > { %14216 = vmatpush3.bf16.msra.mxu1 %v14215_v22  ;;  %13612 = vmatprep.mubr.msk.f32.mxu1 %vm15771_vm2, %v19626_v30  ;;  %v15606_v22 = vpop.permute.xlu0 %15605 }
 0xb06   : > { %14217 = vmatprep.subr.bf16.mxu1 %v19647_v43  ;;  %v15608_v1 = vunpack.i.h.bf16 %v15606_v22  ;;  %v15607_v7 = vunpack.i.l.bf16 %v15606_v22  ;;  %v12394_v22 = vld [vmem:[%s19595_s5 + $0x1c0] sm:$0xff] }
 0xb08   : > { %13613 = vmatmul.mubr.msk.f32.gmra.mrb[52].mxu1 %vm8845_vm7, %v12346_v41  ;;  %v15611_v41 = vpop.permute.xlu1 %15610  ;;  %v14254_v36 = vpack.c.bf16 %v15608_v1, %v15607_v7 }
 0xb09   : > { %14219 = vmatpush3.bf16.msra.mxu1 %v14218_v35  ;;  %13615 = vmatprep.mubr.msk.f32.mxu1 %vm15771_vm2, %v19626_v30  ;;  %v15613_v35 = vunpack.i.h.bf16 %v15611_v41 }
 0xb0a   : > { %14220 = vmatprep.subr.bf16.mxu1 %v19647_v43 }
 0xb0c   : > { %13616 = vmatmul.mubr.msk.f32.gmra.mrb[54].mxu1 %vm8845_vm7, %v12347_v49  ;;  %v15616_v49 = vpop.permute.xlu0 %15615  ;;  %v15621_v9 = vpop.permute.xlu1 %15620 }
 0xb0d   : > { %14222 = vmatpush3.bf16.msra.mxu1 %v14221_v40  ;;  %13640 = vmatprep.mubr.msk.f32.mxu1 %vm15771_vm2, %v19626_v30  ;;  %v15618_v40 = vunpack.i.h.bf16 %v15616_v49  ;;  %v15617_v32 = vunpack.i.l.bf16 %v15616_v49  ;;  %v15623_v34 = vunpack.i.h.bf16 %v15621_v9  ;;  %v15622_v42 = vunpack.i.l.bf16 %v15621_v9 }
 0xb0e   : > { %13638 = vmatprep.subr.mxu1 %v19626_v30 }
 0xb10   : > { %v15626_v31 = vpop.permute.xlu0 %15625  ;;  %v10335_v62 = vpop.permute.xlu1 %10334 }
 0xb11   : > { %13639 = vmatpush3.msra.mxu1 %v9888_v0  ;;  %v15612_v0 = vunpack.i.l.bf16 %v15611_v41  ;;  %v15628_v14 = vunpack.i.h.bf16 %v15626_v31  ;;  %v15627_v46 = vunpack.i.l.bf16 %v15626_v31 }
 0xb12   : > { %14223 = vmatprep.subr.bf16.mxu1 %v19647_v43  ;;  %13641 = vmatmul.mubr.msk.f32.vlgmr.msra.gmra.mrb[46].mxu1 %vm8845_vm7, %v12353_v47  ;;  %v12375_v47 = vld [vmem:[%s19595_s5 + $0x178] sm:$0xff] }
 0xb13   : > { %14225 = vmatpush3.bf16.msra.mxu1 %v14224_v23  ;;  %13643 = vmatprep.mubr.msk.f32.mxu1 %vm15771_vm2, %v19626_v30  ;;  %v14257_v61 = vpack.c.bf16 %v15613_v35, %v15612_v0  ;;  %v14260_v23 = vpack.c.bf16 %v15618_v40, %v15617_v32  ;;  %v14266_v51 = vpack.c.bf16 %v15628_v14, %v15627_v46  ;;  %v12403_v14 = vld [vmem:[%s19595_s5 + $0x1e0] sm:$0xff] }
 0xb14   : > { %14226 = vmatprep.subr.bf16.mxu1 %v19647_v43 }
 0xb16   : > { %13644 = vmatmul.mubr.msk.f32.gmra.mrb[48].mxu1 %vm8845_vm7, %v12354_v11  ;;  %v12376_v11 = vld [vmem:[%s19595_s5 + $0x180] sm:$0xff] }
 0xb17   : > { %14228 = vmatpush3.bf16.msra.mxu1 %v14227_v4  ;;  %13646 = vmatprep.mubr.msk.f32.mxu1 %vm15771_vm2, %v19626_v30  ;;  %v14263_v4 = vpack.c.bf16 %v15623_v34, %v15622_v42 }
 0xb18   : > { %14229 = vmatprep.subr.bf16.mxu1 %v19647_v43 }
 0xb1a   : > { %13647 = vmatmul.mubr.msk.f32.gmra.mrb[50].mxu1 %vm8845_vm7, %v12355_v57  ;;  %v12377_v57 = vld [vmem:[%s19595_s5 + $0x188] sm:$0x3] }
 0xb1b   : > { %14231 = vmatpush3.bf16.msra.mxu1 %v14230_v45  ;;  %13649 = vmatprep.mubr.msk.f32.mxu1 %vm15771_vm2, %v19626_v30  ;;  %v15631_v45 = vpop.permute.xlu0 %15630 }
 0xb1c   : > { %14232 = vmatprep.subr.bf16.mxu1 %v19647_v43  ;;  %v15633_v27 = vunpack.i.h.bf16 %v15631_v45  ;;  %v15632_v18 = vunpack.i.l.bf16 %v15631_v45  ;;  %v12404_v45 = vld [vmem:[%s19595_s5 + $0x1e8] sm:$0xff] }
 0xb1e   : > { %13650 = vmatmul.mubr.msk.f32.gmra.mrb[52].mxu1 %vm8845_vm7, %v12356_v56  ;;  %v15636_v56 = vpop.permute.xlu1 %15635  ;;  %v14269_v8 = vpack.c.bf16 %v15633_v27, %v15632_v18 }
 0xb1f   : > { %14234 = vmatpush3.bf16.msra.mxu1 %v14233_v21  ;;  %13652 = vmatprep.mubr.msk.f32.mxu1 %vm15771_vm2, %v19626_v30  ;;  %v15638_v21 = vunpack.i.h.bf16 %v15636_v56 }
 0xb20   : > { %14235 = vmatprep.subr.bf16.mxu1 %v19647_v43 }
 0xb22   : > { %13653 = vmatmul.mubr.msk.f32.gmra.mrb[54].mxu1 %vm8845_vm7, %v12357_v55  ;;  %v15641_v55 = vpop.permute.xlu0 %15640  ;;  %v15646_v17 = vpop.permute.xlu1 %15645 }
 0xb23   : > { %14237 = vmatpush3.bf16.msra.mxu1 %v14236_v52  ;;  %13677 = vmatprep.mubr.msk.f32.mxu1 %vm15771_vm2, %v19626_v30  ;;  %v15643_v52 = vunpack.i.h.bf16 %v15641_v55  ;;  %v15642_v15 = vunpack.i.l.bf16 %v15641_v55  ;;  %v15648_v24 = vunpack.i.h.bf16 %v15646_v17  ;;  %v15647_v3 = vunpack.i.l.bf16 %v15646_v17 }
 0xb24   : > { %13675 = vmatprep.subr.mxu1 %v19626_v30 }
 0xb26   : > { %v15651_v13 = vpop.permute.xlu0 %15650  ;;  %v10484_v10 = vpop.permute.xlu1 %10483 }
 0xb27   : > { %13676 = vmatpush3.msra.mxu1 %v10037_v54  ;;  %v15637_v54 = vunpack.i.l.bf16 %v15636_v56  ;;  %v15653_v60 = vunpack.i.h.bf16 %v15651_v13  ;;  %v15652_v50 = vunpack.i.l.bf16 %v15651_v13 }
 0xb28   : > { %14238 = vmatprep.subr.bf16.mxu1 %v19647_v43  ;;  %13678 = vmatmul.mubr.msk.f32.vlgmr.msra.gmra.mrb[46].mxu1 %vm8845_vm7, %v12363_v6  ;;  %v12385_v6 = vld [vmem:[%s19595_s5 + $0x1a0] sm:$0xff] }
 0xb29   : > { %14240 = vmatpush3.bf16.msra.mxu1 %v14239_v19  ;;  %13680 = vmatprep.mubr.msk.f32.mxu1 %vm15771_vm2, %v19626_v30  ;;  %v14272_v16 = vpack.c.bf16 %v15638_v21, %v15637_v54  ;;  %v14275_v19 = vpack.c.bf16 %v15643_v52, %v15642_v15  ;;  %v14281_v26 = vpack.c.bf16 %v15653_v60, %v15652_v50  ;;  %v12413_v60 = vld [vmem:[%s19595_s5 + $0x208] sm:$0xff] }
 0xb2a   : > { %14241 = vmatprep.subr.bf16.mxu1 %v19647_v43 }
 0xb2c   : > { %13681 = vmatmul.mubr.msk.f32.gmra.mrb[48].mxu1 %vm8845_vm7, %v12364_v59  ;;  %v12386_v59 = vld [vmem:[%s19595_s5 + $0x1a8] sm:$0xff] }
 0xb2d   : > { %14243 = vmatpush3.bf16.msra.mxu1 %v14242_v20  ;;  %13683 = vmatprep.mubr.msk.f32.mxu1 %vm15771_vm2, %v19626_v30  ;;  %v14278_v20 = vpack.c.bf16 %v15648_v24, %v15647_v3 }
 0xb2e   : > { %14244 = vmatprep.subr.bf16.mxu1 %v19647_v43 }
 0xb30   : > { %13684 = vmatmul.mubr.msk.f32.gmra.mrb[50].mxu1 %vm8845_vm7, %v12365_v33  ;;  %v12387_v33 = vld [vmem:[%s19595_s5 + $0x1b0] sm:$0x3] }
 0xb31   : > { %14246 = vmatpush3.bf16.msra.mxu1 %v14245_v58  ;;  %13686 = vmatprep.mubr.msk.f32.mxu1 %vm15771_vm2, %v19626_v30  ;;  %v15656_v58 = vpop.permute.xlu0 %15655 }
 0xb32   : > { %14247 = vmatprep.subr.bf16.mxu1 %v19647_v43  ;;  %v15658_v29 = vunpack.i.h.bf16 %v15656_v58  ;;  %v15657_v38 = vunpack.i.l.bf16 %v15656_v58  ;;  %v12414_v58 = vld [vmem:[%s19595_s5 + $0x210] sm:$0xff] }
 0xb34   : > { %13687 = vmatmul.mubr.msk.f32.gmra.mrb[52].mxu1 %vm8845_vm7, %v12366_v53  ;;  %v15661_v53 = vpop.permute.xlu1 %15660  ;;  %v14284_v12 = vpack.c.bf16 %v15658_v29, %v15657_v38 }
 0xb35   : > { %14249 = vmatpush3.bf16.msra.mxu1 %v14248_v48  ;;  %13689 = vmatprep.mubr.msk.f32.mxu1 %vm15771_vm2, %v19626_v30  ;;  %v15663_v48 = vunpack.i.h.bf16 %v15661_v53 }
 0xb36   : > { %14250 = vmatprep.subr.bf16.mxu1 %v19647_v43 }
 0xb38   : > { %13690 = vmatmul.mubr.msk.f32.gmra.mrb[54].mxu1 %vm8845_vm7, %v12367_v25  ;;  %v15666_v25 = vpop.permute.xlu0 %15665  ;;  %v15671_v41 = vpop.permute.xlu1 %15670 }
 0xb39   : > { %14252 = vmatpush3.bf16.msra.mxu1 %v14251_v5  ;;  %13714 = vmatprep.mubr.msk.f32.mxu1 %vm15771_vm2, %v19626_v30  ;;  %v15668_v5 = vunpack.i.h.bf16 %v15666_v25  ;;  %v15667_v1 = vunpack.i.l.bf16 %v15666_v25  ;;  %v15673_v35 = vunpack.i.h.bf16 %v15671_v41  ;;  %v15672_v0 = vunpack.i.l.bf16 %v15671_v41 }
 0xb3a   : > { %13712 = vmatprep.subr.mxu1 %v19626_v30 }
 0xb3c   : > { %v15676_v49 = vpop.permute.xlu0 %15675  ;;  %v10633_v9 = vpop.permute.xlu1 %10632 }
 0xb3d   : > { %13713 = vmatpush3.msra.mxu1 %v10186_v39  ;;  %v15662_v39 = vunpack.i.l.bf16 %v15661_v53  ;;  %v15678_v40 = vunpack.i.h.bf16 %v15676_v49  ;;  %v15677_v32 = vunpack.i.l.bf16 %v15676_v49 }
 0xb3e   : > { %14253 = vmatprep.subr.bf16.mxu1 %v19647_v43  ;;  %13715 = vmatmul.mubr.msk.f32.vlgmr.msra.gmra.mrb[46].mxu1 %vm8845_vm7, %v12373_v28  ;;  %v12395_v28 = vld [vmem:[%s19595_s5 + $0x1c8] sm:$0xff] }
 0xb3f   : > { %14255 = vmatpush3.bf16.msra.mxu1 %v14254_v36  ;;  %13717 = vmatprep.mubr.msk.f32.mxu1 %vm15771_vm2, %v19626_v30  ;;  %v14287_v7 = vpack.c.bf16 %v15663_v48, %v15662_v39  ;;  %v14290_v36 = vpack.c.bf16 %v15668_v5, %v15667_v1  ;;  %v14296_v34 = vpack.c.bf16 %v15678_v40, %v15677_v32  ;;  %v12423_v40 = vld [vmem:[%s19595_s5 + $0x230] sm:$0xff] }
 0xb40   : > { %14256 = vmatprep.subr.bf16.mxu1 %v19647_v43 }
 0xb42   : > { %13718 = vmatmul.mubr.msk.f32.gmra.mrb[48].mxu1 %vm8845_vm7, %v12374_v63  ;;  %v12396_v63 = vld [vmem:[%s19595_s5 + $0x1d0] sm:$0xff] }
 0xb43   : > { %14258 = vmatpush3.bf16.msra.mxu1 %v14257_v61  ;;  %13720 = vmatprep.mubr.msk.f32.mxu1 %vm15771_vm2, %v19626_v30  ;;  %v14293_v61 = vpack.c.bf16 %v15673_v35, %v15672_v0 }
 0xb44   : > { %14259 = vmatprep.subr.bf16.mxu1 %v19647_v43 }
 0xb46   : > { %13721 = vmatmul.mubr.msk.f32.gmra.mrb[50].mxu1 %vm8845_vm7, %v12375_v47  ;;  %v12397_v47 = vld [vmem:[%s19595_s5 + $0x1d8] sm:$0x3] }
 0xb47   : > { %14261 = vmatpush3.bf16.msra.mxu1 %v14260_v23  ;;  %13723 = vmatprep.mubr.msk.f32.mxu1 %vm15771_vm2, %v19626_v30  ;;  %v15681_v23 = vpop.permute.xlu0 %15680 }
 0xb48   : > { %14262 = vmatprep.subr.bf16.mxu1 %v19647_v43  ;;  %v15683_v42 = vunpack.i.h.bf16 %v15681_v23  ;;  %v15682_v31 = vunpack.i.l.bf16 %v15681_v23  ;;  %v12424_v23 = vld [vmem:[%s19595_s5 + $0x238] sm:$0xff] }
 0xb4a   : > { %13724 = vmatmul.mubr.msk.f32.gmra.mrb[52].mxu1 %vm8845_vm7, %v12376_v11  ;;  %v15686_v11 = vpop.permute.xlu1 %15685  ;;  %v14299_v46 = vpack.c.bf16 %v15683_v42, %v15682_v31 }
 0xb4b   : > { %14264 = vmatpush3.bf16.msra.mxu1 %v14263_v4  ;;  %13726 = vmatprep.mubr.msk.f32.mxu1 %vm15771_vm2, %v19626_v30  ;;  %v15688_v4 = vunpack.i.h.bf16 %v15686_v11 }
 0xb4c   : > { %14265 = vmatprep.subr.bf16.mxu1 %v19647_v43 }
 0xb4e   : > { %13727 = vmatmul.mubr.msk.f32.gmra.mrb[54].mxu1 %vm8845_vm7, %v12377_v57  ;;  %v15691_v57 = vpop.permute.xlu0 %15690  ;;  %v15696_v56 = vpop.permute.xlu1 %15695 }
 0xb4f   : > { %14267 = vmatpush3.bf16.msra.mxu1 %v14266_v51  ;;  %13751 = vmatprep.mubr.msk.f32.mxu1 %vm15771_vm2, %v19626_v30  ;;  %v15693_v51 = vunpack.i.h.bf16 %v15691_v57  ;;  %v15692_v27 = vunpack.i.l.bf16 %v15691_v57  ;;  %v15698_v21 = vunpack.i.h.bf16 %v15696_v56  ;;  %v15697_v54 = vunpack.i.l.bf16 %v15696_v56  ;;  %v12427_v56 = vld [vmem:[%s19595_s5 + $0x250] sm:$0x3] }
 0xb50   : > { %13749 = vmatprep.subr.mxu1 %v19626_v30 }
 0xb52   : > { %v15701_v55 = vpop.permute.xlu0 %15700  ;;  %v10782_v17 = vpop.permute.xlu1 %10781 }
 0xb53   : > { %13750 = vmatpush3.msra.mxu1 %v10335_v62  ;;  %v15687_v62 = vunpack.i.l.bf16 %v15686_v11  ;;  %v15703_v52 = vunpack.i.h.bf16 %v15701_v55  ;;  %v15702_v15 = vunpack.i.l.bf16 %v15701_v55  ;;  %v12435_v55 = vld [vmem:[%s19595_s5 + $0x268] sm:$0xff] }
 0xb54   : > { %14268 = vmatprep.subr.bf16.mxu1 %v19647_v43  ;;  %13752 = vmatmul.mubr.msk.f32.vlgmr.msra.gmra.mrb[46].mxu1 %vm8845_vm7, %v12383_v2  ;;  %v12405_v2 = vld [vmem:[%s19595_s5 + $0x1f0] sm:$0xff] }
 0xb55   : > { %14270 = vmatpush3.bf16.msra.mxu1 %v14269_v8  ;;  %13754 = vmatprep.mubr.msk.f32.mxu1 %vm15771_vm2, %v19626_v30  ;;  %v14302_v18 = vpack.c.bf16 %v15688_v4, %v15687_v62  ;;  %v14305_v8 = vpack.c.bf16 %v15693_v51, %v15692_v27  ;;  %v14311_v24 = vpack.c.bf16 %v15703_v52, %v15702_v15  ;;  %v12437_v52 = vld [vmem:[%s19595_s5 + $0x278] sm:$0x3]  ;;  %v8835_v15 = vld [vmem:[%s19596_s6] sm:$0xff] }
 0xb56   : > { %14271 = vmatprep.subr.bf16.mxu1 %v19647_v43 }
 0xb58   : > { %13755 = vmatmul.mubr.msk.f32.gmra.mrb[48].mxu1 %vm8845_vm7, %v12384_v37  ;;  %v12406_v37 = vld [vmem:[%s19595_s5 + $0x1f8] sm:$0xff] }
 0xb59   : > { %14273 = vmatpush3.bf16.msra.mxu1 %v14272_v16  ;;  %13757 = vmatprep.mubr.msk.f32.mxu1 %vm15771_vm2, %v19626_v30  ;;  %v14308_v16 = vpack.c.bf16 %v15698_v21, %v15697_v54  ;;  %v12434_v54 = vld [vmem:[%s19595_s5 + $0x260] sm:$0xff] }
 0xb5a   : > { %14274 = vmatprep.subr.bf16.mxu1 %v19647_v43 }
 0xb5c   : > { %13758 = vmatmul.mubr.msk.f32.gmra.mrb[50].mxu1 %vm8845_vm7, %v12385_v6  ;;  %v12407_v6 = vld [vmem:[%s19595_s5 + $0x200] sm:$0x3] }
 0xb5d   : > { %14276 = vmatpush3.bf16.msra.mxu1 %v14275_v19  ;;  %13760 = vmatprep.mubr.msk.f32.mxu1 %vm15771_vm2, %v19626_v30  ;;  %v15706_v19 = vpop.permute.xlu0 %15705 }
 0xb5e   : > { %14277 = vmatprep.subr.bf16.mxu1 %v19647_v43  ;;  %v15708_v3 = vunpack.i.h.bf16 %v15706_v19  ;;  %v15707_v13 = vunpack.i.l.bf16 %v15706_v19 }
 0xb60   : > { %13761 = vmatmul.mubr.msk.f32.gmra.mrb[52].mxu1 %vm8845_vm7, %v12386_v59  ;;  %v15711_v59 = vpop.permute.xlu1 %15710  ;;  %v14314_v50 = vpack.c.bf16 %v15708_v3, %v15707_v13 }
 0xb61   : > { %14279 = vmatpush3.bf16.msra.mxu1 %v14278_v20  ;;  %13763 = vmatprep.mubr.msk.f32.mxu1 %vm15771_vm2, %v19626_v30  ;;  %v15713_v20 = vunpack.i.h.bf16 %v15711_v59 }
 0xb62   : > { %14280 = vmatprep.subr.bf16.mxu1 %v19647_v43 }
 0xb64   : > { %13764 = vmatmul.mubr.msk.f32.gmra.mrb[54].mxu1 %vm8845_vm7, %v12387_v33  ;;  %v15716_v33 = vpop.permute.xlu0 %15715  ;;  %v15721_v53 = vpop.permute.xlu1 %15720 }
 0xb65   : > { %14282 = vmatpush3.bf16.msra.mxu1 %v14281_v26  ;;  %13788 = vmatprep.mubr.msk.f32.mxu1 %vm15771_vm2, %v19626_v30  ;;  %v15718_v26 = vunpack.i.h.bf16 %v15716_v33  ;;  %v15717_v29 = vunpack.i.l.bf16 %v15716_v33  ;;  %v15723_v48 = vunpack.i.h.bf16 %v15721_v53  ;;  %v15722_v39 = vunpack.i.l.bf16 %v15721_v53 }
 0xb66   : > { %13786 = vmatprep.subr.mxu1 %v19626_v30 }
 0xb68   : > { %v15726_v25 = vpop.permute.xlu0 %15725  ;;  %v10931_v41 = vpop.permute.xlu1 %10930 }
 0xb69   : > { %13787 = vmatpush3.msra.mxu1 %v10484_v10  ;;  %v15712_v10 = vunpack.i.l.bf16 %v15711_v59  ;;  %v15728_v5 = vunpack.i.h.bf16 %v15726_v25  ;;  %v15727_v1 = vunpack.i.l.bf16 %v15726_v25 }
 0xb6a   : > { %14283 = vmatprep.subr.bf16.mxu1 %v19647_v43  ;;  %13789 = vmatmul.mubr.msk.f32.vlgmr.msra.gmra.mrb[46].mxu1 %vm8845_vm7, %v12393_v44  ;;  %v12415_v44 = vld [vmem:[%s19595_s5 + $0x218] sm:$0xff] }
 0xb6b   : > { %14285 = vmatpush3.bf16.msra.mxu1 %v14284_v12  ;;  %13791 = vmatprep.mubr.msk.f32.mxu1 %vm15771_vm2, %v19626_v30  ;;  %v14317_v38 = vpack.c.bf16 %v15713_v20, %v15712_v10  ;;  %v14320_v12 = vpack.c.bf16 %v15718_v26, %v15717_v29  ;;  %v14326_v35 = vpack.c.bf16 %v15728_v5, %v15727_v1 }
 0xb6c   : > { %14286 = vmatprep.subr.bf16.mxu1 %v19647_v43 }
 0xb6e   : > { %13792 = vmatmul.mubr.msk.f32.gmra.mrb[48].mxu1 %vm8845_vm7, %v12394_v22  ;;  %v12416_v22 = vld [vmem:[%s19595_s5 + $0x220] sm:$0xff] }
 0xb6f   : > { %14288 = vmatpush3.bf16.msra.mxu1 %v14287_v7  ;;  %13794 = vmatprep.mubr.msk.f32.mxu1 %vm15771_vm2, %v19626_v30  ;;  %v14323_v7 = vpack.c.bf16 %v15723_v48, %v15722_v39 }
 0xb70   : > { %14289 = vmatprep.subr.bf16.mxu1 %v19647_v43 }
 0xb72   : > { %13795 = vmatmul.mubr.msk.f32.gmra.mrb[50].mxu1 %vm8845_vm7, %v12395_v28  ;;  %v12417_v28 = vld [vmem:[%s19595_s5 + $0x228] sm:$0x3] }
 0xb73   : > { %14291 = vmatpush3.bf16.msra.mxu1 %v14290_v36  ;;  %13797 = vmatprep.mubr.msk.f32.mxu1 %vm15771_vm2, %v19626_v30  ;;  %v15731_v36 = vpop.permute.xlu0 %15730 }
 0xb74   : > { %14292 = vmatprep.subr.bf16.mxu1 %v19647_v43  ;;  %v15733_v0 = vunpack.i.h.bf16 %v15731_v36  ;;  %v15732_v49 = vunpack.i.l.bf16 %v15731_v36 }
 0xb76   : > { %13798 = vmatmul.mubr.msk.f32.gmra.mrb[52].mxu1 %vm8845_vm7, %v12396_v63  ;;  %v15736_v63 = vpop.permute.xlu1 %15735  ;;  %v14329_v32 = vpack.c.bf16 %v15733_v0, %v15732_v49 }
 0xb77   : > { %14294 = vmatpush3.bf16.msra.mxu1 %v14293_v61  ;;  %13800 = vmatprep.mubr.msk.f32.mxu1 %vm15771_vm2, %v19626_v30  ;;  %v15738_v61 = vunpack.i.h.bf16 %v15736_v63 }
 0xb78   : > { %14295 = vmatprep.subr.bf16.mxu1 %v19647_v43 }
 0xb7a   : > { %13801 = vmatmul.mubr.msk.f32.gmra.mrb[54].mxu1 %vm8845_vm7, %v12397_v47  ;;  %v15741_v47 = vpop.permute.xlu0 %15740  ;;  %v15746_v11 = vpop.permute.xlu1 %15745 }
 0xb7b   : > { %14297 = vmatpush3.bf16.msra.mxu1 %v14296_v34  ;;  %13825 = vmatprep.mubr.msk.f32.mxu1 %vm15771_vm2, %v19626_v30  ;;  %v15743_v34 = vunpack.i.h.bf16 %v15741_v47  ;;  %v15742_v42 = vunpack.i.l.bf16 %v15741_v47  ;;  %v15748_v4 = vunpack.i.h.bf16 %v15746_v11  ;;  %v15747_v62 = vunpack.i.l.bf16 %v15746_v11 }
 0xb7c   : > { %13823 = vmatprep.subr.mxu1 %v19626_v30 }
 0xb7e   : > { %v15751_v57 = vpop.permute.xlu0 %15750  ;;  %v11080_v21 = vpop.permute.xlu1 %11079 }
 0xb7f   : > { %13824 = vmatpush3.msra.mxu1 %v10633_v9  ;;  %v15737_v9 = vunpack.i.l.bf16 %v15736_v63  ;;  %v15753_v51 = vunpack.i.h.bf16 %v15751_v57  ;;  %v15752_v27 = vunpack.i.l.bf16 %v15751_v57 }
 0xb80   : > { %14298 = vmatprep.subr.bf16.mxu1 %v19647_v43  ;;  %13826 = vmatmul.mubr.msk.f32.vlgmr.msra.gmra.mrb[46].mxu1 %vm8845_vm7, %v12403_v14  ;;  %v12425_v14 = vld [vmem:[%s19595_s5 + $0x240] sm:$0xff] }
 0xb81   : > { %14300 = vmatpush3.bf16.msra.mxu1 %v14299_v46  ;;  %13828 = vmatprep.mubr.msk.f32.mxu1 %vm15771_vm2, %v19626_v30  ;;  %v14332_v31 = vpack.c.bf16 %v15738_v61, %v15737_v9  ;;  %v14335_v46 = vpack.c.bf16 %v15743_v34, %v15742_v42 }
 0xb82   : > { %14301 = vmatprep.subr.bf16.mxu1 %v19647_v43 }
 0xb84   : > { %13829 = vmatmul.mubr.msk.f32.gmra.mrb[48].mxu1 %vm8845_vm7, %v12404_v45  ;;  %v12426_v45 = vld [vmem:[%s19595_s5 + $0x248] sm:$0xff] }
 0xb85   : > { %14303 = vmatpush3.bf16.msra.mxu1 %v14302_v18  ;;  %13831 = vmatprep.mubr.msk.f32.mxu1 %vm15771_vm2, %v19626_v30  ;;  %v14338_v18 = vpack.c.bf16 %v15748_v4, %v15747_v62 }
 0xb86   : > { %14304 = vmatprep.subr.bf16.mxu1 %v19647_v43 }
 0xb88   : > { %13832 = vmatmul.mubr.msk.f32.gmra.mrb[50].mxu1 %vm8845_vm7, %v12405_v2  ;;  %v14341_v2 = vpack.c.bf16 %v15753_v51, %v15752_v27 }
 0xb89   : > { %14306 = vmatpush3.bf16.msra.mxu1 %v14305_v8  ;;  %13834 = vmatprep.mubr.msk.f32.mxu1 %vm15771_vm2, %v19626_v30  ;;  %v12433_v8 = vld [vmem:[%s19595_s5 + $0x258] sm:$0xff] }
 0xb8a   : > { %14307 = vmatprep.subr.bf16.mxu1 %v19647_v43 }
 0xb8c   : > { %13835 = vmatmul.mubr.msk.f32.gmra.mrb[52].mxu1 %vm8845_vm7, %v12406_v37  ;;  %v12436_v37 = vld [vmem:[%s19595_s5 + $0x270] sm:$0xff] }
 0xb8d   : > { %14309 = vmatpush3.bf16.msra.mxu1 %v14308_v16  ;;  %13837 = vmatprep.mubr.msk.f32.mxu1 %vm15771_vm2, %v19626_v30 }
 0xb8e   : > { %14310 = vmatprep.subr.bf16.mxu1 %v19647_v43 }
 0xb90   : > { %13838 = vmatmul.mubr.msk.f32.gmra.mrb[54].mxu1 %vm8845_vm7, %v12407_v6  ;;  %v8836_v6 = vld [vmem:[%s19596_s6 + $0x8] sm:$0xff] }
 0xb91   : > { %14312 = vmatpush3.bf16.msra.mxu1 %v14311_v24  ;;  %13862 = vmatprep.mubr.msk.f32.mxu1 %vm15771_vm2, %v19626_v30 }
 0xb92   : > { %13860 = vmatprep.subr.mxu1 %v19626_v30 }
 0xb95   : > { %13861 = vmatpush3.msra.mxu1 %v10782_v17 }
 0xb96   : > { %14313 = vmatprep.subr.bf16.mxu1 %v19647_v43  ;;  %13863 = vmatmul.mubr.msk.f32.vlgmr.msra.gmra.mrb[46].mxu1 %vm8845_vm7, %v12413_v60 }
 0xb97   : > { %14315 = vmatpush3.bf16.msra.mxu1 %v14314_v50  ;;  %13865 = vmatprep.mubr.msk.f32.mxu1 %vm15771_vm2, %v19626_v30  ;;  %v8837_v50 = vld [vmem:[%s19596_s6 + $0x10] sm:$0xff] }
 0xb98   : > { %14316 = vmatprep.subr.bf16.mxu1 %v19647_v43 }
 0xb9a   : > { %13866 = vmatmul.mubr.msk.f32.gmra.mrb[48].mxu1 %vm8845_vm7, %v12414_v58  ;;  %v8838_v58 = vld [vmem:[%s19596_s6 + $0x18] sm:$0xff] }
 0xb9b   : > { %14318 = vmatpush3.bf16.msra.mxu1 %v14317_v38  ;;  %13868 = vmatprep.mubr.msk.f32.mxu1 %vm15771_vm2, %v19626_v30 }
 0xb9c   : > { %14319 = vmatprep.subr.bf16.mxu1 %v19647_v43 }
 0xb9e   : > { %13869 = vmatmul.mubr.msk.f32.gmra.mrb[50].mxu1 %vm8845_vm7, %v12415_v44  ;;  %v8839_v44 = vld [vmem:[%s19596_s6 + $0x20] sm:$0x3] }
 0xb9f   : > { %14321 = vmatpush3.bf16.msra.mxu1 %v14320_v12  ;;  %13871 = vmatprep.mubr.msk.f32.mxu1 %vm15771_vm2, %v19626_v30 }
 0xba0   : > { %14322 = vmatprep.subr.bf16.mxu1 %v19647_v43 }
 0xba2   : > { %13872 = vmatmul.mubr.msk.f32.gmra.mrb[52].mxu1 %vm8845_vm7, %v12416_v22 }
 0xba3   : > { %14324 = vmatpush3.bf16.msra.mxu1 %v14323_v7  ;;  %13874 = vmatprep.mubr.msk.f32.mxu1 %vm15771_vm2, %v19626_v30  ;;  %v11208_v7 = vld [vmem:[%s19598_s8] sm:$0x3] }
 0xba4   : > { %14325 = vmatprep.subr.bf16.mxu1 %v19647_v43 }
 0xba6   : > { %13875 = vmatmul.mubr.msk.f32.gmra.mrb[54].mxu1 %vm8845_vm7, %v12417_v28 }
 0xba7   : > { %14327 = vmatpush3.bf16.msra.mxu1 %v14326_v35  ;;  %13899 = vmatprep.mubr.msk.f32.mxu1 %vm15771_vm2, %v19626_v30 }
 0xba8   : > { %13897 = vmatprep.subr.mxu1 %v19626_v30 }
 0xbab   : > { %13898 = vmatpush3.msra.mxu1 %v10931_v41 }
 0xbac   : > { %14328 = vmatprep.subr.bf16.mxu1 %v19647_v43  ;;  %13900 = vmatmul.mubr.msk.f32.vlgmr.msra.gmra.mrb[46].mxu1 %vm8845_vm7, %v12423_v40 }
 0xbad   : > { %14330 = vmatpush3.bf16.msra.mxu1 %v14329_v32  ;;  %13902 = vmatprep.mubr.msk.f32.mxu1 %vm15771_vm2, %v19626_v30 }
 0xbae   : > { %14331 = vmatprep.subr.bf16.mxu1 %v19647_v43 }
 0xbb0   : > { %13903 = vmatmul.mubr.msk.f32.gmra.mrb[48].mxu1 %vm8845_vm7, %v12424_v23 }
 0xbb1   : > { %14333 = vmatpush3.bf16.msra.mxu1 %v14332_v31  ;;  %13905 = vmatprep.mubr.msk.f32.mxu1 %vm15771_vm2, %v19626_v30 }
 0xbb2   : > { %14334 = vmatprep.subr.bf16.mxu1 %v19647_v43 }
 0xbb4   : > { %13906 = vmatmul.mubr.msk.f32.gmra.mrb[50].mxu1 %vm8845_vm7, %v12425_v14 }
 0xbb5   : > { %14336 = vmatpush3.bf16.msra.mxu1 %v14335_v46  ;;  %13908 = vmatprep.mubr.msk.f32.mxu1 %vm15771_vm2, %v19626_v30 }
 0xbb6   : > { %14337 = vmatprep.subr.bf16.mxu1 %v19647_v43 }
 0xbb8   : > { %13909 = vmatmul.mubr.msk.f32.gmra.mrb[52].mxu1 %vm8845_vm7, %v12426_v45 }
 0xbb9   : > { %14339 = vmatpush3.bf16.msra.mxu1 %v14338_v18  ;;  %13911 = vmatprep.mubr.msk.f32.mxu1 %vm15771_vm2, %v19626_v30 }
 0xbba   : > { %14340 = vmatprep.subr.bf16.mxu1 %v19647_v43 }
 0xbbc   : > { %13912 = vmatmul.mubr.msk.f32.gmra.mrb[54].mxu1 %vm8845_vm7, %v12427_v56 }
 0xbbd   : > { %14342 = vmatpush3.bf16.msra.mxu1 %v14341_v2  ;;  %13936 = vmatprep.mubr.msk.f32.mxu1 %vm15771_vm2, %v19626_v30 }
 0xbbe   : > { %13934 = vmatprep.subr.mxu1 %v19626_v30 }
 0xbc1   : > { %13935 = vmatpush3.msra.mxu1 %v11080_v21 }
 0xbc2   : > { %13937 = vmatmul.mubr.msk.f32.vlgmr.msra.gmra.mrb[46].mxu1 %vm8845_vm7, %v12433_v8  ;;  %14343 = vmatprep.subr.bf16.mxu1 %v19647_v43 }
 0xbc3   : > { %13939 = vmatprep.mubr.msk.f32.mxu1 %vm15771_vm2, %v19626_v30 }
 0xbc6   : > { %13940 = vmatmul.mubr.msk.f32.gmra.mrb[48].mxu1 %vm8845_vm7, %v12434_v54 }
 0xbc7   : > { %13942 = vmatprep.mubr.msk.f32.mxu1 %vm15771_vm2, %v19626_v30 }
 0xbca   : > { %13943 = vmatmul.mubr.msk.f32.gmra.mrb[50].mxu1 %vm8845_vm7, %v12435_v55 }
 0xbcb   : > { %13945 = vmatprep.mubr.msk.f32.mxu1 %vm15771_vm2, %v19626_v30 }
 0xbce   : > { %13946 = vmatmul.mubr.msk.f32.gmra.mrb[52].mxu1 %vm8845_vm7, %v12436_v37 }
 0xbcf   : > { %13948 = vmatprep.mubr.msk.f32.mxu1 %vm15771_vm2, %v19626_v30 }
 0xbd2   : > { %13949 = vmatmul.mubr.msk.f32.gmra.mrb[54].mxu1 %vm8845_vm7, %v12437_v52 }
 0xbd3   : > { %13961 = vmatprep.mubr.msk.f32.mxu1 %vm15771_vm2, %v19626_v30 }
 0xc95   : > { %v11173_v16 = vpop.f32.mrb[46].mxu1 }
 0xc96   : > { %v13938_v17 = vpop.f32.mrb[47].mxu1  ;;  %v14377_v19 = vadd.f32 %v11173_v16, %v8835_v15 }
 0xc98   : > { %v11202_v59 = vmax.f32 %v14377_v19, 0.0 }
 0xc99   : > { %v11178_v24 = vpop.f32.mrb[48].mxu1 }
 0xc9a   : > { %v14378_v3 = vadd.f32 %v11178_v24, %v8836_v6  ;;  %v13941_v13 = vpop.f32.mrb[49].mxu1 }
 0xc9c   : > { %v11203_v60 = vmax.f32 %v14378_v3, 0.0 }
 0xc9d   : > { %v11183_v20 = vpop.f32.mrb[50].mxu1 }
 0xc9e   : > { %v14344_v10 = vpack.c.bf16 %v11203_v60, %v11202_v59  ;;  %v13944_v33 = vpop.f32.mrb[51].mxu1  ;;  %v14379_v26 = vadd.f32 %v11183_v20, %v8837_v50 }
 0xca0   : > { %14345 = vmatpush3.bf16.msra.mxu1 %v14344_v10  ;;  %v11204_v12 = vmax.f32 %v14379_v26, 0.0 }
 0xca1   : > { %v11188_v29 = vpop.f32.mrb[52].mxu1  ;;  %14346 = vmatprep.subr.bf16.mxu1 %v19647_v43  ;;  %v11207_v43 = vld [vmem:[%s19597_s7] sm:$0x3] }
 0xca2   : > { %v14380_v38 = vadd.f32 %v11188_v29, %v8838_v58  ;;  %v13947_v53 = vpop.f32.mrb[53].mxu1 }
 0xca4   : > { %v11205_v48 = vmax.f32 %v14380_v38, 0.0 }
 0xca5   : > { %v11193_v39 = vpop.f32.mrb[54].mxu1 }
 0xca6   : > { %v14347_v25 = vpack.c.bf16 %v11205_v48, %v11204_v12  ;;  %v14381_v22 = vadd.f32 %v11193_v39, %v8839_v44  ;;  %v13950_v5 = vpop.f32.mrb[55].mxu1 }
 0xca8   : > { %14348 = vmatpush3.bf16.msra.mxu1 %v14347_v25  ;;  %v11206_v1 = vmax.f32 %v14381_v22, 0.0 }
 0xca9   : > { %13959 = vmatprep.subr.mxu1 %v19626_v30 }
 0xcac   : > { %13960 = vmatpush3.msk.msra.mxu1 %vm11213_vm8, %v11206_v1 }
 0xcad   : > { %13962 = vmatmul.mubr.msk.f32.vlgmr.msra.gmra.mrb[56].mxu1 %vm11209_vm9, %v11207_v43 }
 0xd80   : > { %v11283_v41 = vpop.f32.mrb[56].mxu1 }
 0xd81   : > { %v11284_v30 = vadd.f32 %v11283_v41, %v11208_v7  ;;  %v13963_v28 = vpop.f32.mrb[57].mxu1 }
 0xd83   : > { %11288 = vst.msk [vmem:[%s330_s15] sm:$0x3] %vm11287_vm10, %v11284_v30 }
 0xd84 PF: > { %s19_s30 = sadd.s32 1, %s15763_s30  }
 0xd85   : > { %p16_p4 = scmp.ge.s32.totalorder %s19_s30, 4  }
 0xd87   :  { %18 = sbr.rel (!%p16_p4) target bundleno = 1 (0x1), region = 152 }

</bundles_post_ra>
